<compile_context>
chip_gen: v7x
topology: tpu7x:2x2x1
jax: 0.10.0
libtpu: 0.0.40
codegen_flags: <defaults>
</compile_context>

<pallas_src>
import functools

import jax
import jax.numpy as jnp
from jax.experimental import pallas as pl
from jax.experimental.pallas import tpu as pltpu

EPS = 1e-5


# ----------------------------------------------------------------------------
# helpers
# ----------------------------------------------------------------------------
def _vmem_limit_bytes():
    try:
        cap = pltpu.get_tpu_info().vmem_capacity_bytes
        return min(int(cap * 0.8), 100 * 1024 * 1024)     # ~100MB v5e/v6e, ~51MB v7x
    except Exception:
        return 48 * 1024 * 1024


def _full_spec(shape):
    nd = len(shape)
    return pl.BlockSpec(tuple(shape), lambda t, nd=nd: (0,) * nd)


def _batch_spec(rest, tile_n):
    nd = 1 + len(rest)
    return pl.BlockSpec((tile_n,) + tuple(rest), lambda t, nd=nd: (t,) + (0,) * (nd - 1))


def _bn_scale_bias(stats, gamma, beta, m):
    # tiny (C,)-sized finalize in glue; the heavy row reduction happened in-kernel
    s = jnp.sum(stats[:, 0, :], axis=0)
    q = jnp.sum(stats[:, 1, :], axis=0)
    mean = s / float(m)
    var = jnp.maximum(q / float(m) - mean * mean, 0.0)
    scale = gamma.astype(jnp.float32) * jax.lax.rsqrt(var + EPS)
    bias = beta.astype(jnp.float32) - mean * scale
    return jnp.stack([scale, bias], axis=0)                # (2, C)


def _conv_w_to_slab(w):
    # PyTorch (cout, cin, k, k) -> (k*k*cin, cout) bf16, row = (kh*k + kw)*cin + ci
    cout, cin, k, _ = w.shape
    return jnp.transpose(w, (2, 3, 1, 0)).reshape(k * k * cin, cout).astype(jnp.bfloat16)


def _depthwise_w_to_mat(w_ds, cin, cout):
    # grouped (groups=cin) 3x3 weight (cout,1,3,3) -> dense (9, cin, cout) bf16
    g = cout // cin
    taps = jnp.transpose(w_ds[:, 0], (1, 2, 0)).reshape(9, cout)                  # (9,cout)
    sel = ((jnp.arange(cout) // g)[None, :] == jnp.arange(cin)[:, None])          # (cin,cout)
    return (taps[:, None, :] * sel[None, :, :].astype(jnp.float32)).astype(jnp.bfloat16)


# ----------------------------------------------------------------------------
# kernels
# ----------------------------------------------------------------------------
def _build_ds_kernel(*, tile_n, Ho, Wo, cin, cout):
    """Stage 0: grouped/depthwise stride-2 3x3 conv -> y0 (pre-BN) + per-tile stats."""
    tile_m = tile_n * Ho * Wo

    def kernel(p00, p01, p10, p11, w_ref, y_ref, st_ref):
        phases = ((p00, p01), (p10, p11))
        y = jnp.zeros((tile_m, cout), jnp.float32)
        for kh in range(3):
            for kw in range(3):
                ph = phases[kh % 2][kw % 2]
                tap = ph[:, kh // 2:kh // 2 + Ho, kw // 2:kw // 2 + Wo, :]
                tap = tap.reshape(tile_m, cin).astype(jnp.bfloat16)
                y = y + jnp.dot(tap, w_ref[kh * 3 + kw],
                                preferred_element_type=jnp.float32)
        y_ref[...] = y.astype(y_ref.dtype).reshape(tile_n, Ho, Wo, cout)
        s = jnp.sum(y, axis=0, keepdims=True)
        q = jnp.sum(y * y, axis=0, keepdims=True)
        st_ref[...] = jnp.concatenate([s, q], axis=0)[None]

    return kernel


def _build_conv_stage_kernel(*, tile_n, Ho, Wo, c_in, c_out, k, pad,
                             apply_affine, use_temb, make_skip, add_skip):
    """Generic stage: [bn+relu] -> [temb add] -> KxK conv (+skip) -> y + stats."""
    tile_m = tile_n * Ho * Wo
    Hp, Wp = Ho + 2 * pad, Wo + 2 * pad

    def kernel(*refs):
        it = iter(refs)
        x_ref = next(it)                                    # (tile_n,Ho,Wo,c_in)
        sb_ref = next(it) if apply_affine else None         # (2, c_in) f32
        if use_temb:
            temb_ref = next(it)                             # (N, E) f32 (full)
            wt_ref = next(it)                               # (E, c_in) f32
            bt_ref = next(it)                               # (1, c_in) f32
        w_ref = next(it)                                    # (k*k*c_in, c_out) bf16
        wsk_ref = next(it) if make_skip else None           # (c_in, c_out) bf16
        sk_in_ref = next(it) if add_skip else None          # (tile_n,Ho,Wo,c_out) bf16
        y_ref = next(it)                                    # out (tile_n,Ho,Wo,c_out)
        sk_out_ref = next(it) if make_skip else None        # out (tile_n,Ho,Wo,c_out)
        st_ref = next(it)                                   # out (1,2,c_out) f32
        pad_ref = next(it)                                  # scratch bf16
        slab_ref = next(it)                                 # scratch bf16

        a = x_ref[...].reshape(tile_m, c_in).astype(jnp.float32)
        if apply_affine:                                    # previous stage's BN + ReLU
            a = jnp.maximum(a * sb_ref[0:1, :] + sb_ref[1:2, :], 0.0)
        if use_temb:                                        # SiLU -> Linear -> broadcast add
            t0 = pl.program_id(0) * tile_n
            t = temb_ref[pl.ds(t0, tile_n), :].astype(jnp.float32)
            t = t * jax.nn.sigmoid(t)
            te = jnp.dot(t, wt_ref[...], preferred_element_type=jnp.float32) + bt_ref[...]
            a = (a.reshape(tile_n, Ho * Wo, c_in) + te[:, None, :]).reshape(tile_m, c_in)

        a_bf = a.astype(jnp.bfloat16)
        if make_skip:                                       # 1x1 skip conv on the shortcut
            sk = jnp.dot(a_bf, wsk_ref[...], preferred_element_type=jnp.float32)
            sk_out_ref[...] = sk.astype(sk_out_ref.dtype).reshape(tile_n, Ho, Wo, c_out)

        # zero only the halo strips (interior fully rewritten every step)
        if pad > 0:
            zrow = jnp.zeros((tile_n, pad, Wp, c_in), jnp.bfloat16)
            zcol = jnp.zeros((tile_n, Ho, pad, c_in), jnp.bfloat16)
            pad_ref[:, 0:pad, :, :] = zrow
            pad_ref[:, pad + Ho:Hp, :, :] = zrow
            pad_ref[:, pad:pad + Ho, 0:pad, :] = zcol
            pad_ref[:, pad:pad + Ho, pad + Wo:Wp, :] = zcol
        pad_ref[:, pad:pad + Ho, pad:pad + Wo, :] = a_bf.reshape(tile_n, Ho, Wo, c_in)

        # fused im2col slab: one MXU dot with K = k*k*c_in
        for kh in range(k):
            for kw in range(k):
                ti = kh * k + kw
                slab_ref[:, ti * c_in:(ti + 1) * c_in] = (
                    pad_ref[:, kh:kh + Ho, kw:kw + Wo, :].reshape(tile_m, c_in))
        y = jnp.dot(slab_ref[...], w_ref[...], preferred_element_type=jnp.float32)
        if add_skip:
            y = y + sk_in_ref[...].reshape(tile_m, c_out).astype(jnp.float32)

        y_ref[...] = y.astype(y_ref.dtype).reshape(tile_n, Ho, Wo, c_out)
        s = jnp.sum(y, axis=0, keepdims=True)
        q = jnp.sum(y * y, axis=0, keepdims=True)
        st_ref[...] = jnp.concatenate([s, q], axis=0)[None]

    return kernel


def _build_apply_kernel(*, tile_n, Ho, Wo, c):
    """Final stage: bn2 scale/bias + ReLU -> f32 output at real cout."""
    tile_m = tile_n * Ho * Wo

    def kernel(y_ref, sb_ref, o_ref):
        y = y_ref[...].reshape(tile_m, c).astype(jnp.float32)
        o = jnp.maximum(y * sb_ref[0:1, :] + sb_ref[1:2, :], 0.0)
        o_ref[...] = o.reshape(tile_n, Ho, Wo, c).astype(o_ref.dtype)

    return kernel


# ----------------------------------------------------------------------------
# pallas_call wrappers
# ----------------------------------------------------------------------------
def _run_conv_stage(x_in, sb_in, temb, wt, bt, w_slab, wsk, sk_in, *,
                    tile_n, num_tiles, Ho, Wo, c_in, c_out, k, pad,
                    apply_affine, use_temb, make_skip, add_skip, cparams):
    N = x_in.shape[0]
    tile_m = tile_n * Ho * Wo
    Hp, Wp = Ho + 2 * pad, Wo + 2 * pad

    args, specs = [x_in], [_batch_spec((Ho, Wo, c_in), tile_n)]
    if apply_affine:
        args.append(sb_in); specs.append(_full_spec(sb_in.shape))
    if use_temb:
        for a in (temb, wt, bt):
            args.append(a); specs.append(_full_spec(a.shape))
    args.append(w_slab); specs.append(_full_spec(w_slab.shape))
    if make_skip:
        args.append(wsk); specs.append(_full_spec(wsk.shape))
    if add_skip:
        args.append(sk_in); specs.append(_batch_spec((Ho, Wo, c_out), tile_n))

    out_shapes = [jax.ShapeDtypeStruct((N, Ho, Wo, c_out), jnp.bfloat16)]
    out_specs = [_batch_spec((Ho, Wo, c_out), tile_n)]
    if make_skip:
        out_shapes.append(jax.ShapeDtypeStruct((N, Ho, Wo, c_out), jnp.bfloat16))
        out_specs.append(_batch_spec((Ho, Wo, c_out), tile_n))
    out_shapes.append(jax.ShapeDtypeStruct((num_tiles, 2, c_out), jnp.float32))
    out_specs.append(pl.BlockSpec((1, 2, c_out), lambda t: (t, 0, 0)))

    kernel = _build_conv_stage_kernel(
        tile_n=tile_n, Ho=Ho, Wo=Wo, c_in=c_in, c_out=c_out, k=k, pad=pad,
        apply_affine=apply_affine, use_temb=use_temb,
        make_skip=make_skip, add_skip=add_skip)

    return pl.pallas_call(
        kernel, grid=(num_tiles,),
        in_specs=specs, out_specs=tuple(out_specs), out_shape=tuple(out_shapes),
        scratch_shapes=[pltpu.VMEM((tile_n, Hp, Wp, c_in), jnp.bfloat16),
                        pltpu.VMEM((tile_m, k * k * c_in), jnp.bfloat16)],
        compiler_params=cparams,
    )(*args)


# ----------------------------------------------------------------------------
# parameters (deterministic, synthetic)
# ----------------------------------------------------------------------------
def init_params(key, cin, cout, k, temb_dim, downscaling=True):
    keys = jax.random.split(key, 12)

    def nrm(kk, shape, scale=0.1):
        return scale * jax.random.normal(kk, shape, dtype=jnp.float32)

    skip_cin = cout if downscaling else cin
    return dict(
        w_ds=nrm(keys[0], (cout, 1, 3, 3)),                 # grouped downscaling conv
        bn_ds_g=1.0 + nrm(keys[1], (cout,)),
        bn_ds_b=nrm(keys[2], (cout,)),
        w1=nrm(keys[3], (cout, cout if downscaling else cin, k, k)),
        bn1_g=1.0 + nrm(keys[4], (cout,)),
        bn1_b=nrm(keys[5], (cout,)),
        wt=nrm(keys[6], (cout, temb_dim)),                  # nn.Linear weight
        bt=nrm(keys[7], (cout,)),                           # nn.Linear bias
        w2=nrm(keys[8], (cout, cout, k, k)),
        w_skip=nrm(keys[9], (cout, skip_cin, 1, 1)),
        bn2_g=1.0 + nrm(keys[10], (cout,)),
        bn2_b=nrm(keys[11], (cout,)),
    )


# ----------------------------------------------------------------------------
# forward pass
# ----------------------------------------------------------------------------
def encoder_block_forward(params, x_nchw, timestep_emb=None, *, cin, cout,
                          kernel_size=3, downscaling=True, residual=True,
                          timestep_embed_dim=0):
    k = 3 if downscaling else kernel_size
    pad = 1 if downscaling else kernel_size // 2
    assert k % 2 == 1, "odd kernel sizes only"
    use_temb = timestep_emb is not None and timestep_embed_dim > 0

    x = jnp.transpose(x_nchw, (0, 2, 3, 1)).astype(jnp.float32)        # NHWC
    N, H, W, _ = x.shape
    if downscaling:
        assert H % 2 == 0 and W % 2 == 0, "downscaling needs even spatial dims"
        assert cout % cin == 0, "grouped conv needs cout % cin == 0"
        Ho, Wo = H // 2, W // 2
    else:
        Ho, Wo = H, W
    M = N * Ho * Wo

    # batch tiling: target <= ~1024 rows per grid step, whole images per tile
    tile_n = min(N, max(1, 1024 // (Ho * Wo)))
    while N % tile_n:
        tile_n -= 1
    num_tiles = N // tile_n

    cparams = pltpu.CompilerParams(dimension_semantics=("parallel",),
                                   vmem_limit_bytes=_vmem_limit_bytes())

    # ---- stage 0: downscaling layer (conv only; BN applied in next call) ----
    if downscaling:
        xp = jnp.pad(x, ((0, 0), (1, 1), (1, 1), (0, 0)))
        phases = [xp[:, a::2, b::2, :] for a in (0, 1) for b in (0, 1)]
        wds = _depthwise_w_to_mat(params["w_ds"], cin, cout)
        y0, st0 = pl.pallas_call(
            _build_ds_kernel(tile_n=tile_n, Ho=Ho, Wo=Wo, cin=cin, cout=cout),
            grid=(num_tiles,),
            in_specs=[_batch_spec((Ho + 1, Wo + 1, cin), tile_n)] * 4
                     + [_full_spec(wds.shape)],
            out_specs=(_batch_spec((Ho, Wo, cout), tile_n),
                       pl.BlockSpec((1, 2, cout), lambda t: (t, 0, 0))),
            out_shape=(jax.ShapeDtypeStruct((N, Ho, Wo, cout), jnp.bfloat16),
                       jax.ShapeDtypeStruct((num_tiles, 2, cout), jnp.float32)),
            compiler_params=cparams,
        )(*phases, wds)
        sb0 = _bn_scale_bias(st0, params["bn_ds_g"], params["bn_ds_b"], M)
        a0_in, c0 = y0, cout
    else:
        a0_in, c0, sb0 = x, cin, None

    # ---- stage 1: [bn0+relu] -> conv1 (+ 1x1 skip conv on shortcut) ----
    w1 = _conv_w_to_slab(params["w1"])
    wsk = None
    if residual:
        wsk = jnp.transpose(params["w_skip"][:, :, 0, 0], (1, 0)).astype(jnp.bfloat16)
    outs1 = _run_conv_stage(
        a0_in, sb0, None, None, None, w1, wsk, None,
        tile_n=tile_n, num_tiles=num_tiles, Ho=Ho, Wo=Wo, c_in=c0, c_out=cout,
        k=k, pad=pad, apply_affine=downscaling, use_temb=False,
        make_skip=residual, add_skip=False, cparams=cparams)
    if residual:
        y1, sk, st1 = outs1
    else:
        (y1, st1), sk = outs1, None
    sb1 = _bn_scale_bias(st1, params["bn1_g"], params["bn1_b"], M)

    # ---- stage 2: bn1+relu (+temb) -> conv2 (+skip add) ----
    w2 = _conv_w_to_slab(params["w2"])
    temb = wt = bt = None
    if use_temb:
        temb = timestep_emb.astype(jnp.float32)
        wt = jnp.transpose(params["wt"], (1, 0)).astype(jnp.float32)    # (E, cout)
        bt = params["bt"].astype(jnp.float32).reshape(1, cout)
    outs2 = _run_conv_stage(
        y1, sb1, temb, wt, bt, w2, None, sk,
        tile_n=tile_n, num_tiles=num_tiles, Ho=Ho, Wo=Wo, c_in=cout, c_out=cout,
        k=k, pad=pad, apply_affine=True, use_temb=use_temb,
        make_skip=False, add_skip=residual, cparams=cparams)
    y2, st2 = outs2
    sb2 = _bn_scale_bias(st2, params["bn2_g"], params["bn2_b"], M)

    # ---- stage 3: bn2 + relu -> final output (f32, real cout) ----
    out_nhwc = pl.pallas_call(
        _build_apply_kernel(tile_n=tile_n, Ho=Ho, Wo=Wo, c=cout),
        grid=(num_tiles,),
        in_specs=[_batch_spec((Ho, Wo, cout), tile_n), _full_spec(sb2.shape)],
        out_specs=_batch_spec((Ho, Wo, cout), tile_n),
        out_shape=jax.ShapeDtypeStruct((N, Ho, Wo, cout), jnp.float32),
        compiler_params=cparams,
    )(y2, sb2)

    return jnp.transpose(out_nhwc, (0, 3, 1, 2))                        # NCHW


# ----------------------------------------------------------------------------
if __name__ == "__main__":
    key = jax.random.PRNGKey(0)
    kx, kt, kp = jax.random.split(key, 3)

    N, CIN, COUT, H, W, E = 2, 4, 8, 16, 16, 16
    x = jax.random.normal(kx, (N, CIN, H, W), dtype=jnp.float32)
    temb = jax.random.normal(kt, (N, E), dtype=jnp.float32)
    params = init_params(kp, CIN, COUT, 3, E, downscaling=True)

    fwd = jax.jit(functools.partial(
        encoder_block_forward, cin=CIN, cout=COUT, kernel_size=3,
        downscaling=True, residual=True, timestep_embed_dim=E))
    out = jax.block_until_ready(fwd(params, x, temb))

    assert out.shape == (N, COUT, H // 2, W // 2), out.shape
    assert bool(jnp.all(jnp.isfinite(out)))
    print("KERNEL_OK")
</pallas_src>

<mosaic_0001>
module attributes {stable_mosaic.version = 11 : i64} {
  func.func @kernel(%arg0: i32, %arg1: memref<2x9x9x4xf32, #tpu.memory_space<vmem>>, %arg2: memref<2x9x9x4xf32, #tpu.memory_space<vmem>>, %arg3: memref<2x9x9x4xf32, #tpu.memory_space<vmem>>, %arg4: memref<2x9x9x4xf32, #tpu.memory_space<vmem>>, %arg5: memref<9x4x8xbf16, #tpu.memory_space<vmem>>, %arg6: memref<2x8x8x8xbf16, #tpu.memory_space<vmem>>, %arg7: memref<1x2x8xf32, #tpu.memory_space<vmem>>) attributes {dimension_semantics = [#tpu.dimension_semantics<parallel>], iteration_bounds = array<i64: 1>, scalar_prefetch = 0 : i64, scratch_operands = 0 : i64, tpu.core_type = #tpu.core_type<tc>, window_params = [{transform_indices = @transform_0, window_bounds = array<i64: 2, 9, 9, 4>}, {transform_indices = @transform_1, window_bounds = array<i64: 2, 9, 9, 4>}, {transform_indices = @transform_2, window_bounds = array<i64: 2, 9, 9, 4>}, {transform_indices = @transform_3, window_bounds = array<i64: 2, 9, 9, 4>}, {pipeline_mode = #tpu.pipeline_mode<synchronous>, transform_indices = @transform_4, window_bounds = array<i64: 9, 4, 8>}, {transform_indices = @transform_5, window_bounds = array<i64: 2, 8, 8, 8>}, {transform_indices = @transform_6, window_bounds = array<i64: 1, 2, 8>}]} {
    %cst = arith.constant 0.000000e+00 : f32
    %0 = vector.broadcast %cst : f32 to vector<128x8xf32>
    %c0 = arith.constant 0 : index
    %c0_0 = arith.constant 0 : index
    %c0_1 = arith.constant 0 : index
    %c0_2 = arith.constant 0 : index
    %1 = vector.load %arg1[%c0, %c0_0, %c0_1, %c0_2] : memref<2x9x9x4xf32, #tpu.memory_space<vmem>>, vector<2x8x8x4xf32>
    %2 = vector.shape_cast %1 : vector<2x8x8x4xf32> to vector<128x4xf32>
    %3 = arith.truncf %2 : vector<128x4xf32> to vector<128x4xbf16>
    %c0_3 = arith.constant 0 : index
    %c0_4 = arith.constant 0 : index
    %c0_5 = arith.constant 0 : index
    %4 = vector.load %arg5[%c0_3, %c0_4, %c0_5] : memref<9x4x8xbf16, #tpu.memory_space<vmem>>, vector<1x4x8xbf16>
    %5 = vector.shape_cast %4 : vector<1x4x8xbf16> to vector<4x8xbf16>
    %cst_6 = arith.constant dense<0.000000e+00> : vector<128x8xf32>
    %6 = tpu.matmul %3, %5, %cst_6 {dimension_numbers = #tpu.dot_dimension_numbers<[1], [0], [0], [1], [0, 0, 1, 1], [], []>} : vector<128x4xbf16>, vector<4x8xbf16>, vector<128x8xf32> -> vector<128x8xf32>
    %7 = arith.addf %0, %6 : vector<128x8xf32>
    %c0_7 = arith.constant 0 : index
    %c0_8 = arith.constant 0 : index
    %c0_9 = arith.constant 0 : index
    %c0_10 = arith.constant 0 : index
    %8 = vector.load %arg2[%c0_7, %c0_8, %c0_9, %c0_10] : memref<2x9x9x4xf32, #tpu.memory_space<vmem>>, vector<2x8x8x4xf32>
    %9 = vector.shape_cast %8 : vector<2x8x8x4xf32> to vector<128x4xf32>
    %10 = arith.truncf %9 : vector<128x4xf32> to vector<128x4xbf16>
    %c1 = arith.constant 1 : index
    %c0_11 = arith.constant 0 : index
    %c0_12 = arith.constant 0 : index
    %11 = vector.load %arg5[%c1, %c0_11, %c0_12] : memref<9x4x8xbf16, #tpu.memory_space<vmem>>, vector<1x4x8xbf16>
    %12 = vector.shape_cast %11 : vector<1x4x8xbf16> to vector<4x8xbf16>
    %cst_13 = arith.constant dense<0.000000e+00> : vector<128x8xf32>
    %13 = tpu.matmul %10, %12, %cst_13 {dimension_numbers = #tpu.dot_dimension_numbers<[1], [0], [0], [1], [0, 0, 1, 1], [], []>} : vector<128x4xbf16>, vector<4x8xbf16>, vector<128x8xf32> -> vector<128x8xf32>
    %14 = arith.addf %7, %13 : vector<128x8xf32>
    %c0_14 = arith.constant 0 : index
    %c0_15 = arith.constant 0 : index
    %c1_16 = arith.constant 1 : index
    %c0_17 = arith.constant 0 : index
    %15 = vector.load %arg1[%c0_14, %c0_15, %c1_16, %c0_17] : memref<2x9x9x4xf32, #tpu.memory_space<vmem>>, vector<2x8x8x4xf32>
    %16 = vector.shape_cast %15 : vector<2x8x8x4xf32> to vector<128x4xf32>
    %17 = arith.truncf %16 : vector<128x4xf32> to vector<128x4xbf16>
    %c2 = arith.constant 2 : index
    %c0_18 = arith.constant 0 : index
    %c0_19 = arith.constant 0 : index
    %18 = vector.load %arg5[%c2, %c0_18, %c0_19] : memref<9x4x8xbf16, #tpu.memory_space<vmem>>, vector<1x4x8xbf16>
    %19 = vector.shape_cast %18 : vector<1x4x8xbf16> to vector<4x8xbf16>
    %cst_20 = arith.constant dense<0.000000e+00> : vector<128x8xf32>
    %20 = tpu.matmul %17, %19, %cst_20 {dimension_numbers = #tpu.dot_dimension_numbers<[1], [0], [0], [1], [0, 0, 1, 1], [], []>} : vector<128x4xbf16>, vector<4x8xbf16>, vector<128x8xf32> -> vector<128x8xf32>
    %21 = arith.addf %14, %20 : vector<128x8xf32>
    %c0_21 = arith.constant 0 : index
    %c0_22 = arith.constant 0 : index
    %c0_23 = arith.constant 0 : index
    %c0_24 = arith.constant 0 : index
    %22 = vector.load %arg3[%c0_21, %c0_22, %c0_23, %c0_24] : memref<2x9x9x4xf32, #tpu.memory_space<vmem>>, vector<2x8x8x4xf32>
    %23 = vector.shape_cast %22 : vector<2x8x8x4xf32> to vector<128x4xf32>
    %24 = arith.truncf %23 : vector<128x4xf32> to vector<128x4xbf16>
    %c3 = arith.constant 3 : index
    %c0_25 = arith.constant 0 : index
    %c0_26 = arith.constant 0 : index
    %25 = vector.load %arg5[%c3, %c0_25, %c0_26] : memref<9x4x8xbf16, #tpu.memory_space<vmem>>, vector<1x4x8xbf16>
    %26 = vector.shape_cast %25 : vector<1x4x8xbf16> to vector<4x8xbf16>
    %cst_27 = arith.constant dense<0.000000e+00> : vector<128x8xf32>
    %27 = tpu.matmul %24, %26, %cst_27 {dimension_numbers = #tpu.dot_dimension_numbers<[1], [0], [0], [1], [0, 0, 1, 1], [], []>} : vector<128x4xbf16>, vector<4x8xbf16>, vector<128x8xf32> -> vector<128x8xf32>
    %28 = arith.addf %21, %27 : vector<128x8xf32>
    %c0_28 = arith.constant 0 : index
    %c0_29 = arith.constant 0 : index
    %c0_30 = arith.constant 0 : index
    %c0_31 = arith.constant 0 : index
    %29 = vector.load %arg4[%c0_28, %c0_29, %c0_30, %c0_31] : memref<2x9x9x4xf32, #tpu.memory_space<vmem>>, vector<2x8x8x4xf32>
    %30 = vector.shape_cast %29 : vector<2x8x8x4xf32> to vector<128x4xf32>
    %31 = arith.truncf %30 : vector<128x4xf32> to vector<128x4xbf16>
    %c4 = arith.constant 4 : index
    %c0_32 = arith.constant 0 : index
    %c0_33 = arith.constant 0 : index
    %32 = vector.load %arg5[%c4, %c0_32, %c0_33] : memref<9x4x8xbf16, #tpu.memory_space<vmem>>, vector<1x4x8xbf16>
    %33 = vector.shape_cast %32 : vector<1x4x8xbf16> to vector<4x8xbf16>
    %cst_34 = arith.constant dense<0.000000e+00> : vector<128x8xf32>
    %34 = tpu.matmul %31, %33, %cst_34 {dimension_numbers = #tpu.dot_dimension_numbers<[1], [0], [0], [1], [0, 0, 1, 1], [], []>} : vector<128x4xbf16>, vector<4x8xbf16>, vector<128x8xf32> -> vector<128x8xf32>
    %35 = arith.addf %28, %34 : vector<128x8xf32>
    %c0_35 = arith.constant 0 : index
    %c0_36 = arith.constant 0 : index
    %c1_37 = arith.constant 1 : index
    %c0_38 = arith.constant 0 : index
    %36 = vector.load %arg3[%c0_35, %c0_36, %c1_37, %c0_38] : memref<2x9x9x4xf32, #tpu.memory_space<vmem>>, vector<2x8x8x4xf32>
    %37 = vector.shape_cast %36 : vector<2x8x8x4xf32> to vector<128x4xf32>
    %38 = arith.truncf %37 : vector<128x4xf32> to vector<128x4xbf16>
    %c5 = arith.constant 5 : index
    %c0_39 = arith.constant 0 : index
    %c0_40 = arith.constant 0 : index
    %39 = vector.load %arg5[%c5, %c0_39, %c0_40] : memref<9x4x8xbf16, #tpu.memory_space<vmem>>, vector<1x4x8xbf16>
    %40 = vector.shape_cast %39 : vector<1x4x8xbf16> to vector<4x8xbf16>
    %cst_41 = arith.constant dense<0.000000e+00> : vector<128x8xf32>
    %41 = tpu.matmul %38, %40, %cst_41 {dimension_numbers = #tpu.dot_dimension_numbers<[1], [0], [0], [1], [0, 0, 1, 1], [], []>} : vector<128x4xbf16>, vector<4x8xbf16>, vector<128x8xf32> -> vector<128x8xf32>
    %42 = arith.addf %35, %41 : vector<128x8xf32>
    %c0_42 = arith.constant 0 : index
    %c1_43 = arith.constant 1 : index
    %c0_44 = arith.constant 0 : index
    %c0_45 = arith.constant 0 : index
    %43 = vector.load %arg1[%c0_42, %c1_43, %c0_44, %c0_45] : memref<2x9x9x4xf32, #tpu.memory_space<vmem>>, vector<2x8x8x4xf32>
    %44 = vector.shape_cast %43 : vector<2x8x8x4xf32> to vector<128x4xf32>
    %45 = arith.truncf %44 : vector<128x4xf32> to vector<128x4xbf16>
    %c6 = arith.constant 6 : index
    %c0_46 = arith.constant 0 : index
    %c0_47 = arith.constant 0 : index
    %46 = vector.load %arg5[%c6, %c0_46, %c0_47] : memref<9x4x8xbf16, #tpu.memory_space<vmem>>, vector<1x4x8xbf16>
    %47 = vector.shape_cast %46 : vector<1x4x8xbf16> to vector<4x8xbf16>
    %cst_48 = arith.constant dense<0.000000e+00> : vector<128x8xf32>
    %48 = tpu.matmul %45, %47, %cst_48 {dimension_numbers = #tpu.dot_dimension_numbers<[1], [0], [0], [1], [0, 0, 1, 1], [], []>} : vector<128x4xbf16>, vector<4x8xbf16>, vector<128x8xf32> -> vector<128x8xf32>
    %49 = arith.addf %42, %48 : vector<128x8xf32>
    %c0_49 = arith.constant 0 : index
    %c1_50 = arith.constant 1 : index
    %c0_51 = arith.constant 0 : index
    %c0_52 = arith.constant 0 : index
    %50 = vector.load %arg2[%c0_49, %c1_50, %c0_51, %c0_52] : memref<2x9x9x4xf32, #tpu.memory_space<vmem>>, vector<2x8x8x4xf32>
    %51 = vector.shape_cast %50 : vector<2x8x8x4xf32> to vector<128x4xf32>
    %52 = arith.truncf %51 : vector<128x4xf32> to vector<128x4xbf16>
    %c7 = arith.constant 7 : index
    %c0_53 = arith.constant 0 : index
    %c0_54 = arith.constant 0 : index
    %53 = vector.load %arg5[%c7, %c0_53, %c0_54] : memref<9x4x8xbf16, #tpu.memory_space<vmem>>, vector<1x4x8xbf16>
    %54 = vector.shape_cast %53 : vector<1x4x8xbf16> to vector<4x8xbf16>
    %cst_55 = arith.constant dense<0.000000e+00> : vector<128x8xf32>
    %55 = tpu.matmul %52, %54, %cst_55 {dimension_numbers = #tpu.dot_dimension_numbers<[1], [0], [0], [1], [0, 0, 1, 1], [], []>} : vector<128x4xbf16>, vector<4x8xbf16>, vector<128x8xf32> -> vector<128x8xf32>
    %56 = arith.addf %49, %55 : vector<128x8xf32>
    %c0_56 = arith.constant 0 : index
    %c1_57 = arith.constant 1 : index
    %c1_58 = arith.constant 1 : index
    %c0_59 = arith.constant 0 : index
    %57 = vector.load %arg1[%c0_56, %c1_57, %c1_58, %c0_59] : memref<2x9x9x4xf32, #tpu.memory_space<vmem>>, vector<2x8x8x4xf32>
    %58 = vector.shape_cast %57 : vector<2x8x8x4xf32> to vector<128x4xf32>
    %59 = arith.truncf %58 : vector<128x4xf32> to vector<128x4xbf16>
    %c8 = arith.constant 8 : index
    %c0_60 = arith.constant 0 : index
    %c0_61 = arith.constant 0 : index
    %60 = vector.load %arg5[%c8, %c0_60, %c0_61] : memref<9x4x8xbf16, #tpu.memory_space<vmem>>, vector<1x4x8xbf16>
    %61 = vector.shape_cast %60 : vector<1x4x8xbf16> to vector<4x8xbf16>
    %cst_62 = arith.constant dense<0.000000e+00> : vector<128x8xf32>
    %62 = tpu.matmul %59, %61, %cst_62 {dimension_numbers = #tpu.dot_dimension_numbers<[1], [0], [0], [1], [0, 0, 1, 1], [], []>} : vector<128x4xbf16>, vector<4x8xbf16>, vector<128x8xf32> -> vector<128x8xf32>
    %63 = arith.addf %56, %62 : vector<128x8xf32>
    %64 = arith.truncf %63 : vector<128x8xf32> to vector<128x8xbf16>
    %65 = vector.shape_cast %64 : vector<128x8xbf16> to vector<2x8x8x8xbf16>
    %c0_63 = arith.constant 0 : index
    %c0_64 = arith.constant 0 : index
    %c0_65 = arith.constant 0 : index
    %c0_66 = arith.constant 0 : index
    %66 = vector.load %arg6[%c0_63, %c0_64, %c0_65, %c0_66] : memref<2x8x8x8xbf16, #tpu.memory_space<vmem>>, vector<2x8x8x8xbf16>
    tpu.vector_store %arg6[%c0_63, %c0_64, %c0_65, %c0_66], %65 {strides = array<i32>} : memref<2x8x8x8xbf16, #tpu.memory_space<vmem>>, vector<2x8x8x8xbf16>,
    %cst_67 = arith.constant dense<0.000000e+00> : vector<8xf32>
    %67 = vector.multi_reduction <add>, %63, %cst_67 [0] : vector<128x8xf32> to vector<8xf32>
    %68 = vector.shape_cast %67 : vector<8xf32> to vector<1x8xf32>
    %69 = arith.mulf %63, %63 : vector<128x8xf32>
    %cst_68 = arith.constant dense<0.000000e+00> : vector<8xf32>
    %70 = vector.multi_reduction <add>, %69, %cst_68 [0] : vector<128x8xf32> to vector<8xf32>
    %71 = vector.shape_cast %70 : vector<8xf32> to vector<1x8xf32>
    %72 = tpu.concatenate %68, %71 in 0 : vector<1x8xf32>, vector<1x8xf32> -> vector<2x8xf32>
    %73 = vector.shape_cast %72 : vector<2x8xf32> to vector<1x2x8xf32>
    %c0_69 = arith.constant 0 : index
    %c0_70 = arith.constant 0 : index
    %c0_71 = arith.constant 0 : index
    %74 = vector.load %arg7[%c0_69, %c0_70, %c0_71] : memref<1x2x8xf32, #tpu.memory_space<vmem>>, vector<1x2x8xf32>
    tpu.vector_store %arg7[%c0_69, %c0_70, %c0_71], %73 {strides = array<i32>} : memref<1x2x8xf32, #tpu.memory_space<vmem>>, vector<1x2x8xf32>,
    return
  }
  func.func @transform_0(%arg0: i32) -> (i32, i32, i32, i32) {
    %c0_i32 = arith.constant 0 : i32
    %c0_i32_0 = arith.constant 0 : i32
    %c0_i32_1 = arith.constant 0 : i32
    %c0_i32_2 = arith.constant 0 : i32
    return %arg0, %c0_i32, %c0_i32_0, %c0_i32_1 : i32, i32, i32, i32
  }
  func.func @transform_1(%arg0: i32) -> (i32, i32, i32, i32) {
    %c0_i32 = arith.constant 0 : i32
    %c0_i32_0 = arith.constant 0 : i32
    %c0_i32_1 = arith.constant 0 : i32
    %c0_i32_2 = arith.constant 0 : i32
    return %arg0, %c0_i32, %c0_i32_0, %c0_i32_1 : i32, i32, i32, i32
  }
  func.func @transform_2(%arg0: i32) -> (i32, i32, i32, i32) {
    %c0_i32 = arith.constant 0 : i32
    %c0_i32_0 = arith.constant 0 : i32
    %c0_i32_1 = arith.constant 0 : i32
    %c0_i32_2 = arith.constant 0 : i32
    return %arg0, %c0_i32, %c0_i32_0, %c0_i32_1 : i32, i32, i32, i32
  }
  func.func @transform_3(%arg0: i32) -> (i32, i32, i32, i32) {
    %c0_i32 = arith.constant 0 : i32
    %c0_i32_0 = arith.constant 0 : i32
    %c0_i32_1 = arith.constant 0 : i32
    %c0_i32_2 = arith.constant 0 : i32
    return %arg0, %c0_i32, %c0_i32_0, %c0_i32_1 : i32, i32, i32, i32
  }
  func.func @transform_4(%arg0: i32) -> (i32, i32, i32) {
    %c0_i32 = arith.constant 0 : i32
    %c0_i32_0 = arith.constant 0 : i32
    %c0_i32_1 = arith.constant 0 : i32
    %c0_i32_2 = arith.constant 0 : i32
    return %c0_i32, %c0_i32_0, %c0_i32_1 : i32, i32, i32
  }
  func.func @transform_5(%arg0: i32) -> (i32, i32, i32, i32) {
    %c0_i32 = arith.constant 0 : i32
    %c0_i32_0 = arith.constant 0 : i32
    %c0_i32_1 = arith.constant 0 : i32
    %c0_i32_2 = arith.constant 0 : i32
    return %arg0, %c0_i32, %c0_i32_0, %c0_i32_1 : i32, i32, i32, i32
  }
  func.func @transform_6(%arg0: i32) -> (i32, i32, i32) {
    %c0_i32 = arith.constant 0 : i32
    %c0_i32_0 = arith.constant 0 : i32
    %c0_i32_1 = arith.constant 0 : i32
    return %arg0, %c0_i32, %c0_i32_0 : i32, i32, i32
  }
}

module attributes {stable_mosaic.version = 11 : i64} {
  func.func @kernel(%arg0: i32, %arg1: memref<2x8x8x8xbf16, #tpu.memory_space<vmem>>, %arg2: memref<2x8xf32, #tpu.memory_space<vmem>>, %arg3: memref<2x8x8x8xf32, #tpu.memory_space<vmem>>) attributes {dimension_semantics = [#tpu.dimension_semantics<parallel>], iteration_bounds = array<i64: 1>, scalar_prefetch = 0 : i64, scratch_operands = 0 : i64, tpu.core_type = #tpu.core_type<tc>, window_params = [{transform_indices = @transform_0, window_bounds = array<i64: 2, 8, 8, 8>}, {pipeline_mode = #tpu.pipeline_mode<synchronous>, transform_indices = @transform_1, window_bounds = array<i64: 2, 8>}, {transform_indices = @transform_2, window_bounds = array<i64: 2, 8, 8, 8>}]} {
    %c0 = arith.constant 0 : index
    %c0_0 = arith.constant 0 : index
    %c0_1 = arith.constant 0 : index
    %c0_2 = arith.constant 0 : index
    %0 = vector.load %arg1[%c0, %c0_0, %c0_1, %c0_2] : memref<2x8x8x8xbf16, #tpu.memory_space<vmem>>, vector<2x8x8x8xbf16>
    %1 = vector.shape_cast %0 : vector<2x8x8x8xbf16> to vector<128x8xbf16>
    %2 = arith.extf %1 : vector<128x8xbf16> to vector<128x8xf32>
    %c0_3 = arith.constant 0 : index
    %c0_4 = arith.constant 0 : index
    %3 = vector.load %arg2[%c0_3, %c0_4] : memref<2x8xf32, #tpu.memory_space<vmem>>, vector<1x8xf32>
    %4 = vector.broadcast %3 : vector<1x8xf32> to vector<128x8xf32>
    %5 = arith.mulf %2, %4 : vector<128x8xf32>
    %c1 = arith.constant 1 : index
    %c0_5 = arith.constant 0 : index
    %6 = vector.load %arg2[%c1, %c0_5] : memref<2x8xf32, #tpu.memory_space<vmem>>, vector<1x8xf32>
    %7 = vector.broadcast %6 : vector<1x8xf32> to vector<128x8xf32>
    %8 = arith.addf %5, %7 : vector<128x8xf32>
    %cst = arith.constant 0.000000e+00 : f32
    %9 = vector.broadcast %cst : f32 to vector<128x8xf32>
    %10 = arith.maximumf %8, %9 : vector<128x8xf32>
    %11 = vector.shape_cast %10 : vector<128x8xf32> to vector<2x8x8x8xf32>
    %c0_6 = arith.constant 0 : index
    %c0_7 = arith.constant 0 : index
    %c0_8 = arith.constant 0 : index
    %c0_9 = arith.constant 0 : index
    %12 = vector.load %arg3[%c0_6, %c0_7, %c0_8, %c0_9] : memref<2x8x8x8xf32, #tpu.memory_space<vmem>>, vector<2x8x8x8xf32>
    tpu.vector_store %arg3[%c0_6, %c0_7, %c0_8, %c0_9], %11 {strides = array<i32>} : memref<2x8x8x8xf32, #tpu.memory_space<vmem>>, vector<2x8x8x8xf32>,
    return
  }
  func.func @transform_0(%arg0: i32) -> (i32, i32, i32, i32) {
    %c0_i32 = arith.constant 0 : i32
    %c0_i32_0 = arith.constant 0 : i32
    %c0_i32_1 = arith.constant 0 : i32
    %c0_i32_2 = arith.constant 0 : i32
    return %arg0, %c0_i32, %c0_i32_0, %c0_i32_1 : i32, i32, i32, i32
  }
  func.func @transform_1(%arg0: i32) -> (i32, i32) {
    %c0_i32 = arith.constant 0 : i32
    %c0_i32_0 = arith.constant 0 : i32
    %c0_i32_1 = arith.constant 0 : i32
    return %c0_i32, %c0_i32_0 : i32, i32
  }
  func.func @transform_2(%arg0: i32) -> (i32, i32, i32, i32) {
    %c0_i32 = arith.constant 0 : i32
    %c0_i32_0 = arith.constant 0 : i32
    %c0_i32_1 = arith.constant 0 : i32
    %c0_i32_2 = arith.constant 0 : i32
    return %arg0, %c0_i32, %c0_i32_0, %c0_i32_1 : i32, i32, i32, i32
  }
}

module attributes {stable_mosaic.version = 11 : i64} {
  func.func @kernel(%arg0: i32, %arg1: memref<2x8x8x8xbf16, #tpu.memory_space<vmem>>, %arg2: memref<2x8xf32, #tpu.memory_space<vmem>>, %arg3: memref<2x16xf32, #tpu.memory_space<vmem>>, %arg4: memref<16x8xf32, #tpu.memory_space<vmem>>, %arg5: memref<1x8xf32, #tpu.memory_space<vmem>>, %arg6: memref<72x8xbf16, #tpu.memory_space<vmem>>, %arg7: memref<2x8x8x8xbf16, #tpu.memory_space<vmem>>, %arg8: memref<2x8x8x8xbf16, #tpu.memory_space<vmem>>, %arg9: memref<1x2x8xf32, #tpu.memory_space<vmem>>, %arg10: memref<2x10x10x8xbf16, #tpu.memory_space<vmem>>, %arg11: memref<128x72xbf16, #tpu.memory_space<vmem>>) attributes {dimension_semantics = [#tpu.dimension_semantics<parallel>], iteration_bounds = array<i64: 1>, scalar_prefetch = 0 : i64, scratch_operands = 2 : i64, tpu.core_type = #tpu.core_type<tc>, window_params = [{transform_indices = @transform_0, window_bounds = array<i64: 2, 8, 8, 8>}, {pipeline_mode = #tpu.pipeline_mode<synchronous>, transform_indices = @transform_1, window_bounds = array<i64: 2, 8>}, {pipeline_mode = #tpu.pipeline_mode<synchronous>, transform_indices = @transform_2, window_bounds = array<i64: 2, 16>}, {pipeline_mode = #tpu.pipeline_mode<synchronous>, transform_indices = @transform_3, window_bounds = array<i64: 16, 8>}, {pipeline_mode = #tpu.pipeline_mode<synchronous>, transform_indices = @transform_4, window_bounds = array<i64: 1, 8>}, {pipeline_mode = #tpu.pipeline_mode<synchronous>, transform_indices = @transform_5, window_bounds = array<i64: 72, 8>}, {transform_indices = @transform_6, window_bounds = array<i64: 2, 8, 8, 8>}, {transform_indices = @transform_7, window_bounds = array<i64: 2, 8, 8, 8>}, {transform_indices = @transform_8, window_bounds = array<i64: 1, 2, 8>}]} {
    %c0 = arith.constant 0 : index
    %c0_0 = arith.constant 0 : index
    %c0_1 = arith.constant 0 : index
    %c0_2 = arith.constant 0 : index
    %0 = vector.load %arg1[%c0, %c0_0, %c0_1, %c0_2] : memref<2x8x8x8xbf16, #tpu.memory_space<vmem>>, vector<2x8x8x8xbf16>
    %1 = vector.shape_cast %0 : vector<2x8x8x8xbf16> to vector<128x8xbf16>
    %2 = arith.extf %1 : vector<128x8xbf16> to vector<128x8xf32>
    %c0_3 = arith.constant 0 : index
    %c0_4 = arith.constant 0 : index
    %3 = vector.load %arg2[%c0_3, %c0_4] : memref<2x8xf32, #tpu.memory_space<vmem>>, vector<1x8xf32>
    %4 = vector.broadcast %3 : vector<1x8xf32> to vector<128x8xf32>
    %5 = arith.mulf %2, %4 : vector<128x8xf32>
    %c1 = arith.constant 1 : index
    %c0_5 = arith.constant 0 : index
    %6 = vector.load %arg2[%c1, %c0_5] : memref<2x8xf32, #tpu.memory_space<vmem>>, vector<1x8xf32>
    %7 = vector.broadcast %6 : vector<1x8xf32> to vector<128x8xf32>
    %8 = arith.addf %5, %7 : vector<128x8xf32>
    %cst = arith.constant 0.000000e+00 : f32
    %9 = vector.broadcast %cst : f32 to vector<128x8xf32>
    %10 = arith.maximumf %8, %9 : vector<128x8xf32>
    %c2_i32 = arith.constant 2 : i32
    %11 = arith.muli %arg0, %c2_i32 : i32
    %12 = arith.index_cast %11 : i32 to index
    %c0_6 = arith.constant 0 : index
    %13 = vector.load %arg3[%12, %c0_6] : memref<2x16xf32, #tpu.memory_space<vmem>>, vector<2x16xf32>
    %14 = arith.negf %13 : vector<2x16xf32>
    %15 = math.exp %14 : vector<2x16xf32>
    %cst_7 = arith.constant 1.000000e+00 : f32
    %16 = vector.broadcast %cst_7 : f32 to vector<2x16xf32>
    %17 = arith.addf %16, %15 : vector<2x16xf32>
    %18 = arith.divf %16, %17 : vector<2x16xf32>
    %19 = arith.mulf %13, %18 : vector<2x16xf32>
    %c0_8 = arith.constant 0 : index
    %c0_9 = arith.constant 0 : index
    %20 = vector.load %arg4[%c0_8, %c0_9] : memref<16x8xf32, #tpu.memory_space<vmem>>, vector<16x8xf32>
    %cst_10 = arith.constant dense<0.000000e+00> : vector<2x8xf32>
    %21 = tpu.matmul %19, %20, %cst_10 {dimension_numbers = #tpu.dot_dimension_numbers<[1], [0], [0], [1], [0, 0, 1, 1], [], []>} : vector<2x16xf32>, vector<16x8xf32>, vector<2x8xf32> -> vector<2x8xf32>
    %c0_11 = arith.constant 0 : index
    %c0_12 = arith.constant 0 : index
    %22 = vector.load %arg5[%c0_11, %c0_12] : memref<1x8xf32, #tpu.memory_space<vmem>>, vector<1x8xf32>
    %23 = vector.broadcast %22 : vector<1x8xf32> to vector<2x8xf32>
    %24 = arith.addf %21, %23 : vector<2x8xf32>
    %25 = vector.shape_cast %10 : vector<128x8xf32> to vector<2x64x8xf32>
    %26 = vector.shape_cast %24 : vector<2x8xf32> to vector<2x1x8xf32>
    %27 = vector.broadcast %26 : vector<2x1x8xf32> to vector<2x64x8xf32>
    %28 = arith.addf %25, %27 : vector<2x64x8xf32>
    %29 = vector.shape_cast %28 : vector<2x64x8xf32> to vector<128x8xf32>
    %30 = arith.truncf %29 : vector<128x8xf32> to vector<128x8xbf16>
    %cst_13 = arith.constant 0.000000e+00 : bf16
    %31 = vector.broadcast %cst_13 : bf16 to vector<2x1x10x8xbf16>
    %cst_14 = arith.constant 0.000000e+00 : bf16
    %32 = vector.broadcast %cst_14 : bf16 to vector<2x8x1x8xbf16>
    %c0_15 = arith.constant 0 : index
    %c0_16 = arith.constant 0 : index
    %c0_17 = arith.constant 0 : index
    %c0_18 = arith.constant 0 : index
    %33 = vector.load %arg10[%c0_15, %c0_16, %c0_17, %c0_18] : memref<2x10x10x8xbf16, #tpu.memory_space<vmem>>, vector<2x1x10x8xbf16>
    tpu.vector_store %arg10[%c0_15, %c0_16, %c0_17, %c0_18], %31 {strides = array<i32>} : memref<2x10x10x8xbf16, #tpu.memory_space<vmem>>, vector<2x1x10x8xbf16>,
    %c0_19 = arith.constant 0 : index
    %c9 = arith.constant 9 : index
    %c0_20 = arith.constant 0 : index
    %c0_21 = arith.constant 0 : index
    %34 = vector.load %arg10[%c0_19, %c9, %c0_20, %c0_21] : memref<2x10x10x8xbf16, #tpu.memory_space<vmem>>, vector<2x1x10x8xbf16>
    tpu.vector_store %arg10[%c0_19, %c9, %c0_20, %c0_21], %31 {strides = array<i32>} : memref<2x10x10x8xbf16, #tpu.memory_space<vmem>>, vector<2x1x10x8xbf16>,
    %c0_22 = arith.constant 0 : index
    %c1_23 = arith.constant 1 : index
    %c0_24 = arith.constant 0 : index
    %c0_25 = arith.constant 0 : index
    %35 = vector.load %arg10[%c0_22, %c1_23, %c0_24, %c0_25] : memref<2x10x10x8xbf16, #tpu.memory_space<vmem>>, vector<2x8x1x8xbf16>
    tpu.vector_store %arg10[%c0_22, %c1_23, %c0_24, %c0_25], %32 {strides = array<i32>} : memref<2x10x10x8xbf16, #tpu.memory_space<vmem>>, vector<2x8x1x8xbf16>,
    %c0_26 = arith.constant 0 : index
    %c1_27 = arith.constant 1 : index
    %c9_28 = arith.constant 9 : index
    %c0_29 = arith.constant 0 : index
    %36 = vector.load %arg10[%c0_26, %c1_27, %c9_28, %c0_29] : memref<2x10x10x8xbf16, #tpu.memory_space<vmem>>, vector<2x8x1x8xbf16>
    tpu.vector_store %arg10[%c0_26, %c1_27, %c9_28, %c0_29], %32 {strides = array<i32>} : memref<2x10x10x8xbf16, #tpu.memory_space<vmem>>, vector<2x8x1x8xbf16>,
    %37 = vector.shape_cast %30 : vector<128x8xbf16> to vector<2x8x8x8xbf16>
    %c0_30 = arith.constant 0 : index
    %c1_31 = arith.constant 1 : index
    %c1_32 = arith.constant 1 : index
    %c0_33 = arith.constant 0 : index
    %38 = vector.load %arg10[%c0_30, %c1_31, %c1_32, %c0_33] : memref<2x10x10x8xbf16, #tpu.memory_space<vmem>>, vector<2x8x8x8xbf16>
    tpu.vector_store %arg10[%c0_30, %c1_31, %c1_32, %c0_33], %37 {strides = array<i32>} : memref<2x10x10x8xbf16, #tpu.memory_space<vmem>>, vector<2x8x8x8xbf16>,
    %c0_34 = arith.constant 0 : index
    %c0_35 = arith.constant 0 : index
    %c0_36 = arith.constant 0 : index
    %c0_37 = arith.constant 0 : index
    %39 = vector.load %arg10[%c0_34, %c0_35, %c0_36, %c0_37] : memref<2x10x10x8xbf16, #tpu.memory_space<vmem>>, vector<2x8x8x8xbf16>
    %40 = vector.shape_cast %39 : vector<2x8x8x8xbf16> to vector<128x8xbf16>
    %c0_38 = arith.constant 0 : index
    %c0_39 = arith.constant 0 : index
    %41 = vector.load %arg11[%c0_38, %c0_39] : memref<128x72xbf16, #tpu.memory_space<vmem>>, vector<128x8xbf16>
    tpu.vector_store %arg11[%c0_38, %c0_39], %40 {strides = array<i32>} : memref<128x72xbf16, #tpu.memory_space<vmem>>, vector<128x8xbf16>,
    %c0_40 = arith.constant 0 : index
    %c0_41 = arith.constant 0 : index
    %c1_42 = arith.constant 1 : index
    %c0_43 = arith.constant 0 : index
    %42 = vector.load %arg10[%c0_40, %c0_41, %c1_42, %c0_43] : memref<2x10x10x8xbf16, #tpu.memory_space<vmem>>, vector<2x8x8x8xbf16>
    %43 = vector.shape_cast %42 : vector<2x8x8x8xbf16> to vector<128x8xbf16>
    %c0_44 = arith.constant 0 : index
    %c8 = arith.constant 8 : index
    %44 = vector.load %arg11[%c0_44, %c8] : memref<128x72xbf16, #tpu.memory_space<vmem>>, vector<128x8xbf16>
    tpu.vector_store %arg11[%c0_44, %c8], %43 {strides = array<i32>} : memref<128x72xbf16, #tpu.memory_space<vmem>>, vector<128x8xbf16>,
    %c0_45 = arith.constant 0 : index
    %c0_46 = arith.constant 0 : index
    %c2 = arith.constant 2 : index
    %c0_47 = arith.constant 0 : index
    %45 = vector.load %arg10[%c0_45, %c0_46, %c2, %c0_47] : memref<2x10x10x8xbf16, #tpu.memory_space<vmem>>, vector<2x8x8x8xbf16>
    %46 = vector.shape_cast %45 : vector<2x8x8x8xbf16> to vector<128x8xbf16>
    %c0_48 = arith.constant 0 : index
    %c16 = arith.constant 16 : index
    %47 = vector.load %arg11[%c0_48, %c16] : memref<128x72xbf16, #tpu.memory_space<vmem>>, vector<128x8xbf16>
    tpu.vector_store %arg11[%c0_48, %c16], %46 {strides = array<i32>} : memref<128x72xbf16, #tpu.memory_space<vmem>>, vector<128x8xbf16>,
    %c0_49 = arith.constant 0 : index
    %c1_50 = arith.constant 1 : index
    %c0_51 = arith.constant 0 : index
    %c0_52 = arith.constant 0 : index
    %48 = vector.load %arg10[%c0_49, %c1_50, %c0_51, %c0_52] : memref<2x10x10x8xbf16, #tpu.memory_space<vmem>>, vector<2x8x8x8xbf16>
    %49 = vector.shape_cast %48 : vector<2x8x8x8xbf16> to vector<128x8xbf16>
    %c0_53 = arith.constant 0 : index
    %c24 = arith.constant 24 : index
    %50 = vector.load %arg11[%c0_53, %c24] : memref<128x72xbf16, #tpu.memory_space<vmem>>, vector<128x8xbf16>
    tpu.vector_store %arg11[%c0_53, %c24], %49 {strides = array<i32>} : memref<128x72xbf16, #tpu.memory_space<vmem>>, vector<128x8xbf16>,
    %c0_54 = arith.constant 0 : index
    %c1_55 = arith.constant 1 : index
    %c1_56 = arith.constant 1 : index
    %c0_57 = arith.constant 0 : index
    %51 = vector.load %arg10[%c0_54, %c1_55, %c1_56, %c0_57] : memref<2x10x10x8xbf16, #tpu.memory_space<vmem>>, vector<2x8x8x8xbf16>
    %52 = vector.shape_cast %51 : vector<2x8x8x8xbf16> to vector<128x8xbf16>
    %c0_58 = arith.constant 0 : index
    %c32 = arith.constant 32 : index
    %53 = vector.load %arg11[%c0_58, %c32] : memref<128x72xbf16, #tpu.memory_space<vmem>>, vector<128x8xbf16>
    tpu.vector_store %arg11[%c0_58, %c32], %52 {strides = array<i32>} : memref<128x72xbf16, #tpu.memory_space<vmem>>, vector<128x8xbf16>,
    %c0_59 = arith.constant 0 : index
    %c1_60 = arith.constant 1 : index
    %c2_61 = arith.constant 2 : index
    %c0_62 = arith.constant 0 : index
    %54 = vector.load %arg10[%c0_59, %c1_60, %c2_61, %c0_62] : memref<2x10x10x8xbf16, #tpu.memory_space<vmem>>, vector<2x8x8x8xbf16>
    %55 = vector.shape_cast %54 : vector<2x8x8x8xbf16> to vector<128x8xbf16>
    %c0_63 = arith.constant 0 : index
    %c40 = arith.constant 40 : index
    %56 = vector.load %arg11[%c0_63, %c40] : memref<128x72xbf16, #tpu.memory_space<vmem>>, vector<128x8xbf16>
    tpu.vector_store %arg11[%c0_63, %c40], %55 {strides = array<i32>} : memref<128x72xbf16, #tpu.memory_space<vmem>>, vector<128x8xbf16>,
    %c0_64 = arith.constant 0 : index
    %c2_65 = arith.constant 2 : index
    %c0_66 = arith.constant 0 : index
    %c0_67 = arith.constant 0 : index
    %57 = vector.load %arg10[%c0_64, %c2_65, %c0_66, %c0_67] : memref<2x10x10x8xbf16, #tpu.memory_space<vmem>>, vector<2x8x8x8xbf16>
    %58 = vector.shape_cast %57 : vector<2x8x8x8xbf16> to vector<128x8xbf16>
    %c0_68 = arith.constant 0 : index
    %c48 = arith.constant 48 : index
    %59 = vector.load %arg11[%c0_68, %c48] : memref<128x72xbf16, #tpu.memory_space<vmem>>, vector<128x8xbf16>
    tpu.vector_store %arg11[%c0_68, %c48], %58 {strides = array<i32>} : memref<128x72xbf16, #tpu.memory_space<vmem>>, vector<128x8xbf16>,
    %c0_69 = arith.constant 0 : index
    %c2_70 = arith.constant 2 : index
    %c1_71 = arith.constant 1 : index
    %c0_72 = arith.constant 0 : index
    %60 = vector.load %arg10[%c0_69, %c2_70, %c1_71, %c0_72] : memref<2x10x10x8xbf16, #tpu.memory_space<vmem>>, vector<2x8x8x8xbf16>
    %61 = vector.shape_cast %60 : vector<2x8x8x8xbf16> to vector<128x8xbf16>
    %c0_73 = arith.constant 0 : index
    %c56 = arith.constant 56 : index
    %62 = vector.load %arg11[%c0_73, %c56] : memref<128x72xbf16, #tpu.memory_space<vmem>>, vector<128x8xbf16>
    tpu.vector_store %arg11[%c0_73, %c56], %61 {strides = array<i32>} : memref<128x72xbf16, #tpu.memory_space<vmem>>, vector<128x8xbf16>,
    %c0_74 = arith.constant 0 : index
    %c2_75 = arith.constant 2 : index
    %c2_76 = arith.constant 2 : index
    %c0_77 = arith.constant 0 : index
    %63 = vector.load %arg10[%c0_74, %c2_75, %c2_76, %c0_77] : memref<2x10x10x8xbf16, #tpu.memory_space<vmem>>, vector<2x8x8x8xbf16>
    %64 = vector.shape_cast %63 : vector<2x8x8x8xbf16> to vector<128x8xbf16>
    %c0_78 = arith.constant 0 : index
    %c64 = arith.constant 64 : index
    %65 = vector.load %arg11[%c0_78, %c64] : memref<128x72xbf16, #tpu.memory_space<vmem>>, vector<128x8xbf16>
    tpu.vector_store %arg11[%c0_78, %c64], %64 {strides = array<i32>} : memref<128x72xbf16, #tpu.memory_space<vmem>>, vector<128x8xbf16>,
    %c0_79 = arith.constant 0 : index
    %c0_80 = arith.constant 0 : index
    %66 = vector.load %arg11[%c0_79, %c0_80] : memref<128x72xbf16, #tpu.memory_space<vmem>>, vector<128x72xbf16>
    %c0_81 = arith.constant 0 : index
    %c0_82 = arith.constant 0 : index
    %67 = vector.load %arg6[%c0_81, %c0_82] : memref<72x8xbf16, #tpu.memory_space<vmem>>, vector<72x8xbf16>
    %cst_83 = arith.constant dense<0.000000e+00> : vector<128x8xf32>
    %68 = tpu.matmul %66, %67, %cst_83 {dimension_numbers = #tpu.dot_dimension_numbers<[1], [0], [0], [1], [0, 0, 1, 1], [], []>} : vector<128x72xbf16>, vector<72x8xbf16>, vector<128x8xf32> -> vector<128x8xf32>
    %c0_84 = arith.constant 0 : index
    %c0_85 = arith.constant 0 : index
    %c0_86 = arith.constant 0 : index
    %c0_87 = arith.constant 0 : index
    %69 = vector.load %arg7[%c0_84, %c0_85, %c0_86, %c0_87] : memref<2x8x8x8xbf16, #tpu.memory_space<vmem>>, vector<2x8x8x8xbf16>
    %70 = vector.shape_cast %69 : vector<2x8x8x8xbf16> to vector<128x8xbf16>
    %71 = arith.extf %70 : vector<128x8xbf16> to vector<128x8xf32>
    %72 = arith.addf %68, %71 : vector<128x8xf32>
    %73 = arith.truncf %72 : vector<128x8xf32> to vector<128x8xbf16>
    %74 = vector.shape_cast %73 : vector<128x8xbf16> to vector<2x8x8x8xbf16>
    %c0_88 = arith.constant 0 : index
    %c0_89 = arith.constant 0 : index
    %c0_90 = arith.constant 0 : index
    %c0_91 = arith.constant 0 : index
    %75 = vector.load %arg8[%c0_88, %c0_89, %c0_90, %c0_91] : memref<2x8x8x8xbf16, #tpu.memory_space<vmem>>, vector<2x8x8x8xbf16>
    tpu.vector_store %arg8[%c0_88, %c0_89, %c0_90, %c0_91], %74 {strides = array<i32>} : memref<2x8x8x8xbf16, #tpu.memory_space<vmem>>, vector<2x8x8x8xbf16>,
    %cst_92 = arith.constant dense<0.000000e+00> : vector<8xf32>
    %76 = vector.multi_reduction <add>, %72, %cst_92 [0] : vector<128x8xf32> to vector<8xf32>
    %77 = vector.shape_cast %76 : vector<8xf32> to vector<1x8xf32>
    %78 = arith.mulf %72, %72 : vector<128x8xf32>
    %cst_93 = arith.constant dense<0.000000e+00> : vector<8xf32>
    %79 = vector.multi_reduction <add>, %78, %cst_93 [0] : vector<128x8xf32> to vector<8xf32>
    %80 = vector.shape_cast %79 : vector<8xf32> to vector<1x8xf32>
    %81 = tpu.concatenate %77, %80 in 0 : vector<1x8xf32>, vector<1x8xf32> -> vector<2x8xf32>
    %82 = vector.shape_cast %81 : vector<2x8xf32> to vector<1x2x8xf32>
    %c0_94 = arith.constant 0 : index
    %c0_95 = arith.constant 0 : index
    %c0_96 = arith.constant 0 : index
    %83 = vector.load %arg9[%c0_94, %c0_95, %c0_96] : memref<1x2x8xf32, #tpu.memory_space<vmem>>, vector<1x2x8xf32>
    tpu.vector_store %arg9[%c0_94, %c0_95, %c0_96], %82 {strides = array<i32>} : memref<1x2x8xf32, #tpu.memory_space<vmem>>, vector<1x2x8xf32>,
    return
  }
  func.func @transform_0(%arg0: i32) -> (i32, i32, i32, i32) {
    %c0_i32 = arith.constant 0 : i32
    %c0_i32_0 = arith.constant 0 : i32
    %c0_i32_1 = arith.constant 0 : i32
    %c0_i32_2 = arith.constant 0 : i32
    return %arg0, %c0_i32, %c0_i32_0, %c0_i32_1 : i32, i32, i32, i32
  }
  func.func @transform_1(%arg0: i32) -> (i32, i32) {
    %c0_i32 = arith.constant 0 : i32
    %c0_i32_0 = arith.constant 0 : i32
    %c0_i32_1 = arith.constant 0 : i32
    return %c0_i32, %c0_i32_0 : i32, i32
  }
  func.func @transform_2(%arg0: i32) -> (i32, i32) {
    %c0_i32 = arith.constant 0 : i32
    %c0_i32_0 = arith.constant 0 : i32
    %c0_i32_1 = arith.constant 0 : i32
    return %c0_i32, %c0_i32_0 : i32, i32
  }
  func.func @transform_3(%arg0: i32) -> (i32, i32) {
    %c0_i32 = arith.constant 0 : i32
    %c0_i32_0 = arith.constant 0 : i32
    %c0_i32_1 = arith.constant 0 : i32
    return %c0_i32, %c0_i32_0 : i32, i32
  }
  func.func @transform_4(%arg0: i32) -> (i32, i32) {
    %c0_i32 = arith.constant 0 : i32
    %c0_i32_0 = arith.constant 0 : i32
    %c0_i32_1 = arith.constant 0 : i32
    return %c0_i32, %c0_i32_0 : i32, i32
  }
  func.func @transform_5(%arg0: i32) -> (i32, i32) {
    %c0_i32 = arith.constant 0 : i32
    %c0_i32_0 = arith.constant 0 : i32
    %c0_i32_1 = arith.constant 0 : i32
    return %c0_i32, %c0_i32_0 : i32, i32
  }
  func.func @transform_6(%arg0: i32) -> (i32, i32, i32, i32) {
    %c0_i32 = arith.constant 0 : i32
    %c0_i32_0 = arith.constant 0 : i32
    %c0_i32_1 = arith.constant 0 : i32
    %c0_i32_2 = arith.constant 0 : i32
    return %arg0, %c0_i32, %c0_i32_0, %c0_i32_1 : i32, i32, i32, i32
  }
  func.func @transform_7(%arg0: i32) -> (i32, i32, i32, i32) {
    %c0_i32 = arith.constant 0 : i32
    %c0_i32_0 = arith.constant 0 : i32
    %c0_i32_1 = arith.constant 0 : i32
    %c0_i32_2 = arith.constant 0 : i32
    return %arg0, %c0_i32, %c0_i32_0, %c0_i32_1 : i32, i32, i32, i32
  }
  func.func @transform_8(%arg0: i32) -> (i32, i32, i32) {
    %c0_i32 = arith.constant 0 : i32
    %c0_i32_0 = arith.constant 0 : i32
    %c0_i32_1 = arith.constant 0 : i32
    return %arg0, %c0_i32, %c0_i32_0 : i32, i32, i32
  }
}

module attributes {stable_mosaic.version = 11 : i64} {
  func.func @kernel(%arg0: i32, %arg1: memref<2x8x8x8xbf16, #tpu.memory_space<vmem>>, %arg2: memref<2x8xf32, #tpu.memory_space<vmem>>, %arg3: memref<72x8xbf16, #tpu.memory_space<vmem>>, %arg4: memref<8x8xbf16, #tpu.memory_space<vmem>>, %arg5: memref<2x8x8x8xbf16, #tpu.memory_space<vmem>>, %arg6: memref<2x8x8x8xbf16, #tpu.memory_space<vmem>>, %arg7: memref<1x2x8xf32, #tpu.memory_space<vmem>>, %arg8: memref<2x10x10x8xbf16, #tpu.memory_space<vmem>>, %arg9: memref<128x72xbf16, #tpu.memory_space<vmem>>) attributes {dimension_semantics = [#tpu.dimension_semantics<parallel>], iteration_bounds = array<i64: 1>, scalar_prefetch = 0 : i64, scratch_operands = 2 : i64, tpu.core_type = #tpu.core_type<tc>, window_params = [{transform_indices = @transform_0, window_bounds = array<i64: 2, 8, 8, 8>}, {pipeline_mode = #tpu.pipeline_mode<synchronous>, transform_indices = @transform_1, window_bounds = array<i64: 2, 8>}, {pipeline_mode = #tpu.pipeline_mode<synchronous>, transform_indices = @transform_2, window_bounds = array<i64: 72, 8>}, {pipeline_mode = #tpu.pipeline_mode<synchronous>, transform_indices = @transform_3, window_bounds = array<i64: 8, 8>}, {transform_indices = @transform_4, window_bounds = array<i64: 2, 8, 8, 8>}, {transform_indices = @transform_5, window_bounds = array<i64: 2, 8, 8, 8>}, {transform_indices = @transform_6, window_bounds = array<i64: 1, 2, 8>}]} {
    %c0 = arith.constant 0 : index
    %c0_0 = arith.constant 0 : index
    %c0_1 = arith.constant 0 : index
    %c0_2 = arith.constant 0 : index
    %0 = vector.load %arg1[%c0, %c0_0, %c0_1, %c0_2] : memref<2x8x8x8xbf16, #tpu.memory_space<vmem>>, vector<2x8x8x8xbf16>
    %1 = vector.shape_cast %0 : vector<2x8x8x8xbf16> to vector<128x8xbf16>
    %2 = arith.extf %1 : vector<128x8xbf16> to vector<128x8xf32>
    %c0_3 = arith.constant 0 : index
    %c0_4 = arith.constant 0 : index
    %3 = vector.load %arg2[%c0_3, %c0_4] : memref<2x8xf32, #tpu.memory_space<vmem>>, vector<1x8xf32>
    %4 = vector.broadcast %3 : vector<1x8xf32> to vector<128x8xf32>
    %5 = arith.mulf %2, %4 : vector<128x8xf32>
    %c1 = arith.constant 1 : index
    %c0_5 = arith.constant 0 : index
    %6 = vector.load %arg2[%c1, %c0_5] : memref<2x8xf32, #tpu.memory_space<vmem>>, vector<1x8xf32>
    %7 = vector.broadcast %6 : vector<1x8xf32> to vector<128x8xf32>
    %8 = arith.addf %5, %7 : vector<128x8xf32>
    %cst = arith.constant 0.000000e+00 : f32
    %9 = vector.broadcast %cst : f32 to vector<128x8xf32>
    %10 = arith.maximumf %8, %9 : vector<128x8xf32>
    %11 = arith.truncf %10 : vector<128x8xf32> to vector<128x8xbf16>
    %c0_6 = arith.constant 0 : index
    %c0_7 = arith.constant 0 : index
    %12 = vector.load %arg4[%c0_6, %c0_7] : memref<8x8xbf16, #tpu.memory_space<vmem>>, vector<8x8xbf16>
    %cst_8 = arith.constant dense<0.000000e+00> : vector<128x8xf32>
    %13 = tpu.matmul %11, %12, %cst_8 {dimension_numbers = #tpu.dot_dimension_numbers<[1], [0], [0], [1], [0, 0, 1, 1], [], []>} : vector<128x8xbf16>, vector<8x8xbf16>, vector<128x8xf32> -> vector<128x8xf32>
    %14 = arith.truncf %13 : vector<128x8xf32> to vector<128x8xbf16>
    %15 = vector.shape_cast %14 : vector<128x8xbf16> to vector<2x8x8x8xbf16>
    %c0_9 = arith.constant 0 : index
    %c0_10 = arith.constant 0 : index
    %c0_11 = arith.constant 0 : index
    %c0_12 = arith.constant 0 : index
    %16 = vector.load %arg6[%c0_9, %c0_10, %c0_11, %c0_12] : memref<2x8x8x8xbf16, #tpu.memory_space<vmem>>, vector<2x8x8x8xbf16>
    tpu.vector_store %arg6[%c0_9, %c0_10, %c0_11, %c0_12], %15 {strides = array<i32>} : memref<2x8x8x8xbf16, #tpu.memory_space<vmem>>, vector<2x8x8x8xbf16>,
    %cst_13 = arith.constant 0.000000e+00 : bf16
    %17 = vector.broadcast %cst_13 : bf16 to vector<2x1x10x8xbf16>
    %cst_14 = arith.constant 0.000000e+00 : bf16
    %18 = vector.broadcast %cst_14 : bf16 to vector<2x8x1x8xbf16>
    %c0_15 = arith.constant 0 : index
    %c0_16 = arith.constant 0 : index
    %c0_17 = arith.constant 0 : index
    %c0_18 = arith.constant 0 : index
    %19 = vector.load %arg8[%c0_15, %c0_16, %c0_17, %c0_18] : memref<2x10x10x8xbf16, #tpu.memory_space<vmem>>, vector<2x1x10x8xbf16>
    tpu.vector_store %arg8[%c0_15, %c0_16, %c0_17, %c0_18], %17 {strides = array<i32>} : memref<2x10x10x8xbf16, #tpu.memory_space<vmem>>, vector<2x1x10x8xbf16>,
    %c0_19 = arith.constant 0 : index
    %c9 = arith.constant 9 : index
    %c0_20 = arith.constant 0 : index
    %c0_21 = arith.constant 0 : index
    %20 = vector.load %arg8[%c0_19, %c9, %c0_20, %c0_21] : memref<2x10x10x8xbf16, #tpu.memory_space<vmem>>, vector<2x1x10x8xbf16>
    tpu.vector_store %arg8[%c0_19, %c9, %c0_20, %c0_21], %17 {strides = array<i32>} : memref<2x10x10x8xbf16, #tpu.memory_space<vmem>>, vector<2x1x10x8xbf16>,
    %c0_22 = arith.constant 0 : index
    %c1_23 = arith.constant 1 : index
    %c0_24 = arith.constant 0 : index
    %c0_25 = arith.constant 0 : index
    %21 = vector.load %arg8[%c0_22, %c1_23, %c0_24, %c0_25] : memref<2x10x10x8xbf16, #tpu.memory_space<vmem>>, vector<2x8x1x8xbf16>
    tpu.vector_store %arg8[%c0_22, %c1_23, %c0_24, %c0_25], %18 {strides = array<i32>} : memref<2x10x10x8xbf16, #tpu.memory_space<vmem>>, vector<2x8x1x8xbf16>,
    %c0_26 = arith.constant 0 : index
    %c1_27 = arith.constant 1 : index
    %c9_28 = arith.constant 9 : index
    %c0_29 = arith.constant 0 : index
    %22 = vector.load %arg8[%c0_26, %c1_27, %c9_28, %c0_29] : memref<2x10x10x8xbf16, #tpu.memory_space<vmem>>, vector<2x8x1x8xbf16>
    tpu.vector_store %arg8[%c0_26, %c1_27, %c9_28, %c0_29], %18 {strides = array<i32>} : memref<2x10x10x8xbf16, #tpu.memory_space<vmem>>, vector<2x8x1x8xbf16>,
    %23 = vector.shape_cast %11 : vector<128x8xbf16> to vector<2x8x8x8xbf16>
    %c0_30 = arith.constant 0 : index
    %c1_31 = arith.constant 1 : index
    %c1_32 = arith.constant 1 : index
    %c0_33 = arith.constant 0 : index
    %24 = vector.load %arg8[%c0_30, %c1_31, %c1_32, %c0_33] : memref<2x10x10x8xbf16, #tpu.memory_space<vmem>>, vector<2x8x8x8xbf16>
    tpu.vector_store %arg8[%c0_30, %c1_31, %c1_32, %c0_33], %23 {strides = array<i32>} : memref<2x10x10x8xbf16, #tpu.memory_space<vmem>>, vector<2x8x8x8xbf16>,
    %c0_34 = arith.constant 0 : index
    %c0_35 = arith.constant 0 : index
    %c0_36 = arith.constant 0 : index
    %c0_37 = arith.constant 0 : index
    %25 = vector.load %arg8[%c0_34, %c0_35, %c0_36, %c0_37] : memref<2x10x10x8xbf16, #tpu.memory_space<vmem>>, vector<2x8x8x8xbf16>
    %26 = vector.shape_cast %25 : vector<2x8x8x8xbf16> to vector<128x8xbf16>
    %c0_38 = arith.constant 0 : index
    %c0_39 = arith.constant 0 : index
    %27 = vector.load %arg9[%c0_38, %c0_39] : memref<128x72xbf16, #tpu.memory_space<vmem>>, vector<128x8xbf16>
    tpu.vector_store %arg9[%c0_38, %c0_39], %26 {strides = array<i32>} : memref<128x72xbf16, #tpu.memory_space<vmem>>, vector<128x8xbf16>,
    %c0_40 = arith.constant 0 : index
    %c0_41 = arith.constant 0 : index
    %c1_42 = arith.constant 1 : index
    %c0_43 = arith.constant 0 : index
    %28 = vector.load %arg8[%c0_40, %c0_41, %c1_42, %c0_43] : memref<2x10x10x8xbf16, #tpu.memory_space<vmem>>, vector<2x8x8x8xbf16>
    %29 = vector.shape_cast %28 : vector<2x8x8x8xbf16> to vector<128x8xbf16>
    %c0_44 = arith.constant 0 : index
    %c8 = arith.constant 8 : index
    %30 = vector.load %arg9[%c0_44, %c8] : memref<128x72xbf16, #tpu.memory_space<vmem>>, vector<128x8xbf16>
    tpu.vector_store %arg9[%c0_44, %c8], %29 {strides = array<i32>} : memref<128x72xbf16, #tpu.memory_space<vmem>>, vector<128x8xbf16>,
    %c0_45 = arith.constant 0 : index
    %c0_46 = arith.constant 0 : index
    %c2 = arith.constant 2 : index
    %c0_47 = arith.constant 0 : index
    %31 = vector.load %arg8[%c0_45, %c0_46, %c2, %c0_47] : memref<2x10x10x8xbf16, #tpu.memory_space<vmem>>, vector<2x8x8x8xbf16>
    %32 = vector.shape_cast %31 : vector<2x8x8x8xbf16> to vector<128x8xbf16>
    %c0_48 = arith.constant 0 : index
    %c16 = arith.constant 16 : index
    %33 = vector.load %arg9[%c0_48, %c16] : memref<128x72xbf16, #tpu.memory_space<vmem>>, vector<128x8xbf16>
    tpu.vector_store %arg9[%c0_48, %c16], %32 {strides = array<i32>} : memref<128x72xbf16, #tpu.memory_space<vmem>>, vector<128x8xbf16>,
    %c0_49 = arith.constant 0 : index
    %c1_50 = arith.constant 1 : index
    %c0_51 = arith.constant 0 : index
    %c0_52 = arith.constant 0 : index
    %34 = vector.load %arg8[%c0_49, %c1_50, %c0_51, %c0_52] : memref<2x10x10x8xbf16, #tpu.memory_space<vmem>>, vector<2x8x8x8xbf16>
    %35 = vector.shape_cast %34 : vector<2x8x8x8xbf16> to vector<128x8xbf16>
    %c0_53 = arith.constant 0 : index
    %c24 = arith.constant 24 : index
    %36 = vector.load %arg9[%c0_53, %c24] : memref<128x72xbf16, #tpu.memory_space<vmem>>, vector<128x8xbf16>
    tpu.vector_store %arg9[%c0_53, %c24], %35 {strides = array<i32>} : memref<128x72xbf16, #tpu.memory_space<vmem>>, vector<128x8xbf16>,
    %c0_54 = arith.constant 0 : index
    %c1_55 = arith.constant 1 : index
    %c1_56 = arith.constant 1 : index
    %c0_57 = arith.constant 0 : index
    %37 = vector.load %arg8[%c0_54, %c1_55, %c1_56, %c0_57] : memref<2x10x10x8xbf16, #tpu.memory_space<vmem>>, vector<2x8x8x8xbf16>
    %38 = vector.shape_cast %37 : vector<2x8x8x8xbf16> to vector<128x8xbf16>
    %c0_58 = arith.constant 0 : index
    %c32 = arith.constant 32 : index
    %39 = vector.load %arg9[%c0_58, %c32] : memref<128x72xbf16, #tpu.memory_space<vmem>>, vector<128x8xbf16>
    tpu.vector_store %arg9[%c0_58, %c32], %38 {strides = array<i32>} : memref<128x72xbf16, #tpu.memory_space<vmem>>, vector<128x8xbf16>,
    %c0_59 = arith.constant 0 : index
    %c1_60 = arith.constant 1 : index
    %c2_61 = arith.constant 2 : index
    %c0_62 = arith.constant 0 : index
    %40 = vector.load %arg8[%c0_59, %c1_60, %c2_61, %c0_62] : memref<2x10x10x8xbf16, #tpu.memory_space<vmem>>, vector<2x8x8x8xbf16>
    %41 = vector.shape_cast %40 : vector<2x8x8x8xbf16> to vector<128x8xbf16>
    %c0_63 = arith.constant 0 : index
    %c40 = arith.constant 40 : index
    %42 = vector.load %arg9[%c0_63, %c40] : memref<128x72xbf16, #tpu.memory_space<vmem>>, vector<128x8xbf16>
    tpu.vector_store %arg9[%c0_63, %c40], %41 {strides = array<i32>} : memref<128x72xbf16, #tpu.memory_space<vmem>>, vector<128x8xbf16>,
    %c0_64 = arith.constant 0 : index
    %c2_65 = arith.constant 2 : index
    %c0_66 = arith.constant 0 : index
    %c0_67 = arith.constant 0 : index
    %43 = vector.load %arg8[%c0_64, %c2_65, %c0_66, %c0_67] : memref<2x10x10x8xbf16, #tpu.memory_space<vmem>>, vector<2x8x8x8xbf16>
    %44 = vector.shape_cast %43 : vector<2x8x8x8xbf16> to vector<128x8xbf16>
    %c0_68 = arith.constant 0 : index
    %c48 = arith.constant 48 : index
    %45 = vector.load %arg9[%c0_68, %c48] : memref<128x72xbf16, #tpu.memory_space<vmem>>, vector<128x8xbf16>
    tpu.vector_store %arg9[%c0_68, %c48], %44 {strides = array<i32>} : memref<128x72xbf16, #tpu.memory_space<vmem>>, vector<128x8xbf16>,
    %c0_69 = arith.constant 0 : index
    %c2_70 = arith.constant 2 : index
    %c1_71 = arith.constant 1 : index
    %c0_72 = arith.constant 0 : index
    %46 = vector.load %arg8[%c0_69, %c2_70, %c1_71, %c0_72] : memref<2x10x10x8xbf16, #tpu.memory_space<vmem>>, vector<2x8x8x8xbf16>
    %47 = vector.shape_cast %46 : vector<2x8x8x8xbf16> to vector<128x8xbf16>
    %c0_73 = arith.constant 0 : index
    %c56 = arith.constant 56 : index
    %48 = vector.load %arg9[%c0_73, %c56] : memref<128x72xbf16, #tpu.memory_space<vmem>>, vector<128x8xbf16>
    tpu.vector_store %arg9[%c0_73, %c56], %47 {strides = array<i32>} : memref<128x72xbf16, #tpu.memory_space<vmem>>, vector<128x8xbf16>,
    %c0_74 = arith.constant 0 : index
    %c2_75 = arith.constant 2 : index
    %c2_76 = arith.constant 2 : index
    %c0_77 = arith.constant 0 : index
    %49 = vector.load %arg8[%c0_74, %c2_75, %c2_76, %c0_77] : memref<2x10x10x8xbf16, #tpu.memory_space<vmem>>, vector<2x8x8x8xbf16>
    %50 = vector.shape_cast %49 : vector<2x8x8x8xbf16> to vector<128x8xbf16>
    %c0_78 = arith.constant 0 : index
    %c64 = arith.constant 64 : index
    %51 = vector.load %arg9[%c0_78, %c64] : memref<128x72xbf16, #tpu.memory_space<vmem>>, vector<128x8xbf16>
    tpu.vector_store %arg9[%c0_78, %c64], %50 {strides = array<i32>} : memref<128x72xbf16, #tpu.memory_space<vmem>>, vector<128x8xbf16>,
    %c0_79 = arith.constant 0 : index
    %c0_80 = arith.constant 0 : index
    %52 = vector.load %arg9[%c0_79, %c0_80] : memref<128x72xbf16, #tpu.memory_space<vmem>>, vector<128x72xbf16>
    %c0_81 = arith.constant 0 : index
    %c0_82 = arith.constant 0 : index
    %53 = vector.load %arg3[%c0_81, %c0_82] : memref<72x8xbf16, #tpu.memory_space<vmem>>, vector<72x8xbf16>
    %cst_83 = arith.constant dense<0.000000e+00> : vector<128x8xf32>
    %54 = tpu.matmul %52, %53, %cst_83 {dimension_numbers = #tpu.dot_dimension_numbers<[1], [0], [0], [1], [0, 0, 1, 1], [], []>} : vector<128x72xbf16>, vector<72x8xbf16>, vector<128x8xf32> -> vector<128x8xf32>
    %55 = arith.truncf %54 : vector<128x8xf32> to vector<128x8xbf16>
    %56 = vector.shape_cast %55 : vector<128x8xbf16> to vector<2x8x8x8xbf16>
    %c0_84 = arith.constant 0 : index
    %c0_85 = arith.constant 0 : index
    %c0_86 = arith.constant 0 : index
    %c0_87 = arith.constant 0 : index
    %57 = vector.load %arg5[%c0_84, %c0_85, %c0_86, %c0_87] : memref<2x8x8x8xbf16, #tpu.memory_space<vmem>>, vector<2x8x8x8xbf16>
    tpu.vector_store %arg5[%c0_84, %c0_85, %c0_86, %c0_87], %56 {strides = array<i32>} : memref<2x8x8x8xbf16, #tpu.memory_space<vmem>>, vector<2x8x8x8xbf16>,
    %cst_88 = arith.constant dense<0.000000e+00> : vector<8xf32>
    %58 = vector.multi_reduction <add>, %54, %cst_88 [0] : vector<128x8xf32> to vector<8xf32>
    %59 = vector.shape_cast %58 : vector<8xf32> to vector<1x8xf32>
    %60 = arith.mulf %54, %54 : vector<128x8xf32>
    %cst_89 = arith.constant dense<0.000000e+00> : vector<8xf32>
    %61 = vector.multi_reduction <add>, %60, %cst_89 [0] : vector<128x8xf32> to vector<8xf32>
    %62 = vector.shape_cast %61 : vector<8xf32> to vector<1x8xf32>
    %63 = tpu.concatenate %59, %62 in 0 : vector<1x8xf32>, vector<1x8xf32> -> vector<2x8xf32>
    %64 = vector.shape_cast %63 : vector<2x8xf32> to vector<1x2x8xf32>
    %c0_90 = arith.constant 0 : index
    %c0_91 = arith.constant 0 : index
    %c0_92 = arith.constant 0 : index
    %65 = vector.load %arg7[%c0_90, %c0_91, %c0_92] : memref<1x2x8xf32, #tpu.memory_space<vmem>>, vector<1x2x8xf32>
    tpu.vector_store %arg7[%c0_90, %c0_91, %c0_92], %64 {strides = array<i32>} : memref<1x2x8xf32, #tpu.memory_space<vmem>>, vector<1x2x8xf32>,
    return
  }
  func.func @transform_0(%arg0: i32) -> (i32, i32, i32, i32) {
    %c0_i32 = arith.constant 0 : i32
    %c0_i32_0 = arith.constant 0 : i32
    %c0_i32_1 = arith.constant 0 : i32
    %c0_i32_2 = arith.constant 0 : i32
    return %arg0, %c0_i32, %c0_i32_0, %c0_i32_1 : i32, i32, i32, i32
  }
  func.func @transform_1(%arg0: i32) -> (i32, i32) {
    %c0_i32 = arith.constant 0 : i32
    %c0_i32_0 = arith.constant 0 : i32
    %c0_i32_1 = arith.constant 0 : i32
    return %c0_i32, %c0_i32_0 : i32, i32
  }
  func.func @transform_2(%arg0: i32) -> (i32, i32) {
    %c0_i32 = arith.constant 0 : i32
    %c0_i32_0 = arith.constant 0 : i32
    %c0_i32_1 = arith.constant 0 : i32
    return %c0_i32, %c0_i32_0 : i32, i32
  }
  func.func @transform_3(%arg0: i32) -> (i32, i32) {
    %c0_i32 = arith.constant 0 : i32
    %c0_i32_0 = arith.constant 0 : i32
    %c0_i32_1 = arith.constant 0 : i32
    return %c0_i32, %c0_i32_0 : i32, i32
  }
  func.func @transform_4(%arg0: i32) -> (i32, i32, i32, i32) {
    %c0_i32 = arith.constant 0 : i32
    %c0_i32_0 = arith.constant 0 : i32
    %c0_i32_1 = arith.constant 0 : i32
    %c0_i32_2 = arith.constant 0 : i32
    return %arg0, %c0_i32, %c0_i32_0, %c0_i32_1 : i32, i32, i32, i32
  }
  func.func @transform_5(%arg0: i32) -> (i32, i32, i32, i32) {
    %c0_i32 = arith.constant 0 : i32
    %c0_i32_0 = arith.constant 0 : i32
    %c0_i32_1 = arith.constant 0 : i32
    %c0_i32_2 = arith.constant 0 : i32
    return %arg0, %c0_i32, %c0_i32_0, %c0_i32_1 : i32, i32, i32, i32
  }
  func.func @transform_6(%arg0: i32) -> (i32, i32, i32) {
    %c0_i32 = arith.constant 0 : i32
    %c0_i32_0 = arith.constant 0 : i32
    %c0_i32_1 = arith.constant 0 : i32
    return %arg0, %c0_i32, %c0_i32_0 : i32, i32, i32
  }
}

</mosaic_0001>

<bundles_post_ra>
// kernel: mul.17
= control target key start
LH: loop header
LB: loop body
LE: loop exit
PB: predicated region body
PF: predicated region fallthrough
CT: control target
= control target key end

     0   :  { %vm16_vm0 = vcmask 64512   ;;  %s61_s0 = inlined_call_operand.vmem [shape: f32[3,3,8], index: 0, kind: input, shape index: {}]   ;;  %s62_s1 = inlined_call_operand.vmem [shape: f32[9,8], index: 1, kind: output, shape index: {}]  }
   0x1   :  { %v29_v0 = vld [vmem:[%s61_s0 + $0x8] sm:$0xf]  ;;  %v30_v1 = vld [vmem:[%s61_s0 + $0x4] sm:$0xf]  ;;  %v13_v2 = vld [vmem:[%s61_s0] sm:$0xf] }
   0x2   :  { %8 = vst [vmem:[#allocation0 + $0x10] sm:$0xf] %v29_v0  ;;  %12 = vst [vmem:[#allocation0 + $0x8] sm:$0xf] %v30_v1 }
   0x3   :  { %14 = vst [vmem:[#allocation0] sm:$0xf] %v13_v2 }
   0x9   :  { %v19_v4 = vld [vmem:[#allocation0 + $0x8] sm:$0x7]   ;;  %v24_v5 = vld [vmem:[#allocation0 + $0x10] sm:$0x7]  }
   0xa   :  { %v15_v3 = vld [vmem:[#allocation0] sm:$0x7]   ;;  %31 = vst.msk [vmem:[%s62_s1 + $0x3] sm:$0x7] %vm16_vm0, %v19_v4   ;;  %32 = vst.msk [vmem:[%s62_s1 + $0x6] sm:$0x7] %vm16_vm0, %v24_v5  }
   0xb   :  { %17 = vst.msk [vmem:[%s62_s1] sm:$0x7] %vm16_vm0, %v15_v3  }

// kernel: encoder_block_forward.7
= control target key start
LH: loop header
LB: loop body
LE: loop exit
PB: predicated region body
PF: predicated region fallthrough
CT: control target
= control target key end

     0   :  { %vm101_vm0 = vcmask 64512   ;;  %s308_s0 = inlined_call_operand.vmem [shape: bf16[2,8,8,8], index: 0, kind: input, shape index: {}]   ;;  %s309_s1 = inlined_call_operand.vmem [shape: f32[2,8], index: 1, kind: input, shape index: {}]   ;;  %s310_s2 = inlined_call_operand.vmem [shape: f32[2,8,8,8], index: 2, kind: output, shape index: {}]  }
   0x1   :  { %v125_v0 = vld [vmem:[%s308_s0] sm:$0xff]   ;;  %v156_v4 = vld [vmem:[%s308_s0 + $0x8] sm:$0xff]   ;;  %v157_v5 = vld [vmem:[%s308_s0 + $0x10] sm:$0xff]  }
   0x2   :  { %v184_v1 = vld [vmem:[%s309_s1] ss:$0 sm:$0xff]  ;;  %v126_v2 = vunpack.c.l.bf16 %v125_v0  ;;  %v127_v3 = vunpack.c.h.bf16 %v125_v0  ;;  %v158_v6 = vld [vmem:[%s308_s0 + $0x18] sm:$0xff]   ;;  %v198_v7 = vld [vmem:[%s309_s1 + $0x1] ss:$0 sm:$0xff]  ;;  %v130_v8 = vunpack.c.l.bf16 %v156_v4  ;;  %v131_v9 = vunpack.c.h.bf16 %v156_v4 }
   0x3   :  { %v134_v10 = vunpack.c.l.bf16 %v157_v5  ;;  %v135_v11 = vunpack.c.h.bf16 %v157_v5  ;;  %v138_v14 = vunpack.c.l.bf16 %v158_v6  ;;  %v139_v15 = vunpack.c.h.bf16 %v158_v6  ;;  %v159_v28 = vld [vmem:[%s308_s0 + $0x20] sm:$0xff]   ;;  %v160_v33 = vld [vmem:[%s308_s0 + $0x28] sm:$0xff]   ;;  %v161_v34 = vld [vmem:[%s308_s0 + $0x30] sm:$0xff]  }
   0x4   :  { %v48_v12 = vmul.f32 %v126_v2, %v184_v1  ;;  %v49_v13 = vmul.f32 %v127_v3, %v184_v1  ;;  %v50_v16 = vmul.f32 %v130_v8, %v184_v1  ;;  %v51_v17 = vmul.f32 %v131_v9, %v184_v1  ;;  %v162_v39 = vld [vmem:[%s308_s0 + $0x38] sm:$0xff]  }
   0x5   :  { %v52_v18 = vmul.f32 %v134_v10, %v184_v1  ;;  %v53_v19 = vmul.f32 %v135_v11, %v184_v1  ;;  %v54_v22 = vmul.f32 %v138_v14, %v184_v1  ;;  %v55_v23 = vmul.f32 %v139_v15, %v184_v1 }
   0x6   :  { %v69_v20 = vadd.f32 %v198_v7, %v48_v12  ;;  %v70_v21 = vadd.f32 %v198_v7, %v49_v13  ;;  %v71_v24 = vadd.f32 %v198_v7, %v50_v16  ;;  %v72_v25 = vadd.f32 %v198_v7, %v51_v17 }
   0x7   :  { %v73_v26 = vadd.f32 %v198_v7, %v52_v18  ;;  %v74_v27 = vadd.f32 %v198_v7, %v53_v19  ;;  %v75_v31 = vadd.f32 %v198_v7, %v54_v22  ;;  %v76_v32 = vadd.f32 %v198_v7, %v55_v23 }
   0x8   :  { %v85_v29 = vmax.f32 %v69_v20, 0.0  ;;  %v86_v30 = vmax.f32 %v70_v21, 0.0  ;;  %v87_v35 = vmax.f32 %v71_v24, 0.0  ;;  %v88_v36 = vmax.f32 %v72_v25, 0.0 }
   0x9   :  { %v89_v37 = vmax.f32 %v73_v26, 0.0  ;;  %v90_v38 = vmax.f32 %v74_v27, 0.0  ;;  %v91_v40 = vmax.f32 %v75_v31, 0.0  ;;  %v92_v41 = vmax.f32 %v76_v32, 0.0 }
   0xa   :  { %102 = vst.msk [vmem:[%s310_s2] sm:$0xff] %vm101_vm0, %v85_v29  ;;  %103 = vst.msk [vmem:[%s310_s2 + $0x8] sm:$0xff] %vm101_vm0, %v86_v30  ;;  %v142_v42 = vunpack.c.l.bf16 %v159_v28  ;;  %v143_v43 = vunpack.c.h.bf16 %v159_v28  ;;  %v146_v44 = vunpack.c.l.bf16 %v160_v33  ;;  %v147_v45 = vunpack.c.h.bf16 %v160_v33 }
   0xb   :  { %104 = vst.msk [vmem:[%s310_s2 + $0x10] sm:$0xff] %vm101_vm0, %v87_v35  ;;  %105 = vst.msk [vmem:[%s310_s2 + $0x18] sm:$0xff] %vm101_vm0, %v88_v36  ;;  %v150_v46 = vunpack.c.l.bf16 %v161_v34  ;;  %v151_v47 = vunpack.c.h.bf16 %v161_v34  ;;  %v154_v50 = vunpack.c.l.bf16 %v162_v39  ;;  %v155_v51 = vunpack.c.h.bf16 %v162_v39 }
   0xc   :  { %106 = vst.msk [vmem:[%s310_s2 + $0x20] sm:$0xff] %vm101_vm0, %v89_v37  ;;  %107 = vst.msk [vmem:[%s310_s2 + $0x28] sm:$0xff] %vm101_vm0, %v90_v38  ;;  %v56_v48 = vmul.f32 %v142_v42, %v184_v1  ;;  %v57_v49 = vmul.f32 %v143_v43, %v184_v1  ;;  %v58_v52 = vmul.f32 %v146_v44, %v184_v1 }
   0xd   :  { %108 = vst.msk [vmem:[%s310_s2 + $0x30] sm:$0xff] %vm101_vm0, %v91_v40  ;;  %109 = vst.msk [vmem:[%s310_s2 + $0x38] sm:$0xff] %vm101_vm0, %v92_v41  ;;  %v59_v53 = vmul.f32 %v147_v45, %v184_v1  ;;  %v60_v54 = vmul.f32 %v150_v46, %v184_v1  ;;  %v61_v55 = vmul.f32 %v151_v47, %v184_v1 }
   0xe   :  { %v77_v56 = vadd.f32 %v198_v7, %v56_v48  ;;  %v78_v57 = vadd.f32 %v198_v7, %v57_v49  ;;  %v62_v58 = vmul.f32 %v154_v50, %v184_v1  ;;  %v63_v59 = vmul.f32 %v155_v51, %v184_v1 }
   0xf   :  { %v79_v60 = vadd.f32 %v198_v7, %v58_v52  ;;  %v80_v61 = vadd.f32 %v198_v7, %v59_v53  ;;  %v81_v62 = vadd.f32 %v198_v7, %v60_v54  ;;  %v82_v63 = vadd.f32 %v198_v7, %v61_v55 }
  0x10   :  { %v93_v0 = vmax.f32 %v77_v56, 0.0  ;;  %v94_v2 = vmax.f32 %v78_v57, 0.0  ;;  %v83_v3 = vadd.f32 %v198_v7, %v62_v58  ;;  %v84_v4 = vadd.f32 %v198_v7, %v63_v59 }
  0x11   :  { %v95_v5 = vmax.f32 %v79_v60, 0.0  ;;  %v96_v6 = vmax.f32 %v80_v61, 0.0  ;;  %v97_v8 = vmax.f32 %v81_v62, 0.0  ;;  %v98_v9 = vmax.f32 %v82_v63, 0.0 }
  0x12   :  { %110 = vst.msk [vmem:[%s310_s2 + $0x40] sm:$0xff] %vm101_vm0, %v93_v0  ;;  %111 = vst.msk [vmem:[%s310_s2 + $0x48] sm:$0xff] %vm101_vm0, %v94_v2  ;;  %v99_v1 = vmax.f32 %v83_v3, 0.0  ;;  %v100_v10 = vmax.f32 %v84_v4, 0.0 }
  0x13   :  { %112 = vst.msk [vmem:[%s310_s2 + $0x50] sm:$0xff] %vm101_vm0, %v95_v5  ;;  %113 = vst.msk [vmem:[%s310_s2 + $0x58] sm:$0xff] %vm101_vm0, %v96_v6 }
  0x14   :  { %114 = vst.msk [vmem:[%s310_s2 + $0x60] sm:$0xff] %vm101_vm0, %v97_v8  ;;  %115 = vst.msk [vmem:[%s310_s2 + $0x68] sm:$0xff] %vm101_vm0, %v98_v9 }
  0x15   :  { %116 = vst.msk [vmem:[%s310_s2 + $0x70] sm:$0xff] %vm101_vm0, %v99_v1  ;;  %117 = vst.msk [vmem:[%s310_s2 + $0x78] sm:$0xff] %vm101_vm0, %v100_v10 }

// kernel: encoder_block_forward.4
= control target key start
LH: loop header
LB: loop body
LE: loop exit
PB: predicated region body
PF: predicated region fallthrough
CT: control target
= control target key end

     0   :  { %vm99_vm0 = vcmask 1041408   ;;  %vm74_vm1 = vcmask 31744   ;;  %vm1552_vm2 = vcmask 60416   ;;  %vm1569_vm3 = vcmask 64512   ;;  %s2928_s4 = inlined_call_operand.vmem [shape: bf16[9,4,8], index: 4, kind: input, shape index: {}]   ;;  %s2929_s1 = inlined_call_operand.vmem [shape: f32[2,9,9,4], index: 1, kind: input, shape index: {}]   ;;  %s2930_s3 = inlined_call_operand.vmem [shape: f32[2,9,9,4], index: 3, kind: input, shape index: {}]   ;;  %s2931_s2 = inlined_call_operand.vmem [shape: f32[2,9,9,4], index: 2, kind: input, shape index: {}]   ;;  %s2932_s0 = inlined_call_operand.vmem [shape: f32[2,9,9,4], index: 0, kind: input, shape index: {}]   ;;  %s2933_s5 = inlined_call_operand.vmem [shape: bf16[2,8,8,8], index: 5, kind: output, shape index: {0}]   ;;  %s2934_s6 = inlined_call_operand.vmem [shape: f32[1,2,8], index: 6, kind: output, shape index: {1}]  }
   0x1   :  { %v1672_v0 = vld [vmem:[%s2928_s4 + $0x2] sm:$0x3]  ;;  %v2256_v1 = vld [vmem:[%s2928_s4 + $0x8] sm:$0x3]  ;;  %v2272_v5 = vld [vmem:[%s2929_s1 + $0x10] sm:$0xff]  ;;  %vm1660_vm4 = vcmask 1040384  }
   0x2   :  { %v48_v2 = vld [vmem:[%s2929_s1] sm:$0xff]  ;;  %2205 = vmatprep.subr.msk.bf16.mxu1 %vm99_vm0, %v1672_v0  ;;  %2209 = vmatprep.subr.msk.bf16.mxu0 %vm99_vm0, %v2256_v1  ;;  %v101_v3 = vsel %vm99_vm0, %v1672_v0, 0  ;;  %v2267_v4 = vsel %vm99_vm0, %v2256_v1, 0  ;;  %v657_v7 = vld [vmem:[%s2930_s3 + $0x10] sm:$0xff]  ;;  %v1716_v16 = vld [vmem:[%s2928_s4 + $0xa] sm:$0x3] }
   0x3   :  { %v656_v6 = vld [vmem:[%s2930_s3] sm:$0xff]  ;;  %1914 = vmatpush3.bf16.msra.mxu1 %v101_v3  ;;  %1986 = vmatpush3.bf16.msra.mxu0 %v2267_v4  ;;  %v64_v8 = vpack.c.bf16 %v2272_v5, %v48_v2  ;;  %v2290_v11 = vld [vmem:[%s2929_s1 + $0x30] sm:$0xff]  ;;  %v873_v20 = vsel %vm99_vm0, %v1716_v16, 0  ;;  %v1741_v40 = vld [vmem:[%s2928_s4 + $0xc] sm:$0x3]  ;;  %vm1662_vm5 = vcmask 58368  }
   0x4   :  { %v672_v9 = vpack.c.bf16 %v657_v7, %v656_v6  ;;  %v2285_v10 = vld [vmem:[%s2929_s1 + $0x20] sm:$0xff]  ;;  %v659_v15 = vld [vmem:[%s2930_s3 + $0x30] sm:$0xff]  ;;  %2211 = vmatprep.subr.msk.bf16.mxu0 %vm99_vm0, %v1716_v16  ;;  %v1040_v59 = vsel %vm99_vm0, %v1741_v40, 0  ;;  %v2437_v60 = vld [vmem:[%s2928_s4 + $0xe] sm:$0x3] }
   0x5   :  { %v47_v12 = vld [vmem:[%s2928_s4] sm:$0x3]  ;;  %v65_v13 = vpack.c.bf16 %v2290_v11, %v2285_v10  ;;  %v1172_v18 = vpack.c.bf16 %v2285_v10, %v2272_v5  ;;  %1915 = vmatprep.mubr.msk.bf16.mxu1 %vm74_vm1, %v64_v8  ;;  %v2321_v22 = vld [vmem:[%s2929_s1 + $0x50] sm:$0xff]  ;;  %v1689_v50 = vld [vmem:[%s2928_s4 + $0x4] sm:$0x3] }
   0x6   :  { %2206 = vmatprep.subr.msk.bf16.mxu1 %vm99_vm0, %v47_v12  ;;  %v658_v14 = vld [vmem:[%s2930_s3 + $0x20] sm:$0xff]  ;;  %v225_v17 = vsel %vm99_vm0, %v47_v12, 0  ;;  %1987 = vmatprep.mubr.msk.bf16.mxu0 %vm74_vm1, %v672_v9  ;;  %v661_v25 = vld [vmem:[%s2930_s3 + $0x50] sm:$0xff] }
   0x7   :  { %v673_v19 = vpack.c.bf16 %v659_v15, %v658_v14  ;;  %v2316_v21 = vld [vmem:[%s2929_s1 + $0x40] sm:$0xff]  ;;  %1916 = vmatmul.mubr.msk.bf16.vlgmr.msra.gmra.mrb[0].mxu1 %vm74_vm1, %v65_v13  ;;  %v2344_v29 = vld [vmem:[%s2929_s1 + $0x70] sm:$0xff] }
   0x8   :  { %v660_v23 = vld [vmem:[%s2930_s3 + $0x40] sm:$0xff]  ;;  %v66_v24 = vpack.c.bf16 %v2321_v22, %v2316_v21  ;;  %v1173_v27 = vpack.c.bf16 %v2316_v21, %v2290_v11  ;;  %1932 = vmatpush3.bf16.msra.mxu1 %v225_v17  ;;  %v663_v32 = vld [vmem:[%s2930_s3 + $0x70] sm:$0xff] }
   0x9   :  { %v2336_v26 = vld [vmem:[%s2929_s1 + $0x60] sm:$0xff]  ;;  %1988 = vmatmul.mubr.msk.bf16.vlgmr.msra.gmra.mrb[0].mxu0 %vm74_vm1, %v673_v19  ;;  %v674_v28 = vpack.c.bf16 %v661_v25, %v660_v23  ;;  %v56_v33 = vld [vmem:[%s2929_s1 + $0x90] sm:$0xff]  ;;  %2207 = vmatprep.subr.msk.bf16.mxu1 %vm99_vm0, %v1689_v50 }
   0xa   :  { %v662_v30 = vld [vmem:[%s2930_s3 + $0x60] sm:$0xff]  ;;  %v1174_v31 = vpack.c.bf16 %v2336_v26, %v2321_v22  ;;  %2004 = vmatpush3.bf16.msra.mxu0 %v873_v20  ;;  %1919 = vmatprep.mubr.msk.bf16.mxu1 %vm74_vm1, %v66_v24  ;;  %v823_v36 = vld [vmem:[%s2931_s2 + $0x11] sm:$0xff]  ;;  %v67_v38 = vpack.c.bf16 %v2344_v29, %v2336_v26 }
   0xb   :  { %v2361_v34 = vld [vmem:[%s2929_s1 + $0xa0] sm:$0xff]  ;;  %1991 = vmatprep.mubr.msk.bf16.mxu0 %vm74_vm1, %v674_v28  ;;  %v2373_v37 = vld [vmem:[%s2929_s1 + $0xb0] sm:$0xff]  ;;  %v675_v43 = vpack.c.bf16 %v663_v32, %v662_v30  ;;  %2212 = vmatprep.subr.msk.bf16.mxu0 %vm99_vm0, %v1741_v40 }
   0xc   :  { %v822_v35 = vld [vmem:[%s2931_s2 + $0x1] sm:$0xff]  ;;  %v2388_v41 = vld [vmem:[%s2929_s1 + $0xd0] sm:$0xff]  ;;  %v1176_v42 = vpack.c.bf16 %v2373_v37, %v2361_v34  ;;  %v68_v44 = vpack.c.bf16 %v2361_v34, %v56_v33 }
   0xd   :  { %v2380_v39 = vld [vmem:[%s2929_s1 + $0xc0] sm:$0xff]  ;;  %v838_v46 = vpack.c.bf16 %v823_v36, %v822_v35  ;;  %v2404_v48 = vld [vmem:[%s2929_s1 + $0xf0] sm:$0xff]  ;;  %v375_v35 = vsel %vm99_vm0, %v1689_v50, 0 }
   0xe   :  { %v1177_v45 = vpack.c.bf16 %v2388_v41, %v2380_v39  ;;  %v2399_v47 = vld [vmem:[%s2929_s1 + $0xe0] sm:$0xff]  ;;  %v825_v52 = vld [vmem:[%s2931_s2 + $0x31] sm:$0xff]  ;;  %v69_v55 = vpack.c.bf16 %v2380_v39, %v2373_v37 }
   0xf   :  { %v1178_v49 = vpack.c.bf16 %v2404_v48, %v2399_v47  ;;  %1920 = vmatmul.mubr.msk.bf16.gmra.mrb[4].mxu1 %vm74_vm1, %v67_v38  ;;  %v824_v51 = vld [vmem:[%s2931_s2 + $0x21] sm:$0xff]  ;;  %v827_v54 = vld [vmem:[%s2931_s2 + $0x51] sm:$0xff]  ;;  %v70_v57 = vpack.c.bf16 %v2399_v47, %v2388_v41 }
  0x10   :  { %1923 = vmatprep.mubr.msk.bf16.mxu1 %vm74_vm1, %v68_v44  ;;  %v826_v53 = vld [vmem:[%s2931_s2 + $0x41] sm:$0xff]  ;;  %v839_v56 = vpack.c.bf16 %v825_v52, %v824_v51  ;;  %v829_v63 = vld [vmem:[%s2931_s2 + $0x71] sm:$0xff] }
  0x11   :  { %1992 = vmatmul.mubr.msk.bf16.gmra.mrb[4].mxu0 %vm74_vm1, %v675_v43  ;;  %v840_v58 = vpack.c.bf16 %v827_v54, %v826_v53  ;;  %v2444_v61 = vld [vmem:[%s2929_s1 + $0x100] sm:$0xff]  ;;  %v24_v2 = vld [vmem:[%s2932_s0 + $0x10] sm:$0xff] }
  0x12   :  { %2005 = vmatprep.mubr.msk.bf16.mxu0 %vm74_vm1, %v838_v46  ;;  %v828_v62 = vld [vmem:[%s2931_s2 + $0x61] sm:$0xff]  ;;  %v830_v3 = vld [vmem:[%s2931_s2 + $0x91] sm:$0xff]  ;;  %v71_v7 = vpack.c.bf16 %v2444_v61, %v2404_v48 }
  0x13   :  { %v23_v0 = vld [vmem:[%s2932_s0] sm:$0xff]  ;;  %v841_v8 = vpack.c.bf16 %v829_v63, %v828_v62  ;;  %v26_v16 = vld [vmem:[%s2932_s0 + $0x30] sm:$0xff] }
  0x14   :  { %v831_v6 = vld [vmem:[%s2931_s2 + $0xa1] sm:$0xff]  ;;  %v39_v9 = vpack.c.bf16 %v24_v2, %v23_v0  ;;  %v2488_v17 = vld [vmem:[%s2929_s1 + $0x110] sm:$0xff] }
  0x15   :  { %v842_v12 = vpack.c.bf16 %v831_v6, %v830_v3  ;;  %v2472_v13 = vld [vmem:[%s2929_s1 + $0x80] sm:$0xff]  ;;  %v832_v19 = vld [vmem:[%s2931_s2 + $0xb1] sm:$0xff]  ;;  %v1179_v24 = vpack.c.bf16 %v2488_v17, %v2444_v61  ;;  %v1207_v6 = vsel %vm99_vm0, %v2437_v60, 0 }
  0x16   :  { %v1175_v14 = vpack.c.bf16 %v2472_v13, %v2344_v29  ;;  %v25_v15 = vld [vmem:[%s2932_s0 + $0x20] sm:$0xff]  ;;  %v28_v25 = vld [vmem:[%s2932_s0 + $0x50] sm:$0xff] }
  0x17   :  { %1924 = vmatmul.mubr.msk.bf16.gmra.mrb[8].mxu1 %vm74_vm1, %v69_v55  ;;  %v833_v20 = vld [vmem:[%s2931_s2 + $0xc1] sm:$0xff]  ;;  %v834_v28 = vld [vmem:[%s2931_s2 + $0xd1] sm:$0xff]  ;;  %v40_v32 = vpack.c.bf16 %v26_v16, %v25_v15 }
  0x18   :  { %1927 = vmatprep.mubr.msk.bf16.mxu1 %vm74_vm1, %v70_v57  ;;  %v27_v23 = vld [vmem:[%s2932_s0 + $0x40] sm:$0xff]  ;;  %v843_v33 = vpack.c.bf16 %v833_v20, %v832_v19  ;;  %v30_v44 = vld [vmem:[%s2932_s0 + $0x70] sm:$0xff] }
  0x19   :  { %2006 = vmatmul.mubr.msk.bf16.vlgmr.msra.gmra.mrb[0].mxu0 %vm74_vm1, %v839_v56  ;;  %v835_v30 = vld [vmem:[%s2931_s2 + $0xe1] sm:$0xff]  ;;  %v41_v36 = vpack.c.bf16 %v28_v25, %v27_v23  ;;  %v836_v46 = vld [vmem:[%s2931_s2 + $0xf1] sm:$0xff]  ;;  %v1005_v56 = vpack.c.bf16 %v25_v15, %v24_v2  ;;  %v1006_v0 = vpack.c.bf16 %v27_v23, %v26_v16 }
  0x1a   :  { %2022 = vmatpush3.bf16.msra.mxu0 %v1040_v59  ;;  %2009 = vmatprep.mubr.msk.bf16.mxu0 %vm74_vm1, %v840_v58  ;;  %v844_v38 = vpack.c.bf16 %v835_v30, %v834_v28  ;;  %v1698_v40 = vld [vmem:[%s2928_s4 + $0x6] sm:$0x3]  ;;  %v31_v51 = vld [vmem:[%s2932_s0 + $0x90] sm:$0xff] }
  0x1b   :  { %2213 = vmatprep.subr.msk.bf16.mxu0 %vm99_vm0, %v2437_v60  ;;  %v29_v43 = vld [vmem:[%s2932_s0 + $0x60] sm:$0xff]  ;;  %v33_v57 = vld [vmem:[%s2932_s0 + $0xb0] sm:$0xff] }
  0x1c   :  { %v837_v50 = vld [vmem:[%s2931_s2 + $0x101] sm:$0xff]  ;;  %v42_v53 = vpack.c.bf16 %v30_v44, %v29_v43  ;;  %v35_v59 = vld [vmem:[%s2932_s0 + $0xd0] sm:$0xff]  ;;  %v1007_v3 = vpack.c.bf16 %v29_v43, %v28_v25 }
  0x1d   :  { %v32_v52 = vld [vmem:[%s2932_s0 + $0xa0] sm:$0xff]  ;;  %v845_v54 = vpack.c.bf16 %v837_v50, %v836_v46  ;;  %v2578_v15 = vld [vmem:[%s2932_s0 + $0x11] sm:$0xff] }
  0x1e   :  { %v43_v55 = vpack.c.bf16 %v32_v52, %v31_v51  ;;  %v34_v58 = vld [vmem:[%s2932_s0 + $0xc0] sm:$0xff]  ;;  %v1009_v23 = vpack.c.bf16 %v33_v57, %v32_v52  ;;  %v2593_v28 = vld [vmem:[%s2932_s0 + $0x31] sm:$0xff] }
  0x1f   :  { %1928 = vmatmul.mubr.msk.bf16.gmra.mrb[12].mxu1 %vm74_vm1, %v71_v7  ;;  %v36_v62 = vld [vmem:[%s2932_s0 + $0xe0] sm:$0xff]  ;;  %v44_v63 = vpack.c.bf16 %v34_v58, %v33_v57  ;;  %v1791_v7 = vld [vmem:[%s2928_s4 + $0x10] sm:$0x3] }
  0x20   :  { %1933 = vmatprep.mubr.msk.bf16.mxu1 %vm74_vm1, %v39_v9  ;;  %v45_v2 = vpack.c.bf16 %v36_v62, %v35_v59  ;;  %v38_v9 = vld [vmem:[%s2932_s0 + $0x100] sm:$0xff]  ;;  %v2621_v46 = vld [vmem:[%s2932_s0 + $0x71] sm:$0xff]  ;;  %v1373_v5 = vsel %vm99_vm0, %v1791_v7, 0 }
  0x21   :  { %2010 = vmatmul.mubr.msk.bf16.gmra.mrb[4].mxu0 %vm74_vm1, %v841_v8  ;;  %v37_v8 = vld [vmem:[%s2932_s0 + $0xf0] sm:$0xff]  ;;  %v1732_v60 = vld [vmem:[%s2932_s0 + $0x80] sm:$0xff] }
  0x22   :  { %2013 = vmatprep.mubr.msk.bf16.mxu0 %vm74_vm1, %v842_v12  ;;  %v324_v12 = vld [vmem:[%s2932_s0 + $0x1] sm:$0xff]  ;;  %v46_v16 = vpack.c.bf16 %v38_v9, %v37_v8  ;;  %v1008_v19 = vpack.c.bf16 %v1732_v60, %v30_v44  ;;  %v1011_v43 = vpack.c.bf16 %v37_v8, %v36_v62  ;;  %v332_v50 = vld [vmem:[%s2932_s0 + $0x91] sm:$0xff] }
  0x23   :  { %v340_v20 = vpack.c.bf16 %v2578_v15, %v324_v12  ;;  %v2588_v25 = vld [vmem:[%s2932_s0 + $0x21] sm:$0xff]  ;;  %v2682_v10 = vld [vmem:[%s2932_s0 + $0xf1] sm:$0xff] }
  0x24   :  { %v2599_v30 = vld [vmem:[%s2932_s0 + $0x41] sm:$0xff]  ;;  %v491_v21 = vld [vmem:[%s2931_s2 + $0x10] sm:$0xff] }
  0x25   :  { %v2616_v44 = vld [vmem:[%s2932_s0 + $0x61] sm:$0xff]  ;;  %v493_v26 = vld [vmem:[%s2931_s2 + $0x30] sm:$0xff] }
  0x26   :  { %v2634_v51 = vld [vmem:[%s2932_s0 + $0xa1] sm:$0xff]  ;;  %v343_v52 = vpack.c.bf16 %v2621_v46, %v2616_v44  ;;  %v497_v37 = vld [vmem:[%s2931_s2 + $0x70] sm:$0xff] }
  0x27   :  { %1934 = vmatmul.mubr.msk.bf16.vlgmr.msra.gmra.mrb[0].mxu1 %vm74_vm1, %v40_v32  ;;  %v2604_v32 = vld [vmem:[%s2932_s0 + $0x51] sm:$0xff]  ;;  %v2666_v57 = vld [vmem:[%s2932_s0 + $0xe1] sm:$0xff] }
  0x28   :  { %1950 = vmatpush3.bf16.msra.mxu1 %v375_v35  ;;  %1937 = vmatprep.mubr.msk.bf16.mxu1 %vm74_vm1, %v41_v36  ;;  %v1010_v35 = vpack.c.bf16 %v35_v59, %v34_v58  ;;  %v541_v36 = vsel %vm99_vm0, %v1698_v40, 0  ;;  %v490_v11 = vld [vmem:[%s2931_s2] sm:$0xff]  ;;  %v498_v39 = vld [vmem:[%s2931_s2 + $0x90] sm:$0xff] }
  0x29   :  { %2014 = vmatmul.mubr.msk.bf16.gmra.mrb[8].mxu0 %vm74_vm1, %v843_v33  ;;  %2208 = vmatprep.subr.msk.bf16.mxu1 %vm99_vm0, %v1698_v40  ;;  %v341_v33 = vpack.c.bf16 %v2593_v28, %v2588_v25  ;;  %v1740_v40 = vld [vmem:[%s2932_s0 + $0x110] sm:$0xff]  ;;  %v506_v62 = vpack.c.bf16 %v491_v21, %v490_v11  ;;  %v492_v22 = vld [vmem:[%s2931_s2 + $0x20] sm:$0xff] }
  0x2a   :  { %2017 = vmatprep.mubr.msk.bf16.mxu0 %vm74_vm1, %v844_v38  ;;  %v342_v38 = vpack.c.bf16 %v2604_v32, %v2599_v30  ;;  %v494_v29 = vld [vmem:[%s2931_s2 + $0x40] sm:$0xff]  ;;  %v507_v13 = vpack.c.bf16 %v493_v26, %v492_v22  ;;  %v500_v47 = vld [vmem:[%s2931_s2 + $0xb0] sm:$0xff] }
  0x2b   :  { %v496_v34 = vld [vmem:[%s2931_s2 + $0x60] sm:$0xff] }
  0x2c   :  { %v509_v41 = vpack.c.bf16 %v497_v37, %v496_v34  ;;  %v501_v48 = vld [vmem:[%s2931_s2 + $0xc0] sm:$0xff] }
  0x2d   :  { %v503_v61 = vld [vmem:[%s2931_s2 + $0xe0] sm:$0xff]  ;;  %v511_v17 = vpack.c.bf16 %v501_v48, %v500_v47 }
  0x2e   :  { %v665_v8 = vld [vmem:[%s2930_s3 + $0xa0] sm:$0xff] }
  0x2f   :  { %1938 = vmatmul.mubr.msk.bf16.gmra.mrb[4].mxu1 %vm74_vm1, %v42_v53  ;;  %v1012_v53 = vpack.c.bf16 %v1740_v40, %v38_v9 }
  0x30   :  { %1941 = vmatprep.mubr.msk.bf16.mxu1 %vm74_vm1, %v43_v55  ;;  %v2647_v55 = vld [vmem:[%s2932_s0 + $0xb1] sm:$0xff] }
  0x31   :  { %2018 = vmatmul.mubr.msk.bf16.gmra.mrb[12].mxu0 %vm74_vm1, %v845_v54  ;;  %v344_v54 = vpack.c.bf16 %v2634_v51, %v332_v50 }
  0x32   :  { %2023 = vmatprep.mubr.msk.bf16.mxu0 %vm74_vm1, %v1005_v56  ;;  %v2661_v56 = vld [vmem:[%s2932_s0 + $0xd1] sm:$0xff] }
  0x33   :  { %v346_v59 = vpack.c.bf16 %v2666_v57, %v2661_v56 }
  0x37   :  { %1942 = vmatmul.mubr.msk.bf16.gmra.mrb[8].mxu1 %vm74_vm1, %v44_v63 }
  0x38   :  { %1945 = vmatprep.mubr.msk.bf16.mxu1 %vm74_vm1, %v45_v2  ;;  %v504_v2 = vld [vmem:[%s2931_s2 + $0xf0] sm:$0xff] }
  0x39   :  { %2024 = vmatmul.mubr.msk.bf16.vlgmr.msra.gmra.mrb[0].mxu0 %vm74_vm1, %v1006_v0  ;;  %v1340_v0 = vpack.c.bf16 %v2616_v44, %v2604_v32  ;;  %v1344_v32 = vpack.c.bf16 %v2682_v10, %v2666_v57 }
  0x3a   :  { %2040 = vmatpush3.bf16.msra.mxu0 %v1207_v6  ;;  %2027 = vmatprep.mubr.msk.bf16.mxu0 %vm74_vm1, %v1007_v3  ;;  %v505_v3 = vld [vmem:[%s2931_s2 + $0x100] sm:$0xff] }
  0x3b   :  { %2214 = vmatprep.subr.msk.bf16.mxu0 %vm99_vm0, %v1791_v7  ;;  %v1782_v6 = vld [vmem:[%s2932_s0 + $0x81] sm:$0xff]  ;;  %v664_v7 = vld [vmem:[%s2930_s3 + $0x90] sm:$0xff]  ;;  %v513_v9 = vpack.c.bf16 %v505_v3, %v504_v2 }
  0x3c   :  { %v1341_v60 = vpack.c.bf16 %v1782_v6, %v2621_v46  ;;  %v676_v12 = vpack.c.bf16 %v665_v8, %v664_v7 }
  0x3f   :  { %1946 = vmatmul.mubr.msk.bf16.gmra.mrb[12].mxu1 %vm74_vm1, %v46_v16  ;;  %v666_v16 = vld [vmem:[%s2930_s3 + $0xb0] sm:$0xff] }
  0x40   :  { %1951 = vmatprep.mubr.msk.bf16.mxu1 %vm74_vm1, %v340_v20  ;;  %v668_v20 = vld [vmem:[%s2930_s3 + $0xd0] sm:$0xff] }
  0x41   :  { %2028 = vmatmul.mubr.msk.bf16.gmra.mrb[4].mxu0 %vm74_vm1, %v1008_v19  ;;  %v667_v19 = vld [vmem:[%s2930_s3 + $0xc0] sm:$0xff] }
  0x42   :  { %2031 = vmatprep.mubr.msk.bf16.mxu0 %vm74_vm1, %v1009_v23  ;;  %v669_v23 = vld [vmem:[%s2930_s3 + $0xe0] sm:$0xff] }
  0x47   :  { %1952 = vmatmul.mubr.msk.bf16.vlgmr.msra.gmra.mrb[0].mxu1 %vm74_vm1, %v341_v33  ;;  %v670_v33 = vld [vmem:[%s2930_s3 + $0xf0] sm:$0xff] }
  0x48   :  { %1968 = vmatpush3.bf16.msra.mxu1 %v541_v36  ;;  %1955 = vmatprep.mubr.msk.bf16.mxu1 %vm74_vm1, %v342_v38  ;;  %v1790_v36 = vld [vmem:[%s2932_s0 + $0x111] sm:$0xff] }
  0x49   :  { %2032 = vmatmul.mubr.msk.bf16.gmra.mrb[8].mxu0 %vm74_vm1, %v1010_v35  ;;  %2210 = vmatprep.subr.msk.bf16.mxu1 %vm99_vm0, %v2256_v1  ;;  %v2652_v1 = vld [vmem:[%s2932_s0 + $0xc1] sm:$0xff] }
  0x4a   :  { %2035 = vmatprep.mubr.msk.bf16.mxu0 %vm74_vm1, %v1011_v43  ;;  %v345_v58 = vpack.c.bf16 %v2652_v1, %v2647_v55  ;;  %v671_v35 = vld [vmem:[%s2930_s3 + $0x100] sm:$0xff] }
  0x4b   :  { %v679_v38 = vpack.c.bf16 %v671_v35, %v670_v33 }
  0x4f   :  { %1956 = vmatmul.mubr.msk.bf16.gmra.mrb[4].mxu1 %vm74_vm1, %v343_v52 }
  0x50   :  { %1959 = vmatprep.mubr.msk.bf16.mxu1 %vm74_vm1, %v344_v54 }
  0x51   :  { %2036 = vmatmul.mubr.msk.bf16.gmra.mrb[12].mxu0 %vm74_vm1, %v1012_v53 }
  0x52   :  { %2041 = vmatprep.mubr.msk.bf16.mxu0 %vm74_vm1, %v1172_v18  ;;  %v2687_v18 = vld [vmem:[%s2932_s0 + $0x101] sm:$0xff] }
  0x53   :  { %v1345_v43 = vpack.c.bf16 %v1790_v36, %v2687_v18 }
  0x57   :  { %1960 = vmatmul.mubr.msk.bf16.gmra.mrb[8].mxu1 %vm74_vm1, %v345_v58 }
  0x58   :  { %1963 = vmatprep.mubr.msk.bf16.mxu1 %vm74_vm1, %v346_v59 }
  0x59   :  { %2042 = vmatmul.mubr.msk.bf16.vlgmr.msra.gmra.mrb[0].mxu0 %vm74_vm1, %v1173_v27  ;;  %v347_v27 = vpack.c.bf16 %v2687_v18, %v2682_v10 }
  0x5a   :  { %2058 = vmatpush3.bf16.msra.mxu0 %v1373_v5  ;;  %2045 = vmatprep.mubr.msk.bf16.mxu0 %vm74_vm1, %v1174_v31  ;;  %v495_v31 = vld [vmem:[%s2931_s2 + $0x50] sm:$0xff] }
  0x5f   :  { %1964 = vmatmul.mubr.msk.bf16.gmra.mrb[12].mxu1 %vm74_vm1, %v347_v27 }
  0x60   :  { %1969 = vmatprep.mubr.msk.bf16.mxu1 %vm74_vm1, %v506_v62 }
  0x61   :  { %2046 = vmatmul.mubr.msk.bf16.gmra.mrb[4].mxu0 %vm74_vm1, %v1175_v14  ;;  %v508_v14 = vpack.c.bf16 %v495_v31, %v494_v29 }
  0x62   :  { %2049 = vmatprep.mubr.msk.bf16.mxu0 %vm74_vm1, %v1176_v42 }
  0x67   :  { %1970 = vmatmul.mubr.msk.bf16.vlgmr.msra.gmra.mrb[0].mxu1 %vm74_vm1, %v507_v13 }
  0x68   :  { %2076 = vmatpush3.bf16.msra.mxu1 %v2267_v4  ;;  %1973 = vmatprep.mubr.msk.bf16.mxu1 %vm74_vm1, %v508_v14  ;;  %v499_v4 = vld [vmem:[%s2931_s2 + $0xa0] sm:$0xff] }
  0x69   :  { %2050 = vmatmul.mubr.msk.bf16.gmra.mrb[8].mxu0 %vm74_vm1, %v1177_v45  ;;  %v510_v42 = vpack.c.bf16 %v499_v4, %v498_v39  ;;  %v1338_v45 = vpack.c.bf16 %v2588_v25, %v2578_v15  ;;  %v1342_v15 = vpack.c.bf16 %v2647_v55, %v2634_v51  ;;  %v677_v25 = vpack.c.bf16 %v667_v19, %v666_v16 }
  0x6a   :  { %2053 = vmatprep.mubr.msk.bf16.mxu0 %vm74_vm1, %v1178_v49  ;;  %v502_v49 = vld [vmem:[%s2931_s2 + $0xd0] sm:$0xff] }
  0x6b   :  { %v512_v63 = vpack.c.bf16 %v503_v61, %v502_v49 }
  0x6f   :  { %1974 = vmatmul.mubr.msk.bf16.gmra.mrb[4].mxu1 %vm74_vm1, %v509_v41 }
  0x70   :  { %1977 = vmatprep.mubr.msk.bf16.mxu1 %vm74_vm1, %v510_v42 }
  0x71   :  { %2054 = vmatmul.mubr.msk.bf16.gmra.mrb[12].mxu0 %vm74_vm1, %v1179_v24  ;;  %v1339_v24 = vpack.c.bf16 %v2599_v30, %v2593_v28  ;;  %v1343_v28 = vpack.c.bf16 %v2661_v56, %v2652_v1  ;;  %v678_v30 = vpack.c.bf16 %v669_v23, %v668_v20 }
  0x72   :  { %2059 = vmatprep.mubr.msk.bf16.mxu0 %vm74_vm1, %v1338_v45 }
  0x77   :  { %1978 = vmatmul.mubr.msk.bf16.gmra.mrb[8].mxu1 %vm74_vm1, %v511_v17 }
  0x78   :  { %1981 = vmatprep.mubr.msk.bf16.mxu1 %vm74_vm1, %v512_v63 }
  0x79   :  { %2060 = vmatmul.mubr.msk.bf16.vlgmr.msra.gmra.mrb[0].mxu0 %vm74_vm1, %v1339_v24 }
  0x7a   :  { %2063 = vmatprep.mubr.msk.bf16.mxu0 %vm74_vm1, %v1340_v0 }
  0x7f   :  { %1982 = vmatmul.mubr.msk.bf16.gmra.mrb[12].mxu1 %vm74_vm1, %v513_v9 }
  0x80   :  { %1995 = vmatprep.mubr.msk.bf16.mxu1 %vm74_vm1, %v676_v12 }
  0x81   :  { %2064 = vmatmul.mubr.msk.bf16.gmra.mrb[4].mxu0 %vm74_vm1, %v1341_v60 }
  0x82   :  { %2067 = vmatprep.mubr.msk.bf16.mxu0 %vm74_vm1, %v1342_v15 }
  0x87   :  { %1996 = vmatmul.mubr.msk.bf16.vlgmr.msra.gmra.mrb[8].mxu1 %vm74_vm1, %v677_v25 }
  0x88   :  { %1999 = vmatprep.mubr.msk.bf16.mxu1 %vm74_vm1, %v678_v30 }
  0x89   :  { %2068 = vmatmul.mubr.msk.bf16.gmra.mrb[8].mxu0 %vm74_vm1, %v1343_v28 }
  0x8a   :  { %2071 = vmatprep.mubr.msk.bf16.mxu0 %vm74_vm1, %v1344_v32 }
  0x8f   :  { %2000 = vmatmul.mubr.msk.bf16.gmra.mrb[12].mxu1 %vm74_vm1, %v679_v38 }
  0x91   :  { %2072 = vmatmul.mubr.msk.bf16.gmra.mrb[12].mxu0 %vm74_vm1, %v1345_v43 }
 0x13a   :  { %v1971_v44 = vpop.f32.mrb[0].mxu1 }
 0x13b   :  { %v577_v46 = vpop.f32.mrb[1].mxu1 }
 0x13c   :  { %v1972_v40 = vpop.f32.mrb[2].mxu1 }
 0x13d   :  { %v580_v50 = vpop.f32.mrb[3].mxu1 }
 0x142   :  { %v1975_v51 = vpop.f32.mrb[4].mxu1 }
 0x143   :  { %v593_v52 = vpop.f32.mrb[5].mxu1 }
 0x144   :  { %v1976_v53 = vpop.f32.mrb[6].mxu1 }
 0x145   :  { %v596_v54 = vpop.f32.mrb[7].mxu1 }
 0x14c   :  { %v2061_v55 = vpop.f32.mrb[0].mxu0 }
 0x14d   :  { %v2077_v1 = vadd.f32 %v2061_v55, %v1971_v44  ;;  %v1409_v56 = vpop.f32.mrb[1].mxu0 }
 0x14e   :  { %v2078_v57 = vadd.f32 %v1409_v56, %v577_v46  ;;  %v2062_v58 = vpop.f32.mrb[2].mxu0 }
 0x14f   :  { %v1818_v59 = vpack.c.bf16 %v2077_v1, %v2077_v1  ;;  %v2079_v5 = vadd.f32 %v2062_v58, %v1972_v40  ;;  %v1412_v10 = vpop.f32.mrb[3].mxu0  ;;  %v1609_v27 = vmul.f32 %v2077_v1, %v2077_v1  ;;  %v1573_v34 = vsel %vm1569_vm3, %v2077_v1, 0.0 }
 0x150   :  { %v1816_v18 = vpack.c.bf16 %v2078_v57, %v2078_v57  ;;  %v1607_v11 = vmul.f32 %v2078_v57, %v2078_v57  ;;  %v2080_v21 = vadd.f32 %v1412_v10, %v580_v50  ;;  %v1570_v22 = vsel %vm1569_vm3, %v2078_v57, 0.0 }
 0x151   :  { %1555 = vst.msk [vmem:[%s2933_s5 + $0x8] sm:$0xf] %vm1552_vm2, %v1818_v59  ;;  %v1819_v62 = vpack.c.bf16 %v2079_v5, %v2079_v5  ;;  %v1610_v13 = vmul.f32 %v2079_v5, %v2079_v5  ;;  %v1626_v48 = vsel %vm1569_vm3, %v1609_v27, 0.0  ;;  %v1575_v17 = vsel %vm1569_vm3, %v2079_v5, 0.0 }
 0x152   :  { %1553 = vst.msk [vmem:[%s2933_s5] sm:$0xf] %vm1552_vm2, %v1816_v18  ;;  %v1817_v26 = vpack.c.bf16 %v2080_v21, %v2080_v21  ;;  %v1571_v29 = vsel %vm1569_vm3, %v2080_v21, 0.0  ;;  %v1608_v31 = vmul.f32 %v2080_v21, %v2080_v21  ;;  %v1623_v37 = vsel %vm1569_vm3, %v1607_v11, 0.0 }
 0x153   :  { %1556 = vst.msk [vmem:[%s2933_s5 + $0xc] sm:$0xf] %vm1552_vm2, %v1819_v62  ;;  %v1572_v14 = vadd.f32 %v1571_v29, %v1570_v22  ;;  %v1628_v24 = vsel %vm1569_vm3, %v1610_v13, 0.0 }
 0x154   :  { %1554 = vst.msk [vmem:[%s2933_s5 + $0x4] sm:$0xf] %vm1552_vm2, %v1817_v26  ;;  %v1624_v39 = vsel %vm1569_vm3, %v1608_v31, 0.0  ;;  %v2065_v4 = vpop.f32.mrb[4].mxu0 }
 0x155   :  { %v1574_v41 = vadd.f32 %v1573_v34, %v1572_v14  ;;  %v1625_v42 = vadd.f32 %v1624_v39, %v1623_v37  ;;  %v2081_v45 = vadd.f32 %v2065_v4, %v1975_v51  ;;  %v1425_v47 = vpop.f32.mrb[5].mxu0 }
 0x156   :  { %v2082_v49 = vadd.f32 %v1425_v47, %v593_v52  ;;  %v2066_v61 = vpop.f32.mrb[6].mxu0 }
 0x157   :  { %v1627_v63 = vadd.f32 %v1626_v48, %v1625_v42  ;;  %v1822_v0 = vpack.c.bf16 %v2081_v45, %v2081_v45  ;;  %v1428_v2 = vpop.f32.mrb[7].mxu0  ;;  %v1576_v6 = vadd.f32 %v1575_v17, %v1574_v41  ;;  %v2083_v60 = vadd.f32 %v2066_v61, %v1976_v53 }
 0x158   :  { %v1820_v3 = vpack.c.bf16 %v2082_v49, %v2082_v49  ;;  %v1577_v7 = vsel %vm1569_vm3, %v2082_v49, 0.0  ;;  %v1611_v8 = vmul.f32 %v2082_v49, %v2082_v49  ;;  %v2084_v12 = vadd.f32 %v1428_v2, %v596_v54 }
 0x159   :  { %1559 = vst.msk [vmem:[%s2933_s5 + $0x18] sm:$0xf] %vm1552_vm2, %v1822_v0  ;;  %v1629_v9 = vadd.f32 %v1628_v24, %v1627_v63  ;;  %v1578_v15 = vadd.f32 %v1577_v7, %v1576_v6  ;;  %v1613_v19 = vmul.f32 %v2081_v45, %v2081_v45  ;;  %v1823_v23 = vpack.c.bf16 %v2083_v60, %v2083_v60 }
 0x15a   :  { %1557 = vst.msk [vmem:[%s2933_s5 + $0x10] sm:$0xf] %vm1552_vm2, %v1820_v3  ;;  %v1630_v16 = vsel %vm1569_vm3, %v1611_v8, 0.0  ;;  %v1997_v25 = vpop.f32.mrb[8].mxu1  ;;  %v1821_v28 = vpack.c.bf16 %v2084_v12, %v2084_v12  ;;  %v1579_v30 = vsel %vm1569_vm3, %v2084_v12, 0.0  ;;  %v1612_v32 = vmul.f32 %v2084_v12, %v2084_v12 }
 0x15b   :  { %v1631_v20 = vadd.f32 %v1630_v16, %v1629_v9  ;;  %v775_v35 = vpop.f32.mrb[9].mxu1  ;;  %1560 = vst.msk [vmem:[%s2933_s5 + $0x1c] sm:$0xf] %vm1552_vm2, %v1823_v23  ;;  %v1580_v36 = vadd.f32 %v1579_v30, %v1578_v15  ;;  %v1581_v46 = vsel %vm1569_vm3, %v2081_v45, 0.0  ;;  %v1614_v40 = vmul.f32 %v2083_v60, %v2083_v60 }
 0x15c   :  { %v2069_v33 = vpop.f32.mrb[8].mxu0  ;;  %v1998_v44 = vpop.f32.mrb[10].mxu1  ;;  %1558 = vst.msk [vmem:[%s2933_s5 + $0x14] sm:$0xf] %vm1552_vm2, %v1821_v28  ;;  %v1632_v50 = vsel %vm1569_vm3, %v1612_v32, 0.0  ;;  %v1634_v54 = vsel %vm1569_vm3, %v1613_v19, 0.0 }
 0x15d   :  { %v2085_v38 = vadd.f32 %v2069_v33, %v1997_v25  ;;  %v1441_v43 = vpop.f32.mrb[9].mxu0  ;;  %v778_v53 = vpop.f32.mrb[11].mxu1  ;;  %v1582_v55 = vadd.f32 %v1581_v46, %v1580_v36  ;;  %v1633_v1 = vadd.f32 %v1632_v50, %v1631_v20  ;;  %v1583_v58 = vsel %vm1569_vm3, %v2083_v60, 0.0 }
 0x15e   :  { %v2086_v51 = vadd.f32 %v1441_v43, %v775_v35  ;;  %v2070_v52 = vpop.f32.mrb[10].mxu0  ;;  %v1636_v62 = vsel %vm1569_vm3, %v1614_v40, 0.0 }
 0x15f   :  { %v1826_v56 = vpack.c.bf16 %v2085_v38, %v2085_v38  ;;  %v1444_v57 = vpop.f32.mrb[11].mxu0  ;;  %v1635_v18 = vadd.f32 %v1634_v54, %v1633_v1  ;;  %v1584_v11 = vadd.f32 %v1583_v58, %v1582_v55  ;;  %v2087_v21 = vadd.f32 %v2070_v52, %v1998_v44 }
 0x160   :  { %v1824_v59 = vpack.c.bf16 %v2086_v51, %v2086_v51  ;;  %v1585_v5 = vsel %vm1569_vm3, %v2086_v51, 0.0  ;;  %v1615_v10 = vmul.f32 %v2086_v51, %v2086_v51  ;;  %v2088_v27 = vadd.f32 %v1444_v57, %v778_v53 }
 0x161   :  { %1563 = vst.msk [vmem:[%s2933_s5 + $0x28] sm:$0xf] %vm1552_vm2, %v1826_v56  ;;  %v1617_v26 = vmul.f32 %v2085_v38, %v2085_v38  ;;  %v1586_v29 = vadd.f32 %v1585_v5, %v1584_v11  ;;  %v1637_v31 = vadd.f32 %v1636_v62, %v1635_v18  ;;  %v1827_v13 = vpack.c.bf16 %v2087_v21, %v2087_v21 }
 0x162   :  { %1561 = vst.msk [vmem:[%s2933_s5 + $0x20] sm:$0xf] %vm1552_vm2, %v1824_v59  ;;  %v1638_v22 = vsel %vm1569_vm3, %v1615_v10, 0.0  ;;  %v2001_v14 = vpop.f32.mrb[12].mxu1  ;;  %v1825_v34 = vpack.c.bf16 %v2088_v27, %v2088_v27  ;;  %v1587_v37 = vsel %vm1569_vm3, %v2088_v27, 0.0  ;;  %v1616_v39 = vmul.f32 %v2088_v27, %v2088_v27 }
 0x163   :  { %v791_v41 = vpop.f32.mrb[13].mxu1  ;;  %v1639_v42 = vadd.f32 %v1638_v22, %v1637_v31  ;;  %1564 = vst.msk [vmem:[%s2933_s5 + $0x2c] sm:$0xf] %vm1552_vm2, %v1827_v13  ;;  %v1588_v45 = vadd.f32 %v1587_v37, %v1586_v29  ;;  %v1589_v61 = vsel %vm1569_vm3, %v2085_v38, 0.0  ;;  %v1618_v17 = vmul.f32 %v2087_v21, %v2087_v21 }
 0x164   :  { %v2073_v4 = vpop.f32.mrb[12].mxu0  ;;  %v2002_v49 = vpop.f32.mrb[14].mxu1  ;;  %1562 = vst.msk [vmem:[%s2933_s5 + $0x24] sm:$0xf] %vm1552_vm2, %v1825_v34  ;;  %v1640_v24 = vsel %vm1569_vm3, %v1616_v39, 0.0  ;;  %v1642_v3 = vsel %vm1569_vm3, %v1617_v26, 0.0 }
 0x165   :  { %v2089_v47 = vadd.f32 %v2073_v4, %v2001_v14  ;;  %v1457_v48 = vpop.f32.mrb[13].mxu0  ;;  %v794_v2 = vpop.f32.mrb[15].mxu1  ;;  %v1590_v6 = vadd.f32 %v1589_v61, %v1588_v45  ;;  %v1641_v7 = vadd.f32 %v1640_v24, %v1639_v42  ;;  %v1591_v60 = vsel %vm1569_vm3, %v2087_v21, 0.0 }
 0x166   :  { %v2090_v63 = vadd.f32 %v1457_v48, %v791_v41  ;;  %v2074_v0 = vpop.f32.mrb[14].mxu0  ;;  %v1644_v28 = vsel %vm1569_vm3, %v1618_v17, 0.0 }
 0x167   :  { %v1830_v8 = vpack.c.bf16 %v2089_v47, %v2089_v47  ;;  %v1460_v9 = vpop.f32.mrb[15].mxu0  ;;  %v1643_v19 = vadd.f32 %v1642_v3, %v1641_v7  ;;  %v1592_v20 = vadd.f32 %v1591_v60, %v1590_v6  ;;  %v2091_v23 = vadd.f32 %v2074_v0, %v2002_v49 }
 0x168   :  { %v1828_v12 = vpack.c.bf16 %v2090_v63, %v2090_v63  ;;  %v1593_v15 = vsel %vm1569_vm3, %v2090_v63, 0.0  ;;  %v1619_v16 = vmul.f32 %v2090_v63, %v2090_v63  ;;  %v2092_v25 = vadd.f32 %v1460_v9, %v794_v2 }
 0x169   :  { %1567 = vst.msk [vmem:[%s2933_s5 + $0x38] sm:$0xf] %vm1552_vm2, %v1830_v8  ;;  %v1594_v32 = vadd.f32 %v1593_v15, %v1592_v20  ;;  %v1645_v33 = vadd.f32 %v1644_v28, %v1643_v19  ;;  %v1831_v35 = vpack.c.bf16 %v2091_v23, %v2091_v23  ;;  %v1621_v36 = vmul.f32 %v2089_v47, %v2089_v47 }
 0x16a   :  { %1565 = vst.msk [vmem:[%s2933_s5 + $0x30] sm:$0xf] %vm1552_vm2, %v1828_v12  ;;  %v1646_v30 = vsel %vm1569_vm3, %v1619_v16, 0.0  ;;  %v1829_v38 = vpack.c.bf16 %v2092_v25, %v2092_v25  ;;  %v1595_v43 = vsel %vm1569_vm3, %v2092_v25, 0.0  ;;  %v1620_v44 = vmul.f32 %v2092_v25, %v2092_v25 }
 0x16b   :  { %v1647_v46 = vadd.f32 %v1646_v30, %v1645_v33  ;;  %1568 = vst.msk [vmem:[%s2933_s5 + $0x3c] sm:$0xf] %vm1552_vm2, %v1831_v35  ;;  %v1596_v40 = vadd.f32 %v1595_v43, %v1594_v32  ;;  %v1597_v50 = vsel %vm1569_vm3, %v2089_v47, 0.0  ;;  %v1622_v51 = vmul.f32 %v2091_v23, %v2091_v23 }
 0x16c   :  { %1566 = vst.msk [vmem:[%s2933_s5 + $0x34] sm:$0xf] %vm1552_vm2, %v1829_v38  ;;  %v1648_v52 = vsel %vm1569_vm3, %v1620_v44, 0.0  ;;  %v1650_v55 = vsel %vm1569_vm3, %v1621_v36, 0.0  ;;  %v1599_v1 = vsel %vm1569_vm3, %v2091_v23, 0.0 }
 0x16d   :  { %v1598_v53 = vadd.f32 %v1597_v50, %v1596_v40  ;;  %v1649_v54 = vadd.f32 %v1648_v52, %v1647_v46  ;;  %v1652_v58 = vsel %vm1569_vm3, %v1622_v51, 0.0 }
 0x16f   :  { %v1600_v56 = vadd.f32 %v1599_v1, %v1598_v53  ;;  %v1651_v57 = vadd.f32 %v1650_v55, %v1649_v54 }
 0x171   :  { %v1601_v59 = vrot.slane %v1600_v56, 4  ;;  %v1653_v5 = vadd.f32 %v1652_v58, %v1651_v57 }
 0x173   :  { %v1602_v10 = vadd.f32 %v1601_v59, %v1600_v56  ;;  %v1654_v18 = vrot.slane %v1653_v5, 4 }
 0x175   :  { %v1603_v11 = vrot.slane %v1602_v10, 2  ;;  %v1655_v21 = vadd.f32 %v1654_v18, %v1653_v5 }
 0x177   :  { %v1604_v27 = vadd.f32 %v1603_v11, %v1602_v10  ;;  %v1656_v62 = vrot.slane %v1655_v21, 2 }
 0x179   :  { %v1605_v22 = vrot.slane %v1604_v27, 1  ;;  %v1657_v26 = vadd.f32 %v1656_v62, %v1655_v21 }
 0x17b   :  { %v1658_v29 = vrot.slane %v1657_v26, 1  ;;  %v1606_v31 = vadd.f32 %v1605_v22, %v1604_v27 }
 0x17d   :  { %v1659_v13 = vadd.f32 %v1658_v29, %v1657_v26 }
 0x17f   :  { %v1661_v14 = vsel %vm1660_vm4, %v1606_v31, %v1659_v13 }
 0x180   :  { %1663 = vst.msk [vmem:[%s2934_s6] sm:$0x3] %vm1662_vm5, %v1661_v14 }

// kernel: encoder_block_forward.6
= control target key start
LH: loop header
LB: loop body
LE: loop exit
PB: predicated region body
PF: predicated region fallthrough
CT: control target
= control target key end

     0   :  { %v3206_v0 = vmov 0.0|0.0   ;;  %vm3207_vm0 = vmmov 0   ;;  %v3208_v3 = vmov 0.0   ;;  %vm138_vm1 = vcmask 130048   ;;  %v290_v12 = vld [vmem:[#allocation2 + $0x18] sm:$0x1]  ;;  %s4570_s3 = inlined_call_operand.vmem [shape: f32[16,8], index: 3, kind: input, shape index: {}]   ;;  %s4571_s2 = inlined_call_operand.vmem [shape: f32[2,16], index: 2, kind: input, shape index: {}]   ;;  %s4572_s0 = inlined_call_operand.vmem [shape: bf16[2,8,8,8], index: 0, kind: input, shape index: {}]   ;;  %s4573_s1 = inlined_call_operand.vmem [shape: f32[2,8], index: 1, kind: input, shape index: {}]   ;;  %s4574_s4 = inlined_call_operand.vmem [shape: f32[1,8], index: 4, kind: input, shape index: {}]   ;;  %s4575_s5 = inlined_call_operand.vmem [shape: bf16[72,8], index: 5, kind: input, shape index: {}]   ;;  %s4576_s6 = inlined_call_operand.vmem [shape: bf16[2,8,8,8], index: 6, kind: input, shape index: {}]   ;;  %s4577_s7 = inlined_call_operand.vmem [shape: bf16[2,8,8,8], index: 7, kind: output, shape index: {0}]   ;;  %s4578_s8 = inlined_call_operand.vmem [shape: f32[1,2,8], index: 8, kind: output, shape index: {1}]  }
   0x1   :  { %3145 = vmatprep.subr.bf16.mxu0 %v3206_v0  ;;  %v129_v1 = vld [vmem:[%s4570_s3] sm:$0xff]  ;;  %v130_v2 = vld [vmem:[%s4570_s3 + $0x8] sm:$0xff]  ;;  %3116 = vmatprep.mubr.msk.f32.mxu0 %vm3207_vm0, %v3208_v3  ;;  %vm271_vm2 = vcmask 57344   ;;  %vm282_vm3 = vsmask.f32 256  ;;  %vm269_vm6 = vcmask 60416  }
   0x2   :  { %v121_v4 = vld [vmem:[%s4571_s2] sm:$0x3]  ;;  %v3146_v5 = vpack.c.bf16 %v130_v2, %v129_v1  ;;  %vm3274_vm4 = vmand %vm271_vm2, %vm282_vm3  ;;  %v284_v16 = vld [vmem:[#allocation2 + $0x8] sm:$0x1]  ;;  %vm332_vm5 = vsmask.f32 7938 }
   0x3   :  { %v2818_v6 = vmul.f32 -1.442695, %v121_v4  ;;  %v293_v13 = vld [vmem:[#allocation2 + $0x20] sm:$0x1]  ;;  %v291_v14 = vsel %vm3274_vm4, 0, %v290_v12  ;;  %v285_v18 = vsel %vm3274_vm4, 0, %v284_v16  ;;  %vm3306_vm7 = vmand %vm271_vm2, %vm332_vm5 }
   0x4   :  { %3147 = vmatpush3.bf16.msra.mxu0 %v3146_v5  ;;  %v294_v15 = vsel %vm3274_vm4, 0, %v293_v13  ;;  %v287_v17 = vld [vmem:[#allocation2 + $0x10] sm:$0x1]  ;;  %292 = vst [vmem:[#allocation2 + $0x18] sm:$0x1] %v291_v14  ;;  %v3209_v43 = vmov 0   ;;  %vm3569_vm8 = vmand %vm269_vm6, %vm332_vm5 }
   0x5   :  { %3202 = vpow2.f32 %v2818_v6  ;;  %295 = vst [vmem:[#allocation2 + $0x20] sm:$0x1] %v294_v15  ;;  %v288_v19 = vsel %vm3274_vm4, 0, %v287_v17  ;;  %v296_v20 = vld [vmem:[#allocation2 + $0x28] sm:$0x1]  ;;  %v3019_v15 = vld [vmem:[%s4572_s0] sm:$0xff]  }
   0x6   :  { %v302_v21 = vld [vmem:[#allocation2 + $0x38] sm:$0x1]  ;;  %286 = vst [vmem:[#allocation2 + $0x8] sm:$0x1] %v285_v18  ;;  %289 = vst [vmem:[#allocation2 + $0x10] sm:$0x1] %v288_v19 }
   0x7   :  { %v297_v22 = vsel %vm3274_vm4, 0, %v296_v20  ;;  %v303_v23 = vsel %vm3274_vm4, 0, %v302_v21  ;;  %v305_v24 = vld [vmem:[#allocation2 + $0x40] sm:$0x1]  ;;  %v299_v25 = vld [vmem:[#allocation2 + $0x30] sm:$0x1]  ;;  %v3020_v21 = vunpack.c.l.bf16 %v3019_v15 }
   0x8   :  { %298 = vst [vmem:[#allocation2 + $0x28] sm:$0x1] %v297_v22  ;;  %304 = vst [vmem:[#allocation2 + $0x38] sm:$0x1] %v303_v23  ;;  %v306_v26 = vsel %vm3274_vm4, 0, %v305_v24  ;;  %v300_v27 = vsel %vm3274_vm4, 0, %v299_v25  ;;  %v3021_v22 = vunpack.c.h.bf16 %v3019_v15 }
   0x9   :  { %307 = vst [vmem:[#allocation2 + $0x40] sm:$0x1] %v306_v26  ;;  %301 = vst [vmem:[#allocation2 + $0x30] sm:$0x1] %v300_v27  ;;  %v314_v28 = vld [vmem:[#allocation2 + $0x68] sm:$0x1] }
   0xa   :  { %v317_v29 = vld [vmem:[#allocation2 + $0x70] sm:$0x1]  ;;  %v308_v30 = vld [vmem:[#allocation2 + $0x58] sm:$0x1]  ;;  %v315_v31 = vsel %vm3274_vm4, 0, %v314_v28  ;;  %v3082_v16 = vld [vmem:[%s4572_s0 + $0x8] sm:$0xff]  }
   0xb   :  { %v318_v32 = vsel %vm3274_vm4, 0, %v317_v29  ;;  %v309_v33 = vsel %vm3274_vm4, 0, %v308_v30  ;;  %v311_v34 = vld [vmem:[#allocation2 + $0x60] sm:$0x1]  ;;  %316 = vst [vmem:[#allocation2 + $0x68] sm:$0x1] %v315_v31  ;;  %v3024_v23 = vunpack.c.l.bf16 %v3082_v16  ;;  %v3025_v25 = vunpack.c.h.bf16 %v3082_v16 }
   0xc   :  { %319 = vst [vmem:[#allocation2 + $0x70] sm:$0x1] %v318_v32  ;;  %310 = vst [vmem:[#allocation2 + $0x58] sm:$0x1] %v309_v33  ;;  %v312_v35 = vsel %vm3274_vm4, 0, %v311_v34  ;;  %v3083_v17 = vld [vmem:[%s4572_s0 + $0x10] sm:$0xff]  }
   0xd   :  { %313 = vst [vmem:[#allocation2 + $0x60] sm:$0x1] %v312_v35  ;;  %v320_v36 = vld [vmem:[#allocation2 + $0x78] sm:$0x1]  ;;  %v326_v39 = vld [vmem:[#allocation2 + $0x88] sm:$0x1]  ;;  %v3028_v26 = vunpack.c.l.bf16 %v3083_v17  ;;  %v3029_v27 = vunpack.c.h.bf16 %v3083_v17 }
   0xe   :  { %v321_v37 = vsel %vm3274_vm4, 0, %v320_v36  ;;  %v327_v40 = vsel %vm3274_vm4, 0, %v326_v39  ;;  %v329_v41 = vld [vmem:[#allocation2 + $0x90] sm:$0x1]  ;;  %v323_v42 = vld [vmem:[#allocation2 + $0x80] sm:$0x1] }
   0xf   :  { %v3203_v7 = vpop.eup %3202  ;;  %322 = vst [vmem:[#allocation2 + $0x78] sm:$0x1] %v321_v37  ;;  %276 = vst.msk [vmem:[#allocation2 + $0x48] sm:$0xf] %vm269_vm6, %v3209_v43  ;;  %v330_v44 = vsel %vm3274_vm4, 0, %v329_v41  ;;  %v324_v45 = vsel %vm3274_vm4, 0, %v323_v42 }
  0x10   :  { %v125_v8 = vadd.f32 1.0, %v3203_v7  ;;  %270 = vst.msk [vmem:[#allocation2] sm:$0xf] %vm269_vm6, %v3209_v43  ;;  %273 = vst.msk [vmem:[#allocation2 + $0x50] sm:$0xf] %vm269_vm6, %v3209_v43  ;;  %v3084_v18 = vld [vmem:[%s4572_s0 + $0x18] sm:$0xff]  }
  0x11   :  { %272 = vst.msk [vmem:[#allocation2 + $0x4] sm:$0x1] %vm271_vm2, %v3209_v43  ;;  %274 = vst.msk [vmem:[#allocation2 + $0x54] sm:$0x1] %vm271_vm2, %v3209_v43  ;;  %v334_v46 = vld [vmem:[#allocation2 + $0xc] sm:$0x1]  ;;  %v3032_v28 = vunpack.c.l.bf16 %v3084_v18  ;;  %v3033_v31 = vunpack.c.h.bf16 %v3084_v18 }
  0x12   :  { %3204 = vrcp.f32 %v125_v8  ;;  %277 = vst.msk [vmem:[#allocation2 + $0x4c] sm:$0x1] %vm271_vm2, %v3209_v43  ;;  %279 = vst.msk [vmem:[#allocation2 + $0x9c] sm:$0x1] %vm271_vm2, %v3209_v43  ;;  %v337_v47 = vld [vmem:[#allocation2 + $0x14] sm:$0x1] }
  0x13   :  { %278 = vst.msk [vmem:[#allocation2 + $0x98] sm:$0xf] %vm269_vm6, %v3209_v43  ;;  %328 = vst [vmem:[#allocation2 + $0x88] sm:$0x1] %v327_v40  ;;  %v335_v48 = vsel %vm3306_vm7, 0, %v334_v46  ;;  %v338_v49 = vsel %vm3306_vm7, 0, %v337_v47 }
  0x14   :  { %331 = vst [vmem:[#allocation2 + $0x90] sm:$0x1] %v330_v44  ;;  %325 = vst [vmem:[#allocation2 + $0x80] sm:$0x1] %v324_v45  ;;  %v340_v50 = vld [vmem:[#allocation2 + $0x1c] sm:$0x1] }
  0x15   :  { %336 = vst [vmem:[#allocation2 + $0xc] sm:$0x1] %v335_v48  ;;  %339 = vst [vmem:[#allocation2 + $0x14] sm:$0x1] %v338_v49  ;;  %v341_v51 = vsel %vm3306_vm7, 0, %v340_v50  ;;  %v3085_v19 = vld [vmem:[%s4572_s0 + $0x20] sm:$0xff]  }
  0x16   :  { %342 = vst [vmem:[#allocation2 + $0x1c] sm:$0x1] %v341_v51  ;;  %v343_v52 = vld [vmem:[#allocation2 + $0x24] sm:$0x1]  ;;  %v346_v53 = vld [vmem:[#allocation2 + $0x2c] sm:$0x1]  ;;  %v3036_v32 = vunpack.c.l.bf16 %v3085_v19  ;;  %v3037_v33 = vunpack.c.h.bf16 %v3085_v19  ;;  %v216_v51 = vlaneseq }
  0x17   :  { %v344_v54 = vsel %vm3306_vm7, 0, %v343_v52  ;;  %v347_v55 = vsel %vm3306_vm7, 0, %v346_v53  ;;  %v349_v56 = vld [vmem:[#allocation2 + $0x34] sm:$0x1]  ;;  %v352_v57 = vld [vmem:[#allocation2 + $0x3c] sm:$0x1] }
  0x18   :  { %345 = vst [vmem:[#allocation2 + $0x24] sm:$0x1] %v344_v54  ;;  %348 = vst [vmem:[#allocation2 + $0x2c] sm:$0x1] %v347_v55  ;;  %v350_v58 = vsel %vm3306_vm7, 0, %v349_v56  ;;  %v353_v59 = vsel %vm3306_vm7, 0, %v352_v57 }
  0x19   :  { %351 = vst [vmem:[#allocation2 + $0x34] sm:$0x1] %v350_v58  ;;  %354 = vst [vmem:[#allocation2 + $0x3c] sm:$0x1] %v353_v59  ;;  %v355_v60 = vld [vmem:[#allocation2 + $0x44] sm:$0x1] }
  0x1a   :  { %v356_v61 = vsel %vm3306_vm7, 0, %v355_v60  ;;  %v361_v62 = vld [vmem:[#allocation2 + $0x64] sm:$0x1]  ;;  %v364_v63 = vld [vmem:[#allocation2 + $0x6c] sm:$0x1]  ;;  %v3087_v24 = vld [vmem:[%s4572_s0 + $0x30] sm:$0xff]  }
  0x1b   :  { %357 = vst [vmem:[#allocation2 + $0x44] sm:$0x1] %v356_v61  ;;  %v362_v0 = vsel %vm3306_vm7, 0, %v361_v62  ;;  %v365_v1 = vsel %vm3306_vm7, 0, %v364_v63  ;;  %v367_v2 = vld [vmem:[#allocation2 + $0x74] sm:$0x1]  ;;  %v3044_v36 = vunpack.c.l.bf16 %v3087_v24  ;;  %v3045_v37 = vunpack.c.h.bf16 %v3087_v24 }
  0x1c   :  { %v3205_v9 = vpop.eup %3204  ;;  %363 = vst [vmem:[#allocation2 + $0x64] sm:$0x1] %v362_v0  ;;  %366 = vst [vmem:[#allocation2 + $0x6c] sm:$0x1] %v365_v1  ;;  %v358_v3 = vld [vmem:[#allocation2 + $0x5c] sm:$0x1] }
  0x1d   :  { %v128_v10 = vmul.f32 %v3205_v9, %v121_v4  ;;  %v368_v4 = vsel %vm3306_vm7, 0, %v367_v2  ;;  %v359_v5 = vsel %vm3306_vm7, 0, %v358_v3  ;;  %v373_v6 = vld [vmem:[#allocation2 + $0x84] sm:$0x1]  ;;  %v376_v7 = vld [vmem:[#allocation2 + $0x8c] sm:$0x1] }
  0x1e   :  { %369 = vst [vmem:[#allocation2 + $0x74] sm:$0x1] %v368_v4  ;;  %360 = vst [vmem:[#allocation2 + $0x5c] sm:$0x1] %v359_v5  ;;  %v374_v8 = vsel %vm3306_vm7, 0, %v373_v6  ;;  %v377_v9 = vsel %vm3306_vm7, 0, %v376_v7 }
  0x1f   :  { %3117 = vmatmul.mubr.msk.f32.vlgmr.msra.gmra.mrb[0].mxu0 %vm138_vm1, %v128_v10  ;;  %375 = vst [vmem:[#allocation2 + $0x84] sm:$0x1] %v374_v8  ;;  %378 = vst [vmem:[#allocation2 + $0x8c] sm:$0x1] %v377_v9  ;;  %v379_v10 = vld [vmem:[#allocation2 + $0x94] sm:$0x1] }
  0x20   :  { %v380_v12 = vsel %vm3306_vm7, 0, %v379_v10  ;;  %v370_v13 = vld [vmem:[#allocation2 + $0x7c] sm:$0x1]  ;;  %v3086_v20 = vld [vmem:[%s4572_s0 + $0x28] sm:$0xff]   ;;  %v2816_v30 = vld [vmem:[%s4573_s1] ss:$0 sm:$0xff] }
  0x21   :  { %381 = vst [vmem:[#allocation2 + $0x94] sm:$0x1] %v380_v12  ;;  %v371_v14 = vsel %vm3306_vm7, 0, %v370_v13  ;;  %v3088_v29 = vld [vmem:[%s4572_s0 + $0x38] sm:$0xff]   ;;  %v3040_v34 = vunpack.c.l.bf16 %v3086_v20  ;;  %v3041_v35 = vunpack.c.h.bf16 %v3086_v20  ;;  %v66_v40 = vmul.f32 %v3020_v21, %v2816_v30  ;;  %v2817_v48 = vld [vmem:[%s4573_s1 + $0x1] ss:$0 sm:$0xff] }
  0x22   :  { %372 = vst [vmem:[#allocation2 + $0x7c] sm:$0x1] %v371_v14  ;;  %v3048_v38 = vunpack.c.l.bf16 %v3088_v29  ;;  %v3049_v39 = vunpack.c.h.bf16 %v3088_v29  ;;  %v67_v41 = vmul.f32 %v3021_v22, %v2816_v30  ;;  %v68_v42 = vmul.f32 %v3024_v23, %v2816_v30  ;;  %v753_v13 = vld [vmem:[#allocation2] sm:$0xf]  ;;  %s3212_s29 = smov 48   ;;  %s3213_s30 = smov 16  }
  0x23   :  { %v69_v43 = vmul.f32 %v3025_v25, %v2816_v30  ;;  %v70_v44 = vmul.f32 %v3028_v26, %v2816_v30  ;;  %v71_v45 = vmul.f32 %v3029_v27, %v2816_v30  ;;  %v72_v46 = vmul.f32 %v3032_v28, %v2816_v30  ;;  %v2819_v18 = vld [vmem:[%s4574_s4] ss:$0 sm:$0xff]  ;;  %s3211_s4 = smov 24   ;;  %s3214_s9 = smov 40  }
  0x24   :  { %v73_v47 = vmul.f32 %v3033_v31, %v2816_v30  ;;  %v3210_v49 = vmov 1966171168   ;;  %v74_v52 = vmul.f32 %v3036_v32, %v2816_v30  ;;  %v75_v53 = vmul.f32 %v3037_v33, %v2816_v30  ;;  %s3215_s10 = smov 64   ;;  %s3216_s2 = smov 32  }
  0x25   :  { %v214_v50 = vunpack.c.l.s4 %v3210_v49  ;;  %v76_v54 = vmul.f32 %v3040_v34, %v2816_v30  ;;  %v77_v55 = vmul.f32 %v3041_v35, %v2816_v30  ;;  %v78_v56 = vmul.f32 %v3044_v36, %v2816_v30  ;;  %v3450_v49 = vld [vmem:[#allocation2 + $0x4] sm:$0x1]  ;;  %s3217_s3 = smov 56   ;;  %s3218_s11 = smov 8  }
  0x26   :  { %v79_v57 = vmul.f32 %v3045_v37, %v2816_v30  ;;  %v80_v58 = vmul.f32 %v3048_v38, %v2816_v30  ;;  %v81_v59 = vmul.f32 %v3049_v39, %v2816_v30  ;;  %v3386_v60 = vadd.f32 %v2817_v48, %v66_v40  ;;  %v3434_v38 = vld [vmem:[#allocation2] sm:$0xe]  ;;  %v3436_v39 = vld [vmem:[#allocation2 + $0x4] sm:$0x1]  ;;  %v3438_v40 = vld [vmem:[#allocation2 + $0x48] sm:$0xe] }
  0x27   :  { %v3388_v61 = vadd.f32 %v2817_v48, %v67_v41  ;;  %v3390_v62 = vadd.f32 %v2817_v48, %v68_v42  ;;  %v3392_v63 = vadd.f32 %v2817_v48, %v69_v43  ;;  %v3394_v0 = vadd.f32 %v2817_v48, %v70_v44  ;;  %4586 = vst [vmem:[#allocation4_spill] sm:$0xff] %v3438_v40  ;;  %v3440_v41 = vld [vmem:[#allocation2 + $0x4c] sm:$0x1]  ;;  %v3442_v42 = vld [vmem:[#allocation2 + $0x50] sm:$0xe] }
  0x28   :  { %v3396_v1 = vadd.f32 %v2817_v48, %v71_v45  ;;  %v215_v2 = vunpack.c.0.s8 %v214_v50  ;;  %v217_v3 = vshrl.u32 %v216_v51, 7  ;;  %v3398_v4 = vadd.f32 %v2817_v48, %v72_v46  ;;  %4587 = vst [vmem:[#allocation5_spill] sm:$0xff] %v3440_v41  ;;  %4588 = vst [vmem:[#allocation6_spill] sm:$0xff] %v3442_v42  ;;  %v3452_v50 = vld [vmem:[#allocation2 + $0x48] sm:$0xf] }
  0x29   :  { %v3400_v5 = vadd.f32 %v2817_v48, %v73_v47  ;;  %v3402_v6 = vadd.f32 %v2817_v48, %v74_v52  ;;  %v3404_v7 = vadd.f32 %v2817_v48, %v75_v53  ;;  %v3406_v8 = vadd.f32 %v2817_v48, %v76_v54  ;;  %v662_v40 = vld [vmem:[#allocation2 + $0x80] sm:$0xf] }
  0x2a   :  { %v3408_v9 = vadd.f32 %v2817_v48, %v77_v55  ;;  %v3410_v10 = vadd.f32 %v2817_v48, %v78_v56  ;;  %v3412_v12 = vadd.f32 %v2817_v48, %v79_v57  ;;  %v3414_v14 = vadd.f32 %v2817_v48, %v80_v58 }
  0x2b   :  { %v3416_v15 = vadd.f32 %v2817_v48, %v81_v59  ;;  %v103_v16 = vmax.f32 %v3386_v60, 0.0  ;;  %v104_v17 = vmax.f32 %v3388_v61, 0.0  ;;  %v105_v19 = vmax.f32 %v3390_v62, 0.0  ;;  %v596_v60 = vld [vmem:[#allocation2 + $0x18] sm:$0xf] }
  0x2c   :  { %v106_v20 = vmax.f32 %v3392_v63, 0.0  ;;  %v107_v21 = vmax.f32 %v3394_v0, 0.0  ;;  %v218_v22 = vsub.s32 %v215_v2, %v217_v3  ;;  %v108_v23 = vmax.f32 %v3396_v1, 0.0  ;;  %v602_v59 = vld [vmem:[#allocation2 + $0x20] sm:$0xf] }
  0x2d   :  { %v109_v24 = vmax.f32 %v3398_v4, 0.0  ;;  %v789_v26 = vshrl.u32 %v753_v13, 16  ;;  %v792_v27 = vshll.u32 %v753_v13, 16  ;;  %v110_v28 = vmax.f32 %v3400_v5, 0.0 }
  0x2e   :  { %v111_v29 = vmax.f32 %v3402_v6, 0.0  ;;  %v112_v30 = vmax.f32 %v3404_v7, 0.0  ;;  %v113_v33 = vmax.f32 %v3406_v8, 0.0  ;;  %v114_v34 = vmax.f32 %v3408_v9, 0.0 }
  0x2f   :  { %v115_v35 = vmax.f32 %v3410_v10, 0.0  ;;  %v237_v36 = vsub.s32 0, %v217_v3  ;;  %v3444_v43 = vrot.slane %v789_v26, 4  ;;  %v3446_v44 = vrot.slane %v792_v27, 5 }
  0x30   :  { %v116_v45 = vmax.f32 %v3412_v12, 0.0  ;;  %v117_v46 = vmax.f32 %v3414_v14, 0.0  ;;  %v118_v51 = vmax.f32 %v3416_v15, 0.0  ;;  %v4611_v11 = vshll.u32 %v3450_v49, 16 }
  0x31   :  { %vm1133_vm9 = vcmask 1042432   ;;  %vm1134_vm10 = vcmask 1046532   ;;  %vm785_vm11 = vsmask.f32 3328  ;;  %vm786_vm12 = vsmask.f32 7440 }
  0x32   :  { %vm3773_vm13 = vmor %vm1133_vm9, %vm1134_vm10  ;;  %vm744_vm15 = vcmask 64512   ;;  %vm2533_vm0 = vcmask 1043456   ;;  %vm1060_vm1 = vcmask 130112   ;;  %vm1248_vm2 = vcmask 195712  }
  0x33   :  { %vm3793_vm14 = vmor %vm785_vm11, %vm786_vm12  ;;  %vm1337_vm3 = vcmask 261312   ;;  %vm1835_vm5 = vcmask 392512   ;;  %vm1925_vm7 = vcmask 458112   ;;  %vm2423_vm9 = vcmask 589312  }
  0x34   :  { %vm2508_vm10 = vcmask 588800   ;;  %vm2806_vm11 = vcmask 58368  }
  0xf2   :  { %v208_v25 = vpop.f32.mrb[0].mxu0 }
  0xf3   :  { %v209_v31 = vadd.f32 %v2819_v18, %v208_v25  ;;  %v3118_v32 = vpop.f32.mrb[1].mxu0 }
  0xf5   :  { %v219_v37 = vrot.slane %v209_v31, %v218_v22 }
  0xf7   :  { %v220_v47 = vcombine.high %v219_v37, %v219_v37  ;;  %v227_v48 = vrot.slane %v219_v37, %v218_v22 }
  0xf9   :  { %v234_v55 = vrot.slane %v220_v47, %v218_v22  ;;  %v238_v56 = vrot.slane %v227_v48, %v237_v36 }
  0xfb   :  { %v242_v63 = vrot.slane %v234_v55, %v237_v36  ;;  %v245_v0 = vadd.f32 %v238_v56, %v103_v16  ;;  %v246_v1 = vadd.f32 %v238_v56, %v104_v17  ;;  %v247_v2 = vadd.f32 %v238_v56, %v105_v19  ;;  %v638_v36 = vld [vmem:[#allocation2 + $0x60] sm:$0xf] }
  0xfc   :  { %v248_v3 = vadd.f32 %v238_v56, %v106_v20  ;;  %v249_v4 = vadd.f32 %v238_v56, %v107_v21  ;;  %v250_v5 = vadd.f32 %v238_v56, %v108_v23  ;;  %v251_v6 = vadd.f32 %v238_v56, %v109_v24 }
  0xfd   :  { %v252_v7 = vadd.f32 %v238_v56, %v110_v28  ;;  %v253_v8 = vadd.f32 %v242_v63, %v111_v29  ;;  %v254_v9 = vadd.f32 %v242_v63, %v112_v30  ;;  %v255_v10 = vadd.f32 %v242_v63, %v113_v33 }
  0xfe   :  { %v256_v12 = vadd.f32 %v242_v63, %v114_v34  ;;  %v257_v13 = vadd.f32 %v242_v63, %v115_v35  ;;  %v258_v14 = vadd.f32 %v242_v63, %v116_v45  ;;  %v259_v15 = vadd.f32 %v242_v63, %v117_v46  ;;  %v674_v34 = vld [vmem:[#allocation2 + $0x90] sm:$0xf] }
  0xff   :  { %v260_v18 = vadd.f32 %v242_v63, %v118_v51  ;;  %v3465_v22 = vpack.c.bf16 %v245_v0, %v245_v0  ;;  %v3467_v25 = vpack.c.bf16 %v246_v1, %v246_v1  ;;  %v3469_v16 = vpack.c.bf16 %v247_v2, %v247_v2 }
 0x100   :  { %v3471_v17 = vpack.c.bf16 %v248_v3, %v248_v3  ;;  %v2990_v19 = vpack.c.bf16 %v249_v4, %v249_v4  ;;  %v2991_v20 = vpack.c.bf16 %v250_v5, %v250_v5  ;;  %v2992_v21 = vpack.c.bf16 %v251_v6, %v251_v6  ;;  %v632_v6 = vld [vmem:[#allocation2 + $0x58] sm:$0xf] }
 0x101   :  { %v2993_v23 = vpack.c.bf16 %v252_v7, %v252_v7  ;;  %v2994_v24 = vpack.c.bf16 %v253_v8, %v253_v8  ;;  %v2995_v26 = vpack.c.bf16 %v254_v9, %v254_v9  ;;  %v2996_v27 = vpack.c.bf16 %v255_v10, %v255_v10  ;;  %v650_v7 = vld [vmem:[#allocation2 + $0x70] sm:$0xf] }
 0x102   :  { %v3473_v28 = vpack.c.bf16 %v256_v12, %v256_v12  ;;  %v3475_v29 = vpack.c.bf16 %v257_v13, %v257_v13  ;;  %v3477_v30 = vpack.c.bf16 %v258_v14, %v258_v14  ;;  %v3479_v31 = vpack.c.bf16 %v259_v15, %v259_v15  ;;  %v644_v12 = vld [vmem:[#allocation2 + $0x68] sm:$0xf] }
 0x103   :  { %v3481_v32 = vpack.c.bf16 %v260_v18, %v260_v18  ;;  %v423_v33 = vshrl.u32 %v3465_v22, 16  ;;  %v431_v35 = vshrl.u32 %v3467_v25, 16  ;;  %v439_v37 = vshrl.u32 %v3469_v16, 16 }
 0x104   :  { %v442_v45 = vshll.u32 %v3469_v16, 16  ;;  %v447_v46 = vshrl.u32 %v3471_v17, 16  ;;  %v450_v51 = vshll.u32 %v3471_v17, 16  ;;  %v455_v55 = vshrl.u32 %v2990_v19, 16  ;;  %v656_v16 = vld [vmem:[#allocation2 + $0x78] sm:$0xf] }
 0x105   :  { %v3490_v47 = vrot.slane %v423_v33, 7  ;;  %v3492_v48 = vrot.slane %v431_v35, 7  ;;  %v3495_v56 = vrot.slane %v439_v37, 7  ;;  %v458_v0 = vshll.u32 %v2990_v19, 16 }
 0x106   :  { %v3497_v63 = vrot.slane %v447_v46, 7  ;;  %v463_v1 = vshrl.u32 %v2991_v20, 16  ;;  %v3501_v4 = vrot.slane %v455_v55, 7  ;;  %v466_v5 = vshll.u32 %v2991_v20, 16 }
 0x107   :  { %v471_v9 = vshrl.u32 %v2992_v21, 16  ;;  %v474_v13 = vshll.u32 %v2992_v21, 16  ;;  %v479_v14 = vshrl.u32 %v2993_v23, 16  ;;  %v482_v20 = vshll.u32 %v2993_v23, 16 }
 0x108   :  { %v3505_v8 = vrot.slane %v463_v1, 7  ;;  %v3508_v10 = vor.u32 %v458_v0, %v3501_v4  ;;  %v487_v35 = vshrl.u32 %v2994_v24, 16  ;;  %v490_v37 = vshll.u32 %v2994_v24, 16 }
 0x109   :  { %v3515_v19 = vrot.slane %v471_v9, 7  ;;  %v3517_v33 = vrot.slane %v479_v14, 7  ;;  %v495_v46 = vshrl.u32 %v2995_v26, 16  ;;  %v498_v21 = vshll.u32 %v2995_v26, 16  ;;  %v608_v26 = vld [vmem:[#allocation2 + $0x28] sm:$0xf] }
 0x10a   :  { %v3512_v15 = vor.u32 %v466_v5, %v3505_v8  ;;  %v503_v1 = vshrl.u32 %v2996_v27, 16  ;;  %v3527_v9 = vrot.slane %v487_v35, 7  ;;  %v506_v24 = vshll.u32 %v2996_v27, 16 }
 0x10b   :  { %v3520_v55 = vor.u32 %v474_v13, %v3515_v19  ;;  %v3524_v5 = vor.u32 %v482_v20, %v3517_v33  ;;  %v3529_v23 = vrot.slane %v495_v46, 7  ;;  %v511_v54 = vshrl.u32 %v3473_v28, 16 }
 0x10c   :  { %v3531_v14 = vrot.slane %v503_v1, 7  ;;  %v514_v13 = vshll.u32 %v3473_v28, 16  ;;  %v3536_v57 = vor.u32 %v490_v37, %v3527_v9  ;;  %v519_v52 = vshrl.u32 %v3475_v29, 16  ;;  %v620_v1 = vld [vmem:[#allocation2 + $0x38] sm:$0xf] }
 0x10d   :  { %v3540_v20 = vor.u32 %v498_v21, %v3529_v23  ;;  %v3547_v27 = vrot.slane %v511_v54, 7  ;;  %v522_v28 = vshll.u32 %v3475_v29, 16  ;;  %v527_v37 = vshrl.u32 %v3477_v30, 16  ;;  %v626_v29 = vld [vmem:[#allocation2 + $0x40] sm:$0xf] }
 0x10e   :  { %v3544_v46 = vor.u32 %v506_v24, %v3531_v14  ;;  %v530_v53 = vshll.u32 %v3477_v30, 16  ;;  %v535_v21 = vshrl.u32 %v3479_v31, 16  ;;  %v3558_v61 = vrot.slane %v519_v52, 7  ;;  %v584_v52 = vld [vmem:[#allocation2 + $0x8] sm:$0xf] }
 0x10f   :  { %v3555_v62 = vor.u32 %v514_v13, %v3547_v27  ;;  %v538_v54 = vshll.u32 %v3479_v31, 16  ;;  %v3561_v35 = vrot.slane %v527_v37, 7  ;;  %v543_v30 = vshrl.u32 %v3481_v32, 16  ;;  %v614_v24 = vld [vmem:[#allocation2 + $0x30] sm:$0xf] }
 0x110   :  { %v3563_v58 = vrot.slane %v535_v21, 7  ;;  %v546_v0 = vshll.u32 %v3481_v32, 16  ;;  %v524_v31 = vor.u32 %v522_v28, %v3558_v61  ;;  %v444_v37 = vor.u32 %v442_v45, %v3495_v56  ;;  %v590_v21 = vld [vmem:[#allocation2 + $0x10] sm:$0xf]  ;;  %v668_v45 = vld [vmem:[#allocation2 + $0x88] sm:$0xf] }
 0x111   :  { %v452_v32 = vor.u32 %v450_v51, %v3497_v63  ;;  %v3582_v3 = vor.u32 %v530_v53, %v3561_v35  ;;  %v3587_v42 = vrot.slane %v543_v30, 7  ;;  %v4591_v53 = vshll.u32 %v3465_v22, 16  ;;  %v593_v22 = vld [vmem:[#allocation2 + $0x14] sm:$0x1] }
 0x112   :  { %v540_v28 = vor.u32 %v538_v54, %v3563_v58  ;;  %v597_v17 = vsel %vm3569_vm8, %v444_v37, %v596_v60  ;;  %v587_v54 = vld [vmem:[#allocation2 + $0xc] sm:$0x1]  ;;  %v4592_v18 = vshll.u32 %v3467_v25, 16  ;;  %v609_v30 = vsel %vm3569_vm8, %v3508_v10, %v608_v26  ;;  %v599_v37 = vld [vmem:[#allocation2 + $0x1c] sm:$0x1] }
 0x113   :  { %v603_v51 = vsel %vm3569_vm8, %v452_v32, %v602_v59  ;;  %v428_v2 = vor.u32 %v4591_v53, %v3490_v47  ;;  %598 = vst [vmem:[#allocation2 + $0x18] sm:$0xf] %v597_v17  ;;  %v621_v59 = vsel %vm3569_vm8, %v3520_v55, %v620_v1  ;;  %v627_v60 = vsel %vm3569_vm8, %v3524_v5, %v626_v29  ;;  %v605_v32 = vld [vmem:[#allocation2 + $0x24] sm:$0x1]  ;;  %v611_v55 = vld [vmem:[#allocation2 + $0x2c] sm:$0x1] }
 0x114   :  { %604 = vst [vmem:[#allocation2 + $0x20] sm:$0xf] %v603_v51  ;;  %v436_v41 = vor.u32 %v4592_v18, %v3492_v48  ;;  %v548_v17 = vor.u32 %v546_v0, %v3587_v42  ;;  %v549_v25 = vrot.slane %v3587_v42, 4  ;;  %610 = vst [vmem:[#allocation2 + $0x28] sm:$0xf] %v609_v30  ;;  %v615_v10 = vsel %vm3569_vm8, %v3512_v15, %v614_v24 }
 0x115   :  { %v585_v18 = vsel %vm3569_vm8, %v428_v2, %v584_v52  ;;  %622 = vst [vmem:[#allocation2 + $0x38] sm:$0xf] %v621_v59  ;;  %628 = vst [vmem:[#allocation2 + $0x40] sm:$0xf] %v627_v60  ;;  %v617_v26 = vld [vmem:[#allocation2 + $0x34] sm:$0x1]  ;;  %v645_v0 = vsel %vm3569_vm8, %v3544_v46, %v644_v12  ;;  %v651_v2 = vsel %vm3569_vm8, %v3555_v62, %v650_v7 }
 0x116   :  { %586 = vst [vmem:[#allocation2 + $0x8] sm:$0xf] %v585_v18  ;;  %v591_v5 = vsel %vm3569_vm8, %v436_v41, %v590_v21  ;;  %616 = vst [vmem:[#allocation2 + $0x30] sm:$0xf] %v615_v10  ;;  %v633_v1 = vsel %vm3569_vm8, %v3536_v57, %v632_v6  ;;  %v623_v15 = vld [vmem:[#allocation2 + $0x3c] sm:$0x1]  ;;  %v639_v41 = vsel %vm3569_vm8, %v3540_v20, %v638_v36 }
 0x117   :  { %v629_v24 = vld [vmem:[#allocation2 + $0x44] sm:$0x1]  ;;  %592 = vst [vmem:[#allocation2 + $0x10] sm:$0xf] %v591_v5  ;;  %646 = vst [vmem:[#allocation2 + $0x68] sm:$0xf] %v645_v0  ;;  %v657_v12 = vsel %vm3569_vm8, %v524_v31, %v656_v16  ;;  %v669_v62 = vsel %vm3569_vm8, %v540_v28, %v668_v45  ;;  %v675_v57 = vsel %vm3569_vm8, %v548_v17, %v674_v34 }
 0x118   :  { %v641_v29 = vld [vmem:[#allocation2 + $0x64] sm:$0x1]  ;;  %652 = vst [vmem:[#allocation2 + $0x70] sm:$0xf] %v651_v2  ;;  %634 = vst [vmem:[#allocation2 + $0x58] sm:$0xf] %v633_v1  ;;  %v663_v36 = vsel %vm3569_vm8, %v3582_v3, %v662_v40 }
 0x119   :  { %v647_v6 = vld [vmem:[#allocation2 + $0x6c] sm:$0x1]  ;;  %v653_v7 = vld [vmem:[#allocation2 + $0x74] sm:$0x1]  ;;  %v635_v46 = vld [vmem:[#allocation2 + $0x5c] sm:$0x1] }
 0x11a   :  { %640 = vst [vmem:[#allocation2 + $0x60] sm:$0xf] %v639_v41  ;;  %658 = vst [vmem:[#allocation2 + $0x78] sm:$0xf] %v657_v12  ;;  %v4593_v20 = vrot.slane %v3490_v47, 4  ;;  %v4594_v31 = vrot.slane %v3492_v48, 4 }
 0x11b   :  { %670 = vst [vmem:[#allocation2 + $0x88] sm:$0xf] %v669_v62  ;;  %676 = vst [vmem:[#allocation2 + $0x90] sm:$0xf] %v675_v57  ;;  %v4595_v21 = vrot.slane %v3495_v56, 4  ;;  %v4596_v40 = vrot.slane %v3497_v63, 4 }
 0x11c   :  { %v588_v52 = vsel %vm3274_vm4, %v4593_v20, %v587_v54  ;;  %v594_v34 = vsel %vm3274_vm4, %v4594_v31, %v593_v22  ;;  %v665_v16 = vld [vmem:[#allocation2 + $0x84] sm:$0x1]  ;;  %v671_v45 = vld [vmem:[#allocation2 + $0x8c] sm:$0x1]  ;;  %v677_v51 = vld [vmem:[#allocation2 + $0x94] sm:$0x1] }
 0x11d   :  { %v600_v28 = vsel %vm3274_vm4, %v4595_v21, %v599_v37  ;;  %664 = vst [vmem:[#allocation2 + $0x80] sm:$0xf] %v663_v36  ;;  %589 = vst [vmem:[#allocation2 + $0xc] sm:$0x1] %v588_v52  ;;  %v606_v47 = vsel %vm3274_vm4, %v4596_v40, %v605_v32  ;;  %v4597_v48 = vrot.slane %v3501_v4, 4  ;;  %v4598_v3 = vrot.slane %v3505_v8, 4 }
 0x11e   :  { %595 = vst [vmem:[#allocation2 + $0x14] sm:$0x1] %v594_v34  ;;  %601 = vst [vmem:[#allocation2 + $0x1c] sm:$0x1] %v600_v28  ;;  %v4599_v53 = vrot.slane %v3515_v19, 4  ;;  %v4600_v63 = vrot.slane %v3517_v33, 4 }
 0x11f   :  { %v612_v56 = vsel %vm3274_vm4, %v4597_v48, %v611_v55  ;;  %v618_v13 = vsel %vm3274_vm4, %v4598_v3, %v617_v26  ;;  %v659_v30 = vld [vmem:[#allocation2 + $0x7c] sm:$0x1]  ;;  %607 = vst [vmem:[#allocation2 + $0x24] sm:$0x1] %v606_v47  ;;  %v4601_v8 = vrot.slane %v3529_v23, 4  ;;  %v4602_v19 = vrot.slane %v3531_v14, 4 }
 0x120   :  { %v624_v54 = vsel %vm3274_vm4, %v4599_v53, %v623_v15  ;;  %613 = vst [vmem:[#allocation2 + $0x2c] sm:$0x1] %v612_v56  ;;  %619 = vst [vmem:[#allocation2 + $0x34] sm:$0x1] %v618_v13  ;;  %v630_v4 = vsel %vm3274_vm4, %v4600_v63, %v629_v24  ;;  %v4603_v22 = vrot.slane %v3547_v27, 4  ;;  %v4604_v23 = vrot.slane %v3527_v9, 4 }
 0x121   :  { %625 = vst [vmem:[#allocation2 + $0x3c] sm:$0x1] %v624_v54  ;;  %v642_v59 = vsel %vm3274_vm4, %v4601_v8, %v641_v29  ;;  %v648_v60 = vsel %vm3274_vm4, %v4602_v19, %v647_v6  ;;  %v3682_v32 = vld [vmem:[#allocation2 + $0x54] sm:$0x1]  ;;  %v3173_v33 = vld [vmem:[#allocation2 + $0x18] ss:$8 sps:$4 sm:$0xff]   ;;  %v678_v55 = vsel %vm3274_vm4, %v549_v25, %v677_v51 }
 0x122   :  { %v654_v37 = vsel %vm3274_vm4, %v4603_v22, %v653_v7  ;;  %631 = vst [vmem:[#allocation2 + $0x44] sm:$0x1] %v630_v4  ;;  %643 = vst [vmem:[#allocation2 + $0x64] sm:$0x1] %v642_v59  ;;  %v636_v14 = vsel %vm3274_vm4, %v4604_v23, %v635_v46  ;;  %v4605_v17 = vrot.slane %v3561_v35, 4  ;;  %v4606_v18 = vrot.slane %v3563_v58, 4  ;;  %1315 = vrot.lane.b32.xlu1 %v3173_v33, %s3211_s4 }
 0x123   :  { %649 = vst [vmem:[#allocation2 + $0x6c] sm:$0x1] %v648_v60  ;;  %655 = vst [vmem:[#allocation2 + $0x74] sm:$0x1] %v654_v37  ;;  %v1949_v26 = vld [vmem:[#allocation2 + $0x4c] sm:$0x1] }
 0x124   :  { %v666_v27 = vsel %vm3274_vm4, %v4605_v17, %v665_v16  ;;  %v672_v10 = vsel %vm3274_vm4, %v4606_v18, %v671_v45  ;;  %637 = vst [vmem:[#allocation2 + $0x5c] sm:$0x1] %v636_v14  ;;  %679 = vst [vmem:[#allocation2 + $0x94] sm:$0x1] %v678_v55  ;;  %v4607_v9 = vrot.slane %v3558_v61, 4  ;;  %v4608_v58 = vshrl.u32 %v3452_v50, 16 }
 0x125   :  { %667 = vst [vmem:[#allocation2 + $0x84] sm:$0x1] %v666_v27  ;;  %673 = vst [vmem:[#allocation2 + $0x8c] sm:$0x1] %v672_v10  ;;  %v4609_v0 = vshll.u32 %v3452_v50, 16  ;;  %v1170_v1 = vrot.slane %v3682_v32, 5  ;;  %v4610_v61 = vor.u32 %v3446_v44, %v3444_v43 }
 0x126   :  { %v660_v35 = vsel %vm3274_vm4, %v4607_v9, %v659_v30  ;;  %v2067_v5 = vrot.slane %v4608_v58, 4  ;;  %v3174_v42 = vld [vmem:[#allocation2 + $0x8] ss:$8 sps:$4 sm:$0xff]   ;;  %v3718_v24 = vrot.slane %v4611_v11, 5  ;;  %v2074_v50 = vshll.u32 %v1949_v26, 16 }
 0x127   :  { %v2070_v2 = vrot.slane %v4609_v0, 5  ;;  %661 = vst [vmem:[#allocation2 + $0x7c] sm:$0x1] %v660_v35  ;;  %v3175_v25 = vld [vmem:[#allocation2 + $0x20] ss:$8 sps:$4 sm:$0xff]   ;;  %v3713_v15 = vrot.slane %v4610_v61, 4  ;;  %1313 = vrot.lane.b32.xlu0 %v3174_v42, %s3211_s4 }
 0x128   :  { %1903 = vrot.lane.b32.xlu1 %v3175_v25, %s3212_s29  ;;  %v769_v41 = vld [vmem:[#allocation2 + $0x50] sm:$0xf]  ;;  %v3177_v62 = vld [vmem:[#allocation2 + $0x38] ss:$8 sps:$4 sm:$0xff]   ;;  %v3725_v6 = vrot.slane %v2074_v50, 5  ;;  %vm1650_vm4 = vcmask 326912  }
 0x129   :  { %v2071_v29 = vor.u32 %v2070_v2, %v2067_v5  ;;  %v3176_v12 = vld [vmem:[#allocation2 + $0x10] ss:$8 sps:$4 sm:$0xff]   ;;  %v901_v57 = vshrl.u32 %v769_v41, 16  ;;  %v904_v43 = vshll.u32 %v769_v41, 16  ;;  %v3179_v7 = vld [vmem:[#allocation2 + $0x40] ss:$8 sps:$4 sm:$0xff]  }
 0x12a   :  { %v3178_v49 = vld [vmem:[#allocation2 + $0x28] ss:$8 sps:$4 sm:$0xff]   ;;  %v3735_v34 = vld [vmem:[#allocation2 + $0xc] sm:$0x1]  ;;  %v3739_v28 = vld [vmem:[#allocation2 + $0x14] sm:$0x1] }
 0x12b   :  { %1901 = vrot.lane.b32.xlu0 %v3176_v12, %s3212_s29  ;;  %v3723_v44 = vrot.slane %v2071_v29, 4  ;;  %v3728_v46 = vrot.slane %v901_v57, 4  ;;  %v3730_v36 = vrot.slane %v904_v43, 5  ;;  %v3180_v20 = vld [vmem:[#allocation2 + $0x30] ss:$8 sps:$4 sm:$0xff]   ;;  %v1725_v45 = vrot.slane %v3735_v34, 5 }
 0x12c   :  { %1319 = vrot.lane.b32.xlu1 %v3177_v62, %s3211_s4  ;;  %v3181_v52 = vld [vmem:[#allocation2 + $0x68] ss:$8 sps:$4 sm:$0xff]   ;;  %v3182_v51 = vld [vmem:[#allocation2 + $0x58] ss:$8 sps:$4 sm:$0xff]   ;;  %v1729_v47 = vrot.slane %v3739_v28, 5  ;;  %v4616_v41 = vrot.slane %v3436_v39, 5 }
 0x12d   :  { %v3733_v31 = vld [vmem:[#allocation2 + $0x8] sm:$0xe]  ;;  %v3737_v21 = vld [vmem:[#allocation2 + $0x10] sm:$0xe]  ;;  %v1072_v56 = vld [vmem:[#allocation2 + $0xc] sm:$0x1]  ;;  %v2077_v32 = vsel %vm3793_vm14, %v3723_v44, %v3725_v6 }
 0x12e   :  { %v2893_v16 = vrot.slane %v3733_v31, 9  ;;  %v2894_v40 = vrot.slane %v3737_v21, 9  ;;  %v1071_v48 = vld [vmem:[#allocation2 + $0x8] sm:$0xe]  ;;  %v3183_v3 = vld [vmem:[#allocation2 + $0x70] ss:$8 sps:$4 sm:$0xff]  }
 0x12f   :  { %1317 = vrot.lane.b32.xlu0 %v3178_v49, %s3211_s4  ;;  %v2854_v13 = vrot.slane %v1071_v48, 9  ;;  %v1142_v53 = vrot.slane %v1072_v56, 5  ;;  %v3747_v54 = vld [vmem:[#allocation2 + $0x10] sm:$0xe]  ;;  %v3749_v30 = vld [vmem:[#allocation2 + $0x14] sm:$0x1] }
 0x130   :  { %1907 = vrot.lane.b32.xlu1 %v3179_v7, %s3212_s29  ;;  %v3751_v63 = vld [vmem:[#allocation2 + $0x18] sm:$0xe]  ;;  %v3753_v4 = vld [vmem:[#allocation2 + $0x1c] sm:$0x1]  ;;  %v2933_v8 = vrot.slane %v3747_v54, 9  ;;  %v2313_v59 = vrot.slane %v3749_v30, 5  ;;  %v1730_v31 = vsel %vm3773_vm13, %v2894_v40, %v1729_v47 }
 0x131   :  { %v2934_v19 = vrot.slane %v3751_v63, 9  ;;  %v2317_v60 = vrot.slane %v3753_v4, 5  ;;  %v3759_v22 = vld [vmem:[#allocation2 + $0x10] sm:$0xe]  ;;  %v3761_v37 = vld [vmem:[#allocation2 + $0x14] sm:$0x1] }
 0x132   :  { %v3184_v33 = vld [vmem:[#allocation2 + $0x60] ss:$8 sps:$4 sm:$0xff]   ;;  %v3764_v23 = vld [vmem:[#allocation2 + $0x18] sm:$0xe]  ;;  %v3766_v14 = vld [vmem:[#allocation2 + $0x1c] sm:$0x1] }
 0x133   :  { %1905 = vrot.lane.b32.xlu0 %v3180_v20, %s3212_s29  ;;  %v2855_v17 = vrot.slane %v3759_v22, 9  ;;  %v1146_v27 = vrot.slane %v3761_v37, 5  ;;  %v3185_v18 = vld [vmem:[#allocation2 + $0x88] ss:$8 sps:$4 sm:$0xff]   ;;  %v2856_v55 = vrot.slane %v3764_v23, 9  ;;  %v1150_v26 = vrot.slane %v3766_v14, 5 }
 0x134   :  { %1323 = vrot.lane.b32.xlu1 %v3181_v52, %s3211_s4  ;;  %v3779_v9 = vld [vmem:[#allocation2 + $0x20] sm:$0xe]  ;;  %v3781_v35 = vld [vmem:[#allocation2 + $0x24] sm:$0x1]  ;;  %v3783_v58 = vld [vmem:[#allocation2 + $0x28] sm:$0xe]  ;;  %v3870_v21 = vsel %vm3773_vm13, %v2934_v19, %v2317_v60 }
 0x135   :  { %v3785_v5 = vld [vmem:[#allocation2 + $0x2c] sm:$0x1]  ;;  %v2935_v0 = vrot.slane %v3779_v9, 9  ;;  %v2321_v2 = vrot.slane %v3781_v35, 5  ;;  %v2936_v42 = vrot.slane %v3783_v58, 9  ;;  %v4617_v12 = vrot.slane %v3434_v38, 9 }
 0x136   :  { %v2325_v25 = vrot.slane %v3785_v5, 5  ;;  %v1663_v61 = vld [vmem:[#allocation2 + $0x18] sm:$0xe]  ;;  %v1664_v11 = vld [vmem:[#allocation2 + $0x1c] sm:$0x1]  ;;  %v4618_v20 = vld [vmem:[#allocation5_spill] sm:$0xff]  ;;  %v1143_v38 = vsel %vm3773_vm13, %v2854_v13, %v1142_v53  ;;  %v801_v53 = vsel %vm3793_vm14, %v3713_v15, %v3718_v24  ;;  %v1147_v30 = vsel %vm3773_vm13, %v2855_v17, %v1146_v27 }
 0x137   :  { %1321 = vrot.lane.b32.xlu0 %v3182_v51, %s3211_s4  ;;  %v3186_v29 = vld [vmem:[#allocation2 + $0x78] ss:$8 sps:$4 sm:$0xff]   ;;  %v1139_v62 = vsel %vm3773_vm13, %v4617_v12, %v4616_v41  ;;  %v1666_v43 = vld [vmem:[#allocation2 + $0x24] sm:$0x1]  ;;  %v2895_v49 = vrot.slane %v1663_v61, 9  ;;  %v1733_v7 = vrot.slane %v1664_v11, 5  ;;  %v1151_v54 = vsel %vm3773_vm13, %v2856_v55, %v1150_v26 }
 0x138   :  { %1911 = vrot.lane.b32.xlu1 %v3183_v3, %s3212_s29  ;;  %v1665_v57 = vld [vmem:[#allocation2 + $0x20] sm:$0xe]  ;;  %v4619_v52 = vrot.slane %v4618_v20, 5  ;;  %v3187_v39 = vld [vmem:[#allocation2 + $0x90] ss:$8 sps:$4 sm:$0xff]   ;;  %v1737_v22 = vrot.slane %v1666_v43, 5  ;;  %v2869_v34 = vcombine.low %v1139_v62, %v1143_v38 }
 0x139   :  { %v4620_v51 = vld [vmem:[#allocation4_spill] sm:$0xff]  ;;  %v2896_v3 = vrot.slane %v1665_v57, 9  ;;  %v4622_v23 = vld [vmem:[#allocation6_spill] sm:$0xff]  ;;  %v3827_v11 = vld [vmem:[#allocation2 + $0x28] sm:$0xe]  ;;  %v3878_v63 = vsel %vm3773_vm13, %v2895_v49, %v1733_v7  ;;  %v2870_v49 = vcombine.low %v1147_v30, %v1151_v54  ;;  %v3894_v7 = vsel %vm3773_vm13, %v2935_v0, %v2321_v2 }
 0x13a   :  { %v4621_v48 = vrot.slane %v4620_v51, 9  ;;  %v3815_v37 = vld [vmem:[#allocation2 + $0x20] sm:$0xe]  ;;  %v4623_v14 = vrot.slane %v4622_v23, 9  ;;  %v2858_v12 = vrot.slane %v3827_v11, 9  ;;  %vm2238_vm8 = vcmask 523712  }
 0x13b   :  { %1909 = vrot.lane.b32.xlu0 %v3184_v33, %s3212_s29  ;;  %v3817_v33 = vld [vmem:[#allocation2 + $0x24] sm:$0x1]  ;;  %v2857_v41 = vrot.slane %v3815_v37, 9  ;;  %v1081_v43 = vld [vmem:[#allocation2 + $0x30] sm:$0xe]  ;;  %v3882_v19 = vsel %vm3773_vm13, %v2896_v3, %v1737_v22 }
 0x13c   :  { %v3810_v56 = vsel %vm3773_vm13, %v4621_v48, %v4619_v52  ;;  %1327 = vrot.lane.b32.xlu1 %v3185_v18, %s3211_s4  ;;  %v3825_v61 = vsel %vm3773_vm13, %v4623_v14, %v1170_v1  ;;  %v1080_v18 = vld [vmem:[#allocation2 + $0x2c] sm:$0x1]  ;;  %v1154_v13 = vrot.slane %v3817_v33, 5  ;;  %v1726_v1 = vsel %vm3773_vm13, %v2893_v16, %v1725_v45  ;;  %v1082_v20 = vld [vmem:[#allocation2 + $0x34] sm:$0x1] }
 0x13d   :  { %v1158_v57 = vrot.slane %v1080_v18, 5  ;;  %v907_v52 = vor.u32 %v3730_v36, %v3728_v46  ;;  %v3188_v51 = vld [vmem:[#allocation2 + $0x80] ss:$8 sps:$4 sm:$0xff]   ;;  %v1083_v16 = vld [vmem:[#allocation2 + $0x38] sm:$0xe]  ;;  %v2859_v48 = vrot.slane %v1081_v43, 9  ;;  %v2909_v17 = vcombine.low %v1726_v1, %v1730_v31 }
 0x13e   :  { %v1084_v45 = vld [vmem:[#allocation2 + $0x3c] sm:$0x1]  ;;  %v1162_v37 = vrot.slane %v1082_v20, 5  ;;  %v2860_v28 = vrot.slane %v1083_v16, 9  ;;  %v1667_v47 = vld [vmem:[#allocation2 + $0x28] sm:$0xe]  ;;  %v3902_v43 = vsel %vm3773_vm13, %v2936_v42, %v2325_v25  ;;  %v2910_v35 = vcombine.low %v3878_v63, %v3882_v19 }
 0x13f   :  { %1325 = vrot.lane.b32.xlu0 %v3186_v29, %s3211_s4  ;;  %v3862_v29 = vsel %vm3773_vm13, %v2933_v8, %v2313_v59  ;;  %v1166_v40 = vrot.slane %v1084_v45, 5  ;;  %v1668_v62 = vld [vmem:[#allocation2 + $0x2c] sm:$0x1]  ;;  %v1669_v8 = vld [vmem:[#allocation2 + $0x30] sm:$0xe]  ;;  %v3908_v2 = vsel %vm3773_vm13, %v2857_v41, %v1154_v13  ;;  %v3912_v5 = vsel %vm3773_vm13, %v2858_v12, %v1158_v57 }
 0x140   :  { %1915 = vrot.lane.b32.xlu1 %v3187_v39, %s3212_s29  ;;  %v1670_v59 = vld [vmem:[#allocation2 + $0x34] sm:$0x1]  ;;  %v2897_v39 = vrot.slane %v1667_v47, 9  ;;  %v1741_v4 = vrot.slane %v1668_v62, 5  ;;  %v2898_v60 = vrot.slane %v1669_v8, 9  ;;  %v2949_v27 = vcombine.low %v3862_v29, %v3870_v21 }
 0x141   :  { %v1745_v38 = vrot.slane %v1670_v59, 5  ;;  %v1671_v33 = vld [vmem:[#allocation2 + $0x38] sm:$0xe]  ;;  %v1672_v23 = vld [vmem:[#allocation2 + $0x3c] sm:$0x1]  ;;  %v1163_v25 = vsel %vm3773_vm13, %v2859_v48, %v1162_v37  ;;  %v1167_v16 = vsel %vm3773_vm13, %v2860_v28, %v1166_v40 }
 0x142   :  { %v1673_v55 = vld [vmem:[#allocation2 + $0x40] sm:$0xe]  ;;  %v1674_v26 = vld [vmem:[#allocation2 + $0x44] sm:$0x1]  ;;  %v2899_v14 = vrot.slane %v1671_v33, 9  ;;  %v1749_v11 = vrot.slane %v1672_v23, 5  ;;  %v3922_v12 = vsel %vm3773_vm13, %v2897_v39, %v1741_v4  ;;  %v2871_v33 = vcombine.low %v3908_v2, %v3912_v5 }
 0x143   :  { %1913 = vrot.lane.b32.xlu0 %v3188_v51, %s3212_s29  ;;  %v2900_v3 = vrot.slane %v1673_v55, 9  ;;  %v1753_v22 = vrot.slane %v1674_v26, 5  ;;  %v2255_v18 = vld [vmem:[#allocation2 + $0x30] sm:$0xe]  ;;  %v2256_v1 = vld [vmem:[#allocation2 + $0x34] sm:$0x1]  ;;  %v3926_v57 = vsel %vm3773_vm13, %v2898_v60, %v1745_v38  ;;  %v2950_v38 = vcombine.low %v3894_v7, %v3902_v43 }
 0x144   :  { %1224 = vrot.lane.b32.xlu1 %v2869_v34, %s3213_s30  ;;  %v2257_v9 = vld [vmem:[#allocation2 + $0x38] sm:$0xe]  ;;  %v2258_v20 = vld [vmem:[#allocation2 + $0x3c] sm:$0x1]  ;;  %v2937_v51 = vrot.slane %v2255_v18, 9  ;;  %v2329_v0 = vrot.slane %v2256_v1, 5  ;;  %v3930_v28 = vsel %vm3773_vm13, %v2899_v14, %v1749_v11  ;;  %v2872_v14 = vcombine.low %v1163_v25, %v1167_v16 }
 0x145   :  { %v2938_v58 = vrot.slane %v2257_v9, 9  ;;  %v2333_v31 = vrot.slane %v2258_v20, 5  ;;  %v1089_v34 = vld [vmem:[#allocation2 + $0x60] sm:$0xe]  ;;  %v1090_v42 = vld [vmem:[#allocation2 + $0x64] sm:$0x1]  ;;  %v3934_v40 = vsel %vm3773_vm13, %v2900_v3, %v1753_v22  ;;  %v2911_v11 = vcombine.low %v3922_v12, %v3926_v57 }
 0x146   :  { %v1091_v45 = vld [vmem:[#allocation2 + $0x68] sm:$0xe]  ;;  %v1092_v41 = vld [vmem:[#allocation2 + $0x6c] sm:$0x1]  ;;  %v2863_v13 = vrot.slane %v1089_v34, 9  ;;  %v1178_v29 = vrot.slane %v1090_v42, 5  ;;  %v3938_v59 = vsel %vm3773_vm13, %v2937_v51, %v2329_v0  ;;  %v2912_v7 = vcombine.low %v3930_v28, %v3934_v40 }
 0x147   :  { %1811 = vrot.lane.b32.xlu0 %v2909_v17, %s3214_s9  ;;  %v2864_v21 = vrot.slane %v1091_v45, 9  ;;  %v1182_v47 = vrot.slane %v1092_v41, 5  ;;  %v2259_v48 = vld [vmem:[#allocation2 + $0x40] sm:$0xe]  ;;  %v2260_v37 = vld [vmem:[#allocation2 + $0x44] sm:$0x1]  ;;  %v3942_v39 = vsel %vm3773_vm13, %v2938_v58, %v2333_v31 }
 0x148   :  { %1226 = vrot.lane.b32.xlu1 %v2870_v49, %s3213_s30  ;;  %v2939_v62 = vrot.slane %v2259_v48, 9  ;;  %v2337_v30 = vrot.slane %v2260_v37, 5  ;;  %v1679_v54 = vld [vmem:[#allocation2 + $0x68] sm:$0xe]  ;;  %v1680_v8 = vld [vmem:[#allocation2 + $0x6c] sm:$0x1]  ;;  %v2951_v18 = vcombine.low %v3938_v59, %v3942_v39 }
 0x149   :  { %v1681_v4 = vld [vmem:[#allocation2 + $0x70] sm:$0xe]  ;;  %v1682_v63 = vld [vmem:[#allocation2 + $0x74] sm:$0x1]  ;;  %v2903_v19 = vrot.slane %v1679_v54, 9  ;;  %v1765_v60 = vrot.slane %v1680_v8, 5  ;;  %v1183_v51 = vsel %vm3773_vm13, %v2864_v21, %v1182_v47 }
 0x14a   :  { %v2904_v23 = vrot.slane %v1681_v4, 9  ;;  %v1769_v17 = vrot.slane %v1682_v63, 5  ;;  %v1087_v55 = vld [vmem:[#allocation2 + $0x58] sm:$0xe]  ;;  %v1088_v26 = vld [vmem:[#allocation2 + $0x5c] sm:$0x1]  ;;  %v3965_v31 = vsel %vm3773_vm13, %v2939_v62, %v2337_v30 }
 0x14b   :  { %2399 = vrot.lane.b32.xlu0 %v2949_v27, %s3215_s10  ;;  %v2862_v49 = vrot.slane %v1087_v55, 9  ;;  %v1174_v3 = vrot.slane %v1088_v26, 5  ;;  %v1097_v22 = vld [vmem:[#allocation2 + $0x80] sm:$0xe]  ;;  %v1098_v27 = vld [vmem:[#allocation2 + $0x84] sm:$0x1]  ;;  %v3969_v34 = vsel %vm3773_vm13, %v2903_v19, %v1765_v60  ;;  %v2952_v4 = vcombine.low %v3965_v31, %v3810_v56 }
 0x14c   :  { %1813 = vrot.lane.b32.xlu1 %v2910_v35, %s3214_s9  ;;  %v1099_v1 = vld [vmem:[#allocation2 + $0x88] sm:$0xe]  ;;  %v1100_v43 = vld [vmem:[#allocation2 + $0x8c] sm:$0x1]  ;;  %v2867_v9 = vrot.slane %v1097_v22, 9  ;;  %v1194_v20 = vrot.slane %v1098_v27, 5  ;;  %v3958_v35 = vsel %vm3773_vm13, %v2863_v13, %v1178_v29  ;;  %v3974_v41 = vsel %vm3773_vm13, %v2904_v23, %v1769_v17 }
 0x14d   :  { %v2868_v0 = vrot.slane %v1099_v1, 9  ;;  %v1198_v2 = vrot.slane %v1100_v43, 5  ;;  %v1675_v5 = vld [vmem:[#allocation2 + $0x58] sm:$0xe]  ;;  %v1676_v58 = vld [vmem:[#allocation2 + $0x5c] sm:$0x1]  ;;  %v3978_v13 = vsel %vm3773_vm13, %v2862_v49, %v1174_v3  ;;  %v2874_v8 = vcombine.low %v3958_v35, %v1183_v51 }
 0x14e   :  { %v1677_v42 = vld [vmem:[#allocation2 + $0x60] sm:$0xe]  ;;  %v1678_v25 = vld [vmem:[#allocation2 + $0x64] sm:$0x1]  ;;  %v2901_v16 = vrot.slane %v1675_v5, 9  ;;  %v1757_v45 = vrot.slane %v1676_v58, 5  ;;  %v3982_v37 = vsel %vm3773_vm13, %v2867_v9, %v1194_v20  ;;  %v2914_v23 = vcombine.low %v3969_v34, %v3974_v41 }
 0x14f   :  { %2401 = vrot.lane.b32.xlu0 %v2950_v38, %s3215_s10  ;;  %v2902_v29 = vrot.slane %v1677_v42, 9  ;;  %v1761_v21 = vrot.slane %v1678_v25, 5  ;;  %v1687_v47 = vld [vmem:[#allocation2 + $0x88] sm:$0xe]  ;;  %v1688_v48 = vld [vmem:[#allocation2 + $0x8c] sm:$0x1]  ;;  %v3986_v28 = vsel %vm3773_vm13, %v2868_v0, %v1198_v2  ;;  %v2873_v17 = vcombine.low %v3825_v61, %v3978_v13 }
 0x150   :  { %1230 = vrot.lane.b32.xlu1 %v2872_v14, %s3213_s30  ;;  %v1689_v40 = vld [vmem:[#allocation2 + $0x90] sm:$0xe]  ;;  %v1690_v62 = vld [vmem:[#allocation2 + $0x94] sm:$0x1]  ;;  %v2907_v30 = vrot.slane %v1687_v47, 9  ;;  %v1781_v54 = vrot.slane %v1688_v48, 5  ;;  %v2876_v3 = vcombine.low %v3982_v37, %v3986_v28  ;;  %v4001_v22 = vsel %vm3773_vm13, %v2901_v16, %v1757_v45 }
 0x151   :  { %v2908_v63 = vrot.slane %v1689_v40, 9  ;;  %v1785_v19 = vrot.slane %v1690_v62, 5  ;;  %v2263_v60 = vld [vmem:[#allocation2 + $0x60] sm:$0xe]  ;;  %v2264_v38 = vld [vmem:[#allocation2 + $0x64] sm:$0x1] }
 0x152   :  { %v2265_v55 = vld [vmem:[#allocation2 + $0x68] sm:$0xe]  ;;  %v2266_v26 = vld [vmem:[#allocation2 + $0x6c] sm:$0x1]  ;;  %v2941_v14 = vrot.slane %v2263_v60, 9  ;;  %v2345_v49 = vrot.slane %v2264_v38, 5  ;;  %v4009_v9 = vsel %vm3773_vm13, %v2907_v30, %v1781_v54 }
 0x153   :  { %1228 = vrot.lane.b32.xlu0 %v2871_v33, %s3213_s30  ;;  %v4005_v33 = vsel %vm3773_vm13, %v2902_v29, %v1761_v21  ;;  %v2942_v27 = vrot.slane %v2265_v55, 9  ;;  %v1350_v1 = vld [vmem:[#allocation2 + $0x18] sm:$0xf]  ;;  %v1351_v43 = vld [vmem:[#allocation2 + $0x1c] sm:$0x1]  ;;  %v2349_v2 = vrot.slane %v2266_v26, 5 }
 0x154   :  { %1817 = vrot.lane.b32.xlu1 %v2912_v7, %s3214_s9  ;;  %v4013_v7 = vsel %vm3773_vm13, %v2908_v63, %v1785_v19  ;;  %v1352_v20 = vld [vmem:[#allocation2 + $0x20] sm:$0xf]  ;;  %v1353_v35 = vld [vmem:[#allocation2 + $0x24] sm:$0x1]  ;;  %v1407_v51 = vshrl.u32 %v1350_v1, 16  ;;  %v1410_v0 = vshll.u32 %v1350_v1, 16  ;;  %v4021_v25 = vsel %vm3773_vm13, %v2941_v14, %v2345_v49 }
 0x155   :  { %v1416_v5 = vshll.u32 %v1351_v43, 16  ;;  %v1421_v58 = vshrl.u32 %v1352_v20, 16  ;;  %v1424_v34 = vshll.u32 %v1352_v20, 16  ;;  %v2267_v42 = vld [vmem:[#allocation2 + $0x70] sm:$0xe]  ;;  %v1430_v41 = vshll.u32 %v1353_v35, 16 }
 0x156   :  { %v1409_v16 = vrot.slane %v1407_v51, 4  ;;  %v1412_v45 = vrot.slane %v1410_v0, 5  ;;  %v2268_v29 = vld [vmem:[#allocation2 + $0x74] sm:$0x1]  ;;  %v2269_v40 = vld [vmem:[#allocation2 + $0x78] sm:$0xe]  ;;  %v2913_v26 = vcombine.low %v4001_v22, %v4005_v33 }
 0x157   :  { %1815 = vrot.lane.b32.xlu0 %v2911_v11, %s3214_s9  ;;  %v1418_v21 = vrot.slane %v1416_v5, 5  ;;  %v1423_v47 = vrot.slane %v1421_v58, 4  ;;  %v1426_v48 = vrot.slane %v1424_v34, 5  ;;  %v2943_v62 = vrot.slane %v2267_v42, 9  ;;  %v2270_v63 = vld [vmem:[#allocation2 + $0x7c] sm:$0x1] }
 0x158   :  { %1234 = vrot.lane.b32.xlu1 %v2874_v8, %s3213_s30  ;;  %v1413_v30 = vor.u32 %v1412_v45, %v1409_v16  ;;  %v1432_v54 = vrot.slane %v1430_v41, 5  ;;  %v2353_v12 = vrot.slane %v2268_v29, 5  ;;  %v2944_v57 = vrot.slane %v2269_v40, 9  ;;  %v1938_v38 = vld [vmem:[#allocation2 + $0x20] sm:$0xf] }
 0x159   :  { %v4026_v11 = vsel %vm3773_vm13, %v2942_v27, %v2349_v2  ;;  %v1427_v19 = vor.u32 %v1426_v48, %v1423_v47  ;;  %v2357_v60 = vrot.slane %v2270_v63, 5  ;;  %v1939_v55 = vld [vmem:[#allocation2 + $0x24] sm:$0x1]  ;;  %v4031_v8 = vrot.slane %v907_v52, 4  ;;  %v1940_v27 = vld [vmem:[#allocation2 + $0x28] sm:$0xf] }
 0x15a   :  { %v1414_v14 = vrot.slane %v1413_v30, 4  ;;  %v4041_v49 = vsel %vm3773_vm13, %v2943_v62, %v2353_v12  ;;  %v1941_v1 = vld [vmem:[#allocation2 + $0x2c] sm:$0x1]  ;;  %v1995_v43 = vshrl.u32 %v1938_v38, 16  ;;  %v1998_v52 = vshll.u32 %v1938_v38, 16 }
 0x15b   :  { %2403 = vrot.lane.b32.xlu0 %v2951_v18, %s3215_s10  ;;  %v1428_v46 = vrot.slane %v1427_v19, 4  ;;  %v4046_v36 = vsel %vm3773_vm13, %v2944_v57, %v2357_v60  ;;  %v2004_v59 = vshll.u32 %v1939_v55, 16  ;;  %v1093_v39 = vld [vmem:[#allocation2 + $0x70] sm:$0xe]  ;;  %v2916_v18 = vcombine.low %v4009_v9, %v4013_v7  ;;  %v1094_v0 = vld [vmem:[#allocation2 + $0x74] sm:$0x1] }
 0x15c   :  { %1821 = vrot.lane.b32.xlu1 %v2914_v23, %s3214_s9  ;;  %v2953_v20 = vcombine.low %v4021_v25, %v4026_v11  ;;  %v1997_v35 = vrot.slane %v1995_v43, 4  ;;  %v2009_v51 = vshrl.u32 %v1940_v27, 16  ;;  %v1095_v2 = vld [vmem:[#allocation2 + $0x78] sm:$0xe]  ;;  %v1419_v23 = vsel %vm3793_vm14, %v1414_v14, %v1418_v21  ;;  %v1096_v42 = vld [vmem:[#allocation2 + $0x7c] sm:$0x1] }
 0x15d   :  { %v1433_v5 = vsel %vm3793_vm14, %v1428_v46, %v1432_v54  ;;  %v2000_v58 = vrot.slane %v1998_v52, 5  ;;  %v2012_v34 = vshll.u32 %v1940_v27, 16  ;;  %v2954_v9 = vcombine.low %v4041_v49, %v4046_v36  ;;  %v761_v41 = vld [vmem:[#allocation2 + $0x20] sm:$0xf]  ;;  %v762_v40 = vld [vmem:[#allocation2 + $0x24] sm:$0x1] }
 0x15e   :  { %v2011_v7 = vrot.slane %v2009_v51, 4  ;;  %v2018_v16 = vshll.u32 %v1941_v1, 16  ;;  %v2865_v45 = vrot.slane %v1093_v39, 9  ;;  %v1186_v47 = vrot.slane %v1094_v0, 5  ;;  %v763_v30 = vld [vmem:[#allocation2 + $0x28] sm:$0xf] }
 0x15f   :  { %2405 = vrot.lane.b32.xlu0 %v2952_v4, %s3215_s10  ;;  %v2001_v29 = vor.u32 %v2000_v58, %v1997_v35  ;;  %v2014_v21 = vrot.slane %v2012_v34, 5  ;;  %v2866_v48 = vrot.slane %v1095_v2, 9  ;;  %v2886_v62 = vcombine.low %v1419_v23, %v1433_v5  ;;  %v764_v57 = vld [vmem:[#allocation2 + $0x2c] sm:$0x1]  ;;  %v1683_v37 = vld [vmem:[#allocation2 + $0x78] sm:$0xe] }
 0x160   :  { %1238 = vrot.lane.b32.xlu1 %v2876_v3, %s3213_s30  ;;  %v2006_v56 = vrot.slane %v2004_v59, 5  ;;  %v2020_v31 = vrot.slane %v2018_v16, 5  ;;  %v1190_v4 = vrot.slane %v1096_v42, 5  ;;  %v4068_v12 = vsel %vm3773_vm13, %v2865_v45, %v1186_v47  ;;  %v1684_v55 = vld [vmem:[#allocation2 + $0x7c] sm:$0x1] }
 0x161   :  { %v2002_v54 = vrot.slane %v2001_v29, 4  ;;  %v2015_v63 = vor.u32 %v2014_v21, %v2011_v7  ;;  %v845_v19 = vshrl.u32 %v761_v41, 16  ;;  %v848_v3 = vshll.u32 %v761_v41, 16  ;;  %v1685_v61 = vld [vmem:[#allocation2 + $0x80] sm:$0xe] }
 0x162   :  { %v4076_v28 = vsel %vm3773_vm13, %v2866_v48, %v1190_v4  ;;  %v854_v60 = vshll.u32 %v762_v40, 16  ;;  %v859_v38 = vshrl.u32 %v763_v30, 16  ;;  %v1686_v13 = vld [vmem:[#allocation2 + $0x84] sm:$0x1]  ;;  %v862_v59 = vshll.u32 %v763_v30, 16 }
 0x163   :  { %1232 = vrot.lane.b32.xlu0 %v2873_v17, %s3213_s30  ;;  %v2007_v14 = vsel %vm3793_vm14, %v2002_v54, %v2006_v56  ;;  %v2016_v27 = vrot.slane %v2015_v63, 4  ;;  %v2875_v1 = vcombine.low %v4068_v12, %v4076_v28  ;;  %v847_v43 = vrot.slane %v845_v19, 4  ;;  %v765_v39 = vld [vmem:[#allocation2 + $0x30] sm:$0xf]  ;;  %v766_v2 = vld [vmem:[#allocation2 + $0x34] sm:$0x1] }
 0x164   :  { %1825 = vrot.lane.b32.xlu1 %v2916_v18, %s3214_s9  ;;  %v850_v17 = vrot.slane %v848_v3, 5  ;;  %v856_v46 = vrot.slane %v854_v60, 5  ;;  %v861_v52 = vrot.slane %v859_v38, 4  ;;  %v868_v51 = vshll.u32 %v764_v57, 16  ;;  %v767_v42 = vld [vmem:[#allocation2 + $0x38] sm:$0xf] }
 0x165   :  { %v2021_v35 = vsel %vm3793_vm14, %v2016_v27, %v2020_v31  ;;  %v2905_v18 = vrot.slane %v1683_v37, 9  ;;  %v1773_v0 = vrot.slane %v1684_v55, 5  ;;  %v864_v58 = vrot.slane %v862_v59, 5  ;;  %v768_v47 = vld [vmem:[#allocation2 + $0x3c] sm:$0x1] }
 0x166   :  { %v2926_v23 = vcombine.low %v2007_v14, %v2021_v35  ;;  %v851_v5 = vor.u32 %v850_v17, %v847_v43  ;;  %v2906_v34 = vrot.slane %v1685_v61, 9  ;;  %v870_v7 = vrot.slane %v868_v51, 5  ;;  %v1359_v63 = vld [vmem:[#allocation2 + $0x3c] sm:$0x1]  ;;  %v1360_v60 = vld [vmem:[#allocation2 + $0x40] sm:$0xf] }
 0x167   :  { %1819 = vrot.lane.b32.xlu0 %v2913_v26, %s3214_s9  ;;  %v4092_v16 = vsel %vm3773_vm13, %v2905_v18, %v1773_v0  ;;  %v1777_v45 = vrot.slane %v1686_v13, 5  ;;  %v873_v41 = vshrl.u32 %v765_v39, 16  ;;  %v865_v21 = vor.u32 %v864_v58, %v861_v52  ;;  %v755_v13 = vld [vmem:[#allocation2 + $0x8] sm:$0xf]  ;;  %v756_v0 = vld [vmem:[#allocation2 + $0xc] sm:$0x1] }
 0x168   :  { %1628 = vrot.lane.b32.xlu1 %v2886_v62, %s3216_s2  ;;  %v852_v29 = vrot.slane %v851_v5, 4  ;;  %v876_v22 = vshll.u32 %v765_v39, 16  ;;  %v882_v33 = vshll.u32 %v766_v2, 16  ;;  %v887_v40 = vshrl.u32 %v767_v42, 16  ;;  %v1358_v62 = vld [vmem:[#allocation2 + $0x38] sm:$0xf] }
 0x169   :  { %v4096_v26 = vsel %vm3773_vm13, %v2906_v34, %v1777_v45  ;;  %v875_v48 = vrot.slane %v873_v41, 4  ;;  %v890_v56 = vshll.u32 %v767_v42, 16  ;;  %v866_v4 = vrot.slane %v865_v21, 4  ;;  %v1946_v49 = vld [vmem:[#allocation2 + $0x40] sm:$0xf] }
 0x16a   :  { %v857_v31 = vsel %vm3793_vm14, %v852_v29, %v856_v46  ;;  %v2915_v30 = vcombine.low %v4092_v16, %v4096_v26  ;;  %v878_v54 = vrot.slane %v876_v22, 5  ;;  %v884_v57 = vrot.slane %v882_v33, 5  ;;  %v1947_v36 = vld [vmem:[#allocation2 + $0x44] sm:$0x1]  ;;  %v757_v45 = vld [vmem:[#allocation2 + $0x10] sm:$0xf] }
 0x16b   :  { %2407 = vrot.lane.b32.xlu0 %v2953_v20, %s3215_s10  ;;  %v889_v19 = vrot.slane %v887_v40, 4  ;;  %v892_v37 = vrot.slane %v890_v56, 5  ;;  %v896_v3 = vshll.u32 %v768_v47, 16  ;;  %v871_v25 = vsel %vm3793_vm14, %v866_v4, %v870_v7  ;;  %v1361_v20 = vld [vmem:[#allocation2 + $0x44] sm:$0x1] }
 0x16c   :  { %2216 = vrot.lane.b32.xlu1 %v2926_v23, %s3217_s3  ;;  %v879_v11 = vor.u32 %v878_v54, %v875_v48  ;;  %v1463_v38 = vshrl.u32 %v1358_v62, 16  ;;  %v1466_v55 = vshll.u32 %v1358_v62, 16  ;;  %v2847_v14 = vcombine.low %v857_v31, %v871_v25  ;;  %v3192_v22 = vld [vmem:[%s4575_s5] sm:$0xff]   ;;  %v758_v62 = vld [vmem:[#allocation2 + $0x14] sm:$0x1] }
 0x16d   :  { %v893_v27 = vor.u32 %v892_v37, %v889_v19  ;;  %v898_v43 = vrot.slane %v896_v3, 5  ;;  %v1472_v61 = vshll.u32 %v1359_v63, 16  ;;  %v1477_v59 = vshrl.u32 %v1360_v60, 16  ;;  %3119 = vmatprep.subr.bf16.mxu0 %v3192_v22  ;;  %3148 = vmatprep.subr.bf16.mxu1 %v3192_v22  ;;  %v760_v3 = vld [vmem:[#allocation2 + $0x1c] sm:$0x1] }
 0x16e   :  { %v880_v17 = vrot.slane %v879_v11, 4  ;;  %v1465_v46 = vrot.slane %v1463_v38, 4  ;;  %v1468_v52 = vrot.slane %v1466_v55, 5  ;;  %v1480_v51 = vshll.u32 %v1360_v60, 16  ;;  %3120 = vmatpush3.bf16.msra.mxu0 %v3192_v22  ;;  %3153 = vmatpush3.bf16.msra.mxu1 %v3192_v22  ;;  %v1349_v6 = vld [vmem:[#allocation2 + $0x14] sm:$0x1] }
 0x16f   :  { %2409 = vrot.lane.b32.xlu0 %v2954_v9, %s3215_s10  ;;  %v894_v39 = vrot.slane %v893_v27, 4  ;;  %v1474_v35 = vrot.slane %v1472_v61, 5  ;;  %v1486_v18 = vshll.u32 %v1361_v20, 16  ;;  %v1479_v5 = vrot.slane %v1477_v59, 4  ;;  %v770_v27 = vld [vmem:[#allocation2 + $0x54] sm:$0x1] }
 0x170   :  { %1040 = vrot.lane.b32.xlu1 %v2847_v14, %s3218_s11  ;;  %v885_v2 = vsel %vm3793_vm14, %v880_v17, %v884_v57  ;;  %v1469_v23 = vor.u32 %v1468_v52, %v1465_v46  ;;  %v803_v58 = vshrl.u32 %v755_v13, 16  ;;  %v1482_v34 = vrot.slane %v1480_v51, 5  ;;  %v771_v46 = vld [vmem:[#allocation2 + $0x58] sm:$0xf]  ;;  %v772_v51 = vld [vmem:[#allocation2 + $0x5c] sm:$0x1] }
 0x171   :  { %v899_v9 = vsel %vm3793_vm14, %v894_v39, %v898_v43  ;;  %v1488_v42 = vrot.slane %v1486_v18, 5  ;;  %v806_v7 = vshll.u32 %v755_v13, 16  ;;  %v812_v47 = vshll.u32 %v756_v0, 16  ;;  %v1346_v0 = vld [vmem:[#allocation2 + $0x8] sm:$0xf] }
 0x172   :  { %v2848_v41 = vcombine.low %v885_v2, %v899_v9  ;;  %v1470_v29 = vrot.slane %v1469_v23, 4  ;;  %v805_v21 = vrot.slane %v803_v58, 4  ;;  %v1483_v33 = vor.u32 %v1482_v34, %v1479_v5 }
 0x173   :  { %1236 = vrot.lane.b32.xlu0 %v2875_v1, %s3213_s30  ;;  %v808_v48 = vrot.slane %v806_v7, 5  ;;  %v2051_v40 = vshrl.u32 %v1946_v49, 16  ;;  %v2054_v56 = vshll.u32 %v1946_v49, 16  ;;  %v814_v12 = vrot.slane %v812_v47, 5  ;;  %v759_v1 = vld [vmem:[#allocation2 + $0x18] sm:$0xf] }
 0x174   :  { %1042 = vrot.lane.b32.xlu1 %v2848_v41, %s3218_s11  ;;  %v1475_v31 = vsel %vm3793_vm14, %v1470_v29, %v1474_v35  ;;  %v2060_v28 = vshll.u32 %v1947_v36, 16  ;;  %v817_v4 = vshrl.u32 %v757_v45, 16  ;;  %v1484_v54 = vrot.slane %v1483_v33, 4  ;;  %v1347_v36 = vld [vmem:[#allocation2 + $0xc] sm:$0x1] }
 0x175   :  { %v809_v63 = vor.u32 %v808_v48, %v805_v21  ;;  %v2053_v57 = vrot.slane %v2051_v40, 4  ;;  %v2056_v19 = vrot.slane %v2054_v56, 5  ;;  %v820_v25 = vshll.u32 %v757_v45, 16  ;;  %v1348_v7 = vld [vmem:[#allocation2 + $0x10] sm:$0xf]  ;;  %v3194_v40 = vld [vmem:[%s4575_s5 + $0x8] sm:$0xff]  }
 0x176   :  { %v2062_v37 = vrot.slane %v2060_v28, 5  ;;  %v819_v60 = vrot.slane %v817_v4, 4  ;;  %v826_v11 = vshll.u32 %v758_v62, 16  ;;  %v1489_v20 = vsel %vm3793_vm14, %v1484_v54, %v1488_v42  ;;  %v773_v48 = vld [vmem:[#allocation2 + $0x60] sm:$0xf]  ;;  %3121 = vmatprep.subr.bf16.mxu0 %v3194_v40  ;;  %3149 = vmatprep.subr.bf16.mxu1 %v3194_v40 }
 0x177   :  { %1823 = vrot.lane.b32.xlu0 %v2915_v30, %s3214_s9  ;;  %v810_v38 = vrot.slane %v809_v63, 4  ;;  %v2057_v55 = vor.u32 %v2056_v19, %v2053_v57  ;;  %v831_v14 = vshrl.u32 %v759_v1, 16  ;;  %v2888_v43 = vcombine.low %v1475_v31, %v1489_v20  ;;  %v774_v28 = vld [vmem:[#allocation2 + $0x64] sm:$0x1]  ;;  %v775_v57 = vld [vmem:[#allocation2 + $0x68] sm:$0xf]  ;;  %3122 = vmatpush3.bf16.msra.mxu0 %v3194_v40 }
 0x178   :  { %v822_v61 = vrot.slane %v820_v25, 5  ;;  %v828_v13 = vrot.slane %v826_v11, 5  ;;  %v834_v17 = vshll.u32 %v759_v1, 16  ;;  %v840_v52 = vshll.u32 %v760_v3, 16  ;;  %3154 = vmatpush3.bf16.msra.mxu1 %v3194_v40 }
 0x179   :  { %v815_v16 = vsel %vm3793_vm14, %v810_v38, %v814_v12  ;;  %v2058_v26 = vrot.slane %v2057_v55, 4  ;;  %v833_v30 = vrot.slane %v831_v14, 4  ;;  %1632 = vrot.lane.b32.xlu1 %v2888_v43, %s3216_s2  ;;  %v910_v18 = vshll.u32 %v770_v27, 16  ;;  %v1934_v14 = vld [vmem:[#allocation2 + $0x10] sm:$0xf] }
 0x17a   :  { %v2845_v59 = vcombine.low %v801_v53, %v815_v16  ;;  %v823_v39 = vor.u32 %v822_v61, %v819_v60  ;;  %v836_v35 = vrot.slane %v834_v17, 5  ;;  %v842_v23 = vrot.slane %v840_v52, 5  ;;  %v776_v60 = vld [vmem:[#allocation2 + $0x6c] sm:$0x1] }
 0x17b   :  { %v2063_v2 = vsel %vm3793_vm14, %v2058_v26, %v2062_v37  ;;  %v915_v5 = vshrl.u32 %v771_v46, 16  ;;  %v918_v58 = vshll.u32 %v771_v46, 16  ;;  %v912_v49 = vrot.slane %v910_v18, 5 }
 0x17c   :  { %1036 = vrot.lane.b32.xlu0 %v2845_v59, %s3218_s11  ;;  %v2928_v15 = vcombine.low %v2063_v2, %v2077_v32  ;;  %v824_v24 = vrot.slane %v823_v39, 4  ;;  %v837_v53 = vor.u32 %v836_v35, %v833_v30  ;;  %v924_v42 = vshll.u32 %v772_v51, 16  ;;  %v1935_v30 = vld [vmem:[#allocation2 + $0x14] sm:$0x1]  ;;  %v1936_v35 = vld [vmem:[#allocation2 + $0x18] sm:$0xf] }
 0x17d   :  { %v917_v9 = vrot.slane %v915_v5, 4  ;;  %v920_v34 = vrot.slane %v918_v58, 5  ;;  %v1379_v45 = vshrl.u32 %v1346_v0, 16  ;;  %v913_v44 = vsel %vm3793_vm14, %v4031_v8, %v912_v49  ;;  %v3196_v8 = vld [vmem:[%s4575_s5 + $0x10] sm:$0xff]   ;;  %v1366_v49 = vld [vmem:[#allocation2 + $0x68] sm:$0xf] }
 0x17e   :  { %2220 = vrot.lane.b32.xlu1 %v2928_v15, %s3217_s3  ;;  %v829_v41 = vsel %vm3793_vm14, %v824_v24, %v828_v13  ;;  %v838_v29 = vrot.slane %v837_v53, 4  ;;  %v1382_v32 = vshll.u32 %v1346_v0, 16  ;;  %v926_v47 = vrot.slane %v924_v42, 5  ;;  %3123 = vmatprep.subr.bf16.mxu0 %v3196_v8 }
 0x17f   :  { %v921_v21 = vor.u32 %v920_v34, %v917_v9  ;;  %v1381_v22 = vrot.slane %v1379_v45, 4  ;;  %v1388_v33 = vshll.u32 %v1347_v36, 16  ;;  %v1393_v31 = vshrl.u32 %v1348_v7, 16  ;;  %3150 = vmatprep.subr.bf16.mxu1 %v3196_v8  ;;  %3124 = vmatpush3.bf16.msra.mxu0 %v3196_v8 }
 0x180   :  { %v843_v56 = vsel %vm3793_vm14, %v838_v29, %v842_v23  ;;  %v1384_v62 = vrot.slane %v1382_v32, 5  ;;  %v1396_v12 = vshll.u32 %v1348_v7, 16  ;;  %v1402_v63 = vshll.u32 %v1349_v6, 16  ;;  %v1937_v23 = vld [vmem:[#allocation2 + $0x1c] sm:$0x1]  ;;  %3155 = vmatpush3.bf16.msra.mxu1 %v3196_v8 }
 0x181   :  { %v2846_v1 = vcombine.low %v829_v41, %v843_v56  ;;  %v922_v4 = vrot.slane %v921_v21, 4  ;;  %v1390_v54 = vrot.slane %v1388_v33, 5  ;;  %v1395_v37 = vrot.slane %v1393_v31, 4  ;;  %v1369_v56 = vld [vmem:[#allocation2 + $0x74] sm:$0x1] }
 0x182   :  { %v1385_v19 = vor.u32 %v1384_v62, %v1381_v22  ;;  %v1398_v3 = vrot.slane %v1396_v12, 5  ;;  %v929_v25 = vshrl.u32 %v773_v48, 16  ;;  %v1404_v20 = vrot.slane %v1402_v63, 5 }
 0x183   :  { %1038 = vrot.lane.b32.xlu0 %v2846_v1, %s3218_s11  ;;  %v927_v11 = vsel %vm3793_vm14, %v922_v4, %v926_v47  ;;  %v932_v38 = vshll.u32 %v773_v48, 16  ;;  %v938_v55 = vshll.u32 %v774_v28, 16  ;;  %v943_v16 = vshrl.u32 %v775_v57, 16  ;;  %v1368_v47 = vld [vmem:[#allocation2 + $0x70] sm:$0xf]  ;;  %v3198_v4 = vld [vmem:[%s4575_s5 + $0x18] sm:$0xff]  }
 0x184   :  { %v2849_v27 = vcombine.low %v913_v44, %v927_v11  ;;  %v1386_v43 = vrot.slane %v1385_v19, 4  ;;  %v1399_v61 = vor.u32 %v1398_v3, %v1395_v37  ;;  %v931_v13 = vrot.slane %v929_v25, 4  ;;  %v1367_v44 = vld [vmem:[#allocation2 + $0x6c] sm:$0x1]  ;;  %v1354_v1 = vld [vmem:[#allocation2 + $0x28] sm:$0xf]  ;;  %3125 = vmatprep.subr.bf16.mxu0 %v3198_v4  ;;  %3151 = vmatprep.subr.bf16.mxu1 %v3198_v4 }
 0x185   :  { %v934_v17 = vrot.slane %v932_v38, 5  ;;  %v940_v46 = vrot.slane %v938_v55, 5  ;;  %v946_v26 = vshll.u32 %v775_v57, 16  ;;  %v952_v39 = vshll.u32 %v776_v60, 16  ;;  %v1355_v37 = vld [vmem:[#allocation2 + $0x2c] sm:$0x1]  ;;  %3126 = vmatpush3.bf16.msra.mxu0 %v3198_v4  ;;  %3156 = vmatpush3.bf16.msra.mxu1 %v3198_v4 }
 0x186   :  { %1044 = vrot.lane.b32.xlu1 %v2849_v27, %s3218_s11  ;;  %v1391_v52 = vsel %vm3793_vm14, %v1386_v43, %v1390_v54  ;;  %v1400_v59 = vrot.slane %v1399_v61, 4  ;;  %v1967_v51 = vshrl.u32 %v1934_v14, 16  ;;  %v945_v0 = vrot.slane %v943_v16, 4 }
 0x187   :  { %v935_v18 = vor.u32 %v934_v17, %v931_v13  ;;  %v948_v2 = vrot.slane %v946_v26, 5  ;;  %v1970_v5 = vshll.u32 %v1934_v14, 16  ;;  %v954_v15 = vrot.slane %v952_v39, 5  ;;  %v1357_v13 = vld [vmem:[#allocation2 + $0x34] sm:$0x1] }
 0x188   :  { %v1405_v58 = vsel %vm3793_vm14, %v1400_v59, %v1404_v20  ;;  %v1969_v24 = vrot.slane %v1967_v51, 4  ;;  %v1976_v53 = vshll.u32 %v1935_v30, 16  ;;  %v1981_v45 = vshrl.u32 %v1936_v35, 16  ;;  %v1356_v20 = vld [vmem:[#allocation2 + $0x30] sm:$0xf] }
 0x189   :  { %v2885_v36 = vcombine.low %v1391_v52, %v1405_v58  ;;  %v936_v9 = vrot.slane %v935_v18, 4  ;;  %v949_v34 = vor.u32 %v948_v2, %v945_v0  ;;  %v1972_v42 = vrot.slane %v1970_v5, 5  ;;  %v1954_v59 = vld [vmem:[#allocation2 + $0x70] sm:$0xf]  ;;  %v1955_v0 = vld [vmem:[#allocation2 + $0x74] sm:$0x1] }
 0x18a   :  { %v1978_v7 = vrot.slane %v1976_v53, 5  ;;  %v1984_v41 = vshll.u32 %v1936_v35, 16  ;;  %v1990_v29 = vshll.u32 %v1937_v23, 16  ;;  %v1519_v22 = vshrl.u32 %v1366_v49, 16  ;;  %v1956_v2 = vld [vmem:[#allocation2 + $0x78] sm:$0xf] }
 0x18b   :  { %1626 = vrot.lane.b32.xlu0 %v2885_v36, %s3216_s2  ;;  %v941_v6 = vsel %vm3793_vm14, %v936_v9, %v940_v46  ;;  %v950_v32 = vrot.slane %v949_v34, 4  ;;  %v1973_v21 = vor.u32 %v1972_v42, %v1969_v24  ;;  %v1983_v33 = vrot.slane %v1981_v45, 4 }
 0x18c   :  { %v1986_v48 = vrot.slane %v1984_v41, 5  ;;  %v1992_v40 = vrot.slane %v1990_v29, 5  ;;  %v1522_v62 = vshll.u32 %v1366_v49, 16  ;;  %v1521_v28 = vrot.slane %v1519_v22, 4  ;;  %v1957_v49 = vld [vmem:[#allocation2 + $0x7c] sm:$0x1] }
 0x18d   :  { %v955_v31 = vsel %vm3793_vm14, %v950_v32, %v954_v15  ;;  %v1974_v12 = vrot.slane %v1973_v21, 4  ;;  %v1528_v8 = vshll.u32 %v1367_v44, 16  ;;  %v1533_v19 = vshrl.u32 %v1368_v47, 16  ;;  %v1942_v29 = vld [vmem:[#allocation2 + $0x30] sm:$0xf] }
 0x18e   :  { %v2850_v54 = vcombine.low %v941_v6, %v955_v31  ;;  %v1987_v63 = vor.u32 %v1986_v48, %v1983_v33  ;;  %v1524_v57 = vrot.slane %v1522_v62, 5  ;;  %v1536_v25 = vshll.u32 %v1368_v47, 16  ;;  %v1943_v47 = vld [vmem:[#allocation2 + $0x34] sm:$0x1] }
 0x18f   :  { %v1979_v3 = vsel %vm3793_vm14, %v1974_v12, %v1978_v7  ;;  %v1530_v60 = vrot.slane %v1528_v8, 5  ;;  %v1542_v11 = vshll.u32 %v1369_v56, 16  ;;  %v1535_v14 = vrot.slane %v1533_v19, 4  ;;  %v1944_v56 = vld [vmem:[#allocation2 + $0x38] sm:$0xf] }
 0x190   :  { %1046 = vrot.lane.b32.xlu1 %v2850_v54, %s3218_s11  ;;  %v1988_v38 = vrot.slane %v1987_v63, 4  ;;  %v1525_v55 = vor.u32 %v1524_v57, %v1521_v28  ;;  %v1435_v27 = vshrl.u32 %v1354_v1, 16  ;;  %v1538_v43 = vrot.slane %v1536_v25, 5 }
 0x191   :  { %v1544_v61 = vrot.slane %v1542_v11, 5  ;;  %v1438_v17 = vshll.u32 %v1354_v1, 16  ;;  %v1444_v46 = vshll.u32 %v1355_v37, 16  ;;  %v1449_v52 = vshrl.u32 %v1356_v20, 16  ;;  %v1945_v1 = vld [vmem:[#allocation2 + $0x3c] sm:$0x1] }
 0x192   :  { %v1993_v16 = vsel %vm3793_vm14, %v1988_v38, %v1992_v40  ;;  %v1526_v26 = vrot.slane %v1525_v55, 4  ;;  %v1437_v30 = vrot.slane %v1435_v27, 4  ;;  %v1539_v35 = vor.u32 %v1538_v43, %v1535_v14  ;;  %v777_v37 = vld [vmem:[#allocation2 + $0x70] sm:$0xf]  ;;  %v779_v43 = vld [vmem:[#allocation2 + $0x78] sm:$0xf] }
 0x193   :  { %v2925_v39 = vcombine.low %v1979_v3, %v1993_v16  ;;  %v1440_v51 = vrot.slane %v1438_v17, 5  ;;  %v1446_v18 = vrot.slane %v1444_v46, 5  ;;  %v1451_v5 = vrot.slane %v1449_v52, 4 }
 0x194   :  { %v1531_v23 = vsel %vm3793_vm14, %v1526_v26, %v1530_v60  ;;  %v1452_v58 = vshll.u32 %v1356_v20, 16  ;;  %v1458_v15 = vshll.u32 %v1357_v13, 16  ;;  %v1540_v24 = vrot.slane %v1539_v35, 4  ;;  %v4188_v34 = vpop.permute.xlu1 %1315  ;;  %v778_v20 = vld [vmem:[#allocation2 + $0x74] sm:$0x1] }
 0x195   :  { %2214 = vrot.lane.b32.xlu0 %v2925_v39, %s3217_s3  ;;  %v1441_v53 = vor.u32 %v1440_v51, %v1437_v30  ;;  %v2107_v36 = vshrl.u32 %v1954_v59, 16  ;;  %v2110_v9 = vshll.u32 %v1954_v59, 16  ;;  %v2116_v45 = vshll.u32 %v1955_v0, 16  ;;  %v780_v39 = vld [vmem:[#allocation2 + $0x7c] sm:$0x1] }
 0x196   :  { %v1454_v42 = vrot.slane %v1452_v58, 5  ;;  %v1460_v7 = vrot.slane %v1458_v15, 5  ;;  %v2121_v41 = vshrl.u32 %v1956_v2, 16  ;;  %v1545_v44 = vsel %vm3793_vm14, %v1540_v24, %v1544_v61 }
 0x197   :  { %v1442_v6 = vrot.slane %v1441_v53, 4  ;;  %v2109_v32 = vrot.slane %v2107_v36, 4  ;;  %v2112_v21 = vrot.slane %v2110_v9, 5  ;;  %v2890_v22 = vcombine.low %v1531_v23, %v1545_v44  ;;  %v1362_v23 = vld [vmem:[#allocation2 + $0x58] sm:$0xf] }
 0x198   :  { %v1455_v33 = vor.u32 %v1454_v42, %v1451_v5  ;;  %v2118_v48 = vrot.slane %v2116_v45, 5  ;;  %v2123_v40 = vrot.slane %v2121_v41, 4  ;;  %v2124_v28 = vshll.u32 %v1956_v2, 16  ;;  %v1363_v53 = vld [vmem:[#allocation2 + $0x5c] sm:$0x1] }
 0x199   :  { %v4192_v62 = vpop.permute.xlu0 %1313  ;;  %v1447_v31 = vsel %vm3793_vm14, %v1442_v6, %v1446_v18  ;;  %v2113_v12 = vor.u32 %v2112_v21, %v2109_v32  ;;  %v2130_v8 = vshll.u32 %v1957_v49, 16  ;;  %1636 = vrot.lane.b32.xlu1 %v2890_v22, %s3216_s2  ;;  %v2023_v63 = vshrl.u32 %v1942_v29, 16  ;;  %v1364_v45 = vld [vmem:[#allocation2 + $0x60] sm:$0xf]  ;;  %v1365_v22 = vld [vmem:[#allocation2 + $0x64] sm:$0x1] }
 0x19a   :  { %v4196_v4 = vpop.permute.xlu1 %1903  ;;  %v1456_v54 = vrot.slane %v1455_v33, 4  ;;  %v2026_v57 = vshll.u32 %v1942_v29, 16  ;;  %v2032_v19 = vshll.u32 %v1943_v47, 16  ;;  %v2126_v60 = vrot.slane %v2124_v28, 5  ;;  %v781_v28 = vld [vmem:[#allocation2 + $0x80] sm:$0xf] }
 0x19b   :  { %v2114_v3 = vrot.slane %v2113_v12, 4  ;;  %v2132_v25 = vrot.slane %v2130_v8, 5  ;;  %v2037_v11 = vshrl.u32 %v1944_v56, 16  ;;  %v2025_v55 = vrot.slane %v2023_v63, 4 }
 0x19c   :  { %v1461_v38 = vsel %vm3793_vm14, %v1456_v54, %v1460_v7  ;;  %v2028_v14 = vrot.slane %v2026_v57, 5  ;;  %v2034_v27 = vrot.slane %v2032_v19, 5  ;;  %v2127_v46 = vor.u32 %v2126_v60, %v2123_v40  ;;  %v782_v19 = vld [vmem:[#allocation2 + $0x84] sm:$0x1] }
 0x19d   :  { %v4201_v61 = vpop.permute.xlu0 %1901  ;;  %v2887_v13 = vcombine.low %v1447_v31, %v1461_v38  ;;  %v2119_v17 = vsel %vm3793_vm14, %v2114_v3, %v2118_v48  ;;  %v2039_v16 = vrot.slane %v2037_v11, 4  ;;  %v2040_v52 = vshll.u32 %v1944_v56, 16 }
 0x19e   :  { %v4205_v26 = vpop.permute.xlu1 %1319  ;;  %v2029_v30 = vor.u32 %v2028_v14, %v2025_v55  ;;  %v2046_v59 = vshll.u32 %v1945_v1, 16  ;;  %v957_v35 = vshrl.u32 %v777_v37, 16  ;;  %v2128_v51 = vrot.slane %v2127_v46, 4 }
 0x19f   :  { %1630 = vrot.lane.b32.xlu0 %v2887_v13, %s3216_s2  ;;  %v960_v18 = vshll.u32 %v777_v37, 16  ;;  %v966_v0 = vshll.u32 %v778_v20, 16  ;;  %v971_v2 = vshrl.u32 %v779_v43, 16  ;;  %v2042_v58 = vrot.slane %v2040_v52, 5  ;;  %v783_v20 = vld [vmem:[#allocation2 + $0x88] sm:$0xf] }
 0x1a0   :  { %v2030_v5 = vrot.slane %v2029_v30, 4  ;;  %v2048_v15 = vrot.slane %v2046_v59, 5  ;;  %v959_v24 = vrot.slane %v957_v35, 4  ;;  %v2133_v36 = vsel %vm3793_vm14, %v2128_v51, %v2132_v25  ;;  %v1950_v30 = vld [vmem:[#allocation2 + $0x60] sm:$0xf] }
 0x1a1   :  { %v4208_v49 = vpop.permute.xlu0 %1317  ;;  %v962_v9 = vrot.slane %v960_v18, 5  ;;  %v968_v42 = vrot.slane %v966_v0, 5  ;;  %v973_v7 = vrot.slane %v971_v2, 4  ;;  %v2930_v29 = vcombine.low %v2119_v17, %v2133_v36 }
 0x1a2   :  { %v4212_v41 = vpop.permute.xlu1 %1907  ;;  %v2035_v44 = vsel %vm3793_vm14, %v2030_v5, %v2034_v27  ;;  %v2043_v6 = vor.u32 %v2042_v58, %v2039_v16  ;;  %v974_v32 = vshll.u32 %v779_v43, 16  ;;  %v980_v47 = vshll.u32 %v780_v39, 16  ;;  %v784_v43 = vld [vmem:[#allocation2 + $0x8c] sm:$0x1]  ;;  %v1951_v58 = vld [vmem:[#allocation2 + $0x64] sm:$0x1] }
 0x1a3   :  { %v963_v21 = vor.u32 %v962_v9, %v959_v24  ;;  %v1491_v33 = vshrl.u32 %v1362_v23, 16  ;;  %v1494_v48 = vshll.u32 %v1362_v23, 16  ;;  %2224 = vrot.lane.b32.xlu1 %v2930_v29, %s3217_s3  ;;  %v1500_v31 = vshll.u32 %v1363_v53, 16  ;;  %v1952_v9 = vld [vmem:[#allocation2 + $0x68] sm:$0xf] }
 0x1a4   :  { %v2044_v40 = vrot.slane %v2043_v6, 4  ;;  %v976_v56 = vrot.slane %v974_v32, 5  ;;  %v1505_v12 = vshrl.u32 %v1364_v45, 16  ;;  %v982_v54 = vrot.slane %v980_v47, 5  ;;  %v1374_v6 = vld [vmem:[#allocation2 + $0x88] sm:$0xf] }
 0x1a5   :  { %v4217_v8 = vpop.permute.xlu0 %1905  ;;  %v964_v1 = vrot.slane %v963_v21, 4  ;;  %v1493_v63 = vrot.slane %v1491_v33, 4  ;;  %v1496_v57 = vrot.slane %v1494_v48, 5  ;;  %v1502_v25 = vrot.slane %v1500_v31, 5  ;;  %v1375_v48 = vld [vmem:[#allocation2 + $0x8c] sm:$0x1] }
 0x1a6   :  { %v4219_v37 = vpop.permute.xlu1 %1323  ;;  %v2049_v3 = vsel %vm3793_vm14, %v2044_v40, %v2048_v15  ;;  %v977_v60 = vor.u32 %v976_v56, %v973_v7  ;;  %v1507_v11 = vrot.slane %v1505_v12, 4  ;;  %v1508_v27 = vshll.u32 %v1364_v45, 16  ;;  %v1376_v40 = vld [vmem:[#allocation2 + $0x90] sm:$0xf] }
 0x1a7   :  { %v2927_v38 = vcombine.low %v2035_v44, %v2049_v3  ;;  %v969_v55 = vsel %vm3793_vm14, %v964_v1, %v968_v42  ;;  %v1497_v14 = vor.u32 %v1496_v57, %v1493_v63  ;;  %v1514_v17 = vshll.u32 %v1365_v22, 16  ;;  %v1953_v44 = vld [vmem:[#allocation2 + $0x6c] sm:$0x1] }
 0x1a8   :  { %v978_v13 = vrot.slane %v977_v60, 4  ;;  %v985_v46 = vshrl.u32 %v781_v28, 16  ;;  %v988_v16 = vshll.u32 %v781_v28, 16  ;;  %v1510_v39 = vrot.slane %v1508_v27, 5  ;;  %v1377_v27 = vld [vmem:[#allocation2 + $0x94] sm:$0x1] }
 0x1a9   :  { %v4225_v52 = vpop.permute.xlu0 %1321  ;;  %2218 = vrot.lane.b32.xlu0 %v2927_v38, %s3217_s3  ;;  %v1498_v59 = vrot.slane %v1497_v14, 4  ;;  %v994_v35 = vshll.u32 %v782_v19, 16  ;;  %v999_v51 = vshrl.u32 %v783_v20, 16  ;;  %v1516_v2 = vrot.slane %v1514_v17, 5 }
 0x1aa   :  { %v4228_v18 = vpop.permute.xlu1 %1911  ;;  %v983_v0 = vsel %vm3793_vm14, %v978_v13, %v982_v54  ;;  %v987_v23 = vrot.slane %v985_v46, 4  ;;  %v990_v5 = vrot.slane %v988_v16, 5  ;;  %v1511_v53 = vor.u32 %v1510_v39, %v1507_v11  ;;  %v1370_v13 = vld [vmem:[#allocation2 + $0x78] sm:$0xf]  ;;  %v1371_v39 = vld [vmem:[#allocation2 + $0x7c] sm:$0x1] }
 0x1ab   :  { %v2851_v15 = vcombine.low %v969_v55, %v983_v0  ;;  %v1503_v24 = vsel %vm3793_vm14, %v1498_v59, %v1502_v25  ;;  %v996_v36 = vrot.slane %v994_v35, 5  ;;  %v1001_v7 = vrot.slane %v999_v51, 4 }
 0x1ac   :  { %v991_v42 = vor.u32 %v990_v5, %v987_v23  ;;  %v1002_v45 = vshll.u32 %v783_v20, 16  ;;  %v1008_v29 = vshll.u32 %v784_v43, 16  ;;  %v1512_v21 = vrot.slane %v1511_v53, 4  ;;  %v1372_v23 = vld [vmem:[#allocation2 + $0x80] sm:$0xf] }
 0x1ad   :  { %v4234_v32 = vpop.permute.xlu0 %1909  ;;  %1048 = vrot.lane.b32.xlu1 %v2851_v15, %s3218_s11  ;;  %v2079_v47 = vshrl.u32 %v1950_v30, 16  ;;  %v2082_v22 = vshll.u32 %v1950_v30, 16  ;;  %v2088_v33 = vshll.u32 %v1951_v58, 16  ;;  %v2093_v1 = vshrl.u32 %v1952_v9, 16 }
 0x1ae   :  { %v4237_v56 = vpop.permute.xlu1 %1327  ;;  %v992_v31 = vrot.slane %v991_v42, 4  ;;  %v1004_v12 = vrot.slane %v1002_v45, 5  ;;  %v1010_v28 = vrot.slane %v1008_v29, 5  ;;  %v1517_v54 = vsel %vm3793_vm14, %v1512_v21, %v1516_v2 }
 0x1af   :  { %v2081_v63 = vrot.slane %v2079_v47, 4  ;;  %v2084_v57 = vrot.slane %v2082_v22, 5  ;;  %v2090_v19 = vrot.slane %v2088_v33, 5  ;;  %v2889_v3 = vcombine.low %v1503_v24, %v1517_v54  ;;  %v1962_v22 = vld [vmem:[#allocation2 + $0x90] sm:$0xf] }
 0x1b0   :  { %v997_v60 = vsel %vm3793_vm14, %v992_v31, %v996_v36  ;;  %v1005_v25 = vor.u32 %v1004_v12, %v1001_v7  ;;  %v2095_v11 = vrot.slane %v2093_v1, 4  ;;  %v2096_v55 = vshll.u32 %v1952_v9, 16  ;;  %v1964_v1 = vld [vmem:[#allocation2 + $0x98] sm:$0xf] }
 0x1b1   :  { %v4243_v20 = vpop.permute.xlu0 %1325  ;;  %v2085_v38 = vor.u32 %v2084_v57, %v2081_v63  ;;  %v2102_v14 = vshll.u32 %v1953_v44, 16  ;;  %v1575_v43 = vshrl.u32 %v1374_v6, 16  ;;  %1634 = vrot.lane.b32.xlu0 %v2889_v3, %s3216_s2  ;;  %v1578_v16 = vshll.u32 %v1374_v6, 16  ;;  %v1373_v6 = vld [vmem:[#allocation2 + $0x84] sm:$0x1] }
 0x1b2   :  { %v4245_v17 = vpop.permute.xlu1 %1915  ;;  %v1006_v46 = vrot.slane %v1005_v25, 4  ;;  %v1584_v30 = vshll.u32 %v1375_v48, 16  ;;  %v1589_v59 = vshrl.u32 %v1376_v40, 16  ;;  %v2098_v51 = vrot.slane %v2096_v55, 5 }
 0x1b3   :  { %v2086_v35 = vrot.slane %v2085_v38, 4  ;;  %v2104_v0 = vrot.slane %v2102_v14, 5  ;;  %v1577_v2 = vrot.slane %v1575_v43, 4  ;;  %v1580_v58 = vrot.slane %v1578_v16, 5 }
 0x1b4   :  { %v1011_v5 = vsel %vm3793_vm14, %v1006_v46, %v1010_v28  ;;  %v1586_v15 = vrot.slane %v1584_v30, 5  ;;  %v1591_v24 = vrot.slane %v1589_v59, 4  ;;  %v2099_v42 = vor.u32 %v2098_v51, %v2095_v11  ;;  %v1963_v28 = vld [vmem:[#allocation2 + $0x94] sm:$0x1] }
 0x1b5   :  { %v4250_v53 = vpop.permute.xlu0 %1913  ;;  %v2852_v36 = vcombine.low %v997_v60, %v1011_v5  ;;  %v2091_v9 = vsel %vm3793_vm14, %v2086_v35, %v2090_v19  ;;  %v1592_v7 = vshll.u32 %v1376_v40, 16  ;;  %v1581_v29 = vor.u32 %v1580_v58, %v1577_v2  ;;  %v1958_v2 = vld [vmem:[#allocation2 + $0x80] sm:$0xf] }
 0x1b6   :  { %v4254_v45 = vpop.permute.xlu1 %1224  ;;  %v1598_v44 = vshll.u32 %v1377_v27, 16  ;;  %v1547_v21 = vshrl.u32 %v1370_v13, 16  ;;  %v1550_v47 = vshll.u32 %v1370_v13, 16  ;;  %v2100_v33 = vrot.slane %v2099_v42, 4  ;;  %v1965_v13 = vld [vmem:[#allocation2 + $0x9c] sm:$0x1] }
 0x1b7   :  { %1050 = vrot.lane.b32.xlu1 %v2852_v36, %s3218_s11  ;;  %v1594_v48 = vrot.slane %v1592_v7, 5  ;;  %v1556_v31 = vshll.u32 %v1371_v39, 16  ;;  %v1561_v12 = vshrl.u32 %v1372_v23, 16  ;;  %v1582_v54 = vrot.slane %v1581_v29, 4 }
 0x1b8   :  { %v1600_v63 = vrot.slane %v1598_v44, 5  ;;  %v1549_v57 = vrot.slane %v1547_v21, 4  ;;  %v1552_v40 = vrot.slane %v1550_v47, 5  ;;  %v2105_v3 = vsel %vm3793_vm14, %v2100_v33, %v2104_v0  ;;  %v1960_v44 = vld [vmem:[#allocation2 + $0x88] sm:$0xf] }
 0x1b9   :  { %v4257_v19 = vpop.permute.xlu0 %1811  ;;  %v1595_v60 = vor.u32 %v1594_v48, %v1591_v24  ;;  %v1558_v25 = vrot.slane %v1556_v31, 5  ;;  %v1563_v11 = vrot.slane %v1561_v12, 4  ;;  %v2929_v55 = vcombine.low %v2091_v9, %v2105_v3  ;;  %v1961_v33 = vld [vmem:[#allocation2 + $0x8c] sm:$0x1]  ;;  %v2275_v48 = vld [vmem:[#allocation2 + $0x90] sm:$0xe] }
 0x1ba   :  { %v4261_v38 = vpop.permute.xlu1 %1226  ;;  %v1587_v14 = vsel %vm3793_vm14, %v1582_v54, %v1586_v15  ;;  %v1553_v27 = vor.u32 %v1552_v40, %v1549_v57  ;;  %v1564_v43 = vshll.u32 %v1372_v23, 16  ;;  %v1570_v16 = vshll.u32 %v1373_v6, 16  ;;  %v1959_v23 = vld [vmem:[#allocation2 + $0x84] sm:$0x1] }
 0x1bb   :  { %v1596_v46 = vrot.slane %v1595_v60, 4  ;;  %v2163_v30 = vshrl.u32 %v1962_v22, 16  ;;  %v2166_v59 = vshll.u32 %v1962_v22, 16  ;;  %2222 = vrot.lane.b32.xlu0 %v2929_v55, %s3217_s3  ;;  %v2172_v51 = vshll.u32 %v1963_v28, 16 }
 0x1bc   :  { %v1554_v39 = vrot.slane %v1553_v27, 4  ;;  %v1566_v35 = vrot.slane %v1564_v43, 5  ;;  %v2177_v0 = vshrl.u32 %v1964_v1, 16  ;;  %v1572_v29 = vrot.slane %v1570_v16, 5 }
 0x1bd   :  { %v4266_v5 = vpop.permute.xlu0 %2399  ;;  %v1601_v58 = vsel %vm3793_vm14, %v1596_v46, %v1600_v63  ;;  %v2165_v15 = vrot.slane %v2163_v30, 4  ;;  %v2168_v24 = vrot.slane %v2166_v59, 5  ;;  %v2180_v47 = vshll.u32 %v1964_v1, 16  ;;  %v2276_v63 = vld [vmem:[#allocation2 + $0x94] sm:$0x1] }
 0x1be   :  { %v4270_v36 = vpop.permute.xlu1 %1813  ;;  %v2892_v9 = vcombine.low %v1587_v14, %v1601_v58  ;;  %v1559_v42 = vsel %vm3793_vm14, %v1554_v39, %v1558_v25  ;;  %v1567_v7 = vor.u32 %v1566_v35, %v1563_v11  ;;  %v2179_v21 = vrot.slane %v2177_v0, 4  ;;  %v2277_v11 = vld [vmem:[#allocation2 + $0x98] sm:$0xe]  ;;  %v2271_v39 = vld [vmem:[#allocation2 + $0x80] sm:$0xe] }
 0x1bf   :  { %v2169_v6 = vor.u32 %v2168_v24, %v2165_v15  ;;  %v2186_v22 = vshll.u32 %v1965_v13, 16  ;;  %v2174_v12 = vrot.slane %v2172_v51, 5  ;;  %v2135_v28 = vshrl.u32 %v1958_v2, 16  ;;  %v2278_v13 = vld [vmem:[#allocation2 + $0x9c] sm:$0x1] }
 0x1c0   :  { %1640 = vrot.lane.b32.xlu1 %v2892_v9, %s3216_s2  ;;  %v1568_v31 = vrot.slane %v1567_v7, 4  ;;  %v2138_v54 = vshll.u32 %v1958_v2, 16  ;;  %v2182_v3 = vrot.slane %v2180_v47, 5  ;;  %v2144_v60 = vshll.u32 %v1959_v23, 16  ;;  %v2272_v58 = vld [vmem:[#allocation2 + $0x84] sm:$0x1] }
 0x1c1   :  { %v4275_v57 = vpop.permute.xlu0 %2401  ;;  %v2170_v40 = vrot.slane %v2169_v6, 4  ;;  %v2149_v25 = vshrl.u32 %v1960_v44, 16  ;;  %v2188_v14 = vrot.slane %v2186_v22, 5  ;;  %v2137_v27 = vrot.slane %v2135_v28, 4  ;;  %v3189_v24 = vld [vmem:[#allocation2 + $0x20] ss:$8 sps:$4 sm:$0xff]  }
 0x1c2   :  { %v4277_v55 = vpop.permute.xlu1 %1230  ;;  %v1573_v1 = vsel %vm3793_vm14, %v1568_v31, %v1572_v29  ;;  %v2140_v43 = vrot.slane %v2138_v54, 5  ;;  %v2183_v30 = vor.u32 %v2182_v3, %v2179_v21  ;;  %v2152_v51 = vshll.u32 %v1960_v44, 16  ;;  %v3190_v23 = vld [vmem:[#allocation2 + $0x30] ss:$8 sps:$4 sm:$0xff]   ;;  %v3191_v9 = vld [vmem:[#allocation2] ss:$8 sps:$4 sm:$0xff]  }
 0x1c3   :  { %v2891_v46 = vcombine.low %v1559_v42, %v1573_v1  ;;  %v2175_v16 = vsel %vm3793_vm14, %v2170_v40, %v2174_v12  ;;  %v2151_v59 = vrot.slane %v2149_v25, 4  ;;  %v2158_v0 = vshll.u32 %v1961_v33, 16  ;;  %v3193_v7 = vld [vmem:[#allocation2 + $0x10] ss:$8 sps:$4 sm:$0xff]   ;;  %v3197_v31 = vld [vmem:[#allocation2 + $0x60] ss:$8 sps:$4 sm:$0xff]  }
 0x1c4   :  { %v2141_v35 = vor.u32 %v2140_v43, %v2137_v27  ;;  %v2947_v2 = vrot.slane %v2275_v48, 9  ;;  %v3195_v29 = vld [vmem:[#allocation2 + $0x50] ss:$8 sps:$4 sm:$0xff]   ;;  %v2184_v42 = vrot.slane %v2183_v30, 4  ;;  %v2369_v6 = vrot.slane %v2276_v63, 5  ;;  %747 = vst.msk [vmem:[#allocation3 + $0x10] sm:$0xff] %vm744_vm15, %v3189_v24 }
 0x1c5   :  { %v4283_v15 = vpop.permute.xlu0 %1228  ;;  %1638 = vrot.lane.b32.xlu0 %v2891_v46, %s3216_s2  ;;  %v2948_v47 = vrot.slane %v2277_v11, 9  ;;  %v2373_v21 = vrot.slane %v2278_v13, 5  ;;  %v2154_v33 = vrot.slane %v2152_v51, 5  ;;  %v3200_v48 = vld [vmem:[#allocation2 + $0x70] ss:$8 sps:$4 sm:$0xff]   ;;  %v2146_v54 = vrot.slane %v2144_v60, 5 }
 0x1c6   :  { %v4286_v22 = vpop.permute.xlu1 %1817  ;;  %v2142_v44 = vrot.slane %v2141_v35, 4  ;;  %v3201_v12 = vld [vmem:[#allocation2 + $0x80] ss:$8 sps:$4 sm:$0xff]   ;;  %v2189_v28 = vsel %vm3793_vm14, %v2184_v42, %v2188_v14  ;;  %v2274_v3 = vld [vmem:[#allocation2 + $0x8c] sm:$0x1]  ;;  %v2160_v27 = vrot.slane %v2158_v0, 5  ;;  %v2370_v11 = vsel %vm3773_vm13, %v2947_v2, %v2369_v6 }
 0x1c7   :  { %v2273_v40 = vld [vmem:[#allocation2 + $0x88] sm:$0xe]  ;;  %v2932_v25 = vcombine.low %v2175_v16, %v2189_v28  ;;  %v2155_v1 = vor.u32 %v2154_v33, %v2151_v59  ;;  %v2945_v43 = vrot.slane %v2271_v39, 9  ;;  %v2374_v13 = vsel %vm3773_vm13, %v2948_v47, %v2373_v21  ;;  %748 = vst.msk [vmem:[#allocation3 + $0x18] sm:$0xff] %vm744_vm15, %v3190_v23  ;;  %745 = vst.msk [vmem:[#allocation3] sm:$0xff] %vm744_vm15, %v3191_v9 }
 0x1c8   :  { %v2361_v46 = vrot.slane %v2272_v58, 5  ;;  %v2147_v60 = vsel %vm3793_vm14, %v2142_v44, %v2146_v54  ;;  %v2946_v16 = vrot.slane %v2273_v40, 9  ;;  %v2365_v59 = vrot.slane %v2274_v3, 5  ;;  %746 = vst.msk [vmem:[#allocation3 + $0x8] sm:$0xff] %vm744_vm15, %v3193_v7  ;;  %749 = vst.msk [vmem:[#allocation3 + $0x20] sm:$0xff] %vm744_vm15, %v3195_v29 }
 0x1c9   :  { %v4290_v63 = vpop.permute.xlu0 %1815  ;;  %2228 = vrot.lane.b32.xlu1 %v2932_v25, %s3217_s3  ;;  %v2156_v14 = vrot.slane %v2155_v1, 4  ;;  %750 = vst.msk [vmem:[#allocation3 + $0x28] sm:$0xff] %vm744_vm15, %v3197_v31  ;;  %v3199_v39 = vld [vmem:[%s4575_s5 + $0x20] ss:$0 sps:$4 sm:$0xff]   ;;  %751 = vst.msk [vmem:[#allocation3 + $0x30] sm:$0xff] %vm744_vm15, %v3200_v48  ;;  %v2956_v51 = vcombine.low %v2370_v11, %v2374_v13 }
 0x1ca   :  { %v4296_v30 = vpop.permute.xlu1 %1234  ;;  %752 = vst.msk [vmem:[#allocation3 + $0x38] sm:$0xff] %vm744_vm15, %v3201_v12  ;;  %v2362_v24 = vsel %vm3773_vm13, %v2945_v43, %v2361_v46  ;;  %v2366_v23 = vsel %vm3773_vm13, %v2946_v16, %v2365_v59  ;;  %3158 = vmatprep.subr.msk.bf16.mxu0 %vm2533_vm0, %v3199_v39  ;;  %v2535_v9 = vsel %vm2533_vm0, %v3199_v39, 0  ;;  %3159 = vmatprep.subr.msk.bf16.mxu1 %vm2533_vm0, %v3199_v39  ;;  %v3051_v43 = vld [vmem:[%s4576_s6] sm:$0xff]  }
 0x1cb   :  { %v2161_v35 = vsel %vm3793_vm14, %v2156_v14, %v2160_v27  ;;  %3128 = vmatpush3.bf16.msra.mxu0 %v2535_v9  ;;  %v2955_v7 = vcombine.low %v2362_v24, %v2366_v23  ;;  %3157 = vmatpush3.bf16.msra.mxu1 %v2535_v9  ;;  %v3052_v11 = vunpack.c.l.bf16 %v3051_v43 }
 0x1cc   :  { %v2931_v2 = vcombine.low %v2147_v60, %v2161_v35 }
 0x1cd   :  { %v4314_v0 = vpop.permute.xlu0 %2403  ;;  %2413 = vrot.lane.b32.xlu1 %v2956_v51, %s3215_s10 }
 0x1ce   :  { %v4316_v58 = vpop.permute.xlu1 %1821  ;;  %2226 = vrot.lane.b32.xlu0 %v2931_v2, %s3217_s3 }
 0x1d1   :  { %v2406_v50 = vpop.permute.xlu0 %2405 }
 0x1d2   :  { %v4324_v29 = vpop.permute.xlu1 %1238  ;;  %2411 = vrot.lane.b32.xlu0 %v2955_v7, %s3215_s10 }
 0x1d5   :  { %v1233_v42 = vpop.permute.xlu0 %1232 }
 0x1d6   :  { %v4327_v6 = vpop.permute.xlu1 %1825 }
 0x1d9   :  { %v4329_v47 = vpop.permute.xlu0 %1819 }
 0x1da   :  { %v1629_v10 = vpop.permute.xlu1 %1628 }
 0x1dd   :  { %v4331_v21 = vpop.permute.xlu0 %2407 }
 0x1de   :  { %v2217_v31 = vpop.permute.xlu1 %2216 }
 0x1e1   :  { %v4333_v44 = vpop.permute.xlu0 %2409 }
 0x1e2   :  { %v1041_v33 = vpop.permute.xlu1 %1040 }
 0x1e3   :  { %1063 = vst.msk [vmem:[#allocation3 + $0x10] sm:$0xff] %vm1060_vm1, %v1041_v33 }
 0x1e4   :  { %1251 = vst.msk [vmem:[#allocation3 + $0x10] sm:$0xff] %vm1248_vm2, %v4283_v15 }
 0x1e5   :  { %v4338_v48 = vpop.permute.xlu0 %1236  ;;  %1340 = vst.msk [vmem:[#allocation3 + $0x10] sm:$0xff] %vm1337_vm3, %v4208_v49 }
 0x1e6   :  { %v1043_v12 = vpop.permute.xlu1 %1042 }
 0x1e7   :  { %1064 = vst.msk [vmem:[#allocation3 + $0x18] sm:$0xff] %vm1060_vm1, %v1043_v12 }
 0x1e8   :  { %1252 = vst.msk [vmem:[#allocation3 + $0x18] sm:$0xff] %vm1248_vm2, %v4277_v55 }
 0x1e9   :  { %v4343_v28 = vpop.permute.xlu0 %1823  ;;  %1341 = vst.msk [vmem:[#allocation3 + $0x18] sm:$0xff] %vm1337_vm3, %v4205_v26 }
 0x1eb   :  { %v1633_v54 = vpop.permute.xlu1 %1632 }
 0x1ec   :  { %1654 = vst.msk [vmem:[#allocation3 + $0x18] sm:$0xff] %vm1650_vm4, %v1633_v54 }
 0x1ed   :  { %1839 = vst.msk [vmem:[#allocation3 + $0x18] sm:$0xff] %vm1835_vm5, %v4286_v22 }
 0x1ee   :  { %v1037_v49 = vpop.permute.xlu0 %1036  ;;  %1929 = vst.msk [vmem:[#allocation3 + $0x18] sm:$0xff] %vm1925_vm7, %v4212_v41 }
 0x1ef   :  { %1061 = vst.msk [vmem:[#allocation3] sm:$0xff] %vm1060_vm1, %v1037_v49 }
 0x1f0   :  { %1249 = vst.msk [vmem:[#allocation3] sm:$0xff] %vm1248_vm2, %v4254_v45  ;;  %v2221_v26 = vpop.permute.xlu1 %2220 }
 0x1f1   :  { %1338 = vst.msk [vmem:[#allocation3] sm:$0xff] %vm1337_vm3, %v4192_v62 }
 0x1f2   :  { %2242 = vst.msk [vmem:[#allocation3 + $0x18] sm:$0xff] %vm2238_vm8, %v2221_v26  ;;  %v3091_v26 = vld [vmem:[%s4576_s6 + $0x18] sm:$0xff]  }
 0x1f3   :  { %2427 = vst.msk [vmem:[#allocation3 + $0x18] sm:$0xff] %vm2423_vm9, %v2406_v50 }
 0x1f5   :  { %v1039_v55 = vpop.permute.xlu0 %1038 }
 0x1f6   :  { %1062 = vst.msk [vmem:[#allocation3 + $0x8] sm:$0xff] %vm1060_vm1, %v1039_v55  ;;  %v3090_v55 = vld [vmem:[%s4576_s6 + $0x10] sm:$0xff]  }
 0x1f7   :  { %1250 = vst.msk [vmem:[#allocation3 + $0x8] sm:$0xff] %vm1248_vm2, %v4261_v38 }
 0x1f8   :  { %1339 = vst.msk [vmem:[#allocation3 + $0x8] sm:$0xff] %vm1337_vm3, %v4188_v34  ;;  %v1045_v41 = vpop.permute.xlu1 %1044 }
 0x1f9   :  { %1652 = vst.msk [vmem:[#allocation3 + $0x8] sm:$0xff] %vm1650_vm4, %v1629_v10 }
 0x1fa   :  { %1065 = vst.msk [vmem:[#allocation3 + $0x20] sm:$0xff] %vm1060_vm1, %v1045_v41  ;;  %v3064_v41 = vunpack.c.l.bf16 %v3091_v26 }
 0x1fb   :  { %1837 = vst.msk [vmem:[#allocation3 + $0x8] sm:$0xff] %vm1835_vm5, %v4270_v36  ;;  %v2435_v36 = vld [vmem:[#allocation3 + $0x18] sm:$0xff] }
 0x1fc   :  { %1253 = vst.msk [vmem:[#allocation3 + $0x20] sm:$0xff] %vm1248_vm2, %v1233_v42 }
 0x1fd   :  { %1927 = vst.msk [vmem:[#allocation3 + $0x8] sm:$0xff] %vm1925_vm7, %v4196_v4  ;;  %v1627_v34 = vpop.permute.xlu0 %1626 }
 0x1fe   :  { %1342 = vst.msk [vmem:[#allocation3 + $0x20] sm:$0xff] %vm1337_vm3, %v4225_v52 }
 0x1ff   :  { %2240 = vst.msk [vmem:[#allocation3 + $0x8] sm:$0xff] %vm2238_vm8, %v2217_v31 }
 0x200   :  { %2425 = vst.msk [vmem:[#allocation3 + $0x8] sm:$0xff] %vm2423_vm9, %v4275_v57 }
 0x201   :  { %1651 = vst.msk [vmem:[#allocation3] sm:$0xff] %vm1650_vm4, %v1627_v34  ;;  %v3060_v34 = vunpack.c.l.bf16 %v3090_v55 }
 0x202   :  { %1836 = vst.msk [vmem:[#allocation3] sm:$0xff] %vm1835_vm5, %v4257_v19  ;;  %v1047_v62 = vpop.permute.xlu1 %1046 }
 0x203   :  { %1926 = vst.msk [vmem:[#allocation3] sm:$0xff] %vm1925_vm7, %v4201_v61 }
 0x204   :  { %1066 = vst.msk [vmem:[#allocation3 + $0x28] sm:$0xff] %vm1060_vm1, %v1047_v62  ;;  %v3065_v62 = vunpack.c.h.bf16 %v3091_v26 }
 0x205   :  { %1254 = vst.msk [vmem:[#allocation3 + $0x28] sm:$0xff] %vm1248_vm2, %v4296_v30  ;;  %v3053_v30 = vunpack.c.h.bf16 %v3051_v43 }
 0x206   :  { %1343 = vst.msk [vmem:[#allocation3 + $0x28] sm:$0xff] %vm1337_vm3, %v4219_v37 }
 0x207   :  { %v2215_v4 = vpop.permute.xlu0 %2214  ;;  %v2433_v37 = vld [vmem:[#allocation3 + $0x8] sm:$0xff] }
 0x208   :  { %2239 = vst.msk [vmem:[#allocation3] sm:$0xff] %vm2238_vm8, %v2215_v4 }
 0x209   :  { %2424 = vst.msk [vmem:[#allocation3] sm:$0xff] %vm2423_vm9, %v4266_v5 }
 0x20b   :  { %v1637_v52 = vpop.permute.xlu1 %1636 }
 0x20c   :  { %1656 = vst.msk [vmem:[#allocation3 + $0x28] sm:$0xff] %vm1650_vm4, %v1637_v52  ;;  %v3061_v52 = vunpack.c.h.bf16 %v3090_v55 }
 0x20d   :  { %1841 = vst.msk [vmem:[#allocation3 + $0x28] sm:$0xff] %vm1835_vm5, %v4316_v58 }
 0x20e   :  { %1931 = vst.msk [vmem:[#allocation3 + $0x28] sm:$0xff] %vm1925_vm7, %v4228_v18 }
 0x210   :  { %v2432_v61 = vld [vmem:[#allocation3] sm:$0xff] }
 0x211   :  { %v1631_v45 = vpop.permute.xlu0 %1630  ;;  %3129 = vmatprep.mubr.msk.bf16.mxu0 %vm2508_vm10, %v2432_v61 }
 0x212   :  { %1653 = vst.msk [vmem:[#allocation3 + $0x10] sm:$0xff] %vm1650_vm4, %v1631_v45  ;;  %3130 = vmatmul.mubr.msk.bf16.vlgmr.msra.gmra.mrb[4].mxu0 %vm2508_vm10, %v2433_v37 }
 0x213   :  { %1838 = vst.msk [vmem:[#allocation3 + $0x10] sm:$0xff] %vm1835_vm5, %v4290_v63 }
 0x214   :  { %1928 = vst.msk [vmem:[#allocation3 + $0x10] sm:$0xff] %vm1925_vm7, %v4217_v8 }
 0x215   :  { %v2225_v19 = vpop.permute.xlu1 %2224 }
 0x216   :  { %2244 = vst.msk [vmem:[#allocation3 + $0x28] sm:$0xff] %vm2238_vm8, %v2225_v19 }
 0x217   :  { %2429 = vst.msk [vmem:[#allocation3 + $0x28] sm:$0xff] %vm2423_vm9, %v4333_v44 }
 0x21b   :  { %v2219_v18 = vpop.permute.xlu0 %2218 }
 0x21c   :  { %2241 = vst.msk [vmem:[#allocation3 + $0x10] sm:$0xff] %vm2238_vm8, %v2219_v18 }
 0x21d   :  { %2426 = vst.msk [vmem:[#allocation3 + $0x10] sm:$0xff] %vm2423_vm9, %v4314_v0 }
 0x21f   :  { %v1049_v38 = vpop.permute.xlu1 %1048 }
 0x220   :  { %1067 = vst.msk [vmem:[#allocation3 + $0x30] sm:$0xff] %vm1060_vm1, %v1049_v38 }
 0x221   :  { %1255 = vst.msk [vmem:[#allocation3 + $0x30] sm:$0xff] %vm1248_vm2, %v4338_v48 }
 0x222   :  { %1344 = vst.msk [vmem:[#allocation3 + $0x30] sm:$0xff] %vm1337_vm3, %v4243_v20 }
 0x223   :  { %v1635_v8 = vpop.permute.xlu0 %1634 }
 0x224   :  { %v2434_v5 = vld [vmem:[#allocation3 + $0x10] sm:$0xff]  ;;  %1655 = vst.msk [vmem:[#allocation3 + $0x20] sm:$0xff] %vm1650_vm4, %v1635_v8 }
 0x225   :  { %3133 = vmatprep.mubr.msk.bf16.mxu1 %vm2508_vm10, %v2434_v5  ;;  %1840 = vst.msk [vmem:[#allocation3 + $0x20] sm:$0xff] %vm1835_vm5, %v4329_v47 }
 0x226   :  { %3134 = vmatmul.mubr.msk.bf16.vlgmr.msra.gmra.mrb[0].mxu1 %vm2508_vm10, %v2435_v36  ;;  %1930 = vst.msk [vmem:[#allocation3 + $0x20] sm:$0xff] %vm1925_vm7, %v4234_v32 }
 0x229   :  { %v1051_v57 = vpop.permute.xlu1 %1050 }
 0x22a   :  { %1068 = vst.msk [vmem:[#allocation3 + $0x38] sm:$0xff] %vm1060_vm1, %v1051_v57 }
 0x22b   :  { %1256 = vst.msk [vmem:[#allocation3 + $0x38] sm:$0xff] %vm1248_vm2, %v4324_v29 }
 0x22c   :  { %1345 = vst.msk [vmem:[#allocation3 + $0x38] sm:$0xff] %vm1337_vm3, %v4237_v56  ;;  %v2437_v56 = vld [vmem:[#allocation3 + $0x28] sm:$0xff] }
 0x22d   :  { %v2223_v20 = vpop.permute.xlu0 %2222 }
 0x22e   :  { %2243 = vst.msk [vmem:[#allocation3 + $0x20] sm:$0xff] %vm2238_vm8, %v2223_v20 }
 0x22f   :  { %2428 = vst.msk [vmem:[#allocation3 + $0x20] sm:$0xff] %vm2423_vm9, %v4331_v21 }
 0x232   :  { %v1641_v15 = vpop.permute.xlu1 %1640 }
 0x233   :  { %1658 = vst.msk [vmem:[#allocation3 + $0x38] sm:$0xff] %vm1650_vm4, %v1641_v15 }
 0x234   :  { %1843 = vst.msk [vmem:[#allocation3 + $0x38] sm:$0xff] %vm1835_vm5, %v4327_v6 }
 0x235   :  { %1933 = vst.msk [vmem:[#allocation3 + $0x38] sm:$0xff] %vm1925_vm7, %v4245_v17 }
 0x236   :  { %v2436_v22 = vld [vmem:[#allocation3 + $0x20] sm:$0xff] }
 0x237   :  { %v1639_v32 = vpop.permute.xlu0 %1638  ;;  %3137 = vmatprep.mubr.msk.bf16.mxu1 %vm2508_vm10, %v2436_v22 }
 0x238   :  { %1657 = vst.msk [vmem:[#allocation3 + $0x30] sm:$0xff] %vm1650_vm4, %v1639_v32  ;;  %3138 = vmatmul.mubr.msk.bf16.gmra.mrb[4].mxu1 %vm2508_vm10, %v2437_v56 }
 0x239   :  { %1842 = vst.msk [vmem:[#allocation3 + $0x30] sm:$0xff] %vm1835_vm5, %v4343_v28 }
 0x23a   :  { %1932 = vst.msk [vmem:[#allocation3 + $0x30] sm:$0xff] %vm1925_vm7, %v4250_v53  ;;  %v3089_v53 = vld [vmem:[%s4576_s6 + $0x8] sm:$0xff]  }
 0x23b   :  { %v2229_v40 = vpop.permute.xlu1 %2228  ;;  %v3056_v63 = vunpack.c.l.bf16 %v3089_v53  ;;  %v3057_v13 = vunpack.c.h.bf16 %v3089_v53 }
 0x23c   :  { %2246 = vst.msk [vmem:[#allocation3 + $0x38] sm:$0xff] %vm2238_vm8, %v2229_v40 }
 0x23f   :  { %v2414_v3 = vpop.permute.xlu1 %2413 }
 0x240   :  { %v2227_v17 = vpop.permute.xlu0 %2226  ;;  %2431 = vst.msk [vmem:[#allocation3 + $0x38] sm:$0xff] %vm2423_vm9, %v2414_v3 }
 0x241   :  { %2245 = vst.msk [vmem:[#allocation3 + $0x30] sm:$0xff] %vm2238_vm8, %v2227_v17 }
 0x244   :  { %v2412_v25 = vpop.permute.xlu0 %2411 }
 0x245   :  { %2430 = vst.msk [vmem:[#allocation3 + $0x30] sm:$0xff] %vm2423_vm9, %v2412_v25 }
 0x247   :  { %v2439_v1 = vld [vmem:[#allocation3 + $0x38] sm:$0xff] }
 0x24c   :  { %v2438_v27 = vld [vmem:[#allocation3 + $0x30] sm:$0xff] }
 0x24d   :  { %3141 = vmatprep.mubr.msk.bf16.mxu1 %vm2508_vm10, %v2438_v27 }
 0x24e   :  { %3142 = vmatmul.mubr.msk.bf16.gmra.mrb[8].mxu1 %vm2508_vm10, %v2439_v1 }
 0x2e5   :  { %v3131_v46 = vpop.f32.mrb[4].mxu0 }
 0x2e6   :  { %v2580_v60 = vadd.f32 %v3131_v46, %v3056_v63  ;;  %v2571_v14 = vpop.f32.mrb[5].mxu0 }
 0x2e7   :  { %v2572_v16 = vadd.f32 %v3052_v11, %v2571_v14  ;;  %v3132_v59 = vpop.f32.mrb[6].mxu0 }
 0x2e8   :  { %v3004_v39 = vpack.c.bf16 %v2580_v60, %v2580_v60  ;;  %v2583_v35 = vadd.f32 %v3132_v59, %v3057_v13  ;;  %v2574_v51 = vpop.f32.mrb[7].mxu0  ;;  %v2753_v24 = vmul.f32 %v2580_v60, %v2580_v60  ;;  %v2717_v6 = vsel %vm744_vm15, %v2580_v60, 0.0  ;;  %v3092_v59 = vld [vmem:[%s4576_s6 + $0x20] sm:$0xff]  }
 0x2e9   :  { %v3002_v0 = vpack.c.bf16 %v2572_v16, %v2572_v16  ;;  %v2751_v2 = vmul.f32 %v2572_v16, %v2572_v16  ;;  %v2575_v58 = vadd.f32 %v3053_v30, %v2574_v51  ;;  %v2714_v9 = vsel %vm744_vm15, %v2572_v16, 0.0  ;;  %v3093_v16 = vld [vmem:[%s4576_s6 + $0x28] sm:$0xff]  }
 0x2ea   :  { %2700 = vst.msk [vmem:[%s4577_s7 + $0x8] sm:$0xf] %vm269_vm6, %v3004_v39  ;;  %v3005_v23 = vpack.c.bf16 %v2583_v35, %v2583_v35  ;;  %v2754_v10 = vmul.f32 %v2583_v35, %v2583_v35  ;;  %v2770_v33 = vsel %vm744_vm15, %v2753_v24, 0.0  ;;  %v2719_v48 = vsel %vm744_vm15, %v2583_v35, 0.0 }
 0x2eb   :  { %2698 = vst.msk [vmem:[%s4577_s7] sm:$0xf] %vm269_vm6, %v3002_v0  ;;  %v3003_v50 = vpack.c.bf16 %v2575_v58, %v2575_v58  ;;  %v2715_v7 = vsel %vm744_vm15, %v2575_v58, 0.0  ;;  %v2752_v29 = vmul.f32 %v2575_v58, %v2575_v58  ;;  %v2767_v47 = vsel %vm744_vm15, %v2751_v2, 0.0 }
 0x2ec   :  { %2701 = vst.msk [vmem:[%s4577_s7 + $0xc] sm:$0xf] %vm269_vm6, %v3005_v23  ;;  %v2716_v42 = vadd.f32 %v2715_v7, %v2714_v9  ;;  %v2772_v54 = vsel %vm744_vm15, %v2754_v10, 0.0  ;;  %v3072_v35 = vunpack.c.l.bf16 %v3093_v16  ;;  %v3068_v51 = vunpack.c.l.bf16 %v3092_v59 }
 0x2ed   :  { %2699 = vst.msk [vmem:[%s4577_s7 + $0x4] sm:$0xf] %vm269_vm6, %v3003_v50  ;;  %v2768_v21 = vsel %vm744_vm15, %v2752_v29, 0.0  ;;  %v3073_v0 = vunpack.c.h.bf16 %v3093_v16  ;;  %v3069_v58 = vunpack.c.h.bf16 %v3092_v59 }
 0x2ee   :  { %v2718_v31 = vadd.f32 %v2717_v6, %v2716_v42  ;;  %v2769_v44 = vadd.f32 %v2768_v21, %v2767_v47 }
 0x2f0   :  { %v2771_v12 = vadd.f32 %v2770_v33, %v2769_v44  ;;  %v2720_v28 = vadd.f32 %v2719_v48, %v2718_v31 }
 0x2f2   :  { %v2773_v49 = vadd.f32 %v2772_v54, %v2771_v12 }
 0x2f9   :  { %v3135_v4 = vpop.f32.mrb[0].mxu1 }
 0x2fa   :  { %v2596_v61 = vadd.f32 %v3135_v4, %v3064_v41  ;;  %v2587_v45 = vpop.f32.mrb[1].mxu1 }
 0x2fb   :  { %v2588_v37 = vadd.f32 %v3060_v34, %v2587_v45  ;;  %v3136_v19 = vpop.f32.mrb[2].mxu1 }
 0x2fc   :  { %v3008_v18 = vpack.c.bf16 %v2596_v61, %v2596_v61  ;;  %v2599_v38 = vadd.f32 %v3136_v19, %v3065_v62  ;;  %v2590_v8 = vpop.f32.mrb[3].mxu1  ;;  %v2757_v3 = vmul.f32 %v2596_v61, %v2596_v61  ;;  %v2725_v27 = vsel %vm744_vm15, %v2596_v61, 0.0 }
 0x2fd   :  { %v3006_v5 = vpack.c.bf16 %v2588_v37, %v2588_v37  ;;  %v2721_v36 = vsel %vm744_vm15, %v2588_v37, 0.0  ;;  %v2755_v57 = vmul.f32 %v2588_v37, %v2588_v37  ;;  %v2591_v20 = vadd.f32 %v3061_v52, %v2590_v8  ;;  %v3094_v8 = vld [vmem:[%s4576_s6 + $0x30] sm:$0xff]  }
 0x2fe   :  { %2704 = vst.msk [vmem:[%s4577_s7 + $0x18] sm:$0xf] %vm269_vm6, %v3008_v18  ;;  %v2722_v15 = vadd.f32 %v2721_v36, %v2720_v28  ;;  %v3009_v32 = vpack.c.bf16 %v2599_v38, %v2599_v38  ;;  %v2758_v53 = vmul.f32 %v2599_v38, %v2599_v38  ;;  %v2727_v11 = vsel %vm744_vm15, %v2599_v38, 0.0  ;;  %v3095_v38 = vld [vmem:[%s4576_s6 + $0x38] sm:$0xff]  }
 0x2ff   :  { %2702 = vst.msk [vmem:[%s4577_s7 + $0x10] sm:$0xf] %vm269_vm6, %v3006_v5  ;;  %v2774_v22 = vsel %vm744_vm15, %v2755_v57, 0.0  ;;  %v3007_v56 = vpack.c.bf16 %v2591_v20, %v2591_v20  ;;  %v2723_v40 = vsel %vm744_vm15, %v2591_v20, 0.0  ;;  %v2756_v1 = vmul.f32 %v2591_v20, %v2591_v20 }
 0x300   :  { %v2775_v17 = vadd.f32 %v2774_v22, %v2773_v49  ;;  %2705 = vst.msk [vmem:[%s4577_s7 + $0x1c] sm:$0xf] %vm269_vm6, %v3009_v32  ;;  %v2724_v25 = vadd.f32 %v2723_v40, %v2722_v15  ;;  %v2778_v46 = vsel %vm744_vm15, %v2757_v3, 0.0  ;;  %v2780_v14 = vsel %vm744_vm15, %v2758_v53, 0.0 }
 0x301   :  { %2703 = vst.msk [vmem:[%s4577_s7 + $0x14] sm:$0xf] %vm269_vm6, %v3007_v56  ;;  %v2776_v63 = vsel %vm744_vm15, %v2756_v1, 0.0  ;;  %v3080_v5 = vunpack.c.l.bf16 %v3095_v38  ;;  %v3076_v36 = vunpack.c.l.bf16 %v3094_v8  ;;  %v3081_v57 = vunpack.c.h.bf16 %v3095_v38 }
 0x302   :  { %v2726_v43 = vadd.f32 %v2725_v27, %v2724_v25  ;;  %v2777_v13 = vadd.f32 %v2776_v63, %v2775_v17  ;;  %v3077_v15 = vunpack.c.h.bf16 %v3094_v8 }
 0x304   :  { %v2728_v30 = vadd.f32 %v2727_v11, %v2726_v43  ;;  %v2779_v60 = vadd.f32 %v2778_v46, %v2777_v13 }
 0x306   :  { %v2781_v39 = vadd.f32 %v2780_v14, %v2779_v60 }
 0x30b   :  { %v3139_v2 = vpop.f32.mrb[4].mxu1 }
 0x30c   :  { %v2612_v24 = vadd.f32 %v3139_v2, %v3072_v35  ;;  %v2603_v23 = vpop.f32.mrb[5].mxu1 }
 0x30d   :  { %v2604_v9 = vadd.f32 %v3068_v51, %v2603_v23  ;;  %v3140_v50 = vpop.f32.mrb[6].mxu1 }
 0x30e   :  { %v3012_v7 = vpack.c.bf16 %v2612_v24, %v2612_v24  ;;  %v2615_v29 = vadd.f32 %v3140_v50, %v3073_v0  ;;  %v2606_v42 = vpop.f32.mrb[7].mxu1  ;;  %v2761_v28 = vmul.f32 %v2612_v24, %v2612_v24  ;;  %v2733_v55 = vsel %vm744_vm15, %v2612_v24, 0.0 }
 0x30f   :  { %v3010_v6 = vpack.c.bf16 %v2604_v9, %v2604_v9  ;;  %v2729_v47 = vsel %vm744_vm15, %v2604_v9, 0.0  ;;  %v2759_v10 = vmul.f32 %v2604_v9, %v2604_v9  ;;  %v2607_v21 = vadd.f32 %v3069_v58, %v2606_v42 }
 0x310   :  { %2708 = vst.msk [vmem:[%s4577_s7 + $0x28] sm:$0xf] %vm269_vm6, %v3012_v7  ;;  %v2730_v31 = vadd.f32 %v2729_v47, %v2728_v30  ;;  %v3013_v44 = vpack.c.bf16 %v2615_v29, %v2615_v29  ;;  %v2762_v41 = vmul.f32 %v2615_v29, %v2615_v29  ;;  %v2735_v4 = vsel %vm744_vm15, %v2615_v29, 0.0 }
 0x311   :  { %2706 = vst.msk [vmem:[%s4577_s7 + $0x20] sm:$0xf] %vm269_vm6, %v3010_v6  ;;  %v2782_v33 = vsel %vm744_vm15, %v2759_v10, 0.0  ;;  %v3011_v48 = vpack.c.bf16 %v2607_v21, %v2607_v21  ;;  %v2731_v12 = vsel %vm744_vm15, %v2607_v21, 0.0  ;;  %v2760_v26 = vmul.f32 %v2607_v21, %v2607_v21 }
 0x312   :  { %v2783_v54 = vadd.f32 %v2782_v33, %v2781_v39  ;;  %2709 = vst.msk [vmem:[%s4577_s7 + $0x2c] sm:$0xf] %vm269_vm6, %v3013_v44  ;;  %v2732_v49 = vadd.f32 %v2731_v12, %v2730_v31  ;;  %v2786_v61 = vsel %vm744_vm15, %v2761_v28, 0.0  ;;  %v2788_v19 = vsel %vm744_vm15, %v2762_v41, 0.0 }
 0x313   :  { %2707 = vst.msk [vmem:[%s4577_s7 + $0x24] sm:$0xf] %vm269_vm6, %v3011_v48  ;;  %v2784_v62 = vsel %vm744_vm15, %v2760_v26, 0.0 }
 0x314   :  { %v2734_v34 = vadd.f32 %v2733_v55, %v2732_v49  ;;  %v2785_v52 = vadd.f32 %v2784_v62, %v2783_v54 }
 0x316   :  { %v2736_v45 = vadd.f32 %v2735_v4, %v2734_v34  ;;  %v2787_v37 = vadd.f32 %v2786_v61, %v2785_v52 }
 0x318   :  { %v2789_v18 = vadd.f32 %v2788_v19, %v2787_v37 }
 0x321   :  { %v3143_v20 = vpop.f32.mrb[8].mxu1 }
 0x322   :  { %v2628_v32 = vadd.f32 %v3143_v20, %v3080_v5  ;;  %v2619_v22 = vpop.f32.mrb[9].mxu1 }
 0x323   :  { %v2620_v56 = vadd.f32 %v3076_v36, %v2619_v22  ;;  %v3144_v40 = vpop.f32.mrb[10].mxu1 }
 0x324   :  { %v3016_v3 = vpack.c.bf16 %v2628_v32, %v2628_v32  ;;  %v2631_v17 = vadd.f32 %v3144_v40, %v3081_v57  ;;  %v2622_v25 = vpop.f32.mrb[11].mxu1  ;;  %v2765_v60 = vmul.f32 %v2628_v32, %v2628_v32  ;;  %v2741_v39 = vsel %vm744_vm15, %v2628_v32, 0.0 }
 0x325   :  { %v3014_v1 = vpack.c.bf16 %v2620_v56, %v2620_v56  ;;  %v2737_v27 = vsel %vm744_vm15, %v2620_v56, 0.0  ;;  %v2763_v53 = vmul.f32 %v2620_v56, %v2620_v56  ;;  %v2623_v43 = vadd.f32 %v3077_v15, %v2622_v25 }
 0x326   :  { %2712 = vst.msk [vmem:[%s4577_s7 + $0x38] sm:$0xf] %vm269_vm6, %v3016_v3  ;;  %v2738_v63 = vadd.f32 %v2737_v27, %v2736_v45  ;;  %v3017_v11 = vpack.c.bf16 %v2631_v17, %v2631_v17  ;;  %v2766_v35 = vmul.f32 %v2631_v17, %v2631_v17  ;;  %v2743_v2 = vsel %vm744_vm15, %v2631_v17, 0.0 }
 0x327   :  { %2710 = vst.msk [vmem:[%s4577_s7 + $0x30] sm:$0xf] %vm269_vm6, %v3014_v1  ;;  %v2790_v13 = vsel %vm744_vm15, %v2763_v53, 0.0  ;;  %v3015_v46 = vpack.c.bf16 %v2623_v43, %v2623_v43  ;;  %v2739_v30 = vsel %vm744_vm15, %v2623_v43, 0.0  ;;  %v2764_v59 = vmul.f32 %v2623_v43, %v2623_v43 }
 0x328   :  { %v2791_v14 = vadd.f32 %v2790_v13, %v2789_v18  ;;  %2713 = vst.msk [vmem:[%s4577_s7 + $0x3c] sm:$0xf] %vm269_vm6, %v3017_v11  ;;  %v2740_v16 = vadd.f32 %v2739_v30, %v2738_v63  ;;  %v2794_v24 = vsel %vm744_vm15, %v2765_v60, 0.0  ;;  %v2796_v50 = vsel %vm744_vm15, %v2766_v35, 0.0 }
 0x329   :  { %2711 = vst.msk [vmem:[%s4577_s7 + $0x34] sm:$0xf] %vm269_vm6, %v3015_v46  ;;  %v2792_v0 = vsel %vm744_vm15, %v2764_v59, 0.0  ;;  %vm2804_vm6 = vcmask 1040384  }
 0x32a   :  { %v2742_v51 = vadd.f32 %v2741_v39, %v2740_v16  ;;  %v2793_v58 = vadd.f32 %v2792_v0, %v2791_v14 }
 0x32c   :  { %v2744_v23 = vadd.f32 %v2743_v2, %v2742_v51  ;;  %v2795_v9 = vadd.f32 %v2794_v24, %v2793_v58 }
 0x32e   :  { %v2745_v7 = vrot.slane %v2744_v23, 4  ;;  %v2797_v29 = vadd.f32 %v2796_v50, %v2795_v9 }
 0x330   :  { %v2746_v42 = vadd.f32 %v2745_v7, %v2744_v23  ;;  %v2798_v6 = vrot.slane %v2797_v29, 4 }
 0x332   :  { %v2747_v47 = vrot.slane %v2746_v42, 2  ;;  %v2799_v10 = vadd.f32 %v2798_v6, %v2797_v29 }
 0x334   :  { %v2748_v21 = vadd.f32 %v2747_v47, %v2746_v42  ;;  %v2800_v31 = vrot.slane %v2799_v10, 2 }
 0x336   :  { %v2749_v44 = vrot.slane %v2748_v21, 1  ;;  %v2801_v33 = vadd.f32 %v2800_v31, %v2799_v10 }
 0x338   :  { %v2802_v48 = vrot.slane %v2801_v33, 1  ;;  %v2750_v12 = vadd.f32 %v2749_v44, %v2748_v21 }
 0x33a   :  { %v2803_v28 = vadd.f32 %v2802_v48, %v2801_v33 }
 0x33c   :  { %v2805_v54 = vsel %vm2804_vm6, %v2750_v12, %v2803_v28 }
 0x33d   :  { %2807 = vst.msk [vmem:[%s4578_s8] sm:$0x3] %vm2806_vm11, %v2805_v54 }

// kernel: encoder_block_forward.5
= control target key start
LH: loop header
LB: loop body
LE: loop exit
PB: predicated region body
PF: predicated region fallthrough
CT: control target
= control target key end

     0   :  { %vm328_vm0 = vcmask 57344   ;;  %vm339_vm1 = vsmask.f32 256  ;;  %v347_v0 = vld [vmem:[#allocation2 + $0x18] sm:$0x1]  ;;  %vm310_vm5 = vcmask 60416   ;;  %s4480_s0 = inlined_call_operand.vmem [shape: bf16[2,8,8,8], index: 0, kind: input, shape index: {}]   ;;  %s4481_s1 = inlined_call_operand.vmem [shape: f32[2,8], index: 1, kind: input, shape index: {}]   ;;  %s4482_s2 = inlined_call_operand.vmem [shape: bf16[72,8], index: 2, kind: input, shape index: {}]   ;;  %s4483_s3 = inlined_call_operand.vmem [shape: bf16[8,8], index: 3, kind: input, shape index: {}]   ;;  %s4484_s5 = inlined_call_operand.vmem [shape: bf16[2,8,8,8], index: 5, kind: output, shape index: {1}]   ;;  %s4485_s4 = inlined_call_operand.vmem [shape: bf16[2,8,8,8], index: 4, kind: output, shape index: {0}]   ;;  %s4486_s6 = inlined_call_operand.vmem [shape: f32[1,2,8], index: 6, kind: output, shape index: {2}]  }
   0x1   :  { %v3114_v1 = vld [vmem:[%s4480_s0 + $0x8] sm:$0xff]   ;;  %v3294_v2 = vld [vmem:[%s4481_s1] ss:$0 sm:$0xff]  ;;  %v3299_v3 = vld [vmem:[%s4481_s1 + $0x1] ss:$0 sm:$0xff]  ;;  %v3244_v46 = vmov 0  }
   0x2   :  { %v3088_v4 = vunpack.c.l.bf16 %v3114_v1  ;;  %v3089_v5 = vunpack.c.h.bf16 %v3114_v1  ;;  %vm3302_vm2 = vmand %vm328_vm0, %vm339_vm1  ;;  %v350_v7 = vld [vmem:[#allocation2 + $0x20] sm:$0x1]  ;;  %vm389_vm3 = vsmask.f32 7938  ;;  %v341_v14 = vld [vmem:[#allocation2 + $0x8] sm:$0x1] }
   0x3   :  { %v3083_v8 = vld [vmem:[%s4480_s0] sm:$0xff]   ;;  %v348_v9 = vsel %vm3302_vm2, 0, %v347_v0  ;;  %v351_v10 = vsel %vm3302_vm2, 0, %v350_v7  ;;  %vm3315_vm4 = vmand %vm328_vm0, %vm389_vm3  ;;  %v344_v15 = vld [vmem:[#allocation2 + $0x10] sm:$0x1]  ;;  %v342_v18 = vsel %vm3302_vm2, 0, %v341_v14 }
   0x4   :  { %v3084_v12 = vunpack.c.l.bf16 %v3083_v8  ;;  %v3085_v13 = vunpack.c.h.bf16 %v3083_v8  ;;  %v60_v16 = vmul.f32 %v3088_v4, %v3294_v2  ;;  %v61_v17 = vmul.f32 %v3089_v5, %v3294_v2  ;;  %349 = vst [vmem:[#allocation2 + $0x18] sm:$0x1] %v348_v9  ;;  %352 = vst [vmem:[#allocation2 + $0x20] sm:$0x1] %v351_v10  ;;  %v3328_v20 = vld [vmem:[%s4480_s0 + $0x10] sm:$0xff]   ;;  %v3381_v53 = vld [vmem:[%s4480_s0 + $0x18] sm:$0xff]  }
   0x5   :  { %v345_v19 = vsel %vm3302_vm2, 0, %v344_v15  ;;  %v353_v21 = vld [vmem:[#allocation2 + $0x28] sm:$0x1]  ;;  %343 = vst [vmem:[#allocation2 + $0x8] sm:$0x1] %v342_v18  ;;  %v3092_v24 = vunpack.c.l.bf16 %v3328_v20  ;;  %v3093_v39 = vunpack.c.h.bf16 %v3328_v20  ;;  %vm1189_vm6 = vcmask 1042432   ;;  %vm3388_vm7 = vmand %vm310_vm5, %vm389_vm3 }
   0x6   :  { %v58_v22 = vmul.f32 %v3084_v12, %v3294_v2  ;;  %v59_v23 = vmul.f32 %v3085_v13, %v3294_v2  ;;  %346 = vst [vmem:[#allocation2 + $0x10] sm:$0x1] %v345_v19  ;;  %v391_v25 = vld [vmem:[#allocation2 + $0xc] sm:$0x1]  ;;  %v394_v26 = vld [vmem:[#allocation2 + $0x14] sm:$0x1]  ;;  %v81_v27 = vadd.f32 %v3299_v3, %v60_v16  ;;  %v82_v28 = vadd.f32 %v3299_v3, %v61_v17 }
   0x7   :  { %v354_v29 = vsel %vm3302_vm2, 0, %v353_v21  ;;  %v392_v30 = vsel %vm3315_vm4, 0, %v391_v25  ;;  %v62_v33 = vmul.f32 %v3092_v24, %v3294_v2  ;;  %v395_v34 = vsel %vm3315_vm4, 0, %v394_v26  ;;  %v397_v35 = vld [vmem:[#allocation2 + $0x1c] sm:$0x1]  ;;  %s3245_s13 = smov 24  }
   0x8   :  { %v79_v31 = vadd.f32 %v3299_v3, %v58_v22  ;;  %v80_v32 = vadd.f32 %v3299_v3, %v59_v23  ;;  %355 = vst [vmem:[#allocation2 + $0x28] sm:$0x1] %v354_v29  ;;  %393 = vst [vmem:[#allocation2 + $0xc] sm:$0x1] %v392_v30  ;;  %v400_v36 = vld [vmem:[#allocation2 + $0x24] sm:$0x1]  ;;  %v3096_v8 = vunpack.c.l.bf16 %v3381_v53  ;;  %v63_v14 = vmul.f32 %v3093_v39, %v3294_v2 }
   0x9   :  { %v3344_v37 = vmax.f32 %v81_v27, 0.0  ;;  %v3346_v38 = vmax.f32 %v82_v28, 0.0  ;;  %396 = vst [vmem:[#allocation2 + $0x14] sm:$0x1] %v395_v34  ;;  %v403_v40 = vld [vmem:[#allocation2 + $0x2c] sm:$0x1]  ;;  %v83_v43 = vadd.f32 %v3299_v3, %v62_v33 }
   0xa   :  { %v3349_v41 = vmax.f32 %v79_v31, 0.0  ;;  %v3351_v42 = vmax.f32 %v80_v32, 0.0  ;;  %327 = vst.msk [vmem:[#allocation2] sm:$0xf] %vm310_vm5, %v3244_v46  ;;  %330 = vst.msk [vmem:[#allocation2 + $0x50] sm:$0xf] %vm310_vm5, %v3244_v46 }
   0xb   :  { %v3052_v44 = vpack.c.bf16 %v3344_v37, %v3344_v37  ;;  %v3053_v45 = vpack.c.bf16 %v3346_v38, %v3346_v38  ;;  %329 = vst.msk [vmem:[#allocation2 + $0x4] sm:$0x1] %vm328_vm0, %v3244_v46  ;;  %331 = vst.msk [vmem:[#allocation2 + $0x54] sm:$0x1] %vm328_vm0, %v3244_v46  ;;  %v398_v47 = vsel %vm3315_vm4, 0, %v397_v35  ;;  %v401_v48 = vsel %vm3315_vm4, 0, %v400_v36 }
   0xc   :  { %333 = vst.msk [vmem:[#allocation2 + $0x48] sm:$0xf] %vm310_vm5, %v3244_v46  ;;  %335 = vst.msk [vmem:[#allocation2 + $0x98] sm:$0xf] %vm310_vm5, %v3244_v46  ;;  %v3050_v49 = vpack.c.bf16 %v3349_v41, %v3349_v41  ;;  %v3051_v50 = vpack.c.bf16 %v3351_v42, %v3351_v42  ;;  %v3374_v51 = vmax.f32 %v83_v43, 0.0  ;;  %v404_v52 = vsel %vm3315_vm4, 0, %v403_v40 }
   0xd   :  { %334 = vst.msk [vmem:[#allocation2 + $0x4c] sm:$0x1] %vm328_vm0, %v3244_v46  ;;  %336 = vst.msk [vmem:[#allocation2 + $0x9c] sm:$0x1] %vm328_vm0, %v3244_v46  ;;  %v496_v54 = vshrl.u32 %v3052_v44, 16  ;;  %v499_v55 = vshll.u32 %v3052_v44, 16 }
   0xe   :  { %399 = vst [vmem:[#allocation2 + $0x1c] sm:$0x1] %v398_v47  ;;  %402 = vst [vmem:[#allocation2 + $0x24] sm:$0x1] %v401_v48  ;;  %v504_v56 = vshrl.u32 %v3053_v45, 16  ;;  %v507_v57 = vshll.u32 %v3053_v45, 16  ;;  %v3054_v7 = vpack.c.bf16 %v3374_v51, %v3374_v51 }
   0xf   :  { %405 = vst [vmem:[#allocation2 + $0x2c] sm:$0x1] %v404_v52  ;;  %v356_v58 = vld [vmem:[#allocation2 + $0x30] sm:$0x1]  ;;  %v653_v59 = vld [vmem:[#allocation2 + $0x18] sm:$0xf]  ;;  %v84_v52 = vadd.f32 %v3299_v3, %v63_v14 }
  0x10   :  { %v480_v60 = vshrl.u32 %v3050_v49, 16  ;;  %v483_v61 = vshll.u32 %v3050_v49, 16  ;;  %v488_v62 = vshrl.u32 %v3051_v50, 16  ;;  %v491_v63 = vshll.u32 %v3051_v50, 16  ;;  %v659_v4 = vld [vmem:[#allocation2 + $0x20] sm:$0xf] }
  0x11   :  { %v498_v0 = vrot.slane %v496_v54, 7  ;;  %v506_v1 = vrot.slane %v504_v56, 7  ;;  %v641_v5 = vld [vmem:[#allocation2 + $0x8] sm:$0xf]  ;;  %v647_v13 = vld [vmem:[#allocation2 + $0x10] sm:$0xf]  ;;  %v64_v50 = vmul.f32 %v3096_v8, %v3294_v2 }
  0x12   :  { %v482_v10 = vrot.slane %v480_v60, 7  ;;  %v490_v12 = vrot.slane %v488_v62, 7  ;;  %v357_v15 = vsel %vm3302_vm2, 0, %v356_v58  ;;  %v644_v20 = vld [vmem:[#allocation2 + $0xc] sm:$0x1]  ;;  %v512_v29 = vshrl.u32 %v3054_v7, 16 }
  0x13   :  { %v501_v16 = vor.u32 %v499_v55, %v498_v0  ;;  %v502_v17 = vrot.slane %v498_v0, 4  ;;  %v509_v18 = vor.u32 %v507_v57, %v506_v1  ;;  %v510_v19 = vrot.slane %v506_v1, 4  ;;  %v650_v21 = vld [vmem:[#allocation2 + $0x14] sm:$0x1]  ;;  %358 = vst [vmem:[#allocation2 + $0x30] sm:$0x1] %v357_v15 }
  0x14   :  { %v485_v22 = vor.u32 %v483_v61, %v482_v10  ;;  %v486_v23 = vrot.slane %v482_v10, 4  ;;  %v493_v24 = vor.u32 %v491_v63, %v490_v12  ;;  %v494_v25 = vrot.slane %v490_v12, 4  ;;  %v359_v26 = vld [vmem:[#allocation2 + $0x38] sm:$0x1]  ;;  %v665_v35 = vld [vmem:[#allocation2 + $0x28] sm:$0xf] }
  0x15   :  { %v654_v27 = vsel %vm3388_vm7, %v501_v16, %v653_v59  ;;  %v660_v28 = vsel %vm3388_vm7, %v509_v18, %v659_v4  ;;  %v515_v30 = vshll.u32 %v3054_v7, 16  ;;  %v656_v31 = vld [vmem:[#allocation2 + $0x1c] sm:$0x1]  ;;  %v662_v32 = vld [vmem:[#allocation2 + $0x24] sm:$0x1]  ;;  %v514_v44 = vrot.slane %v512_v29, 7 }
  0x16   :  { %655 = vst [vmem:[#allocation2 + $0x18] sm:$0xf] %v654_v27  ;;  %661 = vst [vmem:[#allocation2 + $0x20] sm:$0xf] %v660_v28  ;;  %v642_v33 = vsel %vm3388_vm7, %v485_v22, %v641_v5  ;;  %v648_v34 = vsel %vm3388_vm7, %v493_v24, %v647_v13  ;;  %v645_v36 = vsel %vm3302_vm2, %v486_v23, %v644_v20  ;;  %v406_v40 = vld [vmem:[#allocation2 + $0x34] sm:$0x1]  ;;  %v3097_v27 = vunpack.c.h.bf16 %v3381_v53 }
  0x17   :  { %v651_v39 = vsel %vm3302_vm2, %v494_v25, %v650_v21  ;;  %v409_v43 = vld [vmem:[#allocation2 + $0x3c] sm:$0x1]  ;;  %643 = vst [vmem:[#allocation2 + $0x8] sm:$0xf] %v642_v33  ;;  %649 = vst [vmem:[#allocation2 + $0x10] sm:$0xf] %v648_v34  ;;  %v657_v46 = vsel %vm3302_vm2, %v502_v17, %v656_v31  ;;  %v663_v48 = vsel %vm3302_vm2, %v510_v19, %v662_v32 }
  0x18   :  { %646 = vst [vmem:[#allocation2 + $0xc] sm:$0x1] %v645_v36  ;;  %652 = vst [vmem:[#allocation2 + $0x14] sm:$0x1] %v651_v39  ;;  %vm1190_vm8 = vcmask 1046532   ;;  %v360_v54 = vsel %vm3302_vm2, 0, %v359_v26  ;;  %v517_v55 = vor.u32 %v515_v30, %v514_v44  ;;  %v85_v61 = vadd.f32 %v3299_v3, %v64_v50 }
  0x19   :  { %v1125_v45 = vld [vmem:[#allocation2] sm:$0xe]  ;;  %v1126_v47 = vld [vmem:[#allocation2 + $0x4] sm:$0x1]  ;;  %658 = vst [vmem:[#allocation2 + $0x1c] sm:$0x1] %v657_v46  ;;  %vm3432_vm9 = vmor %vm1189_vm6, %vm1190_vm8 }
  0x1a   :  { %v668_v49 = vld [vmem:[#allocation2 + $0x2c] sm:$0x1]  ;;  %v518_v56 = vrot.slane %v514_v44, 4  ;;  %664 = vst [vmem:[#allocation2 + $0x24] sm:$0x1] %v663_v48  ;;  %v407_v57 = vsel %vm3315_vm4, 0, %v406_v40  ;;  %v666_v63 = vsel %vm3388_vm7, %v517_v55, %v665_v35 }
  0x1b   :  { %361 = vst [vmem:[#allocation2 + $0x38] sm:$0x1] %v360_v54  ;;  %v3417_v58 = vld [vmem:[#allocation2] sm:$0xf]  ;;  %v3419_v59 = vld [vmem:[#allocation2 + $0x4] sm:$0x1] }
  0x1c   :  { %v2901_v60 = vrot.slane %v1125_v45, 9  ;;  %408 = vst [vmem:[#allocation2 + $0x34] sm:$0x1] %v407_v57  ;;  %v410_v62 = vsel %vm3315_vm4, 0, %v409_v43  ;;  %v1194_v0 = vrot.slane %v1126_v47, 5  ;;  %v669_v1 = vsel %vm3302_vm2, %v518_v56, %v668_v49  ;;  %v3444_v13 = vld [vmem:[%s4480_s0 + $0x20] sm:$0xff]  }
  0x1d   :  { %v3428_v4 = vmax.f32 %v84_v52, 0.0  ;;  %411 = vst [vmem:[#allocation2 + $0x3c] sm:$0x1] %v410_v62  ;;  %667 = vst [vmem:[#allocation2 + $0x28] sm:$0xf] %v666_v63  ;;  %v3436_v7 = vmax.f32 %v85_v61, 0.0  ;;  %v3100_v28 = vunpack.c.l.bf16 %v3444_v13  ;;  %v3101_v33 = vunpack.c.h.bf16 %v3444_v13 }
  0x1e   :  { %670 = vst [vmem:[#allocation2 + $0x2c] sm:$0x1] %v669_v1  ;;  %v845_v8 = vshrl.u32 %v3417_v58, 16  ;;  %v848_v10 = vshll.u32 %v3417_v58, 16  ;;  %v854_v12 = vshll.u32 %v3419_v59, 16  ;;  %v3449_v15 = vld [vmem:[%s4480_s0 + $0x28] sm:$0xff]   ;;  %v1195_v21 = vsel %vm3432_vm9, %v2901_v60, %v1194_v0 }
  0x1f   :  { %4505 = vst [vmem:[#allocation4_spill] sm:$0xff] %v3436_v7  ;;  %v3209_v14 = vld [vmem:[#allocation2 + $0x18] ss:$8 sps:$4 sm:$0xff]   ;;  %v3210_v16 = vld [vmem:[#allocation2 + $0x8] ss:$8 sps:$4 sm:$0xff]   ;;  %v3462_v22 = vpack.c.bf16 %v3428_v4, %v3428_v4  ;;  %v3104_v34 = vunpack.c.l.bf16 %v3449_v15  ;;  %v3472_v43 = vpack.c.bf16 %v3436_v7, %v3436_v7  ;;  %s3246_s16 = smov 48   ;;  %v3105_v47 = vunpack.c.h.bf16 %v3449_v15 }
  0x20   :  { %1371 = vrot.lane.b32.xlu1 %v3209_v14, %s3245_s13  ;;  %v3455_v17 = vld [vmem:[%s4480_s0 + $0x30] sm:$0xff]   ;;  %1369 = vrot.lane.b32.xlu0 %v3210_v16, %s3245_s13  ;;  %v1715_v19 = vld [vmem:[#allocation2 + $0x8] sm:$0xe]  ;;  %v1716_v20 = vld [vmem:[#allocation2 + $0xc] sm:$0x1]  ;;  %v3484_v1 = vmul.f32 %v3097_v27, %v3294_v2  ;;  %s3247_s17 = smov 40  }
  0x21   :  { %v3212_v18 = vld [vmem:[#allocation2 + $0x10] ss:$8 sps:$4 sm:$0xff]   ;;  %v1718_v24 = vld [vmem:[#allocation2 + $0x14] sm:$0x1]  ;;  %v2941_v25 = vrot.slane %v1715_v19, 9  ;;  %v1781_v26 = vrot.slane %v1716_v20, 5  ;;  %v3108_v48 = vunpack.c.l.bf16 %v3455_v17  ;;  %v3109_v49 = vunpack.c.h.bf16 %v3455_v17 }
  0x22   :  { %v1717_v23 = vld [vmem:[#allocation2 + $0x10] sm:$0xe]  ;;  %v1785_v30 = vrot.slane %v1718_v24, 5  ;;  %v1127_v31 = vld [vmem:[#allocation2 + $0x8] sm:$0xe]  ;;  %s3248_s18 = smov 16  }
  0x23   :  { %v2942_v29 = vrot.slane %v1717_v23, 9  ;;  %v1128_v32 = vld [vmem:[#allocation2 + $0xc] sm:$0x1]  ;;  %v1782_v36 = vsel %vm3432_vm9, %v2941_v25, %v1781_v26  ;;  %v2902_v39 = vrot.slane %v1127_v31, 9  ;;  %v2303_v44 = vld [vmem:[#allocation2 + $0x10] sm:$0xe]  ;;  %v3493_v26 = vmul.f32 %v3100_v28, %v3294_v2 }
  0x24   :  { %v3211_v35 = vld [vmem:[#allocation2 + $0x20] ss:$8 sps:$4 sm:$0xff]   ;;  %v1198_v40 = vrot.slane %v1128_v32, 5  ;;  %1957 = vrot.lane.b32.xlu0 %v3212_v18, %s3246_s16  ;;  %v2304_v45 = vld [vmem:[#allocation2 + $0x14] sm:$0x1]  ;;  %v2981_v55 = vrot.slane %v2303_v44, 9  ;;  %v3501_v28 = vmul.f32 %v3101_v33, %v3294_v2  ;;  %v3511_v33 = vmul.f32 %v3104_v34, %v3294_v2 }
  0x25   :  { %v1786_v53 = vsel %vm3432_vm9, %v2942_v29, %v1785_v30  ;;  %v2305_v46 = vld [vmem:[#allocation2 + $0x18] sm:$0xe]  ;;  %1959 = vrot.lane.b32.xlu1 %v3211_v35, %s3246_s16  ;;  %v2306_v54 = vld [vmem:[#allocation2 + $0x1c] sm:$0x1]  ;;  %v2369_v56 = vrot.slane %v2304_v45, 5  ;;  %v520_v25 = vshrl.u32 %v3462_v22, 16 }
  0x26   :  { %v2957_v50 = vcombine.low %v1782_v36, %v1786_v53  ;;  %v1199_v52 = vsel %vm3432_vm9, %v2902_v39, %v1198_v40  ;;  %v1129_v57 = vld [vmem:[#allocation2 + $0x10] sm:$0xe]  ;;  %v2982_v61 = vrot.slane %v2305_v46, 9  ;;  %v2373_v62 = vrot.slane %v2306_v54, 5  ;;  %v1130_v63 = vld [vmem:[#allocation2 + $0x14] sm:$0x1] }
  0x27   :  { %v2917_v60 = vcombine.low %v1195_v21, %v1199_v52  ;;  %v1131_v0 = vld [vmem:[#allocation2 + $0x18] sm:$0xe]  ;;  %v2370_v13 = vsel %vm3432_vm9, %v2981_v55, %v2369_v56  ;;  %v1132_v14 = vld [vmem:[#allocation2 + $0x1c] sm:$0x1]  ;;  %v2903_v16 = vrot.slane %v1129_v57, 9  ;;  %v1202_v18 = vrot.slane %v1130_v63, 5 }
  0x28   :  { %v2904_v19 = vrot.slane %v1131_v0, 9  ;;  %1867 = vrot.lane.b32.xlu0 %v2957_v50, %s3247_s17  ;;  %v2374_v20 = vsel %vm3432_vm9, %v2982_v61, %v2373_v62  ;;  %v1206_v21 = vrot.slane %v1132_v14, 5  ;;  %v2307_v23 = vld [vmem:[#allocation2 + $0x20] sm:$0xe]  ;;  %v2308_v24 = vld [vmem:[#allocation2 + $0x24] sm:$0x1] }
  0x29   :  { %1280 = vrot.lane.b32.xlu1 %v2917_v60, %s3248_s18  ;;  %v2997_v27 = vcombine.low %v2370_v13, %v2374_v20  ;;  %v1203_v29 = vsel %vm3432_vm9, %v2903_v16, %v1202_v18  ;;  %v2309_v30 = vld [vmem:[#allocation2 + $0x28] sm:$0xe]  ;;  %v2310_v31 = vld [vmem:[#allocation2 + $0x2c] sm:$0x1]  ;;  %v2983_v32 = vrot.slane %v2307_v23, 9  ;;  %v2377_v35 = vrot.slane %v2308_v24, 5 }
  0x2a   :  { %v1207_v36 = vsel %vm3432_vm9, %v2904_v19, %v1206_v21  ;;  %v2984_v39 = vrot.slane %v2309_v30, 9  ;;  %v2381_v40 = vrot.slane %v2310_v31, 5  ;;  %v1719_v53 = vld [vmem:[#allocation2 + $0x18] sm:$0xe]  ;;  %v1720_v44 = vld [vmem:[#allocation2 + $0x1c] sm:$0x1] }
  0x2b   :  { %v2918_v45 = vcombine.low %v1203_v29, %v1207_v36  ;;  %v2378_v46 = vsel %vm3432_vm9, %v2983_v32, %v2377_v35  ;;  %v1721_v50 = vld [vmem:[#allocation2 + $0x20] sm:$0xe]  ;;  %v1722_v52 = vld [vmem:[#allocation2 + $0x24] sm:$0x1]  ;;  %v2943_v54 = vrot.slane %v1719_v53, 9  ;;  %v1789_v55 = vrot.slane %v1720_v44, 5 }
  0x2c   :  { %s3249_s19 = smov 64   ;;  %v2382_v56 = vsel %vm3432_vm9, %v2984_v39, %v2381_v40  ;;  %v2944_v57 = vrot.slane %v1721_v50, 9  ;;  %v1793_v60 = vrot.slane %v1722_v52, 5  ;;  %v1133_v61 = vld [vmem:[#allocation2 + $0x20] sm:$0xe]  ;;  %v522_v23 = vrot.slane %v520_v25, 7 }
  0x2d   :  { %2455 = vrot.lane.b32.xlu0 %v2997_v27, %s3249_s19  ;;  %v1134_v62 = vld [vmem:[#allocation2 + $0x24] sm:$0x1]  ;;  %vm841_vm10 = vsmask.f32 3328  ;;  %vm842_vm11 = vsmask.f32 7440  ;;  %1282 = vrot.lane.b32.xlu1 %v2918_v45, %s3248_s18  ;;  %v2998_v63 = vcombine.low %v2378_v46, %v2382_v56  ;;  %v1790_v0 = vsel %vm3432_vm9, %v2943_v54, %v1789_v55 }
  0x2e   :  { %v1135_v13 = vld [vmem:[#allocation2 + $0x28] sm:$0xe]  ;;  %v1136_v14 = vld [vmem:[#allocation2 + $0x2c] sm:$0x1]  ;;  %v2905_v16 = vrot.slane %v1133_v61, 9  ;;  %v1210_v18 = vrot.slane %v1134_v62, 5  ;;  %v1794_v19 = vsel %vm3432_vm9, %v2944_v57, %v1793_v60  ;;  %v3529_v53 = vmul.f32 %v3105_v47, %v3294_v2  ;;  %vm3549_vm12 = vmor %vm841_vm10, %vm842_vm11 }
  0x2f   :  { %v2906_v20 = vrot.slane %v1135_v13, 9  ;;  %v1214_v21 = vrot.slane %v1136_v14, 5  ;;  %v2958_v24 = vcombine.low %v1790_v0, %v1794_v19  ;;  %v523_v27 = vshll.u32 %v3462_v22, 16  ;;  %v671_v30 = vld [vmem:[#allocation2 + $0x30] sm:$0xf]  ;;  %s3250_s20 = smov 8  }
  0x30   :  { %v1211_v34 = vsel %vm3432_vm9, %v2905_v16, %v1210_v18  ;;  %v528_v29 = vshrl.u32 %v3472_v43, 16  ;;  %v674_v31 = vld [vmem:[#allocation2 + $0x34] sm:$0x1]  ;;  %v526_v35 = vrot.slane %v522_v23, 4  ;;  %v531_v36 = vshll.u32 %v3472_v43, 16  ;;  %s3251_s21 = smov 32  }
  0x31   :  { %2457 = vrot.lane.b32.xlu0 %v2998_v63, %s3249_s19  ;;  %v1215_v32 = vsel %vm3432_vm9, %v2906_v20, %v1214_v21  ;;  %v677_v39 = vld [vmem:[#allocation2 + $0x38] sm:$0xf]  ;;  %v1407_v40 = vld [vmem:[#allocation2 + $0x1c] sm:$0x1]  ;;  %1869 = vrot.lane.b32.xlu1 %v2958_v24, %s3247_s17  ;;  %v525_v44 = vor.u32 %v523_v27, %v522_v23  ;;  %v1408_v50 = vld [vmem:[#allocation2 + $0x20] sm:$0xf] }
  0x32   :  { %v1406_v25 = vld [vmem:[#allocation2 + $0x18] sm:$0xf]  ;;  %v2919_v22 = vcombine.low %v1211_v34, %v1215_v32  ;;  %v530_v45 = vrot.slane %v528_v29, 7  ;;  %v680_v46 = vld [vmem:[#allocation2 + $0x3c] sm:$0x1]  ;;  %v675_v54 = vsel %vm3302_vm2, %v526_v35, %v674_v31  ;;  %v1472_v56 = vshll.u32 %v1407_v40, 16 }
  0x33   :  { %v1463_v52 = vshrl.u32 %v1406_v25, 16  ;;  %v1409_v43 = vld [vmem:[#allocation2 + $0x24] sm:$0x1]  ;;  %v1466_v55 = vshll.u32 %v1406_v25, 16  ;;  %v1477_v57 = vshrl.u32 %v1408_v50, 16  ;;  %v672_v2 = vsel %vm3388_vm7, %v525_v44, %v671_v30  ;;  %s3252_s22 = smov 56  }
  0x34   :  { %v533_v60 = vor.u32 %v531_v36, %v530_v45  ;;  %v534_v61 = vrot.slane %v530_v45, 4  ;;  %676 = vst [vmem:[#allocation2 + $0x34] sm:$0x1] %v675_v54  ;;  %v811_v47 = vld [vmem:[#allocation2 + $0x8] sm:$0xf]  ;;  %v1474_v63 = vrot.slane %v1472_v56, 5 }
  0x35   :  { %v1465_v15 = vrot.slane %v1463_v52, 4  ;;  %1284 = vrot.lane.b32.xlu0 %v2919_v22, %s3248_s18  ;;  %673 = vst [vmem:[#allocation2 + $0x30] sm:$0xf] %v672_v2  ;;  %v1468_v62 = vrot.slane %v1466_v55, 5  ;;  %v1479_v0 = vrot.slane %v1477_v57, 4  ;;  %v1480_v13 = vshll.u32 %v1408_v50, 16 }
  0x36   :  { %v812_v14 = vld [vmem:[#allocation2 + $0xc] sm:$0x1]  ;;  %v678_v16 = vsel %vm3388_vm7, %v533_v60, %v677_v39  ;;  %v681_v18 = vsel %vm3302_vm2, %v534_v61, %v680_v46  ;;  %v1486_v19 = vshll.u32 %v1409_v43, 16  ;;  %v847_v20 = vrot.slane %v845_v8, 4  ;;  %v1994_v21 = vld [vmem:[#allocation2 + $0x20] sm:$0xf] }
  0x37   :  { %679 = vst [vmem:[#allocation2 + $0x38] sm:$0xf] %v678_v16  ;;  %682 = vst [vmem:[#allocation2 + $0x3c] sm:$0x1] %v681_v18  ;;  %v1469_v23 = vor.u32 %v1468_v62, %v1465_v15  ;;  %v1482_v24 = vrot.slane %v1480_v13, 5  ;;  %v850_v34 = vrot.slane %v848_v10, 5 }
  0x38   :  { %v856_v27 = vrot.slane %v854_v12, 5  ;;  %v1488_v30 = vrot.slane %v1486_v19, 5  ;;  %v859_v31 = vshrl.u32 %v811_v47, 16  ;;  %v862_v8 = vshll.u32 %v811_v47, 16  ;;  %v1995_v25 = vld [vmem:[#allocation2 + $0x24] sm:$0x1] }
  0x39   :  { %v868_v32 = vshll.u32 %v812_v14, 16  ;;  %v1470_v35 = vrot.slane %v1469_v23, 4  ;;  %v1483_v36 = vor.u32 %v1482_v24, %v1479_v0  ;;  %v851_v39 = vor.u32 %v850_v34, %v847_v20  ;;  %v1996_v59 = vld [vmem:[#allocation2 + $0x28] sm:$0xf]  ;;  %v1997_v15 = vld [vmem:[#allocation2 + $0x2c] sm:$0x1] }
  0x3a   :  { %v2051_v40 = vshrl.u32 %v1994_v21, 16  ;;  %v861_v58 = vrot.slane %v859_v31, 4  ;;  %v864_v10 = vrot.slane %v862_v8, 5  ;;  %v2054_v12 = vshll.u32 %v1994_v21, 16  ;;  %v813_v62 = vld [vmem:[#allocation2 + $0x10] sm:$0xf] }
  0x3b   :  { %v870_v22 = vrot.slane %v868_v32, 5  ;;  %v1138_v44 = vld [vmem:[#allocation2 + $0x34] sm:$0x1]  ;;  %v1475_v45 = vsel %vm3549_vm12, %v1470_v35, %v1474_v63  ;;  %v1484_v46 = vrot.slane %v1483_v36, 4  ;;  %v852_v50 = vrot.slane %v851_v39, 4 }
  0x3c   :  { %v2053_v52 = vrot.slane %v2051_v40, 4  ;;  %v1137_v54 = vld [vmem:[#allocation2 + $0x30] sm:$0xe]  ;;  %v1218_v43 = vrot.slane %v1138_v44, 5  ;;  %v865_v55 = vor.u32 %v864_v10, %v861_v58  ;;  %v2056_v56 = vrot.slane %v2054_v12, 5 }
  0x3d   :  { %v2060_v57 = vshll.u32 %v1995_v25, 16  ;;  %v2907_v60 = vrot.slane %v1137_v54, 9  ;;  %v1489_v61 = vsel %vm3549_vm12, %v1484_v46, %v1488_v30  ;;  %v857_v2 = vsel %vm3549_vm12, %v852_v50, %v856_v27  ;;  %v814_v24 = vld [vmem:[#allocation2 + $0x14] sm:$0x1]  ;;  %v815_v8 = vld [vmem:[#allocation2 + $0x18] sm:$0xf] }
  0x3e   :  { %v2065_v47 = vshrl.u32 %v1996_v59, 16  ;;  %v1139_v0 = vld [vmem:[#allocation2 + $0x38] sm:$0xe]  ;;  %v1140_v63 = vld [vmem:[#allocation2 + $0x3c] sm:$0x1]  ;;  %v2934_v13 = vcombine.low %v1475_v45, %v1489_v61  ;;  %v866_v14 = vrot.slane %v865_v55, 4  ;;  %v2057_v16 = vor.u32 %v2056_v56, %v2053_v52 }
  0x3f   :  { %v2062_v18 = vrot.slane %v2060_v57, 5  ;;  %v1219_v19 = vsel %vm3432_vm9, %v2907_v60, %v1218_v43  ;;  %v2908_v20 = vrot.slane %v1139_v0, 9  ;;  %v1222_v21 = vrot.slane %v1140_v63, 5  ;;  %v816_v36 = vld [vmem:[#allocation2 + $0x1c] sm:$0x1] }
  0x40   :  { %v2067_v23 = vrot.slane %v2065_v47, 4  ;;  %v871_v34 = vsel %vm3549_vm12, %v866_v14, %v870_v22  ;;  %v2058_v27 = vrot.slane %v2057_v16, 4  ;;  %v2068_v30 = vshll.u32 %v1996_v59, 16  ;;  %v817_v40 = vld [vmem:[#allocation2 + $0x20] sm:$0xf] }
  0x41   :  { %v2074_v31 = vshll.u32 %v1997_v15, 16  ;;  %v1223_v32 = vsel %vm3432_vm9, %v2908_v20, %v1222_v21  ;;  %v2893_v35 = vcombine.low %v857_v2, %v871_v34  ;;  %v873_v39 = vshrl.u32 %v813_v62, 16  ;;  %v818_v50 = vld [vmem:[#allocation2 + $0x24] sm:$0x1]  ;;  %v819_v55 = vld [vmem:[#allocation2 + $0x28] sm:$0xf] }
  0x42   :  { %v876_v25 = vshll.u32 %v813_v62, 16  ;;  %v2920_v58 = vcombine.low %v1219_v19, %v1223_v32  ;;  %v2063_v10 = vsel %vm3549_vm12, %v2058_v27, %v2062_v18  ;;  %v2070_v12 = vrot.slane %v2068_v30, 5  ;;  %v820_v2 = vld [vmem:[#allocation2 + $0x2c] sm:$0x1]  ;;  %v1402_v20 = vld [vmem:[#allocation2 + $0x8] sm:$0xf] }
  0x43   :  { %v2076_v44 = vrot.slane %v2074_v31, 5  ;;  %1092 = vrot.lane.b32.xlu0 %v2893_v35, %s3250_s20  ;;  %v875_v22 = vrot.slane %v873_v39, 4  ;;  %v882_v45 = vshll.u32 %v814_v24, 16  ;;  %v887_v46 = vshrl.u32 %v815_v8, 16  ;;  %v1403_v27 = vld [vmem:[#allocation2 + $0xc] sm:$0x1] }
  0x44   :  { %v878_v59 = vrot.slane %v876_v25, 5  ;;  %1286 = vrot.lane.b32.xlu1 %v2920_v58, %s3248_s18  ;;  %v2071_v52 = vor.u32 %v2070_v12, %v2067_v23  ;;  %v890_v54 = vshll.u32 %v815_v8, 16  ;;  %v896_v43 = vshll.u32 %v816_v36, 16  ;;  %v1404_v30 = vld [vmem:[#allocation2 + $0x10] sm:$0xf] }
  0x45   :  { %v901_v56 = vshrl.u32 %v817_v40, 16  ;;  %v884_v60 = vrot.slane %v882_v45, 5  ;;  %v889_v61 = vrot.slane %v887_v46, 4  ;;  %v904_v15 = vshll.u32 %v817_v40, 16  ;;  %v4002_v11 = vld [vmem:[%s4483_s3] sm:$0xf] }
  0x46   :  { %v879_v57 = vor.u32 %v878_v59, %v875_v22  ;;  %v2072_v47 = vrot.slane %v2071_v52, 4  ;;  %v892_v62 = vrot.slane %v890_v54, 5  ;;  %v898_v0 = vrot.slane %v896_v43, 5  ;;  %v1405_v59 = vld [vmem:[#allocation2 + $0x14] sm:$0x1] }
  0x47   :  { %v903_v63 = vrot.slane %v901_v56, 4  ;;  %v906_v16 = vrot.slane %v904_v15, 5  ;;  %v910_v18 = vshll.u32 %v818_v50, 16  ;;  %v915_v19 = vshrl.u32 %v819_v55, 16  ;;  %v821_v50 = vld [vmem:[#allocation2 + $0x30] sm:$0xf] }
  0x48   :  { %v880_v14 = vrot.slane %v879_v57, 4  ;;  %1684 = vrot.lane.b32.xlu1 %v2934_v13, %s3251_s21  ;;  %v2077_v21 = vsel %vm3549_vm12, %v2072_v47, %v2076_v44  ;;  %v893_v23 = vor.u32 %v892_v62, %v889_v61  ;;  %v918_v24 = vshll.u32 %v819_v55, 16  ;;  %v822_v56 = vld [vmem:[#allocation2 + $0x34] sm:$0x1]  ;;  %v823_v57 = vld [vmem:[#allocation2 + $0x38] sm:$0xf] }
  0x49   :  { %v924_v34 = vshll.u32 %v820_v2, 16  ;;  %v2974_v31 = vcombine.low %v2063_v10, %v2077_v21  ;;  %v907_v32 = vor.u32 %v906_v16, %v903_v63  ;;  %v912_v35 = vrot.slane %v910_v18, 5  ;;  %v824_v18 = vld [vmem:[#allocation2 + $0x3c] sm:$0x1]  ;;  %v1990_v21 = vld [vmem:[#allocation2 + $0x10] sm:$0xf] }
  0x4a   :  { %v885_v8 = vsel %vm3549_vm12, %v880_v14, %v884_v60  ;;  %v894_v36 = vrot.slane %v893_v23, 4  ;;  %v917_v39 = vrot.slane %v915_v19, 4  ;;  %v920_v25 = vrot.slane %v918_v24, 5 }
  0x4b   :  { %v926_v40 = vrot.slane %v924_v34, 5  ;;  %v908_v58 = vrot.slane %v907_v32, 4  ;;  %v1435_v13 = vshrl.u32 %v1402_v20, 16  ;;  %v1438_v12 = vshll.u32 %v1402_v20, 16 }
  0x4c   :  { %v1444_v22 = vshll.u32 %v1403_v27, 16  ;;  %2272 = vrot.lane.b32.xlu1 %v2974_v31, %s3252_s22  ;;  %v899_v44 = vsel %vm3549_vm12, %v894_v36, %v898_v0  ;;  %v921_v10 = vor.u32 %v920_v25, %v917_v39  ;;  %v1449_v45 = vshrl.u32 %v1404_v30, 16 }
  0x4d   :  { %v1452_v46 = vshll.u32 %v1404_v30, 16  ;;  %v2894_v52 = vcombine.low %v885_v8, %v899_v44  ;;  %v913_v54 = vsel %vm3549_vm12, %v908_v58, %v912_v35  ;;  %v1437_v43 = vrot.slane %v1435_v13, 4  ;;  %v1991_v30 = vld [vmem:[#allocation2 + $0x14] sm:$0x1]  ;;  %v362_v13 = vld [vmem:[#allocation2 + $0x40] sm:$0x1] }
  0x4e   :  { %v1440_v55 = vrot.slane %v1438_v12, 5  ;;  %v922_v60 = vrot.slane %v921_v10, 4  ;;  %v1446_v61 = vrot.slane %v1444_v22, 5  ;;  %v1451_v2 = vrot.slane %v1449_v45, 4  ;;  %v1993_v44 = vld [vmem:[#allocation2 + $0x1c] sm:$0x1] }
  0x4f   :  { %v1454_v15 = vrot.slane %v1452_v46, 5  ;;  %1094 = vrot.lane.b32.xlu0 %v2894_v52, %s3250_s20  ;;  %v1458_v62 = vshll.u32 %v1405_v59, 16  ;;  %v929_v0 = vshrl.u32 %v821_v50, 16  ;;  %v932_v63 = vshll.u32 %v821_v50, 16 }
  0x50   :  { %v1441_v47 = vor.u32 %v1440_v55, %v1437_v43  ;;  %v927_v14 = vsel %vm3549_vm12, %v922_v60, %v926_v40  ;;  %v938_v19 = vshll.u32 %v822_v56, 16  ;;  %v943_v20 = vshrl.u32 %v823_v57, 16  ;;  %v1992_v40 = vld [vmem:[#allocation2 + $0x18] sm:$0xf] }
  0x51   :  { %v1455_v16 = vor.u32 %v1454_v15, %v1451_v2  ;;  %v2895_v23 = vcombine.low %v913_v54, %v927_v14  ;;  %v1460_v34 = vrot.slane %v1458_v62, 5  ;;  %v931_v27 = vrot.slane %v929_v0, 4 }
  0x52   :  { %v1442_v24 = vrot.slane %v1441_v47, 4  ;;  %v934_v8 = vrot.slane %v932_v63, 5  ;;  %v945_v32 = vrot.slane %v943_v20, 4  ;;  %v86_v35 = vadd.f32 %v3299_v3, %v3484_v1 }
  0x53   :  { %v1456_v31 = vrot.slane %v1455_v16, 4  ;;  %1096 = vrot.lane.b32.xlu1 %v2895_v23, %s3250_s20  ;;  %v946_v39 = vshll.u32 %v823_v57, 16  ;;  %v952_v25 = vshll.u32 %v824_v18, 16  ;;  %v2023_v58 = vshrl.u32 %v1990_v21, 16  ;;  %v1411_v18 = vld [vmem:[#allocation2 + $0x2c] sm:$0x1] }
  0x54   :  { %v1447_v36 = vsel %vm3549_vm12, %v1442_v24, %v1446_v61  ;;  %v935_v22 = vor.u32 %v934_v8, %v931_v27  ;;  %v2026_v10 = vshll.u32 %v1990_v21, 16  ;;  %v2032_v59 = vshll.u32 %v1991_v30, 16  ;;  %v1410_v61 = vld [vmem:[#allocation2 + $0x28] sm:$0xf]  ;;  %v1412_v21 = vld [vmem:[#allocation2 + $0x30] sm:$0xf] }
  0x55   :  { %v1461_v12 = vsel %vm3549_vm12, %v1456_v31, %v1460_v34  ;;  %v940_v46 = vrot.slane %v938_v19, 5  ;;  %v948_v3 = vrot.slane %v946_v39, 5  ;;  %v2025_v1 = vrot.slane %v2023_v58, 4  ;;  %v1413_v8 = vld [vmem:[#allocation2 + $0x34] sm:$0x1] }
  0x56   :  { %v2933_v45 = vcombine.low %v1447_v36, %v1461_v12  ;;  %v936_v50 = vrot.slane %v935_v22, 4  ;;  %v954_v52 = vrot.slane %v952_v25, 5  ;;  %v2028_v54 = vrot.slane %v2026_v10, 5 }
  0x57   :  { %v2037_v43 = vshrl.u32 %v1992_v40, 16  ;;  %v949_v55 = vor.u32 %v948_v3, %v945_v32  ;;  %v2040_v56 = vshll.u32 %v1992_v40, 16  ;;  %v2046_v57 = vshll.u32 %v1993_v44, 16  ;;  %v412_v32 = vld [vmem:[#allocation2 + $0x44] sm:$0x1] }
  0x58   :  { %1682 = vrot.lane.b32.xlu0 %v2933_v45, %s3251_s21  ;;  %v3590_v60 = vmax.f32 %v86_v35, 0.0  ;;  %v2029_v2 = vor.u32 %v2028_v54, %v2025_v1  ;;  %v2034_v15 = vrot.slane %v2032_v59, 5  ;;  %v363_v62 = vsel %vm3302_vm2, 0, %v362_v13  ;;  %v1414_v40 = vld [vmem:[#allocation2 + $0x38] sm:$0xf] }
  0x59   :  { %v2039_v47 = vrot.slane %v2037_v43, 4  ;;  %v941_v0 = vsel %vm3549_vm12, %v936_v50, %v940_v46  ;;  %v950_v63 = vrot.slane %v949_v55, 4  ;;  %v2042_v14 = vrot.slane %v2040_v56, 5  ;;  %364 = vst [vmem:[#allocation2 + $0x40] sm:$0x1] %v363_v62 }
  0x5a   :  { %4508 = vst [vmem:[#allocation5_spill] sm:$0xff] %v3590_v60  ;;  %v3057_v16 = vpack.c.bf16 %v3590_v60, %v3590_v60  ;;  %v2030_v19 = vrot.slane %v2029_v2, 4  ;;  %v2048_v20 = vrot.slane %v2046_v57, 5  ;;  %v1491_v23 = vshrl.u32 %v1410_v61, 16  ;;  %v1415_v44 = vld [vmem:[#allocation2 + $0x3c] sm:$0x1] }
  0x5b   :  { %v1494_v24 = vshll.u32 %v1410_v61, 16  ;;  %v955_v34 = vsel %vm3549_vm12, %v950_v63, %v954_v52  ;;  %v2043_v27 = vor.u32 %v2042_v14, %v2039_v47  ;;  %v1500_v25 = vshll.u32 %v1411_v18, 16  ;;  %v1723_v3 = vld [vmem:[#allocation2 + $0x28] sm:$0xe]  ;;  %v1724_v54 = vld [vmem:[#allocation2 + $0x2c] sm:$0x1] }
  0x5c   :  { %v536_v30 = vshrl.u32 %v3057_v16, 16  ;;  %v539_v31 = vshll.u32 %v3057_v16, 16  ;;  %v2896_v35 = vcombine.low %v941_v0, %v955_v34  ;;  %v1493_v36 = vrot.slane %v1491_v23, 4  ;;  %v1725_v43 = vld [vmem:[#allocation2 + $0x30] sm:$0xe] }
  0x5d   :  { %v1496_v39 = vrot.slane %v1494_v24, 5  ;;  %v2035_v58 = vsel %vm3549_vm12, %v2030_v19, %v2034_v15  ;;  %v2044_v13 = vrot.slane %v2043_v27, 4  ;;  %v1505_v22 = vshrl.u32 %v1412_v21, 16  ;;  %v3610_v55 = vld [vmem:[%s4481_s1] ss:$0 sm:$0xff] }
  0x5e   :  { %v538_v12 = vrot.slane %v536_v30, 7  ;;  %1098 = vrot.lane.b32.xlu1 %v2896_v35, %s3250_s20  ;;  %v1508_v59 = vshll.u32 %v1412_v21, 16  ;;  %v1514_v45 = vshll.u32 %v1413_v8, 16  ;;  %v413_v46 = vsel %vm3315_vm4, 0, %v412_v32  ;;  %v3213_v61 = vld [vmem:[#allocation2 + $0x28] ss:$8 sps:$4 sm:$0xff]  }
  0x5f   :  { %v1497_v10 = vor.u32 %v1496_v39, %v1493_v36  ;;  %v2049_v1 = vsel %vm3549_vm12, %v2044_v13, %v2048_v20  ;;  %v1507_v52 = vrot.slane %v1505_v22, 4  ;;  %414 = vst [vmem:[#allocation2 + $0x44] sm:$0x1] %v413_v46  ;;  %v3615_v56 = vmul.f32 %v3610_v55, %v3108_v48  ;;  %v1726_v18 = vld [vmem:[#allocation2 + $0x34] sm:$0x1] }
  0x60   :  { %v541_v50 = vor.u32 %v539_v31, %v538_v12  ;;  %v2973_v57 = vcombine.low %v2035_v58, %v2049_v1  ;;  %v683_v2 = vld [vmem:[#allocation2 + $0x40] sm:$0xf]  ;;  %v1502_v47 = vrot.slane %v1500_v25, 5  ;;  %v1510_v62 = vrot.slane %v1508_v59, 5  ;;  %v1998_v23 = vld [vmem:[#allocation2 + $0x30] sm:$0xf] }
  0x61   :  { %v1498_v15 = vrot.slane %v1497_v10, 4  ;;  %v1519_v63 = vshrl.u32 %v1414_v40, 16  ;;  %v1522_v14 = vshll.u32 %v1414_v40, 16  ;;  %v1528_v16 = vshll.u32 %v1415_v44, 16  ;;  %v3620_v31 = vld [vmem:[#allocation2 + $0x38] sm:$0xe] }
  0x62   :  { %v684_v0 = vsel %vm3388_vm7, %v541_v50, %v683_v2  ;;  %2270 = vrot.lane.b32.xlu0 %v2973_v57, %s3252_s22  ;;  %v1511_v19 = vor.u32 %v1510_v62, %v1507_v52  ;;  %v1516_v20 = vrot.slane %v1514_v45, 5  ;;  %v2945_v48 = vrot.slane %v1723_v3, 9  ;;  %v1999_v36 = vld [vmem:[#allocation2 + $0x34] sm:$0x1]  ;;  %v2000_v39 = vld [vmem:[#allocation2 + $0x38] sm:$0xf] }
  0x63   :  { %685 = vst [vmem:[#allocation2 + $0x40] sm:$0xf] %v684_v0  ;;  %v1797_v21 = vrot.slane %v1724_v54, 5  ;;  %v542_v24 = vrot.slane %v538_v12, 4  ;;  %v1521_v34 = vrot.slane %v1519_v63, 4  ;;  %v1524_v27 = vrot.slane %v1522_v14, 5 }
  0x64   :  { %v2946_v30 = vrot.slane %v1725_v43, 9  ;;  %v1503_v8 = vsel %vm3549_vm12, %v1498_v15, %v1502_v47  ;;  %v1512_v32 = vrot.slane %v1511_v19, 4  ;;  %v1801_v35 = vrot.slane %v1726_v18, 5  ;;  %v1728_v13 = vld [vmem:[#allocation2 + $0x3c] sm:$0x1] }
  0x65   :  { %v3627_v25 = vmul.f32 %v3610_v55, %v3109_v49  ;;  %v1525_v40 = vor.u32 %v1524_v27, %v1521_v34  ;;  %v3629_v58 = vrot.slane %v1528_v16, 5  ;;  %v2079_v12 = vshrl.u32 %v1998_v23, 16  ;;  %v2004_v50 = vld [vmem:[#allocation2 + $0x48] sm:$0xf]  ;;  %v2001_v43 = vld [vmem:[#allocation2 + $0x3c] sm:$0x1] }
  0x66   :  { %v2082_v22 = vshll.u32 %v1998_v23, 16  ;;  %1373 = vrot.lane.b32.xlu0 %v3213_v61, %s3245_s13  ;;  %v1517_v44 = vsel %vm3549_vm12, %v1512_v32, %v1516_v20  ;;  %v686_v10 = vld [vmem:[#allocation2 + $0x44] sm:$0x1]  ;;  %v1798_v59 = vsel %vm3432_vm9, %v2945_v48, %v1797_v21  ;;  %v1802_v17 = vsel %vm3432_vm9, %v2946_v30, %v1801_v35  ;;  %v3646_v47 = vld [vmem:[%s4481_s1 + $0x1] ss:$0 sm:$0xff] }
  0x67   :  { %v2947_v49 = vrot.slane %v3620_v31, 9  ;;  %v2935_v45 = vcombine.low %v1503_v8, %v1517_v44  ;;  %v687_v46 = vsel %vm3302_vm2, %v542_v24, %v686_v10  ;;  %v2088_v3 = vshll.u32 %v1999_v36, 16  ;;  %v3215_v31 = vld [vmem:[#allocation2 + $0x30] ss:$8 sps:$4 sm:$0xff]   ;;  %v2005_v32 = vld [vmem:[#allocation2 + $0x4c] sm:$0x1] }
  0x68   :  { %v2093_v1 = vshrl.u32 %v2000_v39, 16  ;;  %688 = vst [vmem:[#allocation2 + $0x44] sm:$0x1] %v687_v46  ;;  %v3641_v52 = vrot.slane %v1525_v40, 4  ;;  %v1805_v54 = vrot.slane %v1728_v13, 5  ;;  %v2081_v57 = vrot.slane %v2079_v12, 4 }
  0x69   :  { %v2084_v61 = vrot.slane %v2082_v22, 5  ;;  %v3650_v62 = vadd.f32 %v3646_v47, %v3493_v26  ;;  %v3654_v0 = vadd.f32 %v3646_v47, %v3501_v28  ;;  %v3658_v63 = vadd.f32 %v3646_v47, %v3511_v33  ;;  %v2311_v44 = vld [vmem:[#allocation2 + $0x30] sm:$0xe] }
  0x6a   :  { %v3214_v2 = vld [vmem:[#allocation2 + $0x38] ss:$8 sps:$4 sm:$0xff]   ;;  %v3662_v14 = vadd.f32 %v3646_v47, %v3529_v53  ;;  %1686 = vrot.lane.b32.xlu0 %v2935_v45, %s3251_s21  ;;  %v2959_v19 = vcombine.low %v1798_v59, %v1802_v17  ;;  %v2090_v48 = vrot.slane %v2088_v3, 5  ;;  %v2095_v28 = vrot.slane %v2093_v1, 4 }
  0x6b   :  { %v1416_v15 = vld [vmem:[#allocation2 + $0x40] sm:$0xf]  ;;  %v2085_v26 = vor.u32 %v2084_v61, %v2081_v57  ;;  %1375 = vrot.lane.b32.xlu1 %v3214_v2, %s3245_s13  ;;  %v2096_v21 = vshll.u32 %v2000_v39, 16  ;;  %v2102_v23 = vshll.u32 %v2001_v43, 16  ;;  %v2121_v30 = vshrl.u32 %v2004_v50, 16 }
  0x6c   :  { %v1533_v16 = vshrl.u32 %v1416_v15, 16  ;;  %v1536_v18 = vshll.u32 %v1416_v15, 16  ;;  %v1729_v20 = vld [vmem:[#allocation2 + $0x40] sm:$0xe]  ;;  %v2124_v22 = vshll.u32 %v2004_v50, 16  ;;  %v1531_v10 = vsel %vm3549_vm12, %v3641_v52, %v3629_v58 }
  0x6d   :  { %v2086_v34 = vrot.slane %v2085_v26, 4  ;;  %v2002_v27 = vld [vmem:[#allocation2 + $0x40] sm:$0xf]  ;;  %v2948_v53 = vrot.slane %v1729_v20, 9  ;;  %v2098_v8 = vrot.slane %v2096_v21, 5  ;;  %v2104_v13 = vrot.slane %v2102_v23, 5 }
  0x6e   :  { %v1535_v24 = vrot.slane %v1533_v16, 4  ;;  %v1538_v33 = vrot.slane %v1536_v18, 5  ;;  %v2107_v35 = vshrl.u32 %v2002_v27, 16  ;;  %v2110_v36 = vshll.u32 %v2002_v27, 16  ;;  %1871 = vrot.lane.b32.xlu0 %v2959_v19, %s3247_s17  ;;  %v2312_v61 = vld [vmem:[#allocation2 + $0x34] sm:$0x1] }
  0x6f   :  { %v2123_v12 = vrot.slane %v2121_v30, 4  ;;  %v1417_v39 = vld [vmem:[#allocation2 + $0x44] sm:$0x1]  ;;  %v3673_v17 = vsel %vm3432_vm9, %v2947_v49, %v1805_v54  ;;  %v2091_v45 = vsel %vm3549_vm12, %v2086_v34, %v2090_v48  ;;  %v2099_v46 = vor.u32 %v2098_v8, %v2095_v28  ;;  %v2313_v58 = vld [vmem:[#allocation2 + $0x38] sm:$0xe] }
  0x70   :  { %v1539_v40 = vor.u32 %v1538_v33, %v1535_v24  ;;  %v1730_v59 = vld [vmem:[#allocation2 + $0x44] sm:$0x1]  ;;  %v1542_v43 = vshll.u32 %v1417_v39, 16  ;;  %v2109_v57 = vrot.slane %v2107_v35, 4  ;;  %v2112_v15 = vrot.slane %v2110_v36, 5 }
  0x71   :  { %v2003_v3 = vld [vmem:[#allocation2 + $0x44] sm:$0x1]  ;;  %v1809_v50 = vrot.slane %v1730_v59, 5  ;;  %v2100_v2 = vrot.slane %v2099_v46, 4  ;;  %v2126_v18 = vrot.slane %v2124_v22, 5  ;;  %v2130_v54 = vshll.u32 %v2005_v32, 16 }
  0x72   :  { %v1540_v1 = vrot.slane %v1539_v40, 4  ;;  %v2116_v16 = vshll.u32 %v2003_v3, 16  ;;  %v365_v52 = vld [vmem:[#allocation2 + $0x58] sm:$0x1]  ;;  %v1544_v19 = vrot.slane %v1542_v43, 5  ;;  %1961 = vrot.lane.b32.xlu0 %v3215_v31, %s3246_s16  ;;  %v2985_v20 = vrot.slane %v2311_v44, 9 }
  0x73   :  { %v1810_v49 = vsel %vm3432_vm9, %v2948_v53, %v1809_v50  ;;  %v3226_v26 = vld [vmem:[%s4482_s2] sm:$0xff]   ;;  %v2105_v28 = vsel %vm3549_vm12, %v2100_v2, %v2104_v13  ;;  %v2113_v21 = vor.u32 %v2112_v15, %v2109_v57  ;;  %v2314_v24 = vld [vmem:[#allocation2 + $0x3c] sm:$0x1]  ;;  %v2127_v30 = vor.u32 %v2126_v18, %v2123_v12  ;;  %v825_v31 = vld [vmem:[#allocation2 + $0x50] sm:$0xf] }
  0x74   :  { %v2960_v48 = vcombine.low %v3673_v17, %v1810_v49  ;;  %v2118_v23 = vrot.slane %v2116_v16, 5  ;;  %v415_v33 = vld [vmem:[#allocation2 + $0x5c] sm:$0x1]  ;;  %v1545_v34 = vsel %vm3549_vm12, %v1540_v1, %v1544_v19  ;;  %v2975_v27 = vcombine.low %v2091_v45, %v2105_v28  ;;  %v3688_v8 = vld [vmem:[#allocation2 + $0x54] sm:$0x1]  ;;  %3187 = vmatprep.subr.bf16.mxu1 %v3226_v26  ;;  %v3228_v15 = vld [vmem:[%s4482_s2 + $0x8] sm:$0xff]  }
  0x75   :  { %v2132_v53 = vrot.slane %v2130_v54, 5  ;;  %v2936_v32 = vcombine.low %v1531_v10, %v1545_v34  ;;  %v2114_v35 = vrot.slane %v2113_v21, 4  ;;  %v2385_v36 = vrot.slane %v2312_v61, 5  ;;  %v2315_v22 = vld [vmem:[#allocation2 + $0x40] sm:$0xe]  ;;  %3192 = vmatpush3.bf16.msra.mxu1 %v3226_v26 }
  0x76   :  { %v2986_v40 = vrot.slane %v2313_v58, 9  ;;  %2274 = vrot.lane.b32.xlu0 %v2975_v27, %s3252_s22  ;;  %v2128_v13 = vrot.slane %v2127_v30, 4  ;;  %v2389_v44 = vrot.slane %v2314_v24, 5  ;;  %v3692_v39 = vmax.f32 %v3650_v62, 0.0  ;;  %v2317_v59 = vld [vmem:[#allocation2 + $0x48] sm:$0xe]  ;;  %3188 = vmatprep.subr.bf16.mxu1 %v3228_v15 }
  0x77   :  { %v366_v12 = vsel %vm3302_vm2, 0, %v365_v52  ;;  %v2318_v17 = vld [vmem:[#allocation2 + $0x4c] sm:$0x1]  ;;  %1688 = vrot.lane.b32.xlu1 %v2936_v32, %s3251_s21  ;;  %v2119_v10 = vsel %vm3549_vm12, %v2114_v35, %v2118_v23  ;;  %v2386_v45 = vsel %vm3432_vm9, %v2985_v20, %v2385_v36  ;;  %v416_v46 = vsel %vm3315_vm4, 0, %v415_v33  ;;  %v2316_v62 = vld [vmem:[#allocation2 + $0x44] sm:$0x1] }
  0x78   :  { %4509 = vst [vmem:[#allocation6_spill] sm:$0xff] %v3692_v39  ;;  %367 = vst [vmem:[#allocation2 + $0x58] sm:$0x1] %v366_v12  ;;  %v957_v3 = vshrl.u32 %v825_v31, 16  ;;  %v2133_v1 = vsel %vm3549_vm12, %v2128_v13, %v2132_v53  ;;  %v2390_v43 = vsel %vm3432_vm9, %v2986_v40, %v2389_v44  ;;  %v3058_v50 = vpack.c.bf16 %v3692_v39, %v3692_v39  ;;  %v368_v61 = vld [vmem:[#allocation2 + $0x60] sm:$0x1] }
  0x79   :  { %417 = vst [vmem:[#allocation2 + $0x5c] sm:$0x1] %v416_v46  ;;  %v960_v57 = vshll.u32 %v825_v31, 16  ;;  %v371_v2 = vld [vmem:[#allocation2 + $0x68] sm:$0x1]  ;;  %v2999_v16 = vcombine.low %v2386_v45, %v2390_v43  ;;  %v966_v58 = vshll.u32 %v3688_v8, 16  ;;  %v3715_v52 = vadd.f32 %v3646_v47, %v3615_v56  ;;  %3193 = vmatpush3.bf16.msra.mxu1 %v3228_v15 }
  0x7a   :  { %v959_v18 = vrot.slane %v957_v3, 4  ;;  %v3216_v19 = vld [vmem:[#allocation2 + $0x40] ss:$8 sps:$4 sm:$0xff]   ;;  %v544_v49 = vshrl.u32 %v3058_v50, 16  ;;  %v547_v54 = vshll.u32 %v3058_v50, 16  ;;  %v2987_v26 = vrot.slane %v2315_v22, 9 }
  0x7b   :  { %v962_v20 = vrot.slane %v960_v57, 5  ;;  %v418_v28 = vld [vmem:[#allocation2 + $0x64] sm:$0x1]  ;;  %v421_v21 = vld [vmem:[#allocation2 + $0x6c] sm:$0x1]  ;;  %1873 = vrot.lane.b32.xlu1 %v2960_v48, %s3247_s17  ;;  %v2976_v23 = vcombine.low %v2119_v10, %v2133_v1  ;;  %2459 = vrot.lane.b32.xlu0 %v2999_v16, %s3249_s19  ;;  %v2393_v24 = vrot.slane %v2316_v62, 5 }
  0x7c   :  { %v2988_v33 = vrot.slane %v2317_v59, 9  ;;  %v2397_v34 = vrot.slane %v2318_v17, 5  ;;  %v546_v27 = vrot.slane %v544_v49, 7  ;;  %v3720_v56 = vmax.f32 %v3654_v0, 0.0  ;;  %v3230_v31 = vld [vmem:[%s4482_s2 + $0x10] sm:$0xff]  }
  0x7d   :  { %v963_v30 = vor.u32 %v962_v20, %v959_v18  ;;  %v3723_v53 = vmax.f32 %v3658_v63, 0.0  ;;  %v2394_v48 = vsel %vm3432_vm9, %v2987_v26, %v2393_v24  ;;  %v369_v32 = vsel %vm3302_vm2, 0, %v368_v61  ;;  %v3736_v35 = vld [vmem:[#allocation2 + $0x50] sm:$0xe]  ;;  %v374_v63 = vld [vmem:[#allocation2 + $0x70] sm:$0x1]  ;;  %3189 = vmatprep.subr.bf16.mxu1 %v3230_v31 }
  0x7e   :  { %4510 = vst [vmem:[#allocation7_spill] sm:$0xff] %v3720_v56  ;;  %v2398_v8 = vsel %vm3432_vm9, %v2988_v33, %v2397_v34  ;;  %v372_v0 = vsel %vm3302_vm2, 0, %v371_v2  ;;  %v424_v36 = vld [vmem:[#allocation2 + $0x74] sm:$0x1]  ;;  %v549_v40 = vor.u32 %v547_v54, %v546_v27  ;;  %v550_v22 = vrot.slane %v546_v27, 4  ;;  %v3232_v2 = vld [vmem:[%s4482_s2 + $0x18] sm:$0xff]   ;;  %3194 = vmatpush3.bf16.msra.mxu1 %v3230_v31 }
  0x7f   :  { %4511 = vst [vmem:[#allocation8_spill] sm:$0xff] %v3723_v53  ;;  %v689_v13 = vld [vmem:[#allocation2 + $0x58] sm:$0xf]  ;;  %v3738_v44 = vrot.slane %v966_v58, 5  ;;  %v3000_v12 = vcombine.low %v2394_v48, %v2398_v8  ;;  %370 = vst [vmem:[#allocation2 + $0x60] sm:$0x1] %v369_v32  ;;  %1963 = vrot.lane.b32.xlu1 %v3216_v19, %s3246_s16  ;;  %v3059_v46 = vpack.c.bf16 %v3720_v56, %v3720_v56  ;;  %3190 = vmatprep.subr.bf16.mxu1 %v3232_v2 }
  0x80   :  { %373 = vst [vmem:[#allocation2 + $0x68] sm:$0x1] %v372_v0  ;;  %v377_v59 = vld [vmem:[#allocation2 + $0x78] sm:$0x1]  ;;  %v692_v17 = vld [vmem:[#allocation2 + $0x5c] sm:$0x1]  ;;  %v3060_v3 = vpack.c.bf16 %v3723_v53, %v3723_v53  ;;  %v690_v43 = vsel %vm3388_vm7, %v549_v40, %v689_v13  ;;  %v92_v61 = vadd.f32 %v3646_v47, %v3627_v25 }
  0x81   :  { %v419_v10 = vsel %vm3315_vm4, 0, %v418_v28  ;;  %v422_v45 = vsel %vm3315_vm4, 0, %v421_v21  ;;  %v3749_v62 = vld [vmem:[#allocation2 + $0x54] sm:$0x1]  ;;  %v427_v1 = vld [vmem:[#allocation2 + $0x7c] sm:$0x1]  ;;  %v693_v50 = vsel %vm3302_vm2, %v550_v22, %v692_v17  ;;  %2461 = vrot.lane.b32.xlu0 %v3000_v12, %s3249_s19 }
  0x82   :  { %v3755_v57 = vrot.slane %v963_v30, 4  ;;  %420 = vst [vmem:[#allocation2 + $0x64] sm:$0x1] %v419_v10  ;;  %423 = vst [vmem:[#allocation2 + $0x6c] sm:$0x1] %v422_v45  ;;  %v552_v15 = vshrl.u32 %v3059_v46, 16  ;;  %3195 = vmatpush3.bf16.msra.mxu1 %v3232_v2 }
  0x83   :  { %691 = vst [vmem:[#allocation2 + $0x58] sm:$0xf] %v690_v43  ;;  %694 = vst [vmem:[#allocation2 + $0x5c] sm:$0x1] %v693_v50  ;;  %v555_v16 = vshll.u32 %v3059_v46, 16  ;;  %v560_v18 = vshrl.u32 %v3060_v3, 16  ;;  %2276 = vrot.lane.b32.xlu1 %v2976_v23, %s3252_s22 }
  0x84   :  { %v563_v58 = vshll.u32 %v3060_v3, 16  ;;  %v2909_v19 = vrot.slane %v3736_v35, 9  ;;  %v3765_v49 = vmax.f32 %v3662_v14, 0.0  ;;  %v375_v54 = vsel %vm3302_vm2, 0, %v374_v63  ;;  %v380_v20 = vld [vmem:[#allocation2 + $0x80] sm:$0x1] }
  0x85   :  { %v425_v25 = vsel %vm3315_vm4, 0, %v424_v36  ;;  %v383_v26 = vld [vmem:[#allocation2 + $0x88] sm:$0x1]  ;;  %v554_v28 = vrot.slane %v552_v15, 7  ;;  %v562_v21 = vrot.slane %v560_v18, 7  ;;  %v3773_v24 = vmax.f32 %v3715_v52, 0.0 }
  0x86   :  { %4512 = vst [vmem:[#allocation9_spill] sm:$0xff] %v3765_v49  ;;  %376 = vst [vmem:[#allocation2 + $0x70] sm:$0x1] %v375_v54  ;;  %v378_v14 = vsel %vm3302_vm2, 0, %v377_v59  ;;  %v1226_v33 = vrot.slane %v3749_v62, 5  ;;  %v3061_v34 = vpack.c.bf16 %v3765_v49, %v3765_v49  ;;  %v428_v27 = vsel %vm3315_vm4, 0, %v427_v1 }
  0x87   :  { %426 = vst [vmem:[#allocation2 + $0x74] sm:$0x1] %v425_v25  ;;  %4513 = vst [vmem:[#allocation10_spill] sm:$0xff] %v3773_v24  ;;  %v557_v23 = vor.u32 %v555_v16, %v554_v28  ;;  %v558_v30 = vrot.slane %v554_v28, 4  ;;  %v565_v31 = vor.u32 %v563_v58, %v562_v21  ;;  %v566_v48 = vrot.slane %v562_v21, 4  ;;  %v3789_v63 = vld [vmem:[%s4480_s0 + $0x38] sm:$0xff]  }
  0x88   :  { %379 = vst [vmem:[#allocation2 + $0x78] sm:$0x1] %v378_v14  ;;  %v695_v8 = vld [vmem:[#allocation2 + $0x60] sm:$0xf]  ;;  %v701_v52 = vld [vmem:[#allocation2 + $0x68] sm:$0xf]  ;;  %v3784_v35 = vpack.c.bf16 %v3773_v24, %v3773_v24  ;;  %v1227_v15 = vsel %vm3432_vm9, %v2909_v19, %v1226_v33  ;;  %v3112_v54 = vunpack.c.l.bf16 %v3789_v63 }
  0x89   :  { %429 = vst [vmem:[#allocation2 + $0x7c] sm:$0x1] %v428_v27  ;;  %v568_v32 = vshrl.u32 %v3061_v34, 16  ;;  %v571_v0 = vshll.u32 %v3061_v34, 16  ;;  %v3791_v36 = vmax.f32 %v92_v61, 0.0  ;;  %v696_v40 = vsel %vm3388_vm7, %v557_v23, %v695_v8 }
  0x8a   :  { %v698_v22 = vld [vmem:[#allocation2 + $0x64] sm:$0x1]  ;;  %v702_v13 = vsel %vm3388_vm7, %v565_v31, %v701_v52  ;;  %v704_v12 = vld [vmem:[#allocation2 + $0x6c] sm:$0x1]  ;;  %v381_v59 = vsel %vm3302_vm2, 0, %v380_v20  ;;  %v384_v17 = vsel %vm3302_vm2, 0, %v383_v26 }
  0x8b   :  { %4514 = vst [vmem:[#allocation11_spill] sm:$0xff] %v3791_v36  ;;  %v827_v10 = vld [vmem:[#allocation2 + $0x58] sm:$0xf]  ;;  %v828_v45 = vld [vmem:[#allocation2 + $0x5c] sm:$0x1]  ;;  %v699_v46 = vsel %vm3302_vm2, %v558_v30, %v698_v22  ;;  %v705_v3 = vsel %vm3302_vm2, %v566_v48, %v704_v12  ;;  %v570_v18 = vrot.slane %v568_v32, 7 }
  0x8c   :  { %697 = vst [vmem:[#allocation2 + $0x60] sm:$0xf] %v696_v40  ;;  %703 = vst [vmem:[#allocation2 + $0x68] sm:$0xf] %v702_v13  ;;  %v1143_v62 = vld [vmem:[#allocation2 + $0x58] sm:$0xe] }
  0x8d   :  { %382 = vst [vmem:[#allocation2 + $0x80] sm:$0x1] %v381_v59  ;;  %385 = vst [vmem:[#allocation2 + $0x88] sm:$0x1] %v384_v17  ;;  %v971_v1 = vshrl.u32 %v827_v10, 16  ;;  %v974_v43 = vshll.u32 %v827_v10, 16  ;;  %v573_v34 = vor.u32 %v571_v0, %v570_v18  ;;  %v969_v0 = vsel %vm3549_vm12, %v3755_v57, %v3738_v44 }
  0x8e   :  { %v980_v50 = vshll.u32 %v828_v45, 16  ;;  %700 = vst [vmem:[#allocation2 + $0x64] sm:$0x1] %v699_v46  ;;  %706 = vst [vmem:[#allocation2 + $0x6c] sm:$0x1] %v705_v3  ;;  %v2910_v2 = vrot.slane %v1143_v62, 9 }
  0x8f   :  { %v1144_v61 = vld [vmem:[#allocation2 + $0x5c] sm:$0x1]  ;;  %v707_v58 = vld [vmem:[#allocation2 + $0x70] sm:$0xf]  ;;  %v973_v25 = vrot.slane %v971_v1, 4  ;;  %v976_v20 = vrot.slane %v974_v43, 5  ;;  %v3824_v1 = vmul.f32 %v3610_v55, %v3112_v54 }
  0x90   :  { %v1230_v16 = vrot.slane %v1144_v61, 5  ;;  %v982_v26 = vrot.slane %v980_v50, 5  ;;  %v1418_v28 = vld [vmem:[#allocation2 + $0x58] sm:$0xf]  ;;  %v576_v21 = vshrl.u32 %v3784_v35, 16  ;;  %v574_v27 = vrot.slane %v570_v18, 4 }
  0x91   :  { %v1419_v23 = vld [vmem:[#allocation2 + $0x5c] sm:$0x1]  ;;  %v1547_v30 = vshrl.u32 %v1418_v28, 16  ;;  %v710_v31 = vld [vmem:[#allocation2 + $0x74] sm:$0x1]  ;;  %v977_v19 = vor.u32 %v976_v20, %v973_v25  ;;  %v1550_v48 = vshll.u32 %v1418_v28, 16  ;;  %v708_v32 = vsel %vm3388_vm7, %v573_v34, %v707_v58 }
  0x92   :  { %v1231_v14 = vsel %vm3432_vm9, %v2910_v2, %v1230_v16  ;;  %v1556_v8 = vshll.u32 %v1419_v23, 16  ;;  %v3811_v52 = vld [vmem:[#allocation2 + $0x58] sm:$0xe]  ;;  %v711_v22 = vsel %vm3302_vm2, %v574_v27, %v710_v31  ;;  %709 = vst [vmem:[#allocation2 + $0x70] sm:$0xf] %v708_v32  ;;  %vm145_vm13 = vcmask 1043456  }
  0x93   :  { %v2921_v33 = vcombine.low %v1227_v15, %v1231_v14  ;;  %v1549_v40 = vrot.slane %v1547_v30, 4  ;;  %v2949_v13 = vrot.slane %v3811_v52, 9  ;;  %v978_v12 = vrot.slane %v977_v19, 4  ;;  %v829_v59 = vld [vmem:[#allocation2 + $0x60] sm:$0xf]  ;;  %3197 = vmatprep.subr.msk.bf16.mxu0 %vm145_vm13, %v4002_v11 }
  0x94   :  { %v831_v17 = vld [vmem:[#allocation2 + $0x68] sm:$0xf]  ;;  %v1552_v10 = vrot.slane %v1550_v48, 5  ;;  %712 = vst [vmem:[#allocation2 + $0x74] sm:$0x1] %v711_v22  ;;  %v985_v3 = vshrl.u32 %v829_v59, 16 }
  0x95   :  { %1288 = vrot.lane.b32.xlu0 %v2921_v33, %s3248_s18  ;;  %v830_v45 = vld [vmem:[#allocation2 + $0x64] sm:$0x1]  ;;  %v832_v46 = vld [vmem:[#allocation2 + $0x6c] sm:$0x1]  ;;  %v988_v62 = vshll.u32 %v829_v59, 16  ;;  %v983_v44 = vsel %vm3549_vm12, %v978_v12, %v982_v26  ;;  %v999_v50 = vshrl.u32 %v831_v17, 16 }
  0x96   :  { %v994_v57 = vshll.u32 %v830_v45, 16  ;;  %v1002_v61 = vshll.u32 %v831_v17, 16  ;;  %v1145_v2 = vld [vmem:[#allocation2 + $0x60] sm:$0xe]  ;;  %v3830_v15 = vld [vmem:[#allocation2 + $0x5c] sm:$0x1]  ;;  %v2897_v16 = vcombine.low %v969_v0, %v983_v44  ;;  %v1553_v22 = vor.u32 %v1552_v10, %v1549_v40 }
  0x97   :  { %v987_v18 = vrot.slane %v985_v3, 4  ;;  %v990_v58 = vrot.slane %v988_v62, 5  ;;  %v1008_v25 = vshll.u32 %v832_v46, 16  ;;  %v1146_v20 = vld [vmem:[#allocation2 + $0x64] sm:$0x1]  ;;  %v1001_v54 = vrot.slane %v999_v50, 4 }
  0x98   :  { %v996_v28 = vrot.slane %v994_v57, 5  ;;  %v1004_v14 = vrot.slane %v1002_v61, 5  ;;  %v1147_v34 = vld [vmem:[#allocation2 + $0x68] sm:$0xe]  ;;  %v2911_v27 = vrot.slane %v1145_v2, 9  ;;  %1100 = vrot.lane.b32.xlu1 %v2897_v16, %s3250_s20  ;;  %v1234_v31 = vrot.slane %v1146_v20, 5 }
  0x99   :  { %v991_v23 = vor.u32 %v990_v58, %v987_v18  ;;  %v1010_v26 = vrot.slane %v1008_v25, 5  ;;  %v1148_v30 = vld [vmem:[#allocation2 + $0x6c] sm:$0x1]  ;;  %v2912_v19 = vrot.slane %v1147_v34, 9  ;;  %v3217_v32 = vld [vmem:[#allocation2 + $0x58] ss:$8 sps:$4 sm:$0xff]   ;;  %v3113_v2 = vunpack.c.h.bf16 %v3789_v63 }
  0x9a   :  { %v1005_v33 = vor.u32 %v1004_v14, %v1001_v54  ;;  %v1238_v48 = vrot.slane %v1148_v30, 5  ;;  %v3833_v0 = vrot.slane %v1556_v8, 5  ;;  %v1235_v59 = vsel %vm3432_vm9, %v2911_v27, %v1234_v31  ;;  %1377 = vrot.lane.b32.xlu0 %v3217_v32, %s3245_s13  ;;  %v1420_v62 = vld [vmem:[#allocation2 + $0x60] sm:$0xf]  ;;  %v1421_v10 = vld [vmem:[#allocation2 + $0x64] sm:$0x1] }
  0x9b   :  { %v992_v12 = vrot.slane %v991_v23, 4  ;;  %v1813_v17 = vrot.slane %v3830_v15, 5  ;;  %v1554_v44 = vrot.slane %v1553_v22, 4  ;;  %v1561_v57 = vshrl.u32 %v1420_v62, 16  ;;  %v1422_v61 = vld [vmem:[#allocation2 + $0x68] sm:$0xf] }
  0x9c   :  { %v1006_v46 = vrot.slane %v1005_v33, 4  ;;  %v1239_v3 = vsel %vm3432_vm9, %v2912_v19, %v1238_v48  ;;  %v1564_v50 = vshll.u32 %v1420_v62, 16  ;;  %v1570_v18 = vshll.u32 %v1421_v10, 16  ;;  %v1423_v58 = vld [vmem:[#allocation2 + $0x6c] sm:$0x1] }
  0x9d   :  { %v997_v40 = vsel %vm3549_vm12, %v992_v12, %v996_v28  ;;  %v2922_v16 = vcombine.low %v1235_v59, %v1239_v3  ;;  %v1424_v25 = vld [vmem:[#allocation2 + $0x70] sm:$0xf]  ;;  %v1575_v20 = vshrl.u32 %v1422_v61, 16  ;;  %v1563_v14 = vrot.slane %v1561_v57, 4  ;;  %v1425_v27 = vld [vmem:[#allocation2 + $0x74] sm:$0x1] }
  0x9e   :  { %v1011_v15 = vsel %vm3549_vm12, %v1006_v46, %v1010_v26  ;;  %v1566_v34 = vrot.slane %v1564_v50, 5  ;;  %v1578_v23 = vshll.u32 %v1422_v61, 16  ;;  %v1572_v28 = vrot.slane %v1570_v18, 5  ;;  %v1733_v33 = vld [vmem:[#allocation2 + $0x60] sm:$0xe]  ;;  %v3854_v18 = vpop.permute.xlu0 %1369 }
  0x9f   :  { %v2898_v54 = vcombine.low %v997_v40, %v1011_v15  ;;  %v1577_v30 = vrot.slane %v1575_v20, 4  ;;  %v1584_v31 = vshll.u32 %v1423_v58, 16  ;;  %v1589_v19 = vshrl.u32 %v1424_v25, 16  ;;  %v1734_v22 = vld [vmem:[#allocation2 + $0x64] sm:$0x1] }
  0xa0   :  { %v1567_v63 = vor.u32 %v1566_v34, %v1563_v14  ;;  %v1580_v48 = vrot.slane %v1578_v23, 5  ;;  %v1592_v26 = vshll.u32 %v1424_v25, 16  ;;  %v1598_v32 = vshll.u32 %v1425_v27, 16  ;;  %v1735_v62 = vld [vmem:[#allocation2 + $0x68] sm:$0xe] }
  0xa1   :  { %1102 = vrot.lane.b32.xlu1 %v2898_v54, %s3250_s20  ;;  %v1559_v12 = vsel %vm3549_vm12, %v1554_v44, %v3833_v0  ;;  %v1586_v59 = vrot.slane %v1584_v31, 5  ;;  %v1591_v46 = vrot.slane %v1589_v19, 4  ;;  %v2950_v3 = vrot.slane %v1733_v33, 9  ;;  %v3218_v40 = vld [vmem:[#allocation2 + $0x68] ss:$8 sps:$4 sm:$0xff]  }
  0xa2   :  { %v1568_v10 = vrot.slane %v1567_v63, 4  ;;  %v1581_v57 = vor.u32 %v1580_v48, %v1577_v30  ;;  %v1594_v50 = vrot.slane %v1592_v26, 5  ;;  %v1600_v61 = vrot.slane %v1598_v32, 5  ;;  %v1736_v15 = vld [vmem:[#allocation2 + $0x6c] sm:$0x1] }
  0xa3   :  { %v1814_v58 = vsel %vm3432_vm9, %v2949_v13, %v1813_v17  ;;  %v1817_v25 = vrot.slane %v1734_v22, 5  ;;  %v1737_v20 = vld [vmem:[#allocation2 + $0x70] sm:$0xe]  ;;  %v1738_v0 = vld [vmem:[#allocation2 + $0x74] sm:$0x1]  ;;  %v2951_v44 = vrot.slane %v1735_v62, 9  ;;  %v3862_v54 = vadd.f32 %v3646_v47, %v3824_v1 }
  0xa4   :  { %v1573_v14 = vsel %vm3549_vm12, %v1568_v10, %v1572_v28  ;;  %v1582_v34 = vrot.slane %v1581_v57, 4  ;;  %v1595_v27 = vor.u32 %v1594_v50, %v1591_v46  ;;  %v1821_v23 = vrot.slane %v1736_v15, 5  ;;  %v2007_v33 = vld [vmem:[#allocation2 + $0x64] sm:$0x1]  ;;  %v713_v22 = vld [vmem:[#allocation2 + $0x78] sm:$0xf]  ;;  %v3888_v10 = vpop.permute.xlu0 %1957 }
  0xa5   :  { %1290 = vrot.lane.b32.xlu1 %v2922_v16, %s3248_s18  ;;  %v2937_v52 = vcombine.low %v1559_v12, %v1573_v14  ;;  %v1818_v13 = vsel %vm3432_vm9, %v2950_v3, %v1817_v25  ;;  %v2952_v17 = vrot.slane %v1737_v20, 9  ;;  %v1825_v30 = vrot.slane %v1738_v0, 5  ;;  %v2006_v16 = vld [vmem:[#allocation2 + $0x60] sm:$0xf]  ;;  %v2008_v12 = vld [vmem:[#allocation2 + $0x68] sm:$0xf] }
  0xa6   :  { %v1587_v31 = vsel %vm3549_vm12, %v1582_v34, %v1586_v59  ;;  %v1596_v19 = vrot.slane %v1595_v27, 4  ;;  %v3873_v1 = vsel %vm3432_vm9, %v2951_v44, %v1821_v23  ;;  %v3876_v28 = vmul.f32 %v3610_v55, %v3113_v2  ;;  %v2009_v2 = vld [vmem:[#allocation2 + $0x6c] sm:$0x1]  ;;  %v716_v62 = vld [vmem:[#allocation2 + $0x7c] sm:$0x1]  ;;  %4515 = vst [vmem:[#allocation12_spill] sm:$0xff] %v3888_v10 }
  0xa7   :  { %1690 = vrot.lane.b32.xlu0 %v2937_v52, %s3251_s21  ;;  %v2961_v63 = vcombine.low %v1814_v58, %v1818_v13  ;;  %v1826_v48 = vsel %vm3432_vm9, %v2952_v17, %v1825_v30  ;;  %v578_v26 = vrot.slane %v576_v21, 7  ;;  %v579_v32 = vshll.u32 %v3784_v35, 16  ;;  %v3219_v50 = vld [vmem:[#allocation2 + $0x60] ss:$8 sps:$4 sm:$0xff]   ;;  %v2010_v58 = vld [vmem:[#allocation2 + $0x70] sm:$0xf]  ;;  %v3895_v17 = vpop.permute.xlu1 %1371 }
  0xa8   :  { %v1601_v59 = vsel %vm3549_vm12, %v1596_v19, %v1600_v61  ;;  %v2962_v55 = vcombine.low %v3873_v1, %v1826_v48  ;;  %v2135_v46 = vshrl.u32 %v2006_v16, 16  ;;  %v2138_v3 = vshll.u32 %v2006_v16, 16  ;;  %v2011_v25 = vld [vmem:[#allocation2 + $0x74] sm:$0x1]  ;;  %v2319_v61 = vld [vmem:[#allocation2 + $0x60] sm:$0xe] }
  0xa9   :  { %1379 = vrot.lane.b32.xlu1 %v3218_v40, %s3245_s13  ;;  %v2938_v57 = vcombine.low %v1587_v31, %v1601_v59  ;;  %v581_v21 = vor.u32 %v579_v32, %v578_v26  ;;  %v582_v15 = vrot.slane %v578_v26, 4  ;;  %v2144_v35 = vshll.u32 %v2007_v33, 16  ;;  %v2320_v52 = vld [vmem:[#allocation2 + $0x64] sm:$0x1]  ;;  %v2321_v13 = vld [vmem:[#allocation2 + $0x68] sm:$0xe] }
  0xaa   :  { %v2137_v20 = vrot.slane %v2135_v46, 4  ;;  %v2140_v40 = vrot.slane %v2138_v3, 5  ;;  %v2149_v0 = vshrl.u32 %v2008_v12, 16  ;;  %v2152_v44 = vshll.u32 %v2008_v12, 16  ;;  %v2322_v16 = vld [vmem:[#allocation2 + $0x6c] sm:$0x1]  ;;  %v3898_v3 = vpop.permute.xlu0 %1867 }
  0xab   :  { %1875 = vrot.lane.b32.xlu0 %v2961_v63, %s3247_s17  ;;  %v714_v14 = vsel %vm3388_vm7, %v581_v21, %v713_v22  ;;  %v2146_v34 = vrot.slane %v2144_v35, 5  ;;  %v2158_v27 = vshll.u32 %v2009_v2, 16  ;;  %v717_v23 = vsel %vm3302_vm2, %v582_v15, %v716_v62  ;;  %v833_v32 = vld [vmem:[#allocation2 + $0x70] sm:$0xf]  ;;  %v834_v46 = vld [vmem:[#allocation2 + $0x74] sm:$0x1] }
  0xac   :  { %715 = vst [vmem:[#allocation2 + $0x78] sm:$0xf] %v714_v14  ;;  %v2141_v30 = vor.u32 %v2140_v40, %v2137_v20  ;;  %v2151_v31 = vrot.slane %v2149_v0, 4  ;;  %v2154_v19 = vrot.slane %v2152_v44, 5  ;;  %718 = vst [vmem:[#allocation2 + $0x7c] sm:$0x1] %v717_v23  ;;  %v3911_v14 = vpop.permute.xlu1 %1959 }
  0xad   :  { %1692 = vrot.lane.b32.xlu1 %v2938_v57, %s3251_s21  ;;  %v2163_v1 = vshrl.u32 %v2010_v58, 16  ;;  %v2160_v33 = vrot.slane %v2158_v27, 5  ;;  %v2166_v63 = vshll.u32 %v2010_v58, 16  ;;  %v2172_v48 = vshll.u32 %v2011_v25, 16  ;;  %v2323_v15 = vld [vmem:[#allocation2 + $0x70] sm:$0xe] }
  0xae   :  { %v2989_v26 = vrot.slane %v2319_v61, 9  ;;  %v2142_v22 = vrot.slane %v2141_v30, 4  ;;  %v2155_v12 = vor.u32 %v2154_v19, %v2151_v31  ;;  %v2401_v2 = vrot.slane %v2320_v52, 5  ;;  %4517 = vst [vmem:[#allocation14_spill] sm:$0xff] %v3911_v14  ;;  %v2324_v30 = vld [vmem:[#allocation2 + $0x74] sm:$0x1] }
  0xaf   :  { %v2165_v59 = vrot.slane %v2163_v1, 4  ;;  %1965 = vrot.lane.b32.xlu0 %v3219_v50, %s3246_s16  ;;  %v2168_v62 = vrot.slane %v2166_v63, 5  ;;  %v2990_v57 = vrot.slane %v2321_v13, 9  ;;  %v2405_v21 = vrot.slane %v2322_v16, 5  ;;  %v3231_v10 = vld [vmem:[#allocation2 + $0x30] ss:$8 sps:$4 sm:$0xff]  }
  0xb0   :  { %v3902_v35 = vmax.f32 %v3862_v54, 0.0  ;;  %v2147_v58 = vsel %vm3549_vm12, %v2142_v22, %v2146_v34  ;;  %v2156_v25 = vrot.slane %v2155_v12, 4  ;;  %v3907_v20 = vrot.slane %v2172_v48, 5  ;;  %v3234_v14 = vld [vmem:[#allocation2 + $0x50] ss:$8 sps:$4 sm:$0xff]   ;;  %v4532_v5 = vld [vmem:[#allocation12_spill] sm:$0xff] }
  0xb1   :  { %1877 = vrot.lane.b32.xlu1 %v2962_v55, %s3247_s17  ;;  %v1013_v40 = vshrl.u32 %v833_v32, 16  ;;  %v2169_v0 = vor.u32 %v2168_v62, %v2165_v59  ;;  %v2402_v50 = vsel %vm3432_vm9, %v2989_v26, %v2401_v2  ;;  %v1016_v44 = vshll.u32 %v833_v32, 16  ;;  %v3925_v26 = vpop.permute.xlu0 %2455 }
  0xb2   :  { %4516 = vst [vmem:[#allocation13_spill] sm:$0xff] %v3902_v35  ;;  %v1022_v61 = vshll.u32 %v834_v46, 16  ;;  %v2161_v54 = vsel %vm3549_vm12, %v2156_v25, %v2160_v33  ;;  %v2406_v55 = vsel %vm3432_vm9, %v2990_v57, %v2405_v21  ;;  %v2991_v34 = vrot.slane %v2323_v15, 9  ;;  %4518 = vst [vmem:[#allocation15_spill] sm:$0xff] %v3925_v26 }
  0xb3   :  { %v1015_v27 = vrot.slane %v1013_v40, 4  ;;  %v3220_v23 = vld [vmem:[#allocation2 + $0x70] ss:$8 sps:$4 sm:$0xff]   ;;  %v2977_v52 = vcombine.low %v2147_v58, %v2161_v54  ;;  %v3919_v31 = vpack.c.bf16 %v3791_v36, %v3791_v36  ;;  %v3923_v19 = vpack.c.bf16 %v3902_v35, %v3902_v35  ;;  %v2013_v1 = vld [vmem:[#allocation2 + $0x7c] sm:$0x1] }
  0xb4   :  { %v2012_v13 = vld [vmem:[#allocation2 + $0x78] sm:$0xf]  ;;  %v2170_v16 = vrot.slane %v2169_v0, 4  ;;  %v1018_v48 = vrot.slane %v1016_v44, 5  ;;  %v2186_v32 = vshll.u32 %v2013_v1, 16  ;;  %v3001_v22 = vcombine.low %v2402_v50, %v2406_v55 }
  0xb5   :  { %v2177_v33 = vshrl.u32 %v2012_v13, 16  ;;  %v2180_v63 = vshll.u32 %v2012_v13, 16  ;;  %1967 = vrot.lane.b32.xlu1 %v3220_v23, %s3246_s16  ;;  %2278 = vrot.lane.b32.xlu0 %v2977_v52, %s3252_s22  ;;  %v835_v12 = vld [vmem:[#allocation2 + $0x78] sm:$0xf]  ;;  %v836_v59 = vld [vmem:[#allocation2 + $0x7c] sm:$0x1]  ;;  %v3933_v46 = vadd.f32 %v3646_v47, %v3876_v28 }
  0xb6   :  { %v3929_v2 = vrot.slane %v1022_v61, 5  ;;  %v2175_v62 = vsel %vm3549_vm12, %v2170_v16, %v3907_v20  ;;  %v1019_v15 = vor.u32 %v1018_v48, %v1015_v27  ;;  %v2325_v58 = vld [vmem:[#allocation2 + $0x78] sm:$0xe]  ;;  %v2326_v25 = vld [vmem:[#allocation2 + $0x7c] sm:$0x1]  ;;  %v2188_v40 = vrot.slane %v2186_v32, 5  ;;  %v3938_v61 = vpop.permute.xlu1 %1280 }
  0xb7   :  { %v2179_v57 = vrot.slane %v2177_v33, 4  ;;  %v2182_v21 = vrot.slane %v2180_v63, 5  ;;  %v1027_v0 = vshrl.u32 %v835_v12, 16  ;;  %v1030_v50 = vshll.u32 %v835_v12, 16  ;;  %v430_v54 = vld [vmem:[#allocation2 + $0x84] sm:$0x1]  ;;  %v3948_v12 = vpop.permute.xlu0 %2457 }
  0xb8   :  { %v1036_v44 = vshll.u32 %v836_v59, 16  ;;  %v1020_v23 = vrot.slane %v1019_v15, 4  ;;  %v2409_v47 = vrot.slane %v2324_v30, 5  ;;  %v2992_v28 = vrot.slane %v2325_v58, 9  ;;  %v433_v52 = vld [vmem:[#allocation2 + $0x8c] sm:$0x1] }
  0xb9   :  { %v2183_v55 = vor.u32 %v2182_v21, %v2179_v57  ;;  %2463 = vrot.lane.b32.xlu0 %v3001_v22, %s3249_s19  ;;  %v1029_v20 = vrot.slane %v1027_v0, 4  ;;  %v1032_v13 = vrot.slane %v1030_v50, 5  ;;  %v2413_v27 = vrot.slane %v2326_v25, 5  ;;  %v1149_v30 = vld [vmem:[#allocation2 + $0x70] sm:$0xe]  ;;  %4519 = vst [vmem:[#allocation16_spill] sm:$0xff] %v3948_v12 }
  0xba   :  { %v1038_v1 = vrot.slane %v1036_v44, 5  ;;  %v1025_v33 = vsel %vm3549_vm12, %v1020_v23, %v3929_v2  ;;  %v2410_v63 = vsel %vm3432_vm9, %v2991_v34, %v2409_v47  ;;  %v431_v48 = vsel %vm3315_vm4, 0, %v430_v54  ;;  %v1150_v32 = vld [vmem:[#allocation2 + $0x74] sm:$0x1]  ;;  %v1151_v21 = vld [vmem:[#allocation2 + $0x78] sm:$0xe] }
  0xbb   :  { %v2184_v16 = vrot.slane %v2183_v55, 4  ;;  %v1033_v22 = vor.u32 %v1032_v13, %v1029_v20  ;;  %v2414_v59 = vsel %vm3432_vm9, %v2992_v28, %v2413_v27  ;;  %432 = vst [vmem:[#allocation2 + $0x84] sm:$0x1] %v431_v48  ;;  %v434_v57 = vsel %vm3315_vm4, 0, %v433_v52  ;;  %v1152_v15 = vld [vmem:[#allocation2 + $0x7c] sm:$0x1]  ;;  %v3960_v52 = vpop.permute.xlu1 %1282 }
  0xbc   :  { %v584_v2 = vshrl.u32 %v3919_v31, 16  ;;  %v3002_v58 = vcombine.low %v2410_v63, %v2414_v59  ;;  %435 = vst [vmem:[#allocation2 + $0x8c] sm:$0x1] %v434_v57  ;;  %v587_v25 = vshll.u32 %v3919_v31, 16  ;;  %v592_v0 = vshrl.u32 %v3923_v19, 16 }
  0xbd   :  { %v2189_v34 = vsel %vm3549_vm12, %v2184_v16, %v2188_v40  ;;  %v719_v50 = vld [vmem:[#allocation2 + $0x80] sm:$0xf]  ;;  %v386_v44 = vld [vmem:[#allocation2 + $0x90] sm:$0x1]  ;;  %v1034_v55 = vrot.slane %v1033_v22, 4  ;;  %v595_v47 = vshll.u32 %v3923_v19, 16 }
  0xbe   :  { %v2978_v54 = vcombine.low %v2175_v62, %v2189_v34  ;;  %v586_v23 = vrot.slane %v584_v2, 7  ;;  %v725_v28 = vld [vmem:[#allocation2 + $0x88] sm:$0xf]  ;;  %2465 = vrot.lane.b32.xlu0 %v3002_v58, %s3249_s19  ;;  %v594_v20 = vrot.slane %v592_v0, 7  ;;  %v2913_v40 = vrot.slane %v1149_v30, 9  ;;  %v3968_v30 = vpop.permute.xlu0 %1284 }
  0xbf   :  { %v1242_v13 = vrot.slane %v1150_v32, 5  ;;  %v2914_v27 = vrot.slane %v1151_v21, 9  ;;  %v1039_v31 = vsel %vm3549_vm12, %v1034_v55, %v1038_v1  ;;  %v1246_v63 = vrot.slane %v1152_v15, 5  ;;  %v1426_v48 = vld [vmem:[#allocation2 + $0x78] sm:$0xf] }
  0xc0   :  { %2280 = vrot.lane.b32.xlu1 %v2978_v54, %s3252_s22  ;;  %v589_v16 = vor.u32 %v587_v25, %v586_v23  ;;  %v590_v62 = vrot.slane %v586_v23, 4  ;;  %v2899_v22 = vcombine.low %v1025_v33, %v1039_v31  ;;  %v597_v19 = vor.u32 %v595_v47, %v594_v20  ;;  %v1427_v2 = vld [vmem:[#allocation2 + $0x7c] sm:$0x1]  ;;  %v436_v34 = vld [vmem:[#allocation2 + $0x94] sm:$0x1] }
  0xc1   :  { %v598_v59 = vrot.slane %v594_v20, 4  ;;  %v1243_v57 = vsel %vm3432_vm9, %v2913_v40, %v1242_v13  ;;  %v1247_v1 = vsel %vm3432_vm9, %v2914_v27, %v1246_v63  ;;  %v3975_v21 = vmax.f32 %v3933_v46, 0.0  ;;  %v3981_v55 = vld [vmem:[#allocation2 + $0x98] sm:$0xf]  ;;  %v3992_v20 = vpop.permute.xlu1 %1869  ;;  %v3225_v12 = vld [vmem:[#allocation2] ss:$8 sps:$4 sm:$0xff]  }
  0xc2   :  { %v720_v32 = vsel %vm3388_vm7, %v589_v16, %v719_v50  ;;  %v387_v33 = vsel %vm3302_vm2, 0, %v386_v44  ;;  %v722_v15 = vld [vmem:[#allocation2 + $0x84] sm:$0x1]  ;;  %v726_v58 = vsel %vm3388_vm7, %v597_v19, %v725_v28  ;;  %v2923_v25 = vcombine.low %v1243_v57, %v1247_v1  ;;  %v3990_v28 = vld [vmem:[#allocation2 + $0x78] sm:$0xe] }
  0xc3   :  { %4520 = vst [vmem:[#allocation17_spill] sm:$0xff] %v3975_v21  ;;  %721 = vst [vmem:[#allocation2 + $0x80] sm:$0xf] %v720_v32  ;;  %v1603_v0 = vshrl.u32 %v1426_v48, 16  ;;  %v1606_v54 = vshll.u32 %v1426_v48, 16  ;;  %v723_v46 = vsel %vm3302_vm2, %v590_v62, %v722_v15  ;;  %v3065_v44 = vpack.c.bf16 %v3975_v21, %v3975_v21 }
  0xc4   :  { %388 = vst [vmem:[#allocation2 + $0x90] sm:$0x1] %v387_v33  ;;  %1104 = vrot.lane.b32.xlu1 %v2899_v22, %s3250_s20  ;;  %727 = vst [vmem:[#allocation2 + $0x88] sm:$0xf] %v726_v58  ;;  %v728_v50 = vld [vmem:[#allocation2 + $0x8c] sm:$0x1]  ;;  %1292 = vrot.lane.b32.xlu0 %v2923_v25, %s3248_s18  ;;  %v4006_v22 = vpop.permute.xlu0 %1092 }
  0xc5   :  { %v1612_v23 = vshll.u32 %v1427_v2, 16  ;;  %v437_v47 = vsel %vm3315_vm4, 0, %v436_v34  ;;  %724 = vst [vmem:[#allocation2 + $0x84] sm:$0x1] %v723_v46  ;;  %v729_v40 = vsel %vm3302_vm2, %v598_v59, %v728_v50  ;;  %v1605_v13 = vrot.slane %v1603_v0, 4  ;;  %v4027_v25 = vpop.permute.xlu1 %1286 }
  0xc6   :  { %v1608_v27 = vrot.slane %v1606_v54, 5  ;;  %438 = vst [vmem:[#allocation2 + $0x94] sm:$0x1] %v437_v47  ;;  %730 = vst [vmem:[#allocation2 + $0x8c] sm:$0x1] %v729_v40  ;;  %v600_v31 = vshrl.u32 %v3065_v44, 16 }
  0xc7   :  { %v3997_v16 = vld [vmem:[#allocation2 + $0x7c] sm:$0x1]  ;;  %v2233_v48 = vshrl.u32 %v3981_v55, 16  ;;  %v4011_v19 = vld [vmem:[%s4482_s2 + $0x20] ss:$0 sps:$4 sm:$0xff]   ;;  %v603_v57 = vshll.u32 %v3065_v44, 16 }
  0xc8   :  { %v1609_v62 = vor.u32 %v1608_v27, %v1605_v13  ;;  %v4013_v59 = vrot.slane %v600_v31, 7  ;;  %v4015_v2 = vrot.slane %v1612_v23, 5  ;;  %v2236_v33 = vshll.u32 %v3981_v55, 16  ;;  %3199 = vmatprep.subr.msk.bf16.mxu1 %vm145_vm13, %v4011_v19  ;;  %v4032_v45 = vpop.permute.xlu0 %1094  ;;  %v3236_v60 = vld [vmem:[#allocation2 + $0x70] ss:$8 sps:$4 sm:$0xff]  }
  0xc9   :  { %v4020_v1 = vrot.slane %v2233_v48, 4  ;;  %vm120_vm14 = vcmask 64512   ;;  %vm1116_vm15 = vcmask 130112   ;;  %vm1304_vm0 = vcmask 195712  }
  0xca   :  { %v4017_v34 = vrot.slane %v1609_v62, 4  ;;  %v837_v15 = vld [vmem:[#allocation2 + $0x80] sm:$0xf]  ;;  %v605_v13 = vor.u32 %v603_v57, %v4013_v59  ;;  %v606_v57 = vrot.slane %v4013_v59, 4  ;;  %801 = vst.msk [vmem:[#allocation3] sm:$0xff] %vm120_vm14, %v3225_v12  ;;  %804 = vst.msk [vmem:[#allocation3 + $0x18] sm:$0xff] %vm120_vm14, %v3231_v10 }
  0xcb   :  { %v1153_v58 = vld [vmem:[#allocation2 + $0x80] sm:$0xe]  ;;  %v839_v54 = vld [vmem:[#allocation2 + $0x88] sm:$0xf]  ;;  %v1041_v46 = vshrl.u32 %v837_v15, 16  ;;  %v1044_v50 = vshll.u32 %v837_v15, 16 }
  0xcc   :  { %v1155_v44 = vld [vmem:[#allocation2 + $0x88] sm:$0xe]  ;;  %v838_v23 = vld [vmem:[#allocation2 + $0x84] sm:$0x1]  ;;  %v1055_v47 = vshrl.u32 %v839_v54, 16  ;;  %v1058_v55 = vshll.u32 %v839_v54, 16 }
  0xcd   :  { %v1154_v40 = vld [vmem:[#allocation2 + $0x84] sm:$0x1]  ;;  %v840_v27 = vld [vmem:[#allocation2 + $0x8c] sm:$0x1]  ;;  %v1043_v31 = vrot.slane %v1041_v46, 4  ;;  %v1046_v62 = vrot.slane %v1044_v50, 5  ;;  %v4037_v50 = vpop.permute.xlu1 %1684 }
  0xce   :  { %v1050_v48 = vshll.u32 %v838_v23, 16  ;;  %v2915_v8 = vrot.slane %v1153_v58, 9  ;;  %v1057_v43 = vrot.slane %v1055_v47, 4  ;;  %v1060_v63 = vrot.slane %v1058_v55, 5  ;;  %v1156_v32 = vld [vmem:[#allocation2 + $0x8c] sm:$0x1] }
  0xcf   :  { %v1064_v0 = vshll.u32 %v840_v27, 16  ;;  %v1250_v35 = vrot.slane %v1154_v40, 5  ;;  %v1047_v15 = vor.u32 %v1046_v62, %v1043_v31  ;;  %v2916_v24 = vrot.slane %v1155_v44, 9  ;;  %v3221_v54 = vld [vmem:[#allocation2 + $0x78] ss:$8 sps:$4 sm:$0xff]   ;;  %805 = vst.msk [vmem:[#allocation3 + $0x20] sm:$0xff] %vm120_vm14, %v3234_v14 }
  0xd0   :  { %v1052_v21 = vrot.slane %v1050_v48, 5  ;;  %v1254_v36 = vrot.slane %v1156_v32, 5  ;;  %v1061_v53 = vor.u32 %v1060_v63, %v1057_v43  ;;  %v731_v46 = vld [vmem:[#allocation2 + $0x90] sm:$0xf]  ;;  %1381 = vrot.lane.b32.xlu0 %v3221_v54, %s3245_s13  ;;  %v1428_v55 = vld [vmem:[#allocation2 + $0x80] sm:$0xf] }
  0xd1   :  { %v1066_v49 = vrot.slane %v1064_v0, 5  ;;  %v1048_v23 = vrot.slane %v1047_v15, 4  ;;  %v732_v47 = vsel %vm3388_vm7, %v605_v13, %v731_v46  ;;  %v1429_v44 = vld [vmem:[#allocation2 + $0x84] sm:$0x1]  ;;  %v4042_v32 = vrot.slane %v2236_v33, 5  ;;  %v4062_v39 = vpop.permute.xlu1 %2272  ;;  %807 = vst.msk [vmem:[#allocation3 + $0x30] sm:$0xff] %vm120_vm14, %v3236_v60 }
  0xd2   :  { %v1062_v63 = vrot.slane %v1061_v53, 4  ;;  %v1251_v59 = vsel %vm3432_vm9, %v2915_v8, %v1250_v35  ;;  %733 = vst [vmem:[#allocation2 + $0x90] sm:$0xf] %v732_v47  ;;  %v1617_v0 = vshrl.u32 %v1428_v55, 16  ;;  %v1620_v40 = vshll.u32 %v1428_v55, 16  ;;  %v4058_v35 = vpop.permute.xlu0 %1682  ;;  %4521 = vst [vmem:[#allocation18_spill] sm:$0xff] %v4062_v39 }
  0xd3   :  { %v734_v27 = vld [vmem:[#allocation2 + $0x94] sm:$0x1]  ;;  %v4048_v31 = vld [vmem:[#allocation2 + $0x9c] sm:$0x1]  ;;  %v4050_v62 = vld [vmem:[#allocation2 + $0x98] sm:$0xe]  ;;  %v1053_v9 = vsel %vm3549_vm12, %v1048_v23, %v1052_v21  ;;  %v1255_v33 = vsel %vm3432_vm9, %v2916_v24, %v1254_v36  ;;  %v4526_v60 = vpack.c.bf16 %v3346_v38, %v3344_v37 }
  0xd4   :  { %v1626_v13 = vshll.u32 %v1429_v44, 16  ;;  %v735_v53 = vsel %vm3302_vm2, %v606_v57, %v734_v27  ;;  %v1430_v48 = vld [vmem:[#allocation2 + $0x88] sm:$0xf]  ;;  %v1431_v8 = vld [vmem:[#allocation2 + $0x8c] sm:$0x1]  ;;  %v1067_v15 = vsel %vm3549_vm12, %v1062_v63, %v1066_v49  ;;  %v1619_v54 = vrot.slane %v1617_v0, 4 }
  0xd5   :  { %v1622_v46 = vrot.slane %v1620_v40, 5  ;;  %736 = vst [vmem:[#allocation2 + $0x94] sm:$0x1] %v735_v53  ;;  %v1631_v47 = vshrl.u32 %v1430_v48, 16  ;;  %v1741_v55 = vld [vmem:[#allocation2 + $0x80] sm:$0xe]  ;;  %v2900_v21 = vcombine.low %v1053_v9, %v1067_v15  ;;  %v2924_v49 = vcombine.low %v1251_v59, %v1255_v33 }
  0xd6   :  { %v1628_v23 = vrot.slane %v1626_v13, 5  ;;  %v1634_v43 = vshll.u32 %v1430_v48, 16  ;;  %v1640_v24 = vshll.u32 %v1431_v8, 16  ;;  %v1742_v36 = vld [vmem:[#allocation2 + $0x84] sm:$0x1]  ;;  %v2954_v57 = vrot.slane %v1741_v55, 9 }
  0xd7   :  { %v1623_v44 = vor.u32 %v1622_v46, %v1619_v54  ;;  %v1633_v6 = vrot.slane %v1631_v47, 4  ;;  %v1833_v27 = vrot.slane %v1742_v36, 5  ;;  %v1743_v58 = vld [vmem:[#allocation2 + $0x88] sm:$0xe]  ;;  %1106 = vrot.lane.b32.xlu1 %v2900_v21, %s3250_s20  ;;  %v1744_v0 = vld [vmem:[#allocation2 + $0x8c] sm:$0x1]  ;;  %v1615_v13 = vsel %vm3549_vm12, %v4017_v34, %v4015_v2  ;;  %v4081_v47 = vpop.permute.xlu0 %2270 }
  0xd8   :  { %v1636_v63 = vrot.slane %v1634_v43, 5  ;;  %v2242_v40 = vshll.u32 %v4048_v31, 16  ;;  %v4071_v48 = vrot.slane %v1640_v24, 5  ;;  %v4522_v8 = vrot.slane %v3997_v16, 5  ;;  %4524 = vst [vmem:[#allocation19_spill] sm:$0xff] %v4081_v47  ;;  %1117 = vst.msk [vmem:[#allocation3] sm:$0xff] %vm1116_vm15, %v4006_v22 }
  0xd9   :  { %v1624_v53 = vrot.slane %v1623_v44, 4  ;;  %v4523_v15 = vrot.slane %v3990_v28, 9  ;;  %v1432_v59 = vld [vmem:[#allocation2 + $0x90] sm:$0xf]  ;;  %v2955_v31 = vrot.slane %v1743_v58, 9  ;;  %v1837_v54 = vrot.slane %v1744_v0, 5 }
  0xda   :  { %v1637_v33 = vor.u32 %v1636_v63, %v1633_v6  ;;  %v2239_v46 = vor.u32 %v4042_v32, %v4020_v1  ;;  %v3222_v2 = vld [vmem:[#allocation2 + $0x88] ss:$8 sps:$4 sm:$0xff]   ;;  %v1645_v55 = vshrl.u32 %v1432_v59, 16  ;;  %v1648_v16 = vshll.u32 %v1432_v59, 16  ;;  %v2327_v1 = vld [vmem:[#allocation2 + $0x80] sm:$0xe] }
  0xdb   :  { %v1830_v43 = vsel %vm3432_vm9, %v4523_v15, %v4522_v8  ;;  %v1629_v34 = vsel %vm3549_vm12, %v1624_v53, %v1628_v23  ;;  %v1834_v28 = vsel %vm3432_vm9, %v2954_v57, %v1833_v27  ;;  %v1745_v21 = vld [vmem:[#allocation2 + $0x90] sm:$0xe]  ;;  %1294 = vrot.lane.b32.xlu1 %v2924_v49, %s3248_s18  ;;  %v4090_v53 = vpop.permute.xlu1 %1096  ;;  %v4095_v27 = vsel %vm3432_vm9, %v2955_v31, %v1837_v54  ;;  %v2014_v49 = vld [vmem:[#allocation2 + $0x80] sm:$0xf]  ;;  %v4101_v59 = vpop.permute.xlu0 %1373  ;;  %v2330_v26 = vld [vmem:[#allocation2 + $0x8c] sm:$0x1] }
  0xdc   :  { %v2939_v24 = vcombine.low %v1615_v13, %v1629_v34  ;;  %v1433_v58 = vld [vmem:[#allocation2 + $0x94] sm:$0x1]  ;;  %v1638_v36 = vrot.slane %v1637_v33, 4  ;;  %v2956_v6 = vrot.slane %v1745_v21, 9  ;;  %v1647_v32 = vrot.slane %v1645_v55, 4  ;;  %1305 = vst.msk [vmem:[#allocation3] sm:$0xff] %vm1304_vm0, %v3938_v61 }
  0xdd   :  { %v1746_v44 = vld [vmem:[#allocation2 + $0x94] sm:$0x1]  ;;  %v1650_v63 = vrot.slane %v1648_v16, 5  ;;  %v1654_v0 = vshll.u32 %v1433_v58, 16  ;;  %v2963_v57 = vcombine.low %v1830_v43, %v1834_v28  ;;  %v2015_v13 = vld [vmem:[#allocation2 + $0x84] sm:$0x1] }
  0xde   :  { %v1841_v23 = vrot.slane %v1746_v44, 5  ;;  %1694 = vrot.lane.b32.xlu0 %v2939_v24, %s3251_s21  ;;  %v4097_v8 = vrot.slane %v2239_v46, 4  ;;  %v4099_v15 = vrot.slane %v2242_v40, 5  ;;  %v1643_v33 = vsel %vm3549_vm12, %v1638_v36, %v4071_v48  ;;  %v2016_v16 = vld [vmem:[#allocation2 + $0x88] sm:$0xf]  ;;  %v4529_v14 = vld [vmem:[#allocation4_spill] sm:$0xff] }
  0xdf   :  { %v1651_v34 = vor.u32 %v1650_v63, %v1647_v32  ;;  %v1656_v55 = vrot.slane %v1654_v0, 5  ;;  %v2017_v43 = vld [vmem:[#allocation2 + $0x8c] sm:$0x1]  ;;  %v2191_v28 = vshrl.u32 %v2014_v49, 16  ;;  %1383 = vrot.lane.b32.xlu1 %v3222_v2, %s3245_s13  ;;  %v3223_v54 = vld [vmem:[#allocation2 + $0x80] ss:$8 sps:$4 sm:$0xff]   ;;  %v4112_v56 = vpop.permute.xlu0 %1686 }
  0xe0   :  { %v4109_v31 = vsel %vm3432_vm9, %v2956_v6, %v1841_v23  ;;  %v2194_v40 = vshll.u32 %v2014_v49, 16  ;;  %v2200_v46 = vshll.u32 %v2015_v13, 16  ;;  %v2205_v21 = vshrl.u32 %v2016_v16, 16  ;;  %v2018_v24 = vld [vmem:[#allocation2 + $0x90] sm:$0xf]  ;;  %v3241_v38 = vld [vmem:[%s4482_s2 + $0x8] sm:$0xff]  }
  0xe1   :  { %v1652_v58 = vrot.slane %v1651_v34, 4  ;;  %v2193_v44 = vrot.slane %v2191_v28, 4  ;;  %v2208_v9 = vshll.u32 %v2016_v16, 16  ;;  %v2214_v48 = vshll.u32 %v2017_v43, 16  ;;  %v2019_v36 = vld [vmem:[#allocation2 + $0x94] sm:$0x1]  ;;  %v4118_v16 = vpop.permute.xlu1 %1098 }
  0xe2   :  { %1879 = vrot.lane.b32.xlu0 %v2963_v57, %s3247_s17  ;;  %v2196_v32 = vrot.slane %v2194_v40, 5  ;;  %v2202_v63 = vrot.slane %v2200_v46, 5  ;;  %v2207_v0 = vrot.slane %v2205_v21, 4  ;;  %v2219_v2 = vshrl.u32 %v2018_v24, 16  ;;  %v2328_v34 = vld [vmem:[#allocation2 + $0x84] sm:$0x1] }
  0xe3   :  { %v1657_v6 = vsel %vm3549_vm12, %v1652_v58, %v1656_v55  ;;  %v2210_v23 = vrot.slane %v2208_v9, 5  ;;  %v2216_v49 = vrot.slane %v2214_v48, 5  ;;  %v2222_v13 = vshll.u32 %v2018_v24, 16  ;;  %v4116_v28 = vld [vmem:[#allocation2 + $0x9c] sm:$0x1]  ;;  %1120 = vst.msk [vmem:[#allocation3 + $0x18] sm:$0xff] %vm1116_vm15, %v4118_v16 }
  0xe4   :  { %v2940_v43 = vcombine.low %v1643_v33, %v1657_v6  ;;  %v2197_v57 = vor.u32 %v2196_v32, %v2193_v44  ;;  %v2221_v40 = vrot.slane %v2219_v2, 4  ;;  %v2228_v46 = vshll.u32 %v2019_v36, 16  ;;  %v2329_v21 = vld [vmem:[#allocation2 + $0x88] sm:$0xe]  ;;  %v3227_v47 = vld [vmem:[#allocation2 + $0x10] ss:$8 sps:$4 sm:$0xff]   ;;  %v4126_v6 = vpop.permute.xlu0 %1871 }
  0xe5   :  { %v3229_v39 = vld [vmem:[#allocation2 + $0x20] ss:$8 sps:$4 sm:$0xff]   ;;  %v2211_v9 = vor.u32 %v2210_v23, %v2207_v0  ;;  %v2224_v58 = vrot.slane %v2222_v13, 5  ;;  %v2993_v24 = vrot.slane %v2327_v1, 9  ;;  %v2417_v48 = vrot.slane %v2328_v34, 5  ;;  %802 = vst.msk [vmem:[#allocation3 + $0x8] sm:$0xff] %vm120_vm14, %v3227_v47 }
  0xe6   :  { %v3235_v55 = vld [vmem:[#allocation2 + $0x60] ss:$8 sps:$4 sm:$0xff]   ;;  %1696 = vrot.lane.b32.xlu1 %v2940_v43, %s3251_s21  ;;  %v2964_v33 = vcombine.low %v4095_v27, %v4109_v31  ;;  %1969 = vrot.lane.b32.xlu0 %v3223_v54, %s3246_s16  ;;  %v2198_v44 = vrot.slane %v2197_v57, 4  ;;  %v2994_v36 = vrot.slane %v2329_v21, 9  ;;  %v2421_v32 = vrot.slane %v2330_v26, 5  ;;  %803 = vst.msk [vmem:[#allocation3 + $0x10] sm:$0xff] %vm120_vm14, %v3229_v39 }
  0xe7   :  { %v4124_v2 = vld [vmem:[#allocation2 + $0x90] sm:$0xe]  ;;  %v2212_v7 = vrot.slane %v2211_v9, 4  ;;  %v2225_v0 = vor.u32 %v2224_v58, %v2221_v40  ;;  %v2230_v23 = vrot.slane %v2228_v46, 5  ;;  %v2245_v1 = vsel %vm3549_vm12, %v4097_v8, %v4099_v15  ;;  %v4138_v26 = vld [vmem:[#allocation2 + $0x94] sm:$0x1]  ;;  %v1376_v15 = vpop.permute.xlu1 %1375 }
  0xe8   :  { %v2203_v27 = vsel %vm3549_vm12, %v2198_v44, %v2202_v63  ;;  %v4136_v31 = vsel %vm3432_vm9, %v2993_v24, %v2417_v48  ;;  %v2429_v54 = vrot.slane %v4116_v28, 5  ;;  %v147_v13 = vsel %vm145_vm13, %v4002_v11, 0  ;;  %v3237_v34 = vld [vmem:[#allocation2 + $0x80] ss:$8 sps:$4 sm:$0xff]   ;;  %v3224_v63 = vld [vmem:[#allocation2 + $0x90] ss:$8 sps:$4 sm:$0xff]  }
  0xe9   :  { %v2217_v43 = vsel %vm3549_vm12, %v2212_v7, %v2216_v49  ;;  %v2226_v57 = vrot.slane %v2225_v0, 4  ;;  %v4147_v8 = vsel %vm3432_vm9, %v2994_v36, %v2421_v32  ;;  %3144 = vmatpush3.bf16.msra.mxu0 %v147_v13  ;;  %v2995_v28 = vrot.slane %v4124_v2, 9  ;;  %v1962_v7 = vpop.permute.xlu0 %1961  ;;  %806 = vst.msk [vmem:[#allocation3 + $0x28] sm:$0xff] %vm120_vm14, %v3235_v55  ;;  %808 = vst.msk [vmem:[#allocation3 + $0x38] sm:$0xff] %vm120_vm14, %v3237_v34  ;;  %v3240_v39 = vld [vmem:[%s4482_s2] sm:$0xff]   ;;  %v4530_v61 = vld [vmem:[#allocation5_spill] sm:$0xff] }
  0xea   :  { %1881 = vrot.lane.b32.xlu1 %v2964_v33, %s3247_s17  ;;  %v2979_v40 = vcombine.low %v2203_v27, %v2217_v43  ;;  %v4525_v11 = vpack.c.bf16 %v3351_v42, %v3349_v41  ;;  %v2425_v42 = vrot.slane %v4138_v26, 5  ;;  %3161 = vmatprep.subr.bf16.mxu0 %v3240_v39  ;;  %vm1393_vm1 = vcmask 261312   ;;  %1118 = vst.msk [vmem:[#allocation3 + $0x8] sm:$0xff] %vm1116_vm15, %v4032_v45  ;;  %1119 = vst.msk [vmem:[#allocation3 + $0x10] sm:$0xff] %vm1116_vm15, %v4090_v53  ;;  %v4535_v22 = vld [vmem:[#allocation16_spill] sm:$0xff]  ;;  %v4537_v47 = vld [vmem:[#allocation7_spill] sm:$0xff] }
  0xeb   :  { %v2231_v41 = vsel %vm3549_vm12, %v2226_v57, %v2230_v23  ;;  %vm1706_vm2 = vcmask 326912   ;;  %v3003_v29 = vcombine.low %v4136_v31, %v4147_v8  ;;  %vm1891_vm3 = vcmask 392512   ;;  %1306 = vst.msk [vmem:[#allocation3 + $0x8] sm:$0xff] %vm1304_vm0, %v3960_v52  ;;  %1307 = vst.msk [vmem:[#allocation3 + $0x10] sm:$0xff] %vm1304_vm0, %v3968_v30  ;;  %v4531_v52 = vld [vmem:[#allocation14_spill] sm:$0xff]  ;;  %v4534_v30 = vld [vmem:[#allocation19_spill] sm:$0xff] }
  0xec   :  { %3145 = vmatprep.mubr.msk.bf16.mxu0 %vm120_vm14, %v4525_v11  ;;  %2282 = vrot.lane.b32.xlu0 %v2979_v40, %s3252_s22  ;;  %1308 = vst.msk [vmem:[#allocation3 + $0x18] sm:$0xff] %vm1304_vm0, %v4027_v25  ;;  %v4527_v45 = vpack.c.bf16 %v3428_v4, %v3374_v51  ;;  %vm1981_vm4 = vcmask 458112   ;;  %v2980_v37 = vcombine.low %v2231_v41, %v2245_v1  ;;  %vm2294_vm6 = vcmask 523712   ;;  %v3242_v25 = vld [vmem:[%s4482_s2 + $0x10] sm:$0xff]   ;;  %v3243_v49 = vld [vmem:[%s4482_s2 + $0x18] sm:$0xff]   ;;  %v4540_v9 = vld [vmem:[#allocation9_spill] sm:$0xff] }
  0xed   :  { %3146 = vmatmul.mubr.msk.bf16.vlgmr.msra.gmra.mrb[0].mxu0 %vm120_vm14, %v4526_v60  ;;  %1395 = vst.msk [vmem:[#allocation3 + $0x8] sm:$0xff] %vm1393_vm1, %v3895_v17  ;;  %1394 = vst.msk [vmem:[#allocation3] sm:$0xff] %vm1393_vm1, %v3854_v18  ;;  %v2558_v51 = vsel %vm145_vm13, %v4011_v19, 0  ;;  %v2275_v4 = vpop.permute.xlu0 %2274  ;;  %v2426_v18 = vsel %vm3432_vm9, %v2995_v28, %v2425_v42  ;;  %v4528_v10 = vrot.slane %v4050_v62, 9  ;;  %vm2479_vm7 = vcmask 589312   ;;  %v4538_v53 = vld [vmem:[#allocation6_spill] sm:$0xff] }
  0xee   :  { %3149 = vmatprep.mubr.msk.bf16.mxu0 %vm120_vm14, %v4527_v45  ;;  %3162 = vmatpush3.bf16.msra.mxu0 %v3240_v39  ;;  %1396 = vst.msk [vmem:[#allocation3 + $0x10] sm:$0xff] %vm1393_vm1, %v4101_v59  ;;  %1397 = vst.msk [vmem:[#allocation3 + $0x18] sm:$0xff] %vm1393_vm1, %v1376_v15  ;;  %v114_v12 = vpack.c.bf16 %v4530_v61, %v4529_v14  ;;  %v4539_v59 = vpack.c.bf16 %v4537_v47, %v4538_v53  ;;  %vm2532_vm8 = vcmask 588800   ;;  %v4541_v58 = vld [vmem:[#allocation8_spill] sm:$0xff]  ;;  %v4543_v48 = vld [vmem:[#allocation11_spill] sm:$0xff] }
  0xef   :  { %1971 = vrot.lane.b32.xlu1 %v3224_v63, %s3246_s16  ;;  %1708 = vst.msk [vmem:[#allocation3 + $0x8] sm:$0xff] %vm1706_vm2, %v4037_v50  ;;  %3163 = vmatprep.subr.bf16.mxu0 %v3241_v38  ;;  %1707 = vst.msk [vmem:[#allocation3] sm:$0xff] %vm1706_vm2, %v4058_v35  ;;  %v2430_v17 = vsel %vm3432_vm9, %v4528_v10, %v2429_v54  ;;  %v4536_v50 = vld [vmem:[#allocation15_spill] sm:$0xff]  ;;  %v4542_v24 = vpack.c.bf16 %v4540_v9, %v4541_v58  ;;  %v4544_v33 = vld [vmem:[#allocation10_spill] sm:$0xff]  ;;  %vm2829_vm9 = vcmask 58368  }
  0xf0   :  { %1709 = vst.msk [vmem:[#allocation3 + $0x10] sm:$0xff] %vm1706_vm2, %v4112_v56  ;;  %v1689_v56 = vpop.permute.xlu1 %1688  ;;  %3196 = vmatpush3.bf16.msra.mxu1 %v2558_v51  ;;  %2467 = vrot.lane.b32.xlu0 %v3003_v29, %s3249_s19  ;;  %v4545_v44 = vpack.c.bf16 %v4543_v48, %v4544_v33  ;;  %v4546_v36 = vld [vmem:[#allocation17_spill] sm:$0xff] }
  0xf1   :  { %1893 = vst.msk [vmem:[#allocation3 + $0x8] sm:$0xff] %vm1891_vm3, %v3992_v20  ;;  %1892 = vst.msk [vmem:[#allocation3] sm:$0xff] %vm1891_vm3, %v3898_v3  ;;  %v4533_v3 = vld [vmem:[#allocation18_spill] sm:$0xff]  ;;  %v3004_v20 = vcombine.low %v2426_v18, %v2430_v17  ;;  %v2460_v35 = vpop.permute.xlu0 %2459  ;;  %v4547_v32 = vld [vmem:[#allocation13_spill] sm:$0xff] }
  0xf2   :  { %1894 = vst.msk [vmem:[#allocation3 + $0x10] sm:$0xff] %vm1891_vm3, %v4126_v6  ;;  %3164 = vmatpush3.bf16.msra.mxu0 %v3241_v38  ;;  %v4548_v2 = vpack.c.bf16 %v4546_v36, %v4547_v32 }
  0xf3   :  { %1983 = vst.msk [vmem:[#allocation3 + $0x8] sm:$0xff] %vm1981_vm4, %v4531_v52  ;;  %1982 = vst.msk [vmem:[#allocation3] sm:$0xff] %vm1981_vm4, %v4532_v5  ;;  %2284 = vrot.lane.b32.xlu1 %v2980_v37, %s3252_s22  ;;  %3165 = vmatprep.subr.bf16.mxu0 %v3242_v25 }
  0xf4   :  { %1710 = vst.msk [vmem:[#allocation3 + $0x18] sm:$0xff] %vm1706_vm2, %v1689_v56  ;;  %v1874_v62 = vpop.permute.xlu1 %1873 }
  0xf5   :  { %1984 = vst.msk [vmem:[#allocation3 + $0x10] sm:$0xff] %vm1981_vm4, %v1962_v7  ;;  %3150 = vmatmul.mubr.msk.bf16.gmra.mrb[4].mxu0 %vm120_vm14, %v114_v12  ;;  %v2462_v46 = vpop.permute.xlu0 %2461 }
  0xf6   :  { %2296 = vst.msk [vmem:[#allocation3 + $0x8] sm:$0xff] %vm2294_vm6, %v4533_v3  ;;  %2295 = vst.msk [vmem:[#allocation3] sm:$0xff] %vm2294_vm6, %v4534_v30  ;;  %3153 = vmatprep.mubr.msk.bf16.mxu0 %vm120_vm14, %v4539_v59  ;;  %3166 = vmatpush3.bf16.msra.mxu0 %v3242_v25 }
  0xf7   :  { %2297 = vst.msk [vmem:[#allocation3 + $0x10] sm:$0xff] %vm2294_vm6, %v2275_v4  ;;  %2469 = vrot.lane.b32.xlu1 %v3004_v20, %s3249_s19  ;;  %3167 = vmatprep.subr.bf16.mxu0 %v3243_v49 }
  0xf8   :  { %2481 = vst.msk [vmem:[#allocation3 + $0x8] sm:$0xff] %vm2479_vm7, %v4535_v22  ;;  %2480 = vst.msk [vmem:[#allocation3] sm:$0xff] %vm2479_vm7, %v4536_v50  ;;  %v1964_v16 = vpop.permute.xlu1 %1963 }
  0xf9   :  { %1895 = vst.msk [vmem:[#allocation3 + $0x18] sm:$0xff] %vm1891_vm3, %v1874_v62 }
  0xfa   :  { %2482 = vst.msk [vmem:[#allocation3 + $0x10] sm:$0xff] %vm2479_vm7, %v2460_v35  ;;  %3168 = vmatpush3.bf16.msra.mxu0 %v3243_v49 }
  0xfb   :  { %1985 = vst.msk [vmem:[#allocation3 + $0x18] sm:$0xff] %vm1981_vm4, %v1964_v16  ;;  %3198 = vmatprep.subr.msk.bf16.mxu0 %vm145_vm13, %v4011_v19 }
  0xfc   :  { %v2277_v21 = vpop.permute.xlu1 %2276 }
  0xfd   :  { %3154 = vmatmul.mubr.msk.bf16.gmra.mrb[8].mxu0 %vm120_vm14, %v4542_v24  ;;  %2298 = vst.msk [vmem:[#allocation3 + $0x18] sm:$0xff] %vm2294_vm6, %v2277_v21 }
  0xfe   :  { %3157 = vmatprep.mubr.msk.bf16.mxu0 %vm120_vm14, %v4545_v44  ;;  %3170 = vmatpush3.bf16.msra.mxu0 %v2558_v51  ;;  %2483 = vst.msk [vmem:[#allocation3 + $0x18] sm:$0xff] %vm2479_vm7, %v2462_v46 }
  0xff   :  { %v2488_v19 = vld [vmem:[#allocation3] sm:$0xff]  ;;  %v2489_v23 = vld [vmem:[#allocation3 + $0x8] sm:$0xff] }
 0x101   :  { %v2490_v55 = vld [vmem:[#allocation3 + $0x10] sm:$0xff] }
 0x102   :  { %3175 = vmatprep.mubr.msk.bf16.mxu1 %vm2532_vm8, %v2490_v55 }
 0x105   :  { %3158 = vmatmul.mubr.msk.bf16.gmra.mrb[12].mxu0 %vm120_vm14, %v4548_v2  ;;  %v2491_v6 = vld [vmem:[#allocation3 + $0x18] sm:$0xff] }
 0x106   :  { %3171 = vmatprep.mubr.msk.bf16.mxu0 %vm2532_vm8, %v2488_v19  ;;  %3176 = vmatmul.mubr.msk.bf16.vlgmr.msra.gmra.mrb[0].mxu1 %vm2532_vm8, %v2491_v6 }
 0x107   :  { %v1289_v0 = vpop.permute.xlu0 %1288 }
 0x10a   :  { %v1101_v1 = vpop.permute.xlu1 %1100 }
 0x10b   :  { %1121 = vst.msk [vmem:[#allocation3 + $0x20] sm:$0xff] %vm1116_vm15, %v1101_v1 }
 0x10c   :  { %1309 = vst.msk [vmem:[#allocation3 + $0x20] sm:$0xff] %vm1304_vm0, %v1289_v0  ;;  %v1378_v27 = vpop.permute.xlu0 %1377 }
 0x10d   :  { %3172 = vmatmul.mubr.msk.bf16.vlgmr.msra.gmra.mrb[16].mxu0 %vm2532_vm8, %v2489_v23  ;;  %1398 = vst.msk [vmem:[#allocation3 + $0x20] sm:$0xff] %vm1393_vm1, %v1378_v27 }
 0x113   :  { %v1103_v31 = vpop.permute.xlu1 %1102 }
 0x114   :  { %1122 = vst.msk [vmem:[#allocation3 + $0x28] sm:$0xff] %vm1116_vm15, %v1103_v31 }
 0x117   :  { %v1291_v26 = vpop.permute.xlu1 %1290 }
 0x118   :  { %1310 = vst.msk [vmem:[#allocation3 + $0x28] sm:$0xff] %vm1304_vm0, %v1291_v26 }
 0x119   :  { %v1691_v54 = vpop.permute.xlu0 %1690 }
 0x11a   :  { %1711 = vst.msk [vmem:[#allocation3 + $0x20] sm:$0xff] %vm1706_vm2, %v1691_v54 }
 0x11b   :  { %v1380_v13 = vpop.permute.xlu1 %1379 }
 0x11c   :  { %1399 = vst.msk [vmem:[#allocation3 + $0x28] sm:$0xff] %vm1393_vm1, %v1380_v13 }
 0x11d   :  { %v1876_v34 = vpop.permute.xlu0 %1875 }
 0x11e   :  { %1896 = vst.msk [vmem:[#allocation3 + $0x20] sm:$0xff] %vm1891_vm3, %v1876_v34 }
 0x11f   :  { %v1693_v43 = vpop.permute.xlu1 %1692 }
 0x120   :  { %1712 = vst.msk [vmem:[#allocation3 + $0x28] sm:$0xff] %vm1706_vm2, %v1693_v43 }
 0x121   :  { %v1966_v57 = vpop.permute.xlu0 %1965 }
 0x122   :  { %1986 = vst.msk [vmem:[#allocation3 + $0x20] sm:$0xff] %vm1981_vm4, %v1966_v57 }
 0x123   :  { %v1878_v8 = vpop.permute.xlu1 %1877 }
 0x124   :  { %1897 = vst.msk [vmem:[#allocation3 + $0x28] sm:$0xff] %vm1891_vm3, %v1878_v8 }
 0x127   :  { %v1968_v15 = vpop.permute.xlu1 %1967  ;;  %v2279_v63 = vpop.permute.xlu0 %2278 }
 0x128   :  { %1987 = vst.msk [vmem:[#allocation3 + $0x28] sm:$0xff] %vm1981_vm4, %v1968_v15 }
 0x129   :  { %2299 = vst.msk [vmem:[#allocation3 + $0x20] sm:$0xff] %vm2294_vm6, %v2279_v63 }
 0x12b   :  { %v2464_v40 = vpop.permute.xlu0 %2463 }
 0x12c   :  { %2484 = vst.msk [vmem:[#allocation3 + $0x20] sm:$0xff] %vm2479_vm7, %v2464_v40 }
 0x130   :  { %v2466_v28 = vpop.permute.xlu0 %2465 }
 0x132   :  { %v2281_v11 = vpop.permute.xlu1 %2280 }
 0x133   :  { %2300 = vst.msk [vmem:[#allocation3 + $0x28] sm:$0xff] %vm2294_vm6, %v2281_v11  ;;  %v2492_v7 = vld [vmem:[#allocation3 + $0x20] sm:$0xff] }
 0x134   :  { %2485 = vst.msk [vmem:[#allocation3 + $0x28] sm:$0xff] %vm2479_vm7, %v2466_v28  ;;  %3179 = vmatprep.mubr.msk.bf16.mxu1 %vm2532_vm8, %v2492_v7 }
 0x136   :  { %v1105_v41 = vpop.permute.xlu1 %1104  ;;  %v1293_v42 = vpop.permute.xlu0 %1292 }
 0x137   :  { %1123 = vst.msk [vmem:[#allocation3 + $0x30] sm:$0xff] %vm1116_vm15, %v1105_v41 }
 0x138   :  { %1311 = vst.msk [vmem:[#allocation3 + $0x30] sm:$0xff] %vm1304_vm0, %v1293_v42 }
 0x13b   :  { %v2493_v39 = vld [vmem:[#allocation3 + $0x28] sm:$0xff] }
 0x13c   :  { %3180 = vmatmul.mubr.msk.bf16.gmra.mrb[4].mxu1 %vm2532_vm8, %v2493_v39 }
 0x142   :  { %v1382_v29 = vpop.permute.xlu0 %1381 }
 0x143   :  { %1400 = vst.msk [vmem:[#allocation3 + $0x30] sm:$0xff] %vm1393_vm1, %v1382_v29 }
 0x149   :  { %v1107_v60 = vpop.permute.xlu1 %1106 }
 0x14a   :  { %1124 = vst.msk [vmem:[#allocation3 + $0x38] sm:$0xff] %vm1116_vm15, %v1107_v60 }
 0x14d   :  { %v1295_v45 = vpop.permute.xlu1 %1294 }
 0x14e   :  { %1312 = vst.msk [vmem:[#allocation3 + $0x38] sm:$0xff] %vm1304_vm0, %v1295_v45 }
 0x150   :  { %v1695_v37 = vpop.permute.xlu0 %1694 }
 0x151   :  { %1713 = vst.msk [vmem:[#allocation3 + $0x30] sm:$0xff] %vm1706_vm2, %v1695_v37  ;;  %v1384_v38 = vpop.permute.xlu1 %1383 }
 0x152   :  { %1401 = vst.msk [vmem:[#allocation3 + $0x38] sm:$0xff] %vm1393_vm1, %v1384_v38 }
 0x154   :  { %v1880_v51 = vpop.permute.xlu0 %1879 }
 0x155   :  { %1898 = vst.msk [vmem:[#allocation3 + $0x30] sm:$0xff] %vm1891_vm3, %v1880_v51 }
 0x158   :  { %v1697_v4 = vpop.permute.xlu1 %1696  ;;  %v1970_v18 = vpop.permute.xlu0 %1969 }
 0x159   :  { %1714 = vst.msk [vmem:[#allocation3 + $0x38] sm:$0xff] %vm1706_vm2, %v1697_v4 }
 0x15a   :  { %1988 = vst.msk [vmem:[#allocation3 + $0x30] sm:$0xff] %vm1981_vm4, %v1970_v18 }
 0x15c   :  { %v1882_v10 = vpop.permute.xlu1 %1881 }
 0x15d   :  { %1899 = vst.msk [vmem:[#allocation3 + $0x38] sm:$0xff] %vm1891_vm3, %v1882_v10 }
 0x15e   :  { %v2283_v17 = vpop.permute.xlu0 %2282 }
 0x15f   :  { %2301 = vst.msk [vmem:[#allocation3 + $0x30] sm:$0xff] %vm2294_vm6, %v2283_v17 }
 0x161   :  { %v1972_v56 = vpop.permute.xlu1 %1971 }
 0x162   :  { %1989 = vst.msk [vmem:[#allocation3 + $0x38] sm:$0xff] %vm1981_vm4, %v1972_v56  ;;  %v2468_v14 = vpop.permute.xlu0 %2467 }
 0x163   :  { %2486 = vst.msk [vmem:[#allocation3 + $0x30] sm:$0xff] %vm2479_vm7, %v2468_v14 }
 0x165   :  { %v2285_v61 = vpop.permute.xlu1 %2284 }
 0x166   :  { %2302 = vst.msk [vmem:[#allocation3 + $0x38] sm:$0xff] %vm2294_vm6, %v2285_v61 }
 0x169   :  { %v2470_v12 = vpop.permute.xlu1 %2469 }
 0x16a   :  { %2487 = vst.msk [vmem:[#allocation3 + $0x38] sm:$0xff] %vm2479_vm7, %v2470_v12  ;;  %v2494_v52 = vld [vmem:[#allocation3 + $0x30] sm:$0xff] }
 0x16b   :  { %3183 = vmatprep.mubr.msk.bf16.mxu1 %vm2532_vm8, %v2494_v52 }
 0x171   :  { %v2495_v5 = vld [vmem:[#allocation3 + $0x38] sm:$0xff] }
 0x172   :  { %3184 = vmatmul.mubr.msk.bf16.gmra.mrb[8].mxu1 %vm2532_vm8, %v2495_v5 }
 0x1c0   :  { %v3147_v3 = vpop.f32.mrb[0].mxu0 }
 0x1c1   :  { %v3036_v30 = vpack.c.bf16 %v3147_v3, %v3147_v3  ;;  %v183_v20 = vpop.f32.mrb[1].mxu0 }
 0x1c2   :  { %v3034_v22 = vpack.c.bf16 %v183_v20, %v183_v20  ;;  %v3148_v25 = vpop.f32.mrb[2].mxu0 }
 0x1c3   :  { %313 = vst.msk [vmem:[%s4484_s5 + $0x8] sm:$0xf] %vm310_vm5, %v3036_v30  ;;  %v3037_v50 = vpack.c.bf16 %v3148_v25, %v3148_v25  ;;  %v186_v62 = vpop.f32.mrb[3].mxu0 }
 0x1c4   :  { %311 = vst.msk [vmem:[%s4484_s5] sm:$0xf] %vm310_vm5, %v3034_v22  ;;  %v3035_v35 = vpack.c.bf16 %v186_v62, %v186_v62 }
 0x1c5   :  { %314 = vst.msk [vmem:[%s4484_s5 + $0xc] sm:$0xf] %vm310_vm5, %v3037_v50 }
 0x1c6   :  { %312 = vst.msk [vmem:[%s4484_s5 + $0x4] sm:$0xf] %vm310_vm5, %v3035_v35 }
 0x1c8   :  { %v3151_v47 = vpop.f32.mrb[4].mxu0 }
 0x1c9   :  { %v3040_v53 = vpack.c.bf16 %v3151_v47, %v3151_v47  ;;  %v199_v59 = vpop.f32.mrb[5].mxu0 }
 0x1ca   :  { %v3038_v49 = vpack.c.bf16 %v199_v59, %v199_v59  ;;  %v3152_v16 = vpop.f32.mrb[6].mxu0 }
 0x1cb   :  { %317 = vst.msk [vmem:[%s4484_s5 + $0x18] sm:$0xf] %vm310_vm5, %v3040_v53  ;;  %v3041_v46 = vpack.c.bf16 %v3152_v16, %v3152_v16  ;;  %v202_v21 = vpop.f32.mrb[7].mxu0 }
 0x1cc   :  { %315 = vst.msk [vmem:[%s4484_s5 + $0x10] sm:$0xf] %vm310_vm5, %v3038_v49  ;;  %v3039_v55 = vpack.c.bf16 %v202_v21, %v202_v21 }
 0x1cd   :  { %318 = vst.msk [vmem:[%s4484_s5 + $0x1c] sm:$0xf] %vm310_vm5, %v3041_v46 }
 0x1ce   :  { %316 = vst.msk [vmem:[%s4484_s5 + $0x14] sm:$0xf] %vm310_vm5, %v3039_v55 }
 0x1d0   :  { %v3155_v9 = vpop.f32.mrb[8].mxu0 }
 0x1d1   :  { %v3044_v58 = vpack.c.bf16 %v3155_v9, %v3155_v9  ;;  %v215_v24 = vpop.f32.mrb[9].mxu0 }
 0x1d2   :  { %v3042_v48 = vpack.c.bf16 %v215_v24, %v215_v24  ;;  %v3156_v33 = vpop.f32.mrb[10].mxu0 }
 0x1d3   :  { %321 = vst.msk [vmem:[%s4484_s5 + $0x28] sm:$0xf] %vm310_vm5, %v3044_v58  ;;  %v3045_v44 = vpack.c.bf16 %v3156_v33, %v3156_v33  ;;  %v218_v19 = vpop.f32.mrb[11].mxu0 }
 0x1d4   :  { %319 = vst.msk [vmem:[%s4484_s5 + $0x20] sm:$0xf] %vm310_vm5, %v3042_v48  ;;  %v3043_v36 = vpack.c.bf16 %v218_v19, %v218_v19 }
 0x1d5   :  { %322 = vst.msk [vmem:[%s4484_s5 + $0x2c] sm:$0xf] %vm310_vm5, %v3045_v44 }
 0x1d6   :  { %320 = vst.msk [vmem:[%s4484_s5 + $0x24] sm:$0xf] %vm310_vm5, %v3043_v36 }
 0x1d8   :  { %v3159_v32 = vpop.f32.mrb[12].mxu0 }
 0x1d9   :  { %v3048_v2 = vpack.c.bf16 %v3159_v32, %v3159_v32  ;;  %v231_v6 = vpop.f32.mrb[13].mxu0  ;;  %v3177_v0 = vpop.f32.mrb[0].mxu1 }
 0x1da   :  { %v3046_v23 = vpack.c.bf16 %v231_v6, %v231_v6  ;;  %v3160_v1 = vpop.f32.mrb[14].mxu0  ;;  %v3072_v27 = vpack.c.bf16 %v3177_v0, %v3177_v0  ;;  %v2610_v31 = vpop.f32.mrb[1].mxu1  ;;  %v2780_v47 = vmul.f32 %v3177_v0, %v3177_v0  ;;  %v2748_v16 = vsel %vm120_vm14, %v3177_v0, 0.0 }
 0x1db   :  { %325 = vst.msk [vmem:[%s4484_s5 + $0x38] sm:$0xf] %vm310_vm5, %v3048_v2  ;;  %v3049_v26 = vpack.c.bf16 %v3160_v1, %v3160_v1  ;;  %v234_v54 = vpop.f32.mrb[15].mxu0  ;;  %v3070_v13 = vpack.c.bf16 %v2610_v31, %v2610_v31  ;;  %v3178_v34 = vpop.f32.mrb[2].mxu1  ;;  %v2778_v4 = vmul.f32 %v2610_v31, %v2610_v31  ;;  %v2744_v5 = vsel %vm120_vm14, %v2610_v31, 0.0 }
 0x1dc   :  { %323 = vst.msk [vmem:[%s4484_s5 + $0x30] sm:$0xf] %vm310_vm5, %v3046_v23  ;;  %v3047_v43 = vpack.c.bf16 %v234_v54, %v234_v54  ;;  %2727 = vst.msk [vmem:[%s4485_s4 + $0x18] sm:$0xf] %vm310_vm5, %v3072_v27  ;;  %v3073_v57 = vpack.c.bf16 %v3178_v34, %v3178_v34  ;;  %v2613_v8 = vpop.f32.mrb[3].mxu1  ;;  %v2781_v46 = vmul.f32 %v3178_v34, %v3178_v34  ;;  %v2801_v9 = vsel %vm120_vm14, %v2780_v47, 0.0 }
 0x1dd   :  { %326 = vst.msk [vmem:[%s4484_s5 + $0x3c] sm:$0xf] %vm310_vm5, %v3049_v26  ;;  %2725 = vst.msk [vmem:[%s4485_s4 + $0x10] sm:$0xf] %vm310_vm5, %v3070_v13  ;;  %v3071_v15 = vpack.c.bf16 %v2613_v8, %v2613_v8  ;;  %v2779_v3 = vmul.f32 %v2613_v8, %v2613_v8  ;;  %v2797_v25 = vsel %vm120_vm14, %v2778_v4, 0.0  ;;  %v2746_v50 = vsel %vm120_vm14, %v2613_v8, 0.0 }
 0x1de   :  { %324 = vst.msk [vmem:[%s4484_s5 + $0x34] sm:$0xf] %vm310_vm5, %v3047_v43  ;;  %2728 = vst.msk [vmem:[%s4485_s4 + $0x1c] sm:$0xf] %vm310_vm5, %v3073_v57  ;;  %v2750_v58 = vsel %vm120_vm14, %v3178_v34, 0.0  ;;  %v2803_v33 = vsel %vm120_vm14, %v2781_v46, 0.0 }
 0x1df   :  { %2726 = vst.msk [vmem:[%s4485_s4 + $0x14] sm:$0xf] %vm310_vm5, %v3071_v15  ;;  %v2799_v53 = vsel %vm120_vm14, %v2779_v3, 0.0 }
 0x1e0   :  { %v3173_v63 = vpop.f32.mrb[16].mxu0 }
 0x1e1   :  { %v3068_v40 = vpack.c.bf16 %v3173_v63, %v3173_v63  ;;  %v2594_v28 = vpop.f32.mrb[17].mxu0  ;;  %v2776_v42 = vmul.f32 %v3173_v63, %v3173_v63  ;;  %v2740_v18 = vsel %vm120_vm14, %v3173_v63, 0.0 }
 0x1e2   :  { %v3066_v11 = vpack.c.bf16 %v2594_v28, %v2594_v28  ;;  %v2774_v7 = vmul.f32 %v2594_v28, %v2594_v28  ;;  %v3174_v41 = vpop.f32.mrb[18].mxu0  ;;  %v2737_v60 = vsel %vm120_vm14, %v2594_v28, 0.0 }
 0x1e3   :  { %2723 = vst.msk [vmem:[%s4485_s4 + $0x8] sm:$0xf] %vm310_vm5, %v3068_v40  ;;  %v3069_v39 = vpack.c.bf16 %v3174_v41, %v3174_v41  ;;  %v2597_v29 = vpop.f32.mrb[19].mxu0  ;;  %v2777_v17 = vmul.f32 %v3174_v41, %v3174_v41  ;;  %v2793_v12 = vsel %vm120_vm14, %v2776_v42, 0.0  ;;  %v2742_v52 = vsel %vm120_vm14, %v3174_v41, 0.0 }
 0x1e4   :  { %2721 = vst.msk [vmem:[%s4485_s4] sm:$0xf] %vm310_vm5, %v3066_v11  ;;  %v3067_v45 = vpack.c.bf16 %v2597_v29, %v2597_v29  ;;  %v2738_v37 = vsel %vm120_vm14, %v2597_v29, 0.0  ;;  %v2775_v38 = vmul.f32 %v2597_v29, %v2597_v29  ;;  %v2790_v10 = vsel %vm120_vm14, %v2774_v7, 0.0 }
 0x1e5   :  { %2724 = vst.msk [vmem:[%s4485_s4 + $0xc] sm:$0xf] %vm310_vm5, %v3069_v39  ;;  %v2739_v51 = vadd.f32 %v2738_v37, %v2737_v60  ;;  %v2795_v22 = vsel %vm120_vm14, %v2777_v17, 0.0 }
 0x1e6   :  { %2722 = vst.msk [vmem:[%s4485_s4 + $0x4] sm:$0xf] %vm310_vm5, %v3067_v45  ;;  %v2791_v56 = vsel %vm120_vm14, %v2775_v38, 0.0 }
 0x1e7   :  { %v2741_v14 = vadd.f32 %v2740_v18, %v2739_v51  ;;  %v2792_v61 = vadd.f32 %v2791_v56, %v2790_v10 }
 0x1e9   :  { %v2794_v30 = vadd.f32 %v2793_v12, %v2792_v61  ;;  %v2743_v20 = vadd.f32 %v2742_v52, %v2741_v14 }
 0x1eb   :  { %v2745_v62 = vadd.f32 %v2744_v5, %v2743_v20  ;;  %v2796_v35 = vadd.f32 %v2795_v22, %v2794_v30 }
 0x1ed   :  { %v2798_v59 = vadd.f32 %v2797_v25, %v2796_v35  ;;  %v2747_v49 = vadd.f32 %v2746_v50, %v2745_v62 }
 0x1ef   :  { %v2749_v21 = vadd.f32 %v2748_v16, %v2747_v49  ;;  %v2800_v55 = vadd.f32 %v2799_v53, %v2798_v59 }
 0x1f1   :  { %v2802_v24 = vadd.f32 %v2801_v9, %v2800_v55  ;;  %v2751_v48 = vadd.f32 %v2750_v58, %v2749_v21 }
 0x1f3   :  { %v2804_v44 = vadd.f32 %v2803_v33, %v2802_v24 }
 0x20f   :  { %v3181_v19 = vpop.f32.mrb[4].mxu1 }
 0x210   :  { %v3076_v36 = vpack.c.bf16 %v3181_v19, %v3181_v19  ;;  %v2626_v32 = vpop.f32.mrb[5].mxu1  ;;  %v2784_v34 = vmul.f32 %v3181_v19, %v3181_v19  ;;  %v2756_v15 = vsel %vm120_vm14, %v3181_v19, 0.0 }
 0x211   :  { %v3074_v2 = vpack.c.bf16 %v2626_v32, %v2626_v32  ;;  %v2752_v6 = vsel %vm120_vm14, %v2626_v32, 0.0  ;;  %v2782_v23 = vmul.f32 %v2626_v32, %v2626_v32  ;;  %v3182_v0 = vpop.f32.mrb[6].mxu1 }
 0x212   :  { %2731 = vst.msk [vmem:[%s4485_s4 + $0x28] sm:$0xf] %vm310_vm5, %v3076_v36  ;;  %v2753_v1 = vadd.f32 %v2752_v6, %v2751_v48  ;;  %v3077_v27 = vpack.c.bf16 %v3182_v0, %v3182_v0  ;;  %v2629_v31 = vpop.f32.mrb[7].mxu1  ;;  %v2785_v63 = vmul.f32 %v3182_v0, %v3182_v0  ;;  %v2758_v11 = vsel %vm120_vm14, %v3182_v0, 0.0 }
 0x213   :  { %2729 = vst.msk [vmem:[%s4485_s4 + $0x20] sm:$0xf] %vm310_vm5, %v3074_v2  ;;  %v2805_v26 = vsel %vm120_vm14, %v2782_v23, 0.0  ;;  %v3075_v54 = vpack.c.bf16 %v2629_v31, %v2629_v31  ;;  %v2754_v13 = vsel %vm120_vm14, %v2629_v31, 0.0  ;;  %v2783_v8 = vmul.f32 %v2629_v31, %v2629_v31 }
 0x214   :  { %v2806_v43 = vadd.f32 %v2805_v26, %v2804_v44  ;;  %2732 = vst.msk [vmem:[%s4485_s4 + $0x2c] sm:$0xf] %vm310_vm5, %v3077_v27  ;;  %v2755_v57 = vadd.f32 %v2754_v13, %v2753_v1  ;;  %v2809_v41 = vsel %vm120_vm14, %v2784_v34, 0.0  ;;  %v2811_v29 = vsel %vm120_vm14, %v2785_v63, 0.0 }
 0x215   :  { %2730 = vst.msk [vmem:[%s4485_s4 + $0x24] sm:$0xf] %vm310_vm5, %v3075_v54  ;;  %v2807_v28 = vsel %vm120_vm14, %v2783_v8, 0.0 }
 0x216   :  { %v2757_v40 = vadd.f32 %v2756_v15, %v2755_v57  ;;  %v2808_v7 = vadd.f32 %v2807_v28, %v2806_v43 }
 0x218   :  { %v2759_v42 = vadd.f32 %v2758_v11, %v2757_v40  ;;  %v2810_v39 = vadd.f32 %v2809_v41, %v2808_v7 }
 0x21a   :  { %v2812_v60 = vadd.f32 %v2811_v29, %v2810_v39 }
 0x245   :  { %v3185_v45 = vpop.f32.mrb[8].mxu1 }
 0x246   :  { %v3080_v37 = vpack.c.bf16 %v3185_v45, %v3185_v45  ;;  %v2642_v38 = vpop.f32.mrb[9].mxu1  ;;  %v2788_v5 = vmul.f32 %v3185_v45, %v3185_v45  ;;  %v2764_v22 = vsel %vm120_vm14, %v3185_v45, 0.0 }
 0x247   :  { %v3078_v51 = vpack.c.bf16 %v2642_v38, %v2642_v38  ;;  %v2760_v4 = vsel %vm120_vm14, %v2642_v38, 0.0  ;;  %v2786_v18 = vmul.f32 %v2642_v38, %v2642_v38  ;;  %v3186_v10 = vpop.f32.mrb[10].mxu1 }
 0x248   :  { %2735 = vst.msk [vmem:[%s4485_s4 + $0x38] sm:$0xf] %vm310_vm5, %v3080_v37  ;;  %v2761_v17 = vadd.f32 %v2760_v4, %v2759_v42  ;;  %v3081_v56 = vpack.c.bf16 %v3186_v10, %v3186_v10  ;;  %v2645_v14 = vpop.f32.mrb[11].mxu1  ;;  %v2789_v25 = vmul.f32 %v3186_v10, %v3186_v10  ;;  %v2766_v35 = vsel %vm120_vm14, %v3186_v10, 0.0 }
 0x249   :  { %2733 = vst.msk [vmem:[%s4485_s4 + $0x30] sm:$0xf] %vm310_vm5, %v3078_v51  ;;  %v2813_v61 = vsel %vm120_vm14, %v2786_v18, 0.0  ;;  %v3079_v12 = vpack.c.bf16 %v2645_v14, %v2645_v14  ;;  %v2762_v52 = vsel %vm120_vm14, %v2645_v14, 0.0  ;;  %v2787_v20 = vmul.f32 %v2645_v14, %v2645_v14 }
 0x24a   :  { %v2814_v3 = vadd.f32 %v2813_v61, %v2812_v60  ;;  %2736 = vst.msk [vmem:[%s4485_s4 + $0x3c] sm:$0xf] %vm310_vm5, %v3081_v56  ;;  %v2763_v30 = vadd.f32 %v2762_v52, %v2761_v17  ;;  %v2817_v53 = vsel %vm120_vm14, %v2788_v5, 0.0  ;;  %v2819_v16 = vsel %vm120_vm14, %v2789_v25, 0.0 }
 0x24b   :  { %2734 = vst.msk [vmem:[%s4485_s4 + $0x34] sm:$0xf] %vm310_vm5, %v3079_v12  ;;  %v2815_v62 = vsel %vm120_vm14, %v2787_v20, 0.0  ;;  %vm2827_vm5 = vcmask 1040384  }
 0x24c   :  { %v2765_v50 = vadd.f32 %v2764_v22, %v2763_v30  ;;  %v2816_v47 = vadd.f32 %v2815_v62, %v2814_v3 }
 0x24e   :  { %v2767_v59 = vadd.f32 %v2766_v35, %v2765_v50  ;;  %v2818_v49 = vadd.f32 %v2817_v53, %v2816_v47 }
 0x250   :  { %v2768_v46 = vrot.slane %v2767_v59, 4  ;;  %v2820_v21 = vadd.f32 %v2819_v16, %v2818_v49 }
 0x252   :  { %v2769_v55 = vadd.f32 %v2768_v46, %v2767_v59  ;;  %v2821_v9 = vrot.slane %v2820_v21, 4 }
 0x254   :  { %v2770_v58 = vrot.slane %v2769_v55, 2  ;;  %v2822_v24 = vadd.f32 %v2821_v9, %v2820_v21 }
 0x256   :  { %v2771_v48 = vadd.f32 %v2770_v58, %v2769_v55  ;;  %v2823_v33 = vrot.slane %v2822_v24, 2 }
 0x258   :  { %v2772_v44 = vrot.slane %v2771_v48, 1  ;;  %v2824_v19 = vadd.f32 %v2823_v33, %v2822_v24 }
 0x25a   :  { %v2825_v36 = vrot.slane %v2824_v19, 1  ;;  %v2773_v32 = vadd.f32 %v2772_v44, %v2771_v48 }
 0x25c   :  { %v2826_v2 = vadd.f32 %v2825_v36, %v2824_v19 }
 0x25e   :  { %v2828_v6 = vsel %vm2827_vm5, %v2773_v32, %v2826_v2 }
 0x25f   :  { %2830 = vst.msk [vmem:[%s4486_s6] sm:$0x3] %vm2829_vm9, %v2828_v6 }

</bundles_post_ra>
